<compile_context>
chip_gen: v7x
topology: tpu7x:2x2x1
jax: 0.10.0
libtpu: 0.0.40
codegen_flags: <defaults>
</compile_context>

<pallas_src>
import jax
import jax.numpy as jnp
from jax import lax
from jax.experimental import pallas as pl
from jax.experimental.pallas import tpu as pltpu


# ------------------------------ geometry helpers ------------------------------

def _round_up(x, m):
    return (x + m - 1) // m * m


def _geom(H, W):
    """Static layout constants for the flattened zero-padded frame."""
    Wp = _round_up(W + 2, 8)       # padded row stride: ky*Wp tap offsets 8-aligned
    PP = (H + 2) * Wp              # flattened zero-padded frame length
    CTR = Wp + 1                   # flat offset of output (1,1) == center-tap offset
    Mo = H * Wp - 2                # valid computed frame rows
    MoP = _round_up(Mo, 8)         # padded so mid/output stores are unmasked full tiles
    PP_pad = _round_up(2 * Wp + 2 + MoP, 8)   # frame rows reachable by the deepest tap
    PAD0 = (-CTR) % 8              # leading mid pad so the interior store is 8-aligned
    TOP = PAD0 + CTR               # 8-aligned start of the mid interior
    MIDP = _round_up(PAD0 + 2 * Wp + 2 + MoP, 8)
    tap_off = tuple(ky * Wp + kx for ky in range(3) for kx in range(3))
    return Wp, PP, Mo, MoP, PP_pad, CTR, PAD0, TOP, MIDP, tap_off


# ------------------------------ Pallas kernel --------------------------------

def _make_fused_basic_block(N, H, W, CP):
    """Builds the fused (conv1+bn1+relu+conv2+bn2+residual+relu) pallas_call."""
    Wp, _, Mo, MoP, PP_pad, CTR, PAD0, TOP, MIDP, tap_off = _geom(H, W)

    def kernel(x_ref, w1_ref, b1_ref, w2_ref, b2_ref, o_ref, mid_ref):
        # Re-zero only the small halo bands of the mid frame (aligned stores,
        # a few rows each); the MoP interior rows are fully rewritten below.
        mid_ref[0:TOP, :] = jnp.zeros((TOP, CP), jnp.bfloat16)
        mid_ref[TOP + MoP:MIDP, :] = jnp.zeros((MIDP - TOP - MoP, CP), jnp.bfloat16)

        # Validity mask over the MoP computed rows, built in-kernel:
        # zero pad-column rows and the (<8) alignment-pad rows.
        row = lax.broadcasted_iota(jnp.int32, (MoP, CP), 0)
        col = (row + 1) % Wp                     # x coordinate in the padded frame
        valid = (col >= 1) & (col <= W) & (row < Mo)

        # ---- conv1 (9 shifted-window MXU dots on the bf16 frame, no staging
        #      copy) + bn1 (scale pre-folded into w1) + relu.  The 9 partial
        #      products are summed as values and stored to VMEM once, as bf16.
        acc = jnp.dot(x_ref[0, tap_off[0]:tap_off[0] + MoP, :], w1_ref[0],
                      preferred_element_type=jnp.float32)
        for t in range(1, 9):
            acc += jnp.dot(x_ref[0, tap_off[t]:tap_off[t] + MoP, :], w1_ref[t],
                           preferred_element_type=jnp.float32)
        out1 = jnp.maximum(acc + b1_ref[...], 0.0)
        out1 = jnp.where(valid, out1, 0.0)
        mid_ref[TOP:TOP + MoP, :] = out1.astype(jnp.bfloat16)   # 8-aligned store

        # ---- conv2 (taps read the bf16 mid frame directly) + bn2 (scale
        #      pre-folded) + residual + relu.
        acc = jnp.dot(mid_ref[PAD0 + tap_off[0]:PAD0 + tap_off[0] + MoP, :],
                      w2_ref[0], preferred_element_type=jnp.float32)
        for t in range(1, 9):
            acc += jnp.dot(mid_ref[PAD0 + tap_off[t]:PAD0 + tap_off[t] + MoP, :],
                           w2_ref[t], preferred_element_type=jnp.float32)
        identity = x_ref[0, CTR:CTR + MoP, :].astype(jnp.float32)   # residual = x
        out2 = jnp.maximum(acc + b2_ref[...] + identity, 0.0)
        o_ref[0] = out2.astype(o_ref.dtype)

    grid_spec = pltpu.PrefetchScalarGridSpec(
        num_scalar_prefetch=0,
        grid=(N,),
        in_specs=[
            pl.BlockSpec((1, PP_pad, CP), lambda n: (n, 0, 0)),   # x frame (bf16)
            pl.BlockSpec((9, CP, CP), lambda n: (0, 0, 0)),       # w1 (bf16, bn1-scaled)
            pl.BlockSpec((1, CP), lambda n: (0, 0)),              # b1 (f32)
            pl.BlockSpec((9, CP, CP), lambda n: (0, 0, 0)),       # w2 (bf16, bn2-scaled)
            pl.BlockSpec((1, CP), lambda n: (0, 0)),              # b2 (f32)
        ],
        out_specs=pl.BlockSpec((1, MoP, CP), lambda n: (n, 0, 0)),
        scratch_shapes=[
            pltpu.VMEM((MIDP, CP), jnp.bfloat16),   # conv1-output frame (never hits HBM)
        ],
    )
    return pl.pallas_call(
        kernel,
        out_shape=jax.ShapeDtypeStruct((N, MoP, CP), jnp.float32),
        grid_spec=grid_spec,
        compiler_params=pltpu.CompilerParams(
            dimension_semantics=("parallel",)),
    )


# -------------------------------- JAX glue -----------------------------------

def _fold_bn(gamma, beta, mean, var, eps=1e-5):
    scale = gamma / jnp.sqrt(var + eps)
    bias = beta - mean * scale
    return scale, bias


def _conv_taps(w_oihw, scale, cin_p, cout_p):
    """(Cout, Cin, 3, 3) -> (9, cin_p, cout_p) bf16, BN scale folded into columns."""
    cout, cin = w_oihw.shape[0], w_oihw.shape[1]
    w = jnp.transpose(w_oihw, (2, 3, 1, 0)).reshape(9, cin, cout)   # t = ky*3 + kx
    w = w * scale.reshape(1, 1, cout)
    w = jnp.pad(w, ((0, 0), (0, cin_p - cin), (0, cout_p - cout)))
    return w.astype(jnp.bfloat16)


def basic_block_forward(x_nchw, params, eps=1e-5):
    """BasicBlock forward (stride=1, downsample=None); input/output NCHW f32."""
    N, C, H, W = x_nchw.shape
    CP = _round_up(C, 128)          # lane-dense channel width (128-lane vregs / MXU)
    Wp, PP, Mo, MoP, PP_pad, _, _, _, _, _ = _geom(H, W)

    # NCHW -> NHWC, zero-pad spatially (3x3 halo + Wp row-stride padding) and on
    # channels (lanes), flatten the spatial frame, cast activations to bf16.
    x = jnp.transpose(x_nchw, (0, 2, 3, 1)).astype(jnp.float32)
    xpad = jnp.pad(x, ((0, 0), (1, 1), (1, Wp - W - 1), (0, CP - C)))
    xflat = jnp.pad(xpad.reshape(N, PP, CP), ((0, 0), (0, PP_pad - PP), (0, 0)))
    xflat = xflat.astype(jnp.bfloat16)

    s1, b1 = _fold_bn(params["bn1_gamma"], params["bn1_beta"],
                      params["bn1_mean"], params["bn1_var"], eps)
    s2, b2 = _fold_bn(params["bn2_gamma"], params["bn2_beta"],
                      params["bn2_mean"], params["bn2_var"], eps)
    w1 = _conv_taps(params["conv1_w"], s1, CP, CP)
    w2 = _conv_taps(params["conv2_w"], s2, CP, CP)
    b1p = jnp.pad(b1, (0, CP - C)).reshape(1, CP).astype(jnp.float32)
    b2p = jnp.pad(b2, (0, CP - C)).reshape(1, CP).astype(jnp.float32)

    fused = _make_fused_basic_block(N, H, W, CP)
    out_flat = fused(xflat, w1, b1p, w2, b2p)               # (N, MoP, CP) f32

    # Un-flatten: local row i maps to pixel (i // Wp, i % Wp); keep x < W.
    need = H * Wp
    if MoP >= need:
        of = out_flat[:, :need, :]
    else:
        of = jnp.pad(out_flat, ((0, 0), (0, need - MoP), (0, 0)))
    out = of.reshape(N, H, Wp, CP)[:, :, :W, :C]
    return jnp.transpose(out, (0, 3, 1, 2))                  # NHWC -> NCHW


# --------------------------- pure-JAX references ------------------------------

def _conv(x, w):
    return lax.conv_general_dilated(
        x, w, (1, 1), ((1, 1), (1, 1)),
        dimension_numbers=("NCHW", "OIHW", "NCHW"),
        precision=lax.Precision.HIGHEST)


def _ref_forward(x_nchw, params, eps=1e-5):
    """Full-f32 reference, identical math to the PyTorch module."""
    def bn(x, g, b, m, v):
        rs = lambda a: a.reshape(1, -1, 1, 1)
        return rs(g) * (x - rs(m)) / jnp.sqrt(rs(v) + eps) + rs(b)

    out = _conv(x_nchw, params["conv1_w"])
    out = jnp.maximum(bn(out, params["bn1_gamma"], params["bn1_beta"],
                         params["bn1_mean"], params["bn1_var"]), 0.0)
    out = _conv(out, params["conv2_w"])
    out = bn(out, params["bn2_gamma"], params["bn2_beta"],
             params["bn2_mean"], params["bn2_var"])
    return jnp.maximum(out + x_nchw, 0.0)


def _ref_forward_matched(x_nchw, params, eps=1e-5):
    """f32 reference with the SAME bf16 rounding of inputs/mid/folded-weights as the kernel."""
    r = lambda a: a.astype(jnp.bfloat16).astype(jnp.float32)
    s1, c1 = _fold_bn(params["bn1_gamma"], params["bn1_beta"],
                      params["bn1_mean"], params["bn1_var"], eps)
    s2, c2 = _fold_bn(params["bn2_gamma"], params["bn2_beta"],
                      params["bn2_mean"], params["bn2_var"], eps)
    w1 = r(params["conv1_w"] * s1.reshape(-1, 1, 1, 1))
    w2 = r(params["conv2_w"] * s2.reshape(-1, 1, 1, 1))
    xr = r(x_nchw)
    out = jnp.maximum(_conv(xr, w1) + c1.reshape(1, -1, 1, 1), 0.0)
    out = _conv(r(out), w2) + c2.reshape(1, -1, 1, 1)
    return jnp.maximum(out + xr, 0.0)


# ---------------------------------- main --------------------------------------

if __name__ == "__main__":
    key = jax.random.PRNGKey(0)
    ks = jax.random.split(key, 12)

    # inplanes == planes == 4, stride=1, downsample=None (module defaults)
    N, C, H, W = 2, 4, 16, 16

    params = {
        "conv1_w": 0.2 * jax.random.normal(ks[0], (C, C, 3, 3), jnp.float32),
        "conv2_w": 0.2 * jax.random.normal(ks[1], (C, C, 3, 3), jnp.float32),
        "bn1_gamma": 1.0 + 0.1 * jax.random.normal(ks[2], (C,), jnp.float32),
        "bn1_beta": 0.1 * jax.random.normal(ks[3], (C,), jnp.float32),
        "bn1_mean": 0.1 * jax.random.normal(ks[4], (C,), jnp.float32),
        "bn1_var": 0.5 + jnp.abs(jax.random.normal(ks[5], (C,), jnp.float32)),
        "bn2_gamma": 1.0 + 0.1 * jax.random.normal(ks[6], (C,), jnp.float32),
        "bn2_beta": 0.1 * jax.random.normal(ks[7], (C,), jnp.float32),
        "bn2_mean": 0.1 * jax.random.normal(ks[8], (C,), jnp.float32),
        "bn2_var": 0.5 + jnp.abs(jax.random.normal(ks[9], (C,), jnp.float32)),
    }
    x = jax.random.normal(ks[10], (N, C, H, W), jnp.float32)

    out = jax.block_until_ready(jax.jit(basic_block_forward)(x, params))
    assert out.shape == x.shape, (out.shape, x.shape)

    # Tight check vs a reference that applies the same bf16 rounding as the kernel.
    err_matched = float(jnp.max(jnp.abs(out - _ref_forward_matched(x, params))))
    assert err_matched < 5e-2, f"max abs error vs matched-precision reference: {err_matched}"

    # Looser check vs the pure-f32 reference (loosened per bf16 activations/weights).
    err_f32 = float(jnp.max(jnp.abs(out - _ref_forward(x, params))))
    assert err_f32 < 1.5e-1, f"max abs error vs f32 reference: {err_f32}"

    print("KERNEL_OK")
</pallas_src>

<mosaic_0001>
module attributes {stable_mosaic.version = 11 : i64} {
  func.func @kernel(%arg0: i32, %arg1: memref<1x440x128xbf16, #tpu.memory_space<vmem>>, %arg2: memref<9x128x128xbf16, #tpu.memory_space<vmem>>, %arg3: memref<1x128xf32, #tpu.memory_space<vmem>>, %arg4: memref<9x128x128xbf16, #tpu.memory_space<vmem>>, %arg5: memref<1x128xf32, #tpu.memory_space<vmem>>, %arg6: memref<1x384x128xf32, #tpu.memory_space<vmem>>, %arg7: memref<448x128xbf16, #tpu.memory_space<vmem>>) attributes {dimension_semantics = [#tpu.dimension_semantics<parallel>], iteration_bounds = array<i64: 2>, scalar_prefetch = 0 : i64, scratch_operands = 1 : i64, tpu.core_type = #tpu.core_type<tc>, window_params = [{transform_indices = @transform_0, window_bounds = array<i64: 1, 440, 128>}, {pipeline_mode = #tpu.pipeline_mode<synchronous>, transform_indices = @transform_1, window_bounds = array<i64: 9, 128, 128>}, {pipeline_mode = #tpu.pipeline_mode<synchronous>, transform_indices = @transform_2, window_bounds = array<i64: 1, 128>}, {pipeline_mode = #tpu.pipeline_mode<synchronous>, transform_indices = @transform_3, window_bounds = array<i64: 9, 128, 128>}, {pipeline_mode = #tpu.pipeline_mode<synchronous>, transform_indices = @transform_4, window_bounds = array<i64: 1, 128>}, {transform_indices = @transform_5, window_bounds = array<i64: 1, 384, 128>}]} {
    %cst = arith.constant 0.000000e+00 : bf16
    %0 = vector.broadcast %cst : bf16 to vector<32x128xbf16>
    %c0 = arith.constant 0 : index
    %c0_0 = arith.constant 0 : index
    %1 = vector.load %arg7[%c0, %c0_0] : memref<448x128xbf16, #tpu.memory_space<vmem>>, vector<32x128xbf16>
    tpu.vector_store %arg7[%c0, %c0_0], %0 {strides = array<i32>} : memref<448x128xbf16, #tpu.memory_space<vmem>>, vector<32x128xbf16>,
    %cst_1 = arith.constant 0.000000e+00 : bf16
    %2 = vector.broadcast %cst_1 : bf16 to vector<32x128xbf16>
    %c416 = arith.constant 416 : index
    %c0_2 = arith.constant 0 : index
    %3 = vector.load %arg7[%c416, %c0_2] : memref<448x128xbf16, #tpu.memory_space<vmem>>, vector<32x128xbf16>
    tpu.vector_store %arg7[%c416, %c0_2], %2 {strides = array<i32>} : memref<448x128xbf16, #tpu.memory_space<vmem>>, vector<32x128xbf16>,
    %4 = tpu.iota {dimensions = array<i32: 0>} : vector<384x128xi32>
    %c1_i32 = arith.constant 1 : i32
    %5 = vector.broadcast %c1_i32 : i32 to vector<384x128xi32>
    %6 = arith.addi %4, %5 : vector<384x128xi32>
    %c24_i32 = arith.constant 24 : i32
    %c0_i32 = arith.constant 0 : i32
    %7 = arith.cmpi eq, %c24_i32, %c0_i32 : i32
    %c1_i32_3 = arith.constant 1 : i32
    %8 = arith.select %7, %c1_i32_3, %c24_i32 : i32
    %9 = vector.broadcast %8 : i32 to vector<384x128xi32>
    %10 = arith.remsi %6, %9 : vector<384x128xi32>
    %c0_i32_4 = arith.constant 0 : i32
    %11 = vector.broadcast %c0_i32_4 : i32 to vector<384x128xi32>
    %12 = arith.cmpi ne, %10, %11 : vector<384x128xi32>
    %c0_i32_5 = arith.constant 0 : i32
    %13 = vector.broadcast %c0_i32_5 : i32 to vector<384x128xi32>
    %14 = arith.cmpi slt, %10, %13 : vector<384x128xi32>
    %c0_i32_6 = arith.constant 0 : i32
    %15 = arith.cmpi slt, %8, %c0_i32_6 : i32
    %16 = vector.broadcast %15 : i1 to vector<384x128xi1>
    %17 = vector.broadcast %16 : vector<384x128xi1> to vector<384x128xi1>
    %18 = arith.xori %14, %17 : vector<384x128xi1>
    %19 = arith.andi %18, %12 : vector<384x128xi1>
    %20 = vector.broadcast %8 : i32 to vector<384x128xi32>
    %21 = arith.addi %10, %20 : vector<384x128xi32>
    %22 = arith.select %19, %21, %10 : vector<384x128xi1>, vector<384x128xi32>
    %c1_i32_7 = arith.constant 1 : i32
    %23 = vector.broadcast %c1_i32_7 : i32 to vector<384x128xi32>
    %24 = arith.cmpi sge, %22, %23 : vector<384x128xi32>
    %c16_i32 = arith.constant 16 : i32
    %25 = vector.broadcast %c16_i32 : i32 to vector<384x128xi32>
    %26 = arith.cmpi sle, %22, %25 : vector<384x128xi32>
    %27 = arith.andi %24, %26 : vector<384x128xi1>
    %c382_i32 = arith.constant 382 : i32
    %28 = vector.broadcast %c382_i32 : i32 to vector<384x128xi32>
    %29 = arith.cmpi slt, %4, %28 : vector<384x128xi32>
    %30 = arith.andi %27, %29 : vector<384x128xi1>
    %c0_8 = arith.constant 0 : index
    %c0_9 = arith.constant 0 : index
    %c0_10 = arith.constant 0 : index
    %31 = vector.load %arg1[%c0_8, %c0_9, %c0_10] : memref<1x440x128xbf16, #tpu.memory_space<vmem>>, vector<1x384x128xbf16>
    %32 = vector.shape_cast %31 : vector<1x384x128xbf16> to vector<384x128xbf16>
    %c0_11 = arith.constant 0 : index
    %c0_12 = arith.constant 0 : index
    %c0_13 = arith.constant 0 : index
    %33 = vector.load %arg2[%c0_11, %c0_12, %c0_13] : memref<9x128x128xbf16, #tpu.memory_space<vmem>>, vector<1x128x128xbf16>
    %34 = vector.shape_cast %33 : vector<1x128x128xbf16> to vector<128x128xbf16>
    %cst_14 = arith.constant dense<0.000000e+00> : vector<384x128xf32>
    %35 = tpu.matmul %32, %34, %cst_14 {dimension_numbers = #tpu.dot_dimension_numbers<[1], [0], [0], [1], [0, 0, 1, 1], [], []>} : vector<384x128xbf16>, vector<128x128xbf16>, vector<384x128xf32> -> vector<384x128xf32>
    %c0_15 = arith.constant 0 : index
    %c1 = arith.constant 1 : index
    %c0_16 = arith.constant 0 : index
    %36 = vector.load %arg1[%c0_15, %c1, %c0_16] : memref<1x440x128xbf16, #tpu.memory_space<vmem>>, vector<1x384x128xbf16>
    %37 = vector.shape_cast %36 : vector<1x384x128xbf16> to vector<384x128xbf16>
    %c1_17 = arith.constant 1 : index
    %c0_18 = arith.constant 0 : index
    %c0_19 = arith.constant 0 : index
    %38 = vector.load %arg2[%c1_17, %c0_18, %c0_19] : memref<9x128x128xbf16, #tpu.memory_space<vmem>>, vector<1x128x128xbf16>
    %39 = vector.shape_cast %38 : vector<1x128x128xbf16> to vector<128x128xbf16>
    %cst_20 = arith.constant dense<0.000000e+00> : vector<384x128xf32>
    %40 = tpu.matmul %37, %39, %cst_20 {dimension_numbers = #tpu.dot_dimension_numbers<[1], [0], [0], [1], [0, 0, 1, 1], [], []>} : vector<384x128xbf16>, vector<128x128xbf16>, vector<384x128xf32> -> vector<384x128xf32>
    %41 = arith.addf %35, %40 : vector<384x128xf32>
    %c0_21 = arith.constant 0 : index
    %c2 = arith.constant 2 : index
    %c0_22 = arith.constant 0 : index
    %42 = vector.load %arg1[%c0_21, %c2, %c0_22] : memref<1x440x128xbf16, #tpu.memory_space<vmem>>, vector<1x384x128xbf16>
    %43 = vector.shape_cast %42 : vector<1x384x128xbf16> to vector<384x128xbf16>
    %c2_23 = arith.constant 2 : index
    %c0_24 = arith.constant 0 : index
    %c0_25 = arith.constant 0 : index
    %44 = vector.load %arg2[%c2_23, %c0_24, %c0_25] : memref<9x128x128xbf16, #tpu.memory_space<vmem>>, vector<1x128x128xbf16>
    %45 = vector.shape_cast %44 : vector<1x128x128xbf16> to vector<128x128xbf16>
    %cst_26 = arith.constant dense<0.000000e+00> : vector<384x128xf32>
    %46 = tpu.matmul %43, %45, %cst_26 {dimension_numbers = #tpu.dot_dimension_numbers<[1], [0], [0], [1], [0, 0, 1, 1], [], []>} : vector<384x128xbf16>, vector<128x128xbf16>, vector<384x128xf32> -> vector<384x128xf32>
    %47 = arith.addf %41, %46 : vector<384x128xf32>
    %c0_27 = arith.constant 0 : index
    %c24 = arith.constant 24 : index
    %c0_28 = arith.constant 0 : index
    %48 = vector.load %arg1[%c0_27, %c24, %c0_28] : memref<1x440x128xbf16, #tpu.memory_space<vmem>>, vector<1x384x128xbf16>
    %49 = vector.shape_cast %48 : vector<1x384x128xbf16> to vector<384x128xbf16>
    %c3 = arith.constant 3 : index
    %c0_29 = arith.constant 0 : index
    %c0_30 = arith.constant 0 : index
    %50 = vector.load %arg2[%c3, %c0_29, %c0_30] : memref<9x128x128xbf16, #tpu.memory_space<vmem>>, vector<1x128x128xbf16>
    %51 = vector.shape_cast %50 : vector<1x128x128xbf16> to vector<128x128xbf16>
    %cst_31 = arith.constant dense<0.000000e+00> : vector<384x128xf32>
    %52 = tpu.matmul %49, %51, %cst_31 {dimension_numbers = #tpu.dot_dimension_numbers<[1], [0], [0], [1], [0, 0, 1, 1], [], []>} : vector<384x128xbf16>, vector<128x128xbf16>, vector<384x128xf32> -> vector<384x128xf32>
    %53 = arith.addf %47, %52 : vector<384x128xf32>
    %c0_32 = arith.constant 0 : index
    %c25 = arith.constant 25 : index
    %c0_33 = arith.constant 0 : index
    %54 = vector.load %arg1[%c0_32, %c25, %c0_33] : memref<1x440x128xbf16, #tpu.memory_space<vmem>>, vector<1x384x128xbf16>
    %55 = vector.shape_cast %54 : vector<1x384x128xbf16> to vector<384x128xbf16>
    %c4 = arith.constant 4 : index
    %c0_34 = arith.constant 0 : index
    %c0_35 = arith.constant 0 : index
    %56 = vector.load %arg2[%c4, %c0_34, %c0_35] : memref<9x128x128xbf16, #tpu.memory_space<vmem>>, vector<1x128x128xbf16>
    %57 = vector.shape_cast %56 : vector<1x128x128xbf16> to vector<128x128xbf16>
    %cst_36 = arith.constant dense<0.000000e+00> : vector<384x128xf32>
    %58 = tpu.matmul %55, %57, %cst_36 {dimension_numbers = #tpu.dot_dimension_numbers<[1], [0], [0], [1], [0, 0, 1, 1], [], []>} : vector<384x128xbf16>, vector<128x128xbf16>, vector<384x128xf32> -> vector<384x128xf32>
    %59 = arith.addf %53, %58 : vector<384x128xf32>
    %c0_37 = arith.constant 0 : index
    %c26 = arith.constant 26 : index
    %c0_38 = arith.constant 0 : index
    %60 = vector.load %arg1[%c0_37, %c26, %c0_38] : memref<1x440x128xbf16, #tpu.memory_space<vmem>>, vector<1x384x128xbf16>
    %61 = vector.shape_cast %60 : vector<1x384x128xbf16> to vector<384x128xbf16>
    %c5 = arith.constant 5 : index
    %c0_39 = arith.constant 0 : index
    %c0_40 = arith.constant 0 : index
    %62 = vector.load %arg2[%c5, %c0_39, %c0_40] : memref<9x128x128xbf16, #tpu.memory_space<vmem>>, vector<1x128x128xbf16>
    %63 = vector.shape_cast %62 : vector<1x128x128xbf16> to vector<128x128xbf16>
    %cst_41 = arith.constant dense<0.000000e+00> : vector<384x128xf32>
    %64 = tpu.matmul %61, %63, %cst_41 {dimension_numbers = #tpu.dot_dimension_numbers<[1], [0], [0], [1], [0, 0, 1, 1], [], []>} : vector<384x128xbf16>, vector<128x128xbf16>, vector<384x128xf32> -> vector<384x128xf32>
    %65 = arith.addf %59, %64 : vector<384x128xf32>
    %c0_42 = arith.constant 0 : index
    %c48 = arith.constant 48 : index
    %c0_43 = arith.constant 0 : index
    %66 = vector.load %arg1[%c0_42, %c48, %c0_43] : memref<1x440x128xbf16, #tpu.memory_space<vmem>>, vector<1x384x128xbf16>
    %67 = vector.shape_cast %66 : vector<1x384x128xbf16> to vector<384x128xbf16>
    %c6 = arith.constant 6 : index
    %c0_44 = arith.constant 0 : index
    %c0_45 = arith.constant 0 : index
    %68 = vector.load %arg2[%c6, %c0_44, %c0_45] : memref<9x128x128xbf16, #tpu.memory_space<vmem>>, vector<1x128x128xbf16>
    %69 = vector.shape_cast %68 : vector<1x128x128xbf16> to vector<128x128xbf16>
    %cst_46 = arith.constant dense<0.000000e+00> : vector<384x128xf32>
    %70 = tpu.matmul %67, %69, %cst_46 {dimension_numbers = #tpu.dot_dimension_numbers<[1], [0], [0], [1], [0, 0, 1, 1], [], []>} : vector<384x128xbf16>, vector<128x128xbf16>, vector<384x128xf32> -> vector<384x128xf32>
    %71 = arith.addf %65, %70 : vector<384x128xf32>
    %c0_47 = arith.constant 0 : index
    %c49 = arith.constant 49 : index
    %c0_48 = arith.constant 0 : index
    %72 = vector.load %arg1[%c0_47, %c49, %c0_48] : memref<1x440x128xbf16, #tpu.memory_space<vmem>>, vector<1x384x128xbf16>
    %73 = vector.shape_cast %72 : vector<1x384x128xbf16> to vector<384x128xbf16>
    %c7 = arith.constant 7 : index
    %c0_49 = arith.constant 0 : index
    %c0_50 = arith.constant 0 : index
    %74 = vector.load %arg2[%c7, %c0_49, %c0_50] : memref<9x128x128xbf16, #tpu.memory_space<vmem>>, vector<1x128x128xbf16>
    %75 = vector.shape_cast %74 : vector<1x128x128xbf16> to vector<128x128xbf16>
    %cst_51 = arith.constant dense<0.000000e+00> : vector<384x128xf32>
    %76 = tpu.matmul %73, %75, %cst_51 {dimension_numbers = #tpu.dot_dimension_numbers<[1], [0], [0], [1], [0, 0, 1, 1], [], []>} : vector<384x128xbf16>, vector<128x128xbf16>, vector<384x128xf32> -> vector<384x128xf32>
    %77 = arith.addf %71, %76 : vector<384x128xf32>
    %c0_52 = arith.constant 0 : index
    %c50 = arith.constant 50 : index
    %c0_53 = arith.constant 0 : index
    %78 = vector.load %arg1[%c0_52, %c50, %c0_53] : memref<1x440x128xbf16, #tpu.memory_space<vmem>>, vector<1x384x128xbf16>
    %79 = vector.shape_cast %78 : vector<1x384x128xbf16> to vector<384x128xbf16>
    %c8 = arith.constant 8 : index
    %c0_54 = arith.constant 0 : index
    %c0_55 = arith.constant 0 : index
    %80 = vector.load %arg2[%c8, %c0_54, %c0_55] : memref<9x128x128xbf16, #tpu.memory_space<vmem>>, vector<1x128x128xbf16>
    %81 = vector.shape_cast %80 : vector<1x128x128xbf16> to vector<128x128xbf16>
    %cst_56 = arith.constant dense<0.000000e+00> : vector<384x128xf32>
    %82 = tpu.matmul %79, %81, %cst_56 {dimension_numbers = #tpu.dot_dimension_numbers<[1], [0], [0], [1], [0, 0, 1, 1], [], []>} : vector<384x128xbf16>, vector<128x128xbf16>, vector<384x128xf32> -> vector<384x128xf32>
    %83 = arith.addf %77, %82 : vector<384x128xf32>
    %c0_57 = arith.constant 0 : index
    %c0_58 = arith.constant 0 : index
    %84 = vector.load %arg3[%c0_57, %c0_58] : memref<1x128xf32, #tpu.memory_space<vmem>>, vector<1x128xf32>
    %85 = vector.broadcast %84 : vector<1x128xf32> to vector<384x128xf32>
    %86 = arith.addf %83, %85 : vector<384x128xf32>
    %cst_59 = arith.constant 0.000000e+00 : f32
    %87 = vector.broadcast %cst_59 : f32 to vector<384x128xf32>
    %88 = arith.maximumf %86, %87 : vector<384x128xf32>
    %cst_60 = arith.constant 0.000000e+00 : f32
    %89 = vector.broadcast %cst_60 : f32 to vector<384x128xf32>
    %90 = arith.select %30, %88, %89 : vector<384x128xi1>, vector<384x128xf32>
    %91 = arith.truncf %90 : vector<384x128xf32> to vector<384x128xbf16>
    %c32 = arith.constant 32 : index
    %c0_61 = arith.constant 0 : index
    %92 = vector.load %arg7[%c32, %c0_61] : memref<448x128xbf16, #tpu.memory_space<vmem>>, vector<384x128xbf16>
    tpu.vector_store %arg7[%c32, %c0_61], %91 {strides = array<i32>} : memref<448x128xbf16, #tpu.memory_space<vmem>>, vector<384x128xbf16>,
    %c7_62 = arith.constant 7 : index
    %c0_63 = arith.constant 0 : index
    %93 = vector.load %arg7[%c7_62, %c0_63] : memref<448x128xbf16, #tpu.memory_space<vmem>>, vector<384x128xbf16>
    %c0_64 = arith.constant 0 : index
    %c0_65 = arith.constant 0 : index
    %c0_66 = arith.constant 0 : index
    %94 = vector.load %arg4[%c0_64, %c0_65, %c0_66] : memref<9x128x128xbf16, #tpu.memory_space<vmem>>, vector<1x128x128xbf16>
    %95 = vector.shape_cast %94 : vector<1x128x128xbf16> to vector<128x128xbf16>
    %cst_67 = arith.constant dense<0.000000e+00> : vector<384x128xf32>
    %96 = tpu.matmul %93, %95, %cst_67 {dimension_numbers = #tpu.dot_dimension_numbers<[1], [0], [0], [1], [0, 0, 1, 1], [], []>} : vector<384x128xbf16>, vector<128x128xbf16>, vector<384x128xf32> -> vector<384x128xf32>
    %c8_68 = arith.constant 8 : index
    %c0_69 = arith.constant 0 : index
    %97 = vector.load %arg7[%c8_68, %c0_69] : memref<448x128xbf16, #tpu.memory_space<vmem>>, vector<384x128xbf16>
    %c1_70 = arith.constant 1 : index
    %c0_71 = arith.constant 0 : index
    %c0_72 = arith.constant 0 : index
    %98 = vector.load %arg4[%c1_70, %c0_71, %c0_72] : memref<9x128x128xbf16, #tpu.memory_space<vmem>>, vector<1x128x128xbf16>
    %99 = vector.shape_cast %98 : vector<1x128x128xbf16> to vector<128x128xbf16>
    %cst_73 = arith.constant dense<0.000000e+00> : vector<384x128xf32>
    %100 = tpu.matmul %97, %99, %cst_73 {dimension_numbers = #tpu.dot_dimension_numbers<[1], [0], [0], [1], [0, 0, 1, 1], [], []>} : vector<384x128xbf16>, vector<128x128xbf16>, vector<384x128xf32> -> vector<384x128xf32>
    %101 = arith.addf %96, %100 : vector<384x128xf32>
    %c9 = arith.constant 9 : index
    %c0_74 = arith.constant 0 : index
    %102 = vector.load %arg7[%c9, %c0_74] : memref<448x128xbf16, #tpu.memory_space<vmem>>, vector<384x128xbf16>
    %c2_75 = arith.constant 2 : index
    %c0_76 = arith.constant 0 : index
    %c0_77 = arith.constant 0 : index
    %103 = vector.load %arg4[%c2_75, %c0_76, %c0_77] : memref<9x128x128xbf16, #tpu.memory_space<vmem>>, vector<1x128x128xbf16>
    %104 = vector.shape_cast %103 : vector<1x128x128xbf16> to vector<128x128xbf16>
    %cst_78 = arith.constant dense<0.000000e+00> : vector<384x128xf32>
    %105 = tpu.matmul %102, %104, %cst_78 {dimension_numbers = #tpu.dot_dimension_numbers<[1], [0], [0], [1], [0, 0, 1, 1], [], []>} : vector<384x128xbf16>, vector<128x128xbf16>, vector<384x128xf32> -> vector<384x128xf32>
    %106 = arith.addf %101, %105 : vector<384x128xf32>
    %c31 = arith.constant 31 : index
    %c0_79 = arith.constant 0 : index
    %107 = vector.load %arg7[%c31, %c0_79] : memref<448x128xbf16, #tpu.memory_space<vmem>>, vector<384x128xbf16>
    %c3_80 = arith.constant 3 : index
    %c0_81 = arith.constant 0 : index
    %c0_82 = arith.constant 0 : index
    %108 = vector.load %arg4[%c3_80, %c0_81, %c0_82] : memref<9x128x128xbf16, #tpu.memory_space<vmem>>, vector<1x128x128xbf16>
    %109 = vector.shape_cast %108 : vector<1x128x128xbf16> to vector<128x128xbf16>
    %cst_83 = arith.constant dense<0.000000e+00> : vector<384x128xf32>
    %110 = tpu.matmul %107, %109, %cst_83 {dimension_numbers = #tpu.dot_dimension_numbers<[1], [0], [0], [1], [0, 0, 1, 1], [], []>} : vector<384x128xbf16>, vector<128x128xbf16>, vector<384x128xf32> -> vector<384x128xf32>
    %111 = arith.addf %106, %110 : vector<384x128xf32>
    %c32_84 = arith.constant 32 : index
    %c0_85 = arith.constant 0 : index
    %112 = vector.load %arg7[%c32_84, %c0_85] : memref<448x128xbf16, #tpu.memory_space<vmem>>, vector<384x128xbf16>
    %c4_86 = arith.constant 4 : index
    %c0_87 = arith.constant 0 : index
    %c0_88 = arith.constant 0 : index
    %113 = vector.load %arg4[%c4_86, %c0_87, %c0_88] : memref<9x128x128xbf16, #tpu.memory_space<vmem>>, vector<1x128x128xbf16>
    %114 = vector.shape_cast %113 : vector<1x128x128xbf16> to vector<128x128xbf16>
    %cst_89 = arith.constant dense<0.000000e+00> : vector<384x128xf32>
    %115 = tpu.matmul %112, %114, %cst_89 {dimension_numbers = #tpu.dot_dimension_numbers<[1], [0], [0], [1], [0, 0, 1, 1], [], []>} : vector<384x128xbf16>, vector<128x128xbf16>, vector<384x128xf32> -> vector<384x128xf32>
    %116 = arith.addf %111, %115 : vector<384x128xf32>
    %c33 = arith.constant 33 : index
    %c0_90 = arith.constant 0 : index
    %117 = vector.load %arg7[%c33, %c0_90] : memref<448x128xbf16, #tpu.memory_space<vmem>>, vector<384x128xbf16>
    %c5_91 = arith.constant 5 : index
    %c0_92 = arith.constant 0 : index
    %c0_93 = arith.constant 0 : index
    %118 = vector.load %arg4[%c5_91, %c0_92, %c0_93] : memref<9x128x128xbf16, #tpu.memory_space<vmem>>, vector<1x128x128xbf16>
    %119 = vector.shape_cast %118 : vector<1x128x128xbf16> to vector<128x128xbf16>
    %cst_94 = arith.constant dense<0.000000e+00> : vector<384x128xf32>
    %120 = tpu.matmul %117, %119, %cst_94 {dimension_numbers = #tpu.dot_dimension_numbers<[1], [0], [0], [1], [0, 0, 1, 1], [], []>} : vector<384x128xbf16>, vector<128x128xbf16>, vector<384x128xf32> -> vector<384x128xf32>
    %121 = arith.addf %116, %120 : vector<384x128xf32>
    %c55 = arith.constant 55 : index
    %c0_95 = arith.constant 0 : index
    %122 = vector.load %arg7[%c55, %c0_95] : memref<448x128xbf16, #tpu.memory_space<vmem>>, vector<384x128xbf16>
    %c6_96 = arith.constant 6 : index
    %c0_97 = arith.constant 0 : index
    %c0_98 = arith.constant 0 : index
    %123 = vector.load %arg4[%c6_96, %c0_97, %c0_98] : memref<9x128x128xbf16, #tpu.memory_space<vmem>>, vector<1x128x128xbf16>
    %124 = vector.shape_cast %123 : vector<1x128x128xbf16> to vector<128x128xbf16>
    %cst_99 = arith.constant dense<0.000000e+00> : vector<384x128xf32>
    %125 = tpu.matmul %122, %124, %cst_99 {dimension_numbers = #tpu.dot_dimension_numbers<[1], [0], [0], [1], [0, 0, 1, 1], [], []>} : vector<384x128xbf16>, vector<128x128xbf16>, vector<384x128xf32> -> vector<384x128xf32>
    %126 = arith.addf %121, %125 : vector<384x128xf32>
    %c56 = arith.constant 56 : index
    %c0_100 = arith.constant 0 : index
    %127 = vector.load %arg7[%c56, %c0_100] : memref<448x128xbf16, #tpu.memory_space<vmem>>, vector<384x128xbf16>
    %c7_101 = arith.constant 7 : index
    %c0_102 = arith.constant 0 : index
    %c0_103 = arith.constant 0 : index
    %128 = vector.load %arg4[%c7_101, %c0_102, %c0_103] : memref<9x128x128xbf16, #tpu.memory_space<vmem>>, vector<1x128x128xbf16>
    %129 = vector.shape_cast %128 : vector<1x128x128xbf16> to vector<128x128xbf16>
    %cst_104 = arith.constant dense<0.000000e+00> : vector<384x128xf32>
    %130 = tpu.matmul %127, %129, %cst_104 {dimension_numbers = #tpu.dot_dimension_numbers<[1], [0], [0], [1], [0, 0, 1, 1], [], []>} : vector<384x128xbf16>, vector<128x128xbf16>, vector<384x128xf32> -> vector<384x128xf32>
    %131 = arith.addf %126, %130 : vector<384x128xf32>
    %c57 = arith.constant 57 : index
    %c0_105 = arith.constant 0 : index
    %132 = vector.load %arg7[%c57, %c0_105] : memref<448x128xbf16, #tpu.memory_space<vmem>>, vector<384x128xbf16>
    %c8_106 = arith.constant 8 : index
    %c0_107 = arith.constant 0 : index
    %c0_108 = arith.constant 0 : index
    %133 = vector.load %arg4[%c8_106, %c0_107, %c0_108] : memref<9x128x128xbf16, #tpu.memory_space<vmem>>, vector<1x128x128xbf16>
    %134 = vector.shape_cast %133 : vector<1x128x128xbf16> to vector<128x128xbf16>
    %cst_109 = arith.constant dense<0.000000e+00> : vector<384x128xf32>
    %135 = tpu.matmul %132, %134, %cst_109 {dimension_numbers = #tpu.dot_dimension_numbers<[1], [0], [0], [1], [0, 0, 1, 1], [], []>} : vector<384x128xbf16>, vector<128x128xbf16>, vector<384x128xf32> -> vector<384x128xf32>
    %136 = arith.addf %131, %135 : vector<384x128xf32>
    %c0_110 = arith.constant 0 : index
    %c25_111 = arith.constant 25 : index
    %c0_112 = arith.constant 0 : index
    %137 = vector.load %arg1[%c0_110, %c25_111, %c0_112] : memref<1x440x128xbf16, #tpu.memory_space<vmem>>, vector<1x384x128xbf16>
    %138 = vector.shape_cast %137 : vector<1x384x128xbf16> to vector<384x128xbf16>
    %139 = arith.extf %138 : vector<384x128xbf16> to vector<384x128xf32>
    %c0_113 = arith.constant 0 : index
    %c0_114 = arith.constant 0 : index
    %140 = vector.load %arg5[%c0_113, %c0_114] : memref<1x128xf32, #tpu.memory_space<vmem>>, vector<1x128xf32>
    %141 = vector.broadcast %140 : vector<1x128xf32> to vector<384x128xf32>
    %142 = arith.addf %136, %141 : vector<384x128xf32>
    %143 = arith.addf %142, %139 : vector<384x128xf32>
    %cst_115 = arith.constant 0.000000e+00 : f32
    %144 = vector.broadcast %cst_115 : f32 to vector<384x128xf32>
    %145 = arith.maximumf %143, %144 : vector<384x128xf32>
    %c0_116 = arith.constant 0 : index
    %c0_117 = arith.constant 0 : index
    %c0_118 = arith.constant 0 : index
    %146 = vector.load %arg6[%c0_116, %c0_117, %c0_118] : memref<1x384x128xf32, #tpu.memory_space<vmem>>, vector<1x384x128xf32>
    %147 = vector.shape_cast %146 : vector<1x384x128xf32> to vector<384x128xf32>
    %148 = vector.shape_cast %145 : vector<384x128xf32> to vector<1x384x128xf32>
    tpu.vector_store %arg6[%c0_116, %c0_117, %c0_118], %148 {strides = array<i32>} : memref<1x384x128xf32, #tpu.memory_space<vmem>>, vector<1x384x128xf32>,
    return
  }
  func.func @transform_0(%arg0: i32) -> (i32, i32, i32) {
    %c0_i32 = arith.constant 0 : i32
    %c0_i32_0 = arith.constant 0 : i32
    %c0_i32_1 = arith.constant 0 : i32
    return %arg0, %c0_i32, %c0_i32_0 : i32, i32, i32
  }
  func.func @transform_1(%arg0: i32) -> (i32, i32, i32) {
    %c0_i32 = arith.constant 0 : i32
    %c0_i32_0 = arith.constant 0 : i32
    %c0_i32_1 = arith.constant 0 : i32
    %c0_i32_2 = arith.constant 0 : i32
    return %c0_i32, %c0_i32_0, %c0_i32_1 : i32, i32, i32
  }
  func.func @transform_2(%arg0: i32) -> (i32, i32) {
    %c0_i32 = arith.constant 0 : i32
    %c0_i32_0 = arith.constant 0 : i32
    %c0_i32_1 = arith.constant 0 : i32
    return %c0_i32, %c0_i32_0 : i32, i32
  }
  func.func @transform_3(%arg0: i32) -> (i32, i32, i32) {
    %c0_i32 = arith.constant 0 : i32
    %c0_i32_0 = arith.constant 0 : i32
    %c0_i32_1 = arith.constant 0 : i32
    %c0_i32_2 = arith.constant 0 : i32
    return %c0_i32, %c0_i32_0, %c0_i32_1 : i32, i32, i32
  }
  func.func @transform_4(%arg0: i32) -> (i32, i32) {
    %c0_i32 = arith.constant 0 : i32
    %c0_i32_0 = arith.constant 0 : i32
    %c0_i32_1 = arith.constant 0 : i32
    return %c0_i32, %c0_i32_0 : i32, i32
  }
  func.func @transform_5(%arg0: i32) -> (i32, i32, i32) {
    %c0_i32 = arith.constant 0 : i32
    %c0_i32_0 = arith.constant 0 : i32
    %c0_i32_1 = arith.constant 0 : i32
    return %arg0, %c0_i32, %c0_i32_0 : i32, i32, i32
  }
}

</mosaic_0001>

<bundles_post_ra>
// kernel: basic_block_forward.1
= control target key start
LH: loop header
LB: loop body
LE: loop exit
PB: predicated region body
PF: predicated region fallthrough
CT: control target
= control target key end

     0   :  { %s14885_s18 = smov 0   ;;  %s19073_s0 = inlined_call_operand.vmem [shape: bf16[2,440,128], index: 0, kind: input, shape index: {}]   ;;  %s19074_s1 = inlined_call_operand.vmem [shape: bf16[9,128,128], index: 1, kind: input, shape index: {}]   ;;  %s19075_s2 = inlined_call_operand.vmem [shape: f32[1,128], index: 2, kind: input, shape index: {}]   ;;  %s19076_s3 = inlined_call_operand.vmem [shape: bf16[9,128,128], index: 3, kind: input, shape index: {}]   ;;  %s19077_s4 = inlined_call_operand.vmem [shape: f32[1,128], index: 4, kind: input, shape index: {}]   ;;  %s19078_s5 = inlined_call_operand.vmem [shape: f32[2,384,128], index: 5, kind: output, shape index: {}]  }
   0x1 LB: > { %s11294_s19 = sadd.s32 4294967295, %s14852_s18   ;;  %p11298_p0 = scmp.ge.s32.totalorder %s14852_s18, 1  ;;  %s14852_s18 = sphi %s14885_s18, %s15_s18  }
   0x2   : > { %p187_p1 = scmp.lt.s32.totalorder %s14852_s18, 3 }
   0x4   : > { %p188_p2 = pnand %p11298_p0, %p187_p1 }
   0x6   : > { %191 = sbr.rel (%p188_p2) target bundleno = 2149 (0x865), region = 40 }
   0xd   : > { %v14549_v0 = vld [vmem:[%s19074_s1 + $0x40] sm:$0xff]   ;;  %p215_p3 = scmp.lt.s32.totalorder %s11294_s19, 1  ;;  %v14550_v1 = vld [vmem:[%s19074_s1 + $0x48] sm:$0xff]   ;;  %v14551_v2 = vld [vmem:[%s19074_s1 + $0x50] sm:$0xff]   ;;  %vm19080_vm0 = vsmask.f32 7424 }
   0xe   : > { %12522 = vmatprep.subr.bf16.mxu0 %v14549_v0  ;;  %v14552_v3 = vld [vmem:[%s19074_s1 + $0x58] sm:$0xff]   ;;  %v14553_v11 = vld [vmem:[%s19074_s1 + $0x60] sm:$0xff]   ;;  %v14554_v15 = vld [vmem:[%s19074_s1 + $0x68] sm:$0xff]   ;;  %vm19079_vm1 = vcmask 1046528   ;;  %vm19086_vm2 = vcmask 1043456  }
   0xf   : > { %s19670_s19 = smov (!%p215_p3, %s11294_s19), 1  ;;  %12523 = vmatpush3.bf16.msra.mxu0 %v14549_v0  ;;  %v14555_v19 = vld [vmem:[%s19074_s1 + $0x70] sm:$0xff]   ;;  %v14556_v20 = vld [vmem:[%s19074_s1 + $0x78] sm:$0xff]   ;;  %v14560_v28 = vld [vmem:[%s19074_s1] sm:$0xff]  }
  0x10   : > { %12524 = vmatprep.subr.bf16.mxu0 %v14550_v1  ;;  %s14442_s26 = smul.u32 220, %s19670_s19  ;;  %v14563_v39 = vld [vmem:[%s19074_s1 + $0x8] sm:$0xff]   ;;  %v14568_v55 = vld [vmem:[%s19074_s1 + $0x10] sm:$0xff]  }
  0x11   : > { %s14443_s9 = smul.u32 384, %s19670_s19 }
  0x12   : > { %s14908_s29 = scalar_lea.vmem %s19073_s0, %s14442_s26 }
  0x13   : > { %12525 = vmatpush3.bf16.msra.mxu0 %v14550_v1  ;;  %v1335_v4 = vld [vmem:[%s14908_s29] sm:$0xf]  ;;  %v1336_v5 = vld [vmem:[%s14908_s29 + $0x4] sm:$0xf]  ;;  %v14918_v7 = vld [vmem:[%s14908_s29 + $0x8] sm:$0xff]   ;;  %s18910_s11 = scalar_lea.vmem %s19078_s5, %s14443_s9 }
  0x14   : > { %12526 = vmatprep.subr.bf16.mxu0 %v14551_v2  ;;  %v14915_v6 = vcombine.low %v1335_v4, %v1336_v5  ;;  %v1549_v10 = vshll.u32 %v14918_v7, 16  ;;  %v14931_v17 = vld [vmem:[%s14908_s29 + $0x10] sm:$0xff]   ;;  %v14934_v18 = vld [vmem:[%s14908_s29 + $0x18] sm:$0xff]   ;;  %v1553_v22 = vshrl.u32 %v14918_v7, 16  ;;  %v14947_v25 = vld [vmem:[%s14908_s29 + $0x20] sm:$0xff]  }
  0x15   : > { %v1557_v21 = vshll.u32 %v14931_v17, 16  ;;  %v1561_v23 = vshrl.u32 %v14931_v17, 16  ;;  %v1565_v24 = vshll.u32 %v14934_v18, 16  ;;  %v1573_v29 = vshll.u32 %v14947_v25, 16  ;;  %v14954_v30 = vld [vmem:[%s14908_s29 + $0x28] sm:$0xff]   ;;  %v14957_v33 = vld [vmem:[%s14908_s29 + $0x30] sm:$0xff]  }
  0x16   : > { %v1542_v8 = vshrl.u32 %v14915_v6, 16  ;;  %v1544_v9 = vshll.u32 %v14915_v6, 16  ;;  %v1551_v13 = vrot.slane %v1549_v10, 1  ;;  %v14960_v34 = vld [vmem:[%s14908_s29 + $0x38] sm:$0xff]   ;;  %v1569_v35 = vshrl.u32 %v14934_v18, 16  ;;  %v14964_v36 = vld [vmem:[%s14908_s29 + $0x40] sm:$0xff]  }
  0x17   : > { %12527 = vmatpush3.bf16.msra.mxu0 %v14551_v2  ;;  %v1559_v26 = vrot.slane %v1557_v21, 1  ;;  %v1567_v32 = vrot.slane %v1565_v24, 1  ;;  %v1575_v38 = vrot.slane %v1573_v29, 1  ;;  %v1577_v40 = vshrl.u32 %v14947_v25, 16  ;;  %v14977_v46 = vld [vmem:[%s14908_s29 + $0x48] sm:$0xff]   ;;  %v14981_v48 = vld [vmem:[%s14908_s29 + $0x50] sm:$0xff]  }
  0x18   : > { %12528 = vmatprep.subr.bf16.mxu0 %v14552_v3  ;;  %v1546_v12 = vrot.slane %v1544_v9, 1  ;;  %v1555_v27 = vor.u32 %v1553_v22, %v1551_v13  ;;  %v1581_v41 = vshll.u32 %v14954_v30, 16  ;;  %v1585_v43 = vshrl.u32 %v14954_v30, 16  ;;  %v14989_v56 = vld [vmem:[%s14908_s29 + $0x58] sm:$0xff]   ;;  %v14994_v61 = vld [vmem:[%s14908_s29 + $0x60] sm:$0xff]   ;;  %v14999_v0 = vld [vmem:[%s14908_s29 + $0x68] sm:$0xff]  }
  0x19   : > { %v1563_v31 = vor.u32 %v1561_v23, %v1559_v26  ;;  %v1589_v44 = vshll.u32 %v14957_v33, 16  ;;  %v1597_v45 = vshll.u32 %v14960_v34, 16  ;;  %v1605_v47 = vshll.u32 %v14964_v36, 16  ;;  %v14571_v2 = vld [vmem:[%s19074_s1 + $0x18] sm:$0xff]   ;;  %v14576_v21 = vld [vmem:[%s19074_s1 + $0x20] sm:$0xff]  }
  0x1a   : > { %v1547_v14 = vor.u32 %v1546_v12, %v1542_v8  ;;  %v1560_v37 = vsel %vm19080_vm0, %v1555_v27, %v1559_v26  ;;  %v1571_v49 = vor.u32 %v1569_v35, %v1567_v32  ;;  %v1583_v50 = vrot.slane %v1581_v41, 1  ;;  %v15009_v8 = vld [vmem:[%s14908_s29 + $0x70] sm:$0xff]   ;;  %v15012_v9 = vld [vmem:[%s14908_s29 + $0x78] sm:$0xff]  }
  0x1b   : > { %12529 = vmatpush3.bf16.msra.mxu0 %v14552_v3  ;;  %v1568_v42 = vsel %vm19080_vm0, %v1563_v31, %v1567_v32  ;;  %v1593_v51 = vshrl.u32 %v14957_v33, 16  ;;  %v1579_v52 = vor.u32 %v1577_v40, %v1575_v38  ;;  %v1591_v53 = vrot.slane %v1589_v44, 1  ;;  %v15030_v32 = vld [vmem:[%s14908_s29 + $0x88] sm:$0xff]  }
  0x1c   : > { %12530 = vmatprep.subr.bf16.mxu0 %v14553_v11  ;;  %v1552_v16 = vsel %vm19080_vm0, %v1547_v14, %v1551_v13  ;;  %v1601_v54 = vshrl.u32 %v14960_v34, 16  ;;  %v1599_v57 = vrot.slane %v1597_v45, 1  ;;  %v1607_v58 = vrot.slane %v1605_v47, 1  ;;  %v14581_v45 = vld [vmem:[%s14908_s29 + $0x90] sm:$0xff]  }
  0x1d   : > { %12538 = vmatprep.mubr.bf16.mxu0 %v1552_v16  ;;  %v1613_v59 = vshll.u32 %v14977_v46, 16  ;;  %v1621_v60 = vshll.u32 %v14981_v48, 16  ;;  %v1576_v62 = vsel %vm19080_vm0, %v1571_v49, %v1575_v38  ;;  %v1609_v63 = vshrl.u32 %v14964_v36, 16  ;;  %v15018_v16 = vld [vmem:[%s14908_s29 + $0x80] sm:$0xff]   ;;  %v14579_v36 = vld [vmem:[%s19074_s1 + $0x28] sm:$0xff]   ;;  %v14584_v47 = vld [vmem:[%s19074_s1 + $0x30] sm:$0xff]  }
  0x1e   : > { %v1584_v1 = vsel %vm19080_vm0, %v1579_v52, %v1583_v50  ;;  %v1629_v3 = vshll.u32 %v14989_v56, 16  ;;  %v1617_v4 = vshrl.u32 %v14977_v46, 16  ;;  %v1625_v5 = vshrl.u32 %v14981_v48, 16  ;;  %v14587_v48 = vld [vmem:[%s19074_s1 + $0x38] sm:$0xff]   ;;  %v15053_v52 = vld [vmem:[%s19074_s1 + $0x80] sm:$0xff]  }
  0x1f   : > { %12531 = vmatpush3.bf16.msra.mxu0 %v14553_v11  ;;  %v1615_v10 = vrot.slane %v1613_v59, 1  ;;  %v1623_v11 = vrot.slane %v1621_v60, 1  ;;  %v1587_v12 = vor.u32 %v1585_v43, %v1583_v50  ;;  %v1633_v13 = vshrl.u32 %v14989_v56, 16 }
  0x20   : > { %12532 = vmatprep.subr.bf16.mxu0 %v14554_v15  ;;  %v1637_v14 = vshll.u32 %v14994_v61, 16  ;;  %v1653_v22 = vshll.u32 %v15009_v8, 16  ;;  %v1661_v23 = vshll.u32 %v15012_v9, 16  ;;  %v1641_v24 = vshrl.u32 %v14994_v61, 16 }
  0x21   : > { %v1649_v26 = vshrl.u32 %v14999_v0, 16  ;;  %v1592_v27 = vsel %vm19080_vm0, %v1587_v12, %v1591_v53  ;;  %v1669_v31 = vshll.u32 %v15018_v16, 16  ;;  %v1657_v35 = vshrl.u32 %v15009_v8, 16 }
  0x22   : > { %v1663_v38 = vrot.slane %v1661_v23, 1  ;;  %v1673_v40 = vshrl.u32 %v15018_v16, 16  ;;  %v1603_v41 = vor.u32 %v1601_v54, %v1599_v57  ;;  %v1677_v43 = vshll.u32 %v15030_v32, 16 }
  0x23   : > { %12533 = vmatpush3.bf16.msra.mxu0 %v14554_v15  ;;  %v1645_v15 = vshll.u32 %v14999_v0, 16  ;;  %v1611_v44 = vor.u32 %v1609_v63, %v1607_v58  ;;  %v1681_v46 = vshrl.u32 %v15030_v32, 16  ;;  %v1627_v54 = vor.u32 %v1625_v5, %v1623_v11 }
  0x24   : > { %12534 = vmatprep.subr.bf16.mxu0 %v14555_v19  ;;  %v1608_v49 = vsel %vm19080_vm0, %v1603_v41, %v1607_v58  ;;  %v1679_v61 = vrot.slane %v1677_v43, 1 }
  0x25   : > { %v1647_v29 = vrot.slane %v1645_v15, 1  ;;  %v1616_v50 = vsel %vm19080_vm0, %v1611_v44, %v1615_v10 }
  0x27   : > { %12535 = vmatpush3.bf16.msra.mxu0 %v14555_v19  ;;  %v1595_v19 = vor.u32 %v1593_v51, %v1591_v53  ;;  %v1685_v51 = vshll.u32 %v14581_v45, 16  ;;  %v1619_v53 = vor.u32 %v1617_v4, %v1615_v10  ;;  %v1651_v63 = vor.u32 %v1649_v26, %v1647_v29 }
  0x28   : > { %12536 = vmatprep.subr.bf16.mxu0 %v14556_v20 }
  0x29   : > { %v1600_v34 = vsel %vm19080_vm0, %v1595_v19, %v1599_v57 }
  0x2b   : > { %12537 = vmatpush3.bf16.msra.mxu0 %v14556_v20  ;;  %v1631_v20 = vrot.slane %v1629_v3, 1 }
  0x2c   : > { %12586 = vmatprep.subr.bf16.mxu0 %v14560_v28 }
  0x2d   : > { %v1632_v56 = vsel %vm19080_vm0, %v1627_v54, %v1631_v20  ;;  %v1635_v57 = vor.u32 %v1633_v13, %v1631_v20  ;;  %v1683_v20 = vor.u32 %v1681_v46, %v1679_v61  ;;  %v14592_v54 = vld [vmem:[%s19074_s1 + $0x90] sm:$0xff]  }
  0x2e   : > { %12539 = vmatmul.mubr.bf16.vlgmr.msra.gmra.mrb[0].mxu0 %v1560_v37  ;;  %v1655_v37 = vrot.slane %v1653_v22, 1 }
  0x2f   : > { %12587 = vmatpush3.bf16.msra.mxu0 %v14560_v28  ;;  %12542 = vmatprep.mubr.bf16.mxu0 %v1568_v42  ;;  %v1639_v28 = vrot.slane %v1637_v14, 1  ;;  %v1671_v42 = vrot.slane %v1669_v31, 1  ;;  %v1687_v14 = vrot.slane %v1685_v51, 1 }
  0x30   : > { %12588 = vmatprep.subr.bf16.mxu0 %v14563_v39  ;;  %v1659_v0 = vor.u32 %v1657_v35, %v1655_v37  ;;  %v1656_v3 = vsel %vm19080_vm0, %v1651_v63, %v1655_v37  ;;  %v15173_v63 = vld [vmem:[%s14908_s29 + $0x88] sm:$0xff]  }
  0x31   : > { %v1643_v58 = vor.u32 %v1641_v24, %v1639_v28  ;;  %v1640_v59 = vsel %vm19080_vm0, %v1635_v57, %v1639_v28  ;;  %v1675_v10 = vor.u32 %v1673_v40, %v1671_v42  ;;  %v15079_v24 = vld [vmem:[%s14908_s29 + $0xb0] sm:$0xff]   ;;  %v1688_v28 = vsel %vm19080_vm0, %v1683_v20, %v1687_v14  ;;  %v15149_v57 = vld [vmem:[%s14908_s29 + $0x58] sm:$0xff]  }
  0x32   : > { %v1664_v4 = vsel %vm19080_vm0, %v1659_v0, %v1663_v38  ;;  %v1717_v32 = vshll.u32 %v15079_v24, 16  ;;  %v1721_v35 = vshrl.u32 %v15079_v24, 16  ;;  %v15177_v0 = vld [vmem:[%s14908_s29 + $0x90] sm:$0xff]  }
  0x33   : > { %12589 = vmatpush3.bf16.msra.mxu0 %v14563_v39  ;;  %v1665_v39 = vshrl.u32 %v15012_v9, 16  ;;  %v1648_v60 = vsel %vm19080_vm0, %v1643_v58, %v1647_v29  ;;  %v1680_v13 = vsel %vm19080_vm0, %v1675_v10, %v1679_v61  ;;  %v15153_v58 = vld [vmem:[%s14908_s29 + $0x60] sm:$0xff]   ;;  %v15165_v61 = vld [vmem:[%s14908_s29 + $0x78] sm:$0xff]  }
  0x34   : > { %12590 = vmatprep.subr.bf16.mxu0 %v14568_v55  ;;  %v1719_v41 = vrot.slane %v1717_v32, 1 }
  0x35   : > { %v1667_v9 = vor.u32 %v1665_v39, %v1663_v38  ;;  %v15091_v38 = vld [vmem:[%s14908_s29 + $0xc0] ss:$0 sps:$4 sm:$0x11]  }
  0x36   : > { %12543 = vmatmul.mubr.bf16.gmra.mrb[4].mxu0 %v1576_v62  ;;  %v1689_v62 = vshrl.u32 %v14581_v45, 16  ;;  %v1733_v45 = vshll.u32 %v15091_v38, 16  ;;  %v1723_v46 = vor.u32 %v1721_v35, %v1719_v41  ;;  %v14603_v35 = vld [vmem:[%s19074_s1 + $0xe0] sm:$0xff]  }
  0x37   : > { %12546 = vmatprep.mubr.bf16.mxu0 %v1584_v1  ;;  %12591 = vmatpush3.bf16.msra.mxu0 %v14568_v55  ;;  %v1624_v55 = vsel %vm19080_vm0, %v1619_v53, %v1623_v11  ;;  %v15061_v1 = vld [vmem:[%s14908_s29 + $0x98] sm:$0xff]   ;;  %v15071_v11 = vld [vmem:[%s14908_s29 + $0xa8] sm:$0xff]   ;;  %v1672_v12 = vsel %vm19080_vm0, %v1667_v9, %v1671_v42 }
  0x38   : > { %12592 = vmatprep.subr.bf16.mxu0 %v14571_v2  ;;  %v1693_v5 = vshll.u32 %v15061_v1, 16  ;;  %v1697_v16 = vshrl.u32 %v15061_v1, 16  ;;  %v1709_v22 = vshll.u32 %v15071_v11, 16  ;;  %v1691_v23 = vor.u32 %v1689_v62, %v1687_v14  ;;  %v14591_v53 = vld [vmem:[%s19074_s1 + $0x88] sm:$0xff]   ;;  %v15169_v62 = vld [vmem:[%s14908_s29 + $0x80] sm:$0xff]  }
  0x39   : > { %v1713_v26 = vshrl.u32 %v15071_v11, 16  ;;  %v14832_v9 = vld [vmem:[%s14908_s29 + $0x8] sm:$0xff]  }
  0x3a   : > { %v1695_v15 = vrot.slane %v1693_v5, 1  ;;  %v1711_v31 = vrot.slane %v1709_v22, 1  ;;  %v2354_v10 = vrot.slane %v14832_v9, 1 }
  0x3b   : > { %12593 = vmatpush3.bf16.msra.mxu0 %v14571_v2  ;;  %v15064_v2 = vld [vmem:[%s14908_s29 + $0xa0] sm:$0xff]  }
  0x3c   : > { %12594 = vmatprep.subr.bf16.mxu0 %v14576_v21  ;;  %v1701_v8 = vshll.u32 %v15064_v2, 16  ;;  %v1705_v19 = vshrl.u32 %v15064_v2, 16  ;;  %v1696_v29 = vsel %vm19080_vm0, %v1691_v23, %v1695_v15  ;;  %v1715_v43 = vor.u32 %v1713_v26, %v1711_v31  ;;  %v14601_v23 = vld [vmem:[%s19074_s1 + $0xd0] sm:$0xff]  }
  0x3e   : > { %12547 = vmatmul.mubr.bf16.gmra.mrb[8].mxu0 %v1592_v27  ;;  %v15083_v27 = vld [vmem:[%s14908_s29 + $0xb8] sm:$0xff]  }
  0x3f   : > { %12550 = vmatprep.mubr.bf16.mxu0 %v1600_v34  ;;  %12595 = vmatpush3.bf16.msra.mxu0 %v14576_v21  ;;  %v1703_v21 = vrot.slane %v1701_v8, 1  ;;  %v1699_v34 = vor.u32 %v1697_v16, %v1695_v15  ;;  %v1729_v42 = vshrl.u32 %v15083_v27, 16  ;;  %v14600_v16 = vld [vmem:[%s19074_s1 + $0xc8] sm:$0xff]  }
  0x40   : > { %12596 = vmatprep.subr.bf16.mxu0 %v14579_v36 }
  0x41   : > { %v1707_v37 = vor.u32 %v1705_v19, %v1703_v21  ;;  %v1704_v39 = vsel %vm19080_vm0, %v1699_v34, %v1703_v21  ;;  %v14835_v19 = vld [vmem:[%s14908_s29 + $0x20] sm:$0xff]   ;;  %v14836_v21 = vld [vmem:[%s14908_s29 + $0x28] sm:$0xff]  }
  0x42   : > { %v2360_v20 = vrot.slane %v14835_v19, 1  ;;  %v2362_v22 = vrot.slane %v14836_v21, 1  ;;  %v14614_v19 = vld [vmem:[%s14908_s29 + $0x34] sm:$0xff]   ;;  %v14628_v21 = vld [vmem:[%s19074_s1 + $0x128] sm:$0xff]  }
  0x43   : > { %12597 = vmatpush3.bf16.msra.mxu0 %v14579_v36  ;;  %v1725_v36 = vshll.u32 %v15083_v27, 16  ;;  %v1712_v40 = vsel %vm19080_vm0, %v1707_v37, %v1711_v31  ;;  %v14837_v31 = vld [vmem:[%s14908_s29 + $0x30] sm:$0xff]  }
  0x44   : > { %12598 = vmatprep.subr.bf16.mxu0 %v14584_v47  ;;  %v2364_v32 = vrot.slane %v14837_v31, 1  ;;  %v14619_v31 = vld [vmem:[%s14908_s29 + $0x54] sm:$0xff]  }
  0x45   : > { %v1727_v44 = vrot.slane %v1725_v36, 1 }
  0x46   : > { %12551 = vmatmul.mubr.bf16.gmra.mrb[12].mxu0 %v1608_v49  ;;  %v2365_v36 = vsel %vm19079_vm1, %v2362_v22, %v2364_v32 }
  0x47   : > { %12554 = vmatprep.mubr.bf16.mxu0 %v1616_v50  ;;  %12599 = vmatpush3.bf16.msra.mxu0 %v14584_v47  ;;  %v1720_v47 = vsel %vm19080_vm0, %v1715_v43, %v1719_v41  ;;  %v1731_v49 = vor.u32 %v1729_v42, %v1727_v44  ;;  %v1735_v50 = vrot.slane %v1733_v45, 1  ;;  %v14605_v42 = vld [vmem:[%s19074_s1 + $0xf0] sm:$0xff]   ;;  %v14606_v45 = vld [vmem:[%s19074_s1 + $0xf8] sm:$0xff]  }
  0x48   : > { %12600 = vmatprep.subr.bf16.mxu0 %v14587_v48 }
  0x49   : > { %v1736_v51 = vsel %vm19080_vm0, %v1731_v49, %v1735_v50 }
  0x4b   : > { %12601 = vmatpush3.bf16.msra.mxu0 %v14587_v48  ;;  %v1728_v48 = vsel %vm19080_vm0, %v1723_v46, %v1727_v44 }
  0x4c   : > { %12650 = vmatprep.subr.bf16.mxu0 %v15053_v52 }
  0x4e   : > { %12555 = vmatmul.mubr.bf16.gmra.mrb[16].mxu0 %v1624_v55  ;;  %v14593_v55 = vld [vmem:[%s19074_s1 + $0x98] sm:$0xff]  }
  0x4f   : > { %12558 = vmatprep.mubr.bf16.mxu0 %v1632_v56  ;;  %v15145_v56 = vld [vmem:[%s14908_s29 + $0x50] sm:$0xff]  }
  0x50   : > { %v2372_v46 = vrot.slane %v15145_v56, 1 }
  0x56   : > { %12559 = vmatmul.mubr.bf16.gmra.mrb[20].mxu0 %v1640_v59  ;;  %v15157_v59 = vld [vmem:[%s14908_s29 + $0x68] sm:$0xff]  }
  0x57   : > { %12562 = vmatprep.mubr.bf16.mxu0 %v1648_v60  ;;  %v15161_v60 = vld [vmem:[%s14908_s29 + $0x70] sm:$0xff]  }
  0x5e   : > { %12563 = vmatmul.mubr.bf16.gmra.mrb[24].mxu0 %v1656_v3  ;;  %v2331_v3 = vld [vmem:[%s14908_s29] sm:$0xe] }
  0x5f   : > { %12566 = vmatprep.mubr.bf16.mxu0 %v1664_v4  ;;  %v14831_v4 = vld [vmem:[%s14908_s29 + $0x4] sm:$0xf] }
  0x60   : > { %v11374_v5 = vcombine.low %v2331_v3, %v14831_v4 }
  0x62   : > { %v2353_v8 = vrot.slane %v11374_v5, 1 }
  0x66   : > { %12567 = vmatmul.mubr.bf16.gmra.mrb[28].mxu0 %v1672_v12  ;;  %v2355_v12 = vsel %vm19079_vm1, %v2353_v8, %v2354_v10  ;;  %v2398_v8 = vrot.slane %v15083_v27, 1 }
  0x67   : > { %12570 = vmatprep.mubr.bf16.mxu0 %v1680_v13  ;;  %v14834_v13 = vld [vmem:[%s14908_s29 + $0x18] sm:$0xff]  }
  0x68   : > { %v2358_v14 = vrot.slane %v14834_v13, 1  ;;  %v14608_v13 = vld [vmem:[%s14908_s29 + $0x14] sm:$0xff]  }
  0x6a   : > { %v2361_v26 = vsel %vm19079_vm1, %v2358_v14, %v2360_v20 }
  0x6e   : > { %12571 = vmatmul.mubr.bf16.gmra.mrb[32].mxu0 %v1688_v28  ;;  %v2363_v28 = vsel %vm19079_vm1, %v2360_v20, %v2362_v22  ;;  %v14615_v20 = vld [vmem:[%s14908_s29 + $0x3c] sm:$0xff]   ;;  %v14633_v22 = vld [vmem:[%s19074_s1 + $0x130] sm:$0xff]  }
  0x6f   : > { %12574 = vmatprep.mubr.bf16.mxu0 %v1696_v29  ;;  %v14602_v29 = vld [vmem:[%s19074_s1 + $0xd8] sm:$0xff]  }
  0x76   : > { %12575 = vmatmul.mubr.bf16.gmra.mrb[36].mxu0 %v1704_v39  ;;  %v14604_v39 = vld [vmem:[%s19074_s1 + $0xe8] sm:$0xff]  }
  0x77   : > { %12578 = vmatprep.mubr.bf16.mxu0 %v1712_v40 }
  0x7e   : > { %12579 = vmatmul.mubr.bf16.gmra.mrb[40].mxu0 %v1720_v47  ;;  %v2374_v47 = vrot.slane %v15149_v57, 1 }
  0x7f   : > { %12582 = vmatprep.mubr.bf16.mxu0 %v1728_v48  ;;  %v14609_v48 = vld [vmem:[%s19074_s1 + $0x100] sm:$0xff]  }
  0x80   : > { %v2375_v50 = vsel %vm19079_vm1, %v2372_v46, %v2374_v47 }
  0x86   : > { %12583 = vmatmul.mubr.bf16.gmra.mrb[44].mxu0 %v1736_v51  ;;  %v2376_v51 = vrot.slane %v15153_v58, 1 }
  0x87   : > { %12602 = vmatprep.mubr.bf16.mxu0 %v14915_v6  ;;  %v14594_v6 = vld [vmem:[%s19074_s1 + $0xa0] sm:$0xff]  }
  0x8e   : > { %12603 = vmatmul.mubr.bf16.vlgmr.msra.gmra.mrb[0].mxu0 %v14918_v7  ;;  %v14595_v7 = vld [vmem:[%s19074_s1 + $0xa8] sm:$0xff]  }
  0x8f   : > { %12651 = vmatpush3.bf16.msra.mxu0 %v15053_v52  ;;  %12606 = vmatprep.mubr.bf16.mxu0 %v14931_v17  ;;  %v14596_v17 = vld [vmem:[%s19074_s1 + $0xb0] sm:$0xff]   ;;  %v15141_v52 = vld [vmem:[%s14908_s29 + $0x48] sm:$0xff]  }
  0x90   : > { %12652 = vmatprep.subr.bf16.mxu0 %v14591_v53  ;;  %v2370_v41 = vrot.slane %v15141_v52, 1 }
  0x92   : > { %v2373_v49 = vsel %vm19079_vm1, %v2370_v41, %v2372_v46  ;;  %v14634_v46 = vld [vmem:[%s14908_s29 + $0xac] sm:$0xff]  }
  0x93   : > { %12653 = vmatpush3.bf16.msra.mxu0 %v14591_v53  ;;  %v2378_v53 = vrot.slane %v15157_v59, 1 }
  0x94   : > { %12654 = vmatprep.subr.bf16.mxu0 %v14592_v54 }
  0x96   : > { %12607 = vmatmul.mubr.bf16.gmra.mrb[4].mxu0 %v14934_v18  ;;  %v14597_v18 = vld [vmem:[%s19074_s1 + $0xb8] sm:$0xff]  }
  0x97   : > { %12610 = vmatprep.mubr.bf16.mxu0 %v14947_v25  ;;  %12655 = vmatpush3.bf16.msra.mxu0 %v14592_v54  ;;  %v15130_v25 = vld [vmem:[%s14908_s29 + $0x38] sm:$0xff]   ;;  %v2377_v54 = vsel %vm19079_vm1, %v2374_v47, %v2376_v51 }
  0x98   : > { %12656 = vmatprep.subr.bf16.mxu0 %v14593_v55  ;;  %v2366_v34 = vrot.slane %v15130_v25, 1 }
  0x9a   : > { %v2367_v37 = vsel %vm19079_vm1, %v2364_v32, %v2366_v34  ;;  %v14621_v32 = vld [vmem:[%s14908_s29 + $0x5c] sm:$0xff]  }
  0x9b   : > { %12657 = vmatpush3.bf16.msra.mxu0 %v14593_v55  ;;  %v2379_v55 = vsel %vm19079_vm1, %v2376_v51, %v2378_v53  ;;  %v14637_v51 = vld [vmem:[%s14908_s29 + $0xbc] sm:$0xff]  }
  0x9c   : > { %12658 = vmatprep.subr.bf16.mxu0 %v14594_v6 }
  0x9e   : > { %12611 = vmatmul.mubr.bf16.gmra.mrb[8].mxu0 %v14954_v30  ;;  %v15134_v30 = vld [vmem:[%s14908_s29 + $0x40] sm:$0xff]  }
  0x9f   : > { %12614 = vmatprep.mubr.bf16.mxu0 %v14957_v33  ;;  %12659 = vmatpush3.bf16.msra.mxu0 %v14594_v6  ;;  %v14599_v33 = vld [vmem:[%s19074_s1 + $0xc0] sm:$0xff]   ;;  %v2368_v40 = vrot.slane %v15134_v30, 1  ;;  %v2380_v6 = vrot.slane %v15161_v60, 1 }
  0xa0   : > { %12660 = vmatprep.subr.bf16.mxu0 %v14595_v7 }
  0xa1   : > { %v2369_v43 = vsel %vm19079_vm1, %v2366_v34, %v2368_v40  ;;  %v2371_v44 = vsel %vm19079_vm1, %v2368_v40, %v2370_v41  ;;  %v14622_v34 = vld [vmem:[%s14908_s29 + $0x64] sm:$0xff]   ;;  %v14629_v40 = vld [vmem:[%s14908_s29 + $0x8c] sm:$0xff]   ;;  %v14630_v41 = vld [vmem:[%s14908_s29 + $0x94] sm:$0xff]  }
  0xa3   : > { %12661 = vmatpush3.bf16.msra.mxu0 %v14595_v7  ;;  %v2382_v7 = vrot.slane %v15165_v61, 1 }
  0xa4   : > { %12662 = vmatprep.subr.bf16.mxu0 %v14596_v17 }
  0xa6   : > { %12615 = vmatmul.mubr.bf16.gmra.mrb[12].mxu0 %v15130_v25  ;;  %v2384_v25 = vrot.slane %v15169_v62, 1 }
  0xa7   : > { %12618 = vmatprep.mubr.bf16.mxu0 %v15134_v30  ;;  %12663 = vmatpush3.bf16.msra.mxu0 %v14596_v17  ;;  %v2381_v17 = vsel %vm19079_vm1, %v2378_v53, %v2380_v6  ;;  %v2386_v30 = vrot.slane %v15173_v63, 1 }
  0xa8   : > { %12664 = vmatprep.subr.bf16.mxu0 %v14597_v18 }
  0xab   : > { %12665 = vmatpush3.bf16.msra.mxu0 %v14597_v18  ;;  %v2383_v18 = vsel %vm19079_vm1, %v2380_v6, %v2382_v7  ;;  %v15319_v6 = vld [vmem:[%s14908_s29 + $0x1c] sm:$0xff]  }
  0xac   : > { %12714 = vmatprep.subr.bf16.mxu0 %v14599_v33 }
  0xae   : > { %12619 = vmatmul.mubr.bf16.gmra.mrb[16].mxu0 %v15141_v52  ;;  %v2387_v52 = vsel %vm19079_vm1, %v2384_v25, %v2386_v30 }
  0xaf   : > { %12622 = vmatprep.mubr.bf16.mxu0 %v15145_v56  ;;  %v2388_v56 = vrot.slane %v15177_v0, 1 }
  0xb6   : > { %12623 = vmatmul.mubr.bf16.gmra.mrb[20].mxu0 %v15149_v57  ;;  %v14838_v57 = vld [vmem:[%s14908_s29 + $0x98] sm:$0xff]  }
  0xb7   : > { %12626 = vmatprep.mubr.bf16.mxu0 %v15153_v58  ;;  %v2390_v58 = vrot.slane %v14838_v57, 1 }
  0xbe   : > { %12627 = vmatmul.mubr.bf16.gmra.mrb[24].mxu0 %v15157_v59  ;;  %v2389_v59 = vsel %vm19079_vm1, %v2386_v30, %v2388_v56  ;;  %v3482_v30 = vshll.u32 %v15319_v6, 16 }
  0xbf   : > { %12630 = vmatprep.mubr.bf16.mxu0 %v15161_v60  ;;  %v2391_v60 = vsel %vm19079_vm1, %v2388_v56, %v2390_v58  ;;  %v3486_v56 = vshrl.u32 %v15319_v6, 16 }
  0xc6   : > { %12631 = vmatmul.mubr.bf16.gmra.mrb[28].mxu0 %v15165_v61  ;;  %v14839_v61 = vld [vmem:[%s14908_s29 + $0xa0] sm:$0xff]  }
  0xc7   : > { %12634 = vmatprep.mubr.bf16.mxu0 %v15169_v62  ;;  %v2392_v62 = vrot.slane %v14839_v61, 1 }
  0xc9   : > { %v2393_v4 = vsel %vm19079_vm1, %v2390_v58, %v2392_v62  ;;  %v3484_v58 = vrot.slane %v3482_v30, 1 }
  0xcb   : > { %v3488_v61 = vor.u32 %v3486_v56, %v3484_v58 }
  0xce   : > { %12635 = vmatmul.mubr.bf16.gmra.mrb[32].mxu0 %v15173_v63  ;;  %v14840_v63 = vld [vmem:[%s14908_s29 + $0xa8] sm:$0xff]  }
  0xcf   : > { %12638 = vmatprep.mubr.bf16.mxu0 %v15177_v0  ;;  %v2394_v3 = vrot.slane %v14840_v63, 1  ;;  %v2396_v0 = vrot.slane %v15079_v24, 1  ;;  %v15334_v63 = vld [vmem:[%s14908_s29 + $0x34] sm:$0xff]  }
  0xd1   : > { %v2395_v5 = vsel %vm19079_vm1, %v2392_v62, %v2394_v3  ;;  %v2397_v9 = vsel %vm19079_vm1, %v2394_v3, %v2396_v0 }
  0xd6   : > { %12639 = vmatmul.mubr.bf16.gmra.mrb[36].mxu0 %v15061_v1  ;;  %v14833_v1 = vld [vmem:[%s14908_s29 + $0x10] sm:$0xff]  }
  0xd7   : > { %12642 = vmatprep.mubr.bf16.mxu0 %v15064_v2  ;;  %v2356_v2 = vrot.slane %v14833_v1, 1 }
  0xd9   : > { %v2357_v15 = vsel %vm19079_vm1, %v2354_v10, %v2356_v2  ;;  %v2399_v10 = vsel %vm19079_vm1, %v2396_v0, %v2398_v8 }
  0xde   : > { %12643 = vmatmul.mubr.bf16.gmra.mrb[40].mxu0 %v15071_v11  ;;  %v2359_v11 = vsel %vm19079_vm1, %v2356_v2, %v2358_v14  ;;  %v14607_v2 = vld [vmem:[%s14908_s29 + $0xc] sm:$0xff]   ;;  %v14610_v14 = vld [vmem:[%s14908_s29 + $0x1c] sm:$0xff]  }
  0xdf   : > { %12646 = vmatprep.mubr.bf16.mxu0 %v15079_v24  ;;  %v14612_v24 = vld [vmem:[%s19074_s1 + $0x108] sm:$0xff]  }
  0xe6   : > { %12647 = vmatmul.mubr.bf16.gmra.mrb[44].mxu0 %v15083_v27  ;;  %v14617_v27 = vld [vmem:[%s19074_s1 + $0x110] sm:$0xff]  }
  0xe7   : > { %12666 = vmatprep.mubr.bf16.mxu0 %v2355_v12  ;;  %v2400_v12 = vrot.slane %v15091_v38, 1  ;;  %v14611_v38 = vld [vmem:[%s14908_s29 + $0x24] sm:$0xff]  }
  0xe9   : > { %v2401_v1 = vsel %vm19079_vm1, %v2398_v8, %v2400_v12  ;;  %v14645_v8 = vld [vmem:[%s19074_s1 + $0x148] sm:$0xff]  }
  0xee   : > { %12667 = vmatmul.mubr.bf16.vlgmr.msra.gmra.mrb[0].mxu0 %v2357_v15  ;;  %v14613_v15 = vld [vmem:[%s14908_s29 + $0x2c] sm:$0xff]  }
  0xef   : > { %12715 = vmatpush3.bf16.msra.mxu0 %v14599_v33  ;;  %12670 = vmatprep.mubr.bf16.mxu0 %v2359_v11  ;;  %v2385_v33 = vsel %vm19079_vm1, %v2382_v7, %v2384_v25  ;;  %v14620_v11 = vld [vmem:[%s19074_s1 + $0x118] sm:$0xff]   ;;  %v14638_v25 = vld [vmem:[%s14908_s29 + $0xc4] sm:$0xff]  }
  0xf0   : > { %12716 = vmatprep.subr.bf16.mxu0 %v14600_v16 }
  0xf3   : > { %12717 = vmatpush3.bf16.msra.mxu0 %v14600_v16  ;;  %v14625_v16 = vld [vmem:[%s19074_s1 + $0x120] sm:$0xff]  }
  0xf4   : > { %12718 = vmatprep.subr.bf16.mxu0 %v14601_v23 }
  0xf6   : > { %12671 = vmatmul.mubr.bf16.gmra.mrb[4].mxu0 %v2361_v26  ;;  %v14618_v26 = vld [vmem:[%s14908_s29 + $0x4c] sm:$0xff]  }
  0xf7   : > { %12674 = vmatprep.mubr.bf16.mxu0 %v2363_v28  ;;  %12719 = vmatpush3.bf16.msra.mxu0 %v14601_v23  ;;  %v14616_v23 = vld [vmem:[%s14908_s29 + $0x44] sm:$0xff]   ;;  %v14636_v28 = vld [vmem:[%s19074_s1 + $0x138] sm:$0xff]  }
  0xf8   : > { %12720 = vmatprep.subr.bf16.mxu0 %v14602_v29 }
  0xfb   : > { %12721 = vmatpush3.bf16.msra.mxu0 %v14602_v29  ;;  %v15292_v29 = vld [vmem:[%s19074_s1 + $0x140] sm:$0xff]  }
  0xfc   : > { %12722 = vmatprep.subr.bf16.mxu0 %v14603_v35 }
  0xfe   : > { %12675 = vmatmul.mubr.bf16.gmra.mrb[8].mxu0 %v2365_v36  ;;  %v14624_v36 = vld [vmem:[%s14908_s29 + $0x74] sm:$0xff]  }
  0xff   : > { %12678 = vmatprep.mubr.bf16.mxu0 %v2367_v37  ;;  %12723 = vmatpush3.bf16.msra.mxu0 %v14603_v35  ;;  %v14623_v35 = vld [vmem:[%s14908_s29 + $0x6c] sm:$0xff]   ;;  %v14626_v37 = vld [vmem:[%s14908_s29 + $0x7c] sm:$0xff]  }
 0x100   : > { %12724 = vmatprep.subr.bf16.mxu0 %v14604_v39 }
 0x103   : > { %12725 = vmatpush3.bf16.msra.mxu0 %v14604_v39  ;;  %v14627_v39 = vld [vmem:[%s14908_s29 + $0x84] sm:$0xff]  }
 0x104   : > { %12726 = vmatprep.subr.bf16.mxu0 %v14605_v42 }
 0x106   : > { %12679 = vmatmul.mubr.bf16.gmra.mrb[12].mxu0 %v2369_v43  ;;  %v3277_v43 = vld [vmem:[%s14908_s29 + $0xc] sm:$0xf] }
 0x107   : > { %12682 = vmatprep.mubr.bf16.mxu0 %v2371_v44  ;;  %12727 = vmatpush3.bf16.msra.mxu0 %v14605_v42  ;;  %v14631_v42 = vld [vmem:[%s14908_s29 + $0x9c] sm:$0xff]   ;;  %v15307_v44 = vld [vmem:[%s14908_s29 + $0x10] sm:$0xf] }
 0x108   : > { %12728 = vmatprep.subr.bf16.mxu0 %v14606_v45  ;;  %v11447_v47 = vcombine.low %v3277_v43, %v15307_v44  ;;  %v15383_v43 = vld [vmem:[%s14908_s29 + $0x5c] sm:$0xff]  }
 0x10a   : > { %v3467_v53 = vshrl.u32 %v11447_v47, 16 }
 0x10b   : > { %12729 = vmatpush3.bf16.msra.mxu0 %v14606_v45  ;;  %v14632_v45 = vld [vmem:[%s14908_s29 + $0xa4] sm:$0xff]  }
 0x10c   : > { %12778 = vmatprep.subr.bf16.mxu0 %v14609_v48 }
 0x10e   : > { %12683 = vmatmul.mubr.bf16.gmra.mrb[16].mxu0 %v2373_v49  ;;  %v3469_v49 = vshll.u32 %v11447_v47, 16 }
 0x10f   : > { %12686 = vmatprep.mubr.bf16.mxu0 %v2375_v50  ;;  %v14635_v50 = vld [vmem:[%s14908_s29 + $0xb4] sm:$0xff]  }
 0x116   : > { %12687 = vmatmul.mubr.bf16.gmra.mrb[20].mxu0 %v2377_v54  ;;  %v3471_v54 = vrot.slane %v3469_v49, 1  ;;  %v15386_v49 = vld [vmem:[%s14908_s29 + $0x64] sm:$0xff]  }
 0x117   : > { %12690 = vmatprep.mubr.bf16.mxu0 %v2379_v55 }
 0x118   : > { %v3472_v7 = vor.u32 %v3471_v54, %v3467_v53 }
 0x11e   : > { %12691 = vmatmul.mubr.bf16.gmra.mrb[24].mxu0 %v2381_v17 }
 0x11f   : > { %12694 = vmatprep.mubr.bf16.mxu0 %v2383_v18  ;;  %v15322_v18 = vld [vmem:[%s14908_s29 + $0x24] sm:$0xff]  }
 0x120   : > { %v3490_v57 = vshll.u32 %v15322_v18, 16 }
 0x122   : > { %v3492_v62 = vrot.slane %v3490_v57, 1 }
 0x124   : > { %v3493_v0 = vsel %vm19080_vm0, %v3488_v61, %v3492_v62 }
 0x126   : > { %12695 = vmatmul.mubr.bf16.gmra.mrb[28].mxu0 %v2385_v33 }
 0x127   : > { %12698 = vmatprep.mubr.bf16.mxu0 %v2387_v52 }
 0x12e   : > { %12699 = vmatmul.mubr.bf16.gmra.mrb[32].mxu0 %v2389_v59  ;;  %v15331_v59 = vld [vmem:[%s14908_s29 + $0x2c] sm:$0xff]  }
 0x12f   : > { %12702 = vmatprep.mubr.bf16.mxu0 %v2391_v60  ;;  %v3498_v3 = vshll.u32 %v15331_v59, 16 }
 0x131   : > { %v3500_v12 = vrot.slane %v3498_v3, 1  ;;  %v3558_v3 = vshrl.u32 %v15386_v49, 16 }
 0x136   : > { %12703 = vmatmul.mubr.bf16.gmra.mrb[36].mxu0 %v2393_v4 }
 0x137   : > { %12706 = vmatprep.mubr.bf16.mxu0 %v2395_v5  ;;  %v3494_v5 = vshrl.u32 %v15322_v18, 16 }
 0x13e   : > { %12707 = vmatmul.mubr.bf16.gmra.mrb[40].mxu0 %v2397_v9  ;;  %v3502_v9 = vshrl.u32 %v15331_v59, 16 }
 0x13f   : > { %12710 = vmatprep.mubr.bf16.mxu0 %v2399_v10  ;;  %v3506_v10 = vshll.u32 %v15334_v63, 16 }
 0x146   : > { %12711 = vmatmul.mubr.bf16.gmra.mrb[44].mxu0 %v2401_v1  ;;  %v15346_v1 = vld [vmem:[%s14908_s29 + $0x3c] sm:$0xff]  }
 0x147   : > { %12730 = vmatprep.mubr.bf16.mxu0 %v14607_v2  ;;  %v3496_v2 = vor.u32 %v3494_v5, %v3492_v62 }
 0x14e   : > { %12731 = vmatmul.mubr.bf16.vlgmr.msra.gmra.mrb[0].mxu0 %v14608_v13  ;;  %v3504_v13 = vor.u32 %v3502_v9, %v3500_v12  ;;  %v15419_v9 = vld [vmem:[%s14908_s29 + $0x7c] sm:$0xff]  }
 0x14f   : > { %12779 = vmatpush3.bf16.msra.mxu0 %v14609_v48  ;;  %12734 = vmatprep.mubr.bf16.mxu0 %v14610_v14  ;;  %v15313_v48 = vld [vmem:[%s14908_s29 + $0x14] sm:$0xff]   ;;  %v3508_v14 = vrot.slane %v3506_v10, 1 }
 0x150   : > { %12780 = vmatprep.subr.bf16.mxu0 %v14612_v24  ;;  %v3474_v55 = vshll.u32 %v15313_v48, 16  ;;  %v3478_v33 = vshrl.u32 %v15313_v48, 16 }
 0x152   : > { %v3476_v17 = vrot.slane %v3474_v55, 1 }
 0x153   : > { %12781 = vmatpush3.bf16.msra.mxu0 %v14612_v24  ;;  %v15350_v24 = vld [vmem:[%s14908_s29 + $0x44] sm:$0xff]  }
 0x154   : > { %12782 = vmatprep.subr.bf16.mxu0 %v14617_v27  ;;  %v3477_v52 = vsel %vm19080_vm0, %v3472_v7, %v3476_v17  ;;  %v3480_v60 = vor.u32 %v3478_v33, %v3476_v17  ;;  %v3550_v7 = vshrl.u32 %v15383_v43, 16  ;;  %v3554_v17 = vshll.u32 %v15386_v49, 16  ;;  %v15401_v33 = vld [vmem:[%s14908_s29 + $0x6c] sm:$0xff]  }
 0x155   : > { %v3562_v61 = vshll.u32 %v15401_v33, 16  ;;  %v3566_v5 = vshrl.u32 %v15401_v33, 16 }
 0x156   : > { %12735 = vmatmul.mubr.bf16.gmra.mrb[4].mxu0 %v14611_v38  ;;  %v3485_v4 = vsel %vm19080_vm0, %v3480_v60, %v3484_v58  ;;  %v3514_v38 = vshll.u32 %v15346_v1, 16  ;;  %v3556_v57 = vrot.slane %v3554_v17, 1  ;;  %v15404_v58 = vld [vmem:[%s14908_s29 + $0x74] sm:$0xff]   ;;  %v15409_v60 = vld [vmem:[%s19074_s1 + $0x180] sm:$0xff]   ;;  %v15455_v17 = vld [vmem:[%s14908_s29 + $0xac] sm:$0xff]  }
 0x157   : > { %12738 = vmatprep.mubr.bf16.mxu0 %v14613_v15  ;;  %12783 = vmatpush3.bf16.msra.mxu0 %v14617_v27  ;;  %v14650_v27 = vld [vmem:[%s19074_s1 + $0x150] sm:$0xff]   ;;  %v3501_v15 = vsel %vm19080_vm0, %v3496_v2, %v3500_v12 }
 0x158   : > { %12784 = vmatprep.subr.bf16.mxu0 %v14620_v11  ;;  %v3560_v10 = vor.u32 %v3558_v3, %v3556_v57 }
 0x15b   : > { %12785 = vmatpush3.bf16.msra.mxu0 %v14620_v11  ;;  %v3510_v11 = vshrl.u32 %v15334_v63, 16 }
 0x15c   : > { %12786 = vmatprep.subr.bf16.mxu0 %v14625_v16 }
 0x15e   : > { %12739 = vmatmul.mubr.bf16.gmra.mrb[8].mxu0 %v14614_v19  ;;  %v3518_v19 = vshrl.u32 %v15346_v1, 16 }
 0x15f   : > { %12742 = vmatprep.mubr.bf16.mxu0 %v14615_v20  ;;  %12787 = vmatpush3.bf16.msra.mxu0 %v14625_v16  ;;  %v3509_v16 = vsel %vm19080_vm0, %v3504_v13, %v3508_v14  ;;  %v3522_v20 = vshll.u32 %v15350_v24, 16  ;;  %v15422_v13 = vld [vmem:[%s14908_s29 + $0x84] sm:$0xff]  }
 0x160   : > { %12788 = vmatprep.subr.bf16.mxu0 %v14628_v21 }
 0x163   : > { %12789 = vmatpush3.bf16.msra.mxu0 %v14628_v21  ;;  %v14653_v21 = vld [vmem:[%s19074_s1 + $0x158] sm:$0xff]  }
 0x164   : > { %12790 = vmatprep.subr.bf16.mxu0 %v14633_v22 }
 0x166   : > { %12743 = vmatmul.mubr.bf16.gmra.mrb[12].mxu0 %v14616_v23  ;;  %v15365_v23 = vld [vmem:[%s14908_s29 + $0x4c] sm:$0xff]  }
 0x167   : > { %12746 = vmatprep.mubr.bf16.mxu0 %v14618_v26  ;;  %12791 = vmatpush3.bf16.msra.mxu0 %v14633_v22  ;;  %v3516_v22 = vrot.slane %v3514_v38, 1  ;;  %v3512_v26 = vor.u32 %v3510_v11, %v3508_v14  ;;  %v3578_v14 = vshll.u32 %v15419_v9, 16  ;;  %v3574_v38 = vshrl.u32 %v15404_v58, 16 }
 0x168   : > { %12792 = vmatprep.subr.bf16.mxu0 %v14636_v28  ;;  %v3582_v11 = vshrl.u32 %v15419_v9, 16 }
 0x16b   : > { %12793 = vmatpush3.bf16.msra.mxu0 %v14636_v28  ;;  %v3520_v28 = vor.u32 %v3518_v19, %v3516_v22  ;;  %v3580_v19 = vrot.slane %v3578_v14, 1  ;;  %v15470_v14 = vld [vmem:[%s14908_s29 + $0xc4] sm:$0xff]  }
 0x16c   : > { %12842 = vmatprep.subr.bf16.mxu0 %v15292_v29 }
 0x16e   : > { %12747 = vmatmul.mubr.bf16.gmra.mrb[16].mxu0 %v14619_v31  ;;  %v15368_v31 = vld [vmem:[%s14908_s29 + $0x54] sm:$0xff]  }
 0x16f   : > { %12750 = vmatprep.mubr.bf16.mxu0 %v14621_v32  ;;  %v14658_v32 = vld [vmem:[%s19074_s1 + $0x160] sm:$0xff]   ;;  %v3542_v54 = vshrl.u32 %v15368_v31, 16 }
 0x176   : > { %12751 = vmatmul.mubr.bf16.gmra.mrb[20].mxu0 %v14622_v34  ;;  %v3530_v34 = vshll.u32 %v15365_v23, 16 }
 0x177   : > { %12754 = vmatprep.mubr.bf16.mxu0 %v14623_v35  ;;  %v3517_v35 = vsel %vm19080_vm0, %v3512_v26, %v3516_v22  ;;  %v3584_v22 = vor.u32 %v3582_v11, %v3580_v19 }
 0x17e   : > { %12755 = vmatmul.mubr.bf16.gmra.mrb[24].mxu0 %v14624_v36  ;;  %v3526_v36 = vshrl.u32 %v15350_v24, 16 }
 0x17f   : > { %12758 = vmatprep.mubr.bf16.mxu0 %v14626_v37 }
 0x186   : > { %12759 = vmatmul.mubr.bf16.gmra.mrb[28].mxu0 %v14627_v39  ;;  %v3534_v39 = vshrl.u32 %v15365_v23, 16 }
 0x187   : > { %12762 = vmatprep.mubr.bf16.mxu0 %v14629_v40  ;;  %v3538_v40 = vshll.u32 %v15368_v31, 16 }
 0x189   : > { %v3540_v47 = vrot.slane %v3538_v40, 1  ;;  %v15443_v40 = vld [vmem:[%s14908_s29 + $0x9c] sm:$0xff]  }
 0x18e   : > { %12763 = vmatmul.mubr.bf16.gmra.mrb[32].mxu0 %v14630_v41  ;;  %v14661_v41 = vld [vmem:[%s19074_s1 + $0x168] sm:$0xff]  }
 0x18f   : > { %12766 = vmatprep.mubr.bf16.mxu0 %v14631_v42  ;;  %v3532_v42 = vrot.slane %v3530_v34, 1  ;;  %v3590_v34 = vshrl.u32 %v15422_v13, 16 }
 0x196   : > { %12767 = vmatmul.mubr.bf16.gmra.mrb[36].mxu0 %v14632_v45 }
 0x197   : > { %12770 = vmatprep.mubr.bf16.mxu0 %v14634_v46  ;;  %v3536_v46 = vor.u32 %v3534_v39, %v3532_v42 }
 0x199   : > { %v3541_v55 = vsel %vm19080_vm0, %v3536_v46, %v3540_v47  ;;  %v15446_v46 = vld [vmem:[%s14908_s29 + $0xa4] sm:$0xff]  }
 0x19e   : > { %12771 = vmatmul.mubr.bf16.gmra.mrb[40].mxu0 %v14635_v50  ;;  %v14666_v50 = vld [vmem:[%s19074_s1 + $0x170] sm:$0xff]  }
 0x19f   : > { %12774 = vmatprep.mubr.bf16.mxu0 %v14637_v51  ;;  %v3546_v51 = vshll.u32 %v15383_v43, 16 }
 0x1a1   : > { %v3548_v30 = vrot.slane %v3546_v51, 1 }
 0x1a3   : > { %v3552_v56 = vor.u32 %v3550_v7, %v3548_v30 }
 0x1a6   : > { %12775 = vmatmul.mubr.bf16.gmra.mrb[44].mxu0 %v14638_v25  ;;  %v14669_v25 = vld [vmem:[%s19074_s1 + $0x178] sm:$0xff]  }
 0x1a7   : > { %12794 = vmatprep.mubr.bf16.mxu0 %v3477_v52  ;;  %v3544_v52 = vor.u32 %v3542_v54, %v3540_v47  ;;  %v3610_v47 = vshll.u32 %v15443_v40, 16  ;;  %v3614_v54 = vshrl.u32 %v15443_v40, 16 }
 0x1a9   : > { %v3549_v62 = vsel %vm19080_vm0, %v3544_v52, %v3548_v30  ;;  %v3612_v7 = vrot.slane %v3610_v47, 1 }
 0x1ab   : > { %v3616_v30 = vor.u32 %v3614_v54, %v3612_v7  ;;  %v4031_v54 = vrot.slane %v15319_v6, 1  ;;  %v14675_v6 = vld [vmem:[%s19074_s1 + $0x190] sm:$0xff]  }
 0x1ae   : > { %12795 = vmatmul.mubr.bf16.vlgmr.msra.gmra.mrb[0].mxu0 %v3485_v4  ;;  %v3557_v4 = vsel %vm19080_vm0, %v3552_v56, %v3556_v57  ;;  %v15458_v56 = vld [vmem:[%s14908_s29 + $0xb4] sm:$0xff]   ;;  %v3626_v57 = vshll.u32 %v15455_v17, 16 }
 0x1af   : > { %12843 = vmatpush3.bf16.msra.mxu0 %v15292_v29  ;;  %12798 = vmatprep.mubr.bf16.mxu0 %v3493_v0  ;;  %v3524_v29 = vrot.slane %v3522_v20, 1  ;;  %v3570_v0 = vshll.u32 %v15404_v58, 16  ;;  %v15431_v20 = vld [vmem:[%s14908_s29 + $0x8c] sm:$0xff]  }
 0x1b0   : > { %12844 = vmatprep.subr.bf16.mxu0 %v14645_v8 }
 0x1b1   : > { %v3525_v37 = vsel %vm19080_vm0, %v3520_v28, %v3524_v29  ;;  %v3528_v45 = vor.u32 %v3526_v36, %v3524_v29  ;;  %v3572_v2 = vrot.slane %v3570_v0, 1  ;;  %v15434_v28 = vld [vmem:[%s14908_s29 + $0x94] sm:$0xff]   ;;  %v3594_v29 = vshll.u32 %v15431_v20, 16 }
 0x1b2   : > { %v3598_v36 = vshrl.u32 %v15431_v20, 16  ;;  %v3606_v51 = vshrl.u32 %v15434_v28, 16  ;;  %v3628_v0 = vrot.slane %v3626_v57, 1  ;;  %v14677_v57 = vld [vmem:[%s19074_s1 + $0x1a0] sm:$0xff]  }
 0x1b3   : > { %12845 = vmatpush3.bf16.msra.mxu0 %v14645_v8  ;;  %v3533_v53 = vsel %vm19080_vm0, %v3528_v45, %v3532_v42  ;;  %v3564_v8 = vrot.slane %v3562_v61, 1  ;;  %v3596_v39 = vrot.slane %v3594_v29, 1 }
 0x1b4   : > { %12846 = vmatprep.subr.bf16.mxu0 %v14650_v27 }
 0x1b5   : > { %v3568_v12 = vor.u32 %v3566_v5, %v3564_v8  ;;  %v3600_v42 = vor.u32 %v3598_v36, %v3596_v39  ;;  %v3634_v5 = vshll.u32 %v15458_v56, 16  ;;  %v3654_v36 = vshrl.u32 %v15470_v14, 16 }
 0x1b6   : > { %12799 = vmatmul.mubr.bf16.gmra.mrb[4].mxu0 %v3501_v15 }
 0x1b7   : > { %12802 = vmatprep.mubr.bf16.mxu0 %v3509_v16  ;;  %12847 = vmatpush3.bf16.msra.mxu0 %v14650_v27  ;;  %v3565_v27 = vsel %vm19080_vm0, %v3560_v10, %v3564_v8  ;;  %v3573_v15 = vsel %vm19080_vm0, %v3568_v12, %v3572_v2  ;;  %v3586_v16 = vshll.u32 %v15422_v13, 16  ;;  %v15467_v8 = vld [vmem:[%s14908_s29 + $0xbc] sm:$0xff]  }
 0x1b8   : > { %12848 = vmatprep.subr.bf16.mxu0 %v14653_v21 }
 0x1b9   : > { %v3588_v26 = vrot.slane %v3586_v16, 1  ;;  %v3646_v16 = vshrl.u32 %v15467_v8, 16 }
 0x1bb   : > { %12849 = vmatpush3.bf16.msra.mxu0 %v14653_v21  ;;  %v3576_v21 = vor.u32 %v3574_v38, %v3572_v2  ;;  %v3636_v2 = vrot.slane %v3634_v5, 1 }
 0x1bc   : > { %12850 = vmatprep.subr.bf16.mxu0 %v14658_v32 }
 0x1be   : > { %12803 = vmatmul.mubr.bf16.gmra.mrb[8].mxu0 %v3517_v35  ;;  %v3589_v35 = vsel %vm19080_vm0, %v3584_v22, %v3588_v26 }
 0x1bf   : > { %12806 = vmatprep.mubr.bf16.mxu0 %v3525_v37  ;;  %12851 = vmatpush3.bf16.msra.mxu0 %v14658_v32  ;;  %v3581_v32 = vsel %vm19080_vm0, %v3576_v21, %v3580_v19  ;;  %v3602_v37 = vshll.u32 %v15434_v28, 16  ;;  %v3650_v19 = vshll.u32 %v15470_v14, 16 }
 0x1c0   : > { %12852 = vmatprep.subr.bf16.mxu0 %v14661_v41 }
 0x1c1   : > { %v3604_v45 = vrot.slane %v3602_v37, 1 }
 0x1c3   : > { %12853 = vmatpush3.bf16.msra.mxu0 %v14661_v41  ;;  %v3592_v41 = vor.u32 %v3590_v34, %v3588_v26  ;;  %v15479_v26 = vld [vmem:[%s14908_s29 + $0xcc] ss:$0 sps:$4 sm:$0x11]   ;;  %v4007_v34 = vld [vmem:[%s14908_s29 + $0xc] sm:$0xe] }
 0x1c4   : > { %12854 = vmatprep.subr.bf16.mxu0 %v14666_v50  ;;  %v3658_v37 = vshll.u32 %v15479_v26, 16 }
 0x1c6   : > { %12807 = vmatmul.mubr.bf16.gmra.mrb[12].mxu0 %v3533_v53  ;;  %v3605_v53 = vsel %vm19080_vm0, %v3600_v42, %v3604_v45 }
 0x1c7   : > { %12810 = vmatprep.mubr.bf16.mxu0 %v3541_v55  ;;  %12855 = vmatpush3.bf16.msra.mxu0 %v14666_v50  ;;  %v3597_v50 = vsel %vm19080_vm0, %v3592_v41, %v3596_v39  ;;  %v3618_v55 = vshll.u32 %v15446_v46, 16  ;;  %v11496_v41 = vcombine.low %v4007_v34, %v15307_v44 }
 0x1c8   : > { %12856 = vmatprep.subr.bf16.mxu0 %v14669_v25 }
 0x1c9   : > { %v3620_v52 = vrot.slane %v3618_v55, 1  ;;  %v4028_v47 = vrot.slane %v11496_v41, 1  ;;  %v4033_v55 = vrot.slane %v15322_v18, 1  ;;  %v14681_v41 = vld [vmem:[%s14908_s29 + $0x18] sm:$0xff]  }
 0x1cb   : > { %12857 = vmatpush3.bf16.msra.mxu0 %v14669_v25  ;;  %v3608_v25 = vor.u32 %v3606_v51, %v3604_v45  ;;  %v3621_v3 = vsel %vm19080_vm0, %v3616_v30, %v3620_v52  ;;  %v3660_v45 = vrot.slane %v3658_v37, 1  ;;  %v4034_v44 = vsel %vm19079_vm1, %v4031_v54, %v4033_v55 }
 0x1cc   : > { %12906 = vmatprep.subr.bf16.mxu0 %v15409_v60  ;;  %v4037_v30 = vrot.slane %v15334_v63, 1  ;;  %v4041_v63 = vrot.slane %v15350_v24, 1  ;;  %v4045_v24 = vrot.slane %v15368_v31, 1  ;;  %v4049_v31 = vrot.slane %v15386_v49, 1 }
 0x1cd   : > { %v3613_v61 = vsel %vm19080_vm0, %v3608_v25, %v3612_v7  ;;  %v14674_v25 = vld [vmem:[%s19074_s1 + $0x188] sm:$0xff]  }
 0x1ce   : > { %12811 = vmatmul.mubr.bf16.gmra.mrb[16].mxu0 %v3549_v62  ;;  %v3622_v62 = vshrl.u32 %v15446_v46, 16 }
 0x1cf   : > { %12814 = vmatprep.mubr.bf16.mxu0 %v3557_v4  ;;  %v3630_v4 = vshrl.u32 %v15455_v17, 16 }
 0x1d0   : > { %v3624_v10 = vor.u32 %v3622_v62, %v3620_v52 }
 0x1d1   : > { %v3632_v12 = vor.u32 %v3630_v4, %v3628_v0  ;;  %v14679_v4 = vld [vmem:[%s19074_s1 + $0x1b0] sm:$0xff]  }
 0x1d2   : > { %v3629_v38 = vsel %vm19080_vm0, %v3624_v10, %v3628_v0  ;;  %v14680_v10 = vld [vmem:[%s19074_s1 + $0x1b8] sm:$0xff]  }
 0x1d3   : > { %v3637_v11 = vsel %vm19080_vm0, %v3632_v12, %v3636_v2  ;;  %v14683_v12 = vld [vmem:[%s19074_s1 + $0x1c0] sm:$0xff]  }
 0x1d6   : > { %12815 = vmatmul.mubr.bf16.gmra.mrb[20].mxu0 %v3565_v27  ;;  %v3642_v27 = vshll.u32 %v15467_v8, 16 }
 0x1d7   : > { %12818 = vmatprep.mubr.bf16.mxu0 %v3573_v15  ;;  %v3638_v15 = vshrl.u32 %v15458_v56, 16 }
 0x1d8   : > { %v3644_v21 = vrot.slane %v3642_v27, 1 }
 0x1d9   : > { %v3640_v22 = vor.u32 %v3638_v15, %v3636_v2 }
 0x1da   : > { %v3648_v29 = vor.u32 %v3646_v16, %v3644_v21  ;;  %v4057_v16 = vrot.slane %v15422_v13, 1  ;;  %v4065_v13 = vrot.slane %v15446_v46, 1  ;;  %v4073_v46 = vrot.slane %v15470_v14, 1  ;;  %v14691_v14 = vld [vmem:[%s19074_s1 + $0x1d0] sm:$0xff]  }
 0x1de   : > { %12819 = vmatmul.mubr.bf16.gmra.mrb[24].mxu0 %v3581_v32  ;;  %v3652_v32 = vrot.slane %v3650_v19, 1 }
 0x1df   : > { %12822 = vmatprep.mubr.bf16.mxu0 %v3589_v35  ;;  %v3645_v35 = vsel %vm19080_vm0, %v3640_v22, %v3644_v21 }
 0x1e0   : > { %v3653_v39 = vsel %vm19080_vm0, %v3648_v29, %v3652_v32  ;;  %v3656_v42 = vor.u32 %v3654_v36, %v3652_v32 }
 0x1e2   : > { %v3661_v51 = vsel %vm19080_vm0, %v3656_v42, %v3660_v45  ;;  %v14682_v42 = vld [vmem:[%s14908_s29 + $0x20] sm:$0xff]   ;;  %v14684_v45 = vld [vmem:[%s14908_s29 + $0x28] sm:$0xff]  }
 0x1e6   : > { %12823 = vmatmul.mubr.bf16.gmra.mrb[28].mxu0 %v3597_v50  ;;  %v4029_v50 = vrot.slane %v15313_v48, 1  ;;  %v4035_v48 = vrot.slane %v15331_v59, 1  ;;  %v4039_v59 = vrot.slane %v15346_v1, 1  ;;  %v4043_v1 = vrot.slane %v15365_v23, 1 }
 0x1e7   : > { %12826 = vmatprep.mubr.bf16.mxu0 %v3605_v53  ;;  %v4047_v23 = vrot.slane %v15383_v43, 1  ;;  %v4053_v43 = vrot.slane %v15404_v58, 1  ;;  %v4061_v58 = vrot.slane %v15434_v28, 1  ;;  %v4069_v28 = vrot.slane %v15458_v56, 1 }
 0x1e8   : > { %v4030_v53 = vsel %vm19079_vm1, %v4028_v47, %v4029_v50  ;;  %v4032_v7 = vsel %vm19079_vm1, %v4029_v50, %v4031_v54  ;;  %v4036_v18 = vsel %vm19079_vm1, %v4033_v55, %v4035_v48  ;;  %v4038_v52 = vsel %vm19079_vm1, %v4035_v48, %v4037_v30  ;;  %v14687_v47 = vld [vmem:[%s14908_s29 + $0x38] sm:$0xff]   ;;  %v14689_v54 = vld [vmem:[%s14908_s29 + $0x48] sm:$0xff]  }
 0x1e9   : > { %v4042_v62 = vsel %vm19079_vm1, %v4039_v59, %v4041_v63  ;;  %v4044_v5 = vsel %vm19079_vm1, %v4041_v63, %v4043_v1  ;;  %v4046_v0 = vsel %vm19079_vm1, %v4043_v1, %v4045_v24  ;;  %v4048_v2 = vsel %vm19079_vm1, %v4045_v24, %v4047_v23  ;;  %v14694_v50 = vld [vmem:[%s19074_s1 + $0x1d8] sm:$0xff]   ;;  %v14702_v55 = vld [vmem:[%s19074_s1 + $0x1e8] sm:$0xff]  }
 0x1ea   : > { %v4050_v27 = vsel %vm19079_vm1, %v4047_v23, %v4049_v31  ;;  %v14710_v48 = vld [vmem:[%s19074_s1 + $0x1f8] sm:$0xff]   ;;  %v14700_v63 = vld [vmem:[%s14908_s29 + $0x88] sm:$0xff]  }
 0x1eb   : > { %v4952_v1 = vld [vmem:[%s14908_s29 + $0x18] sm:$0xf]  ;;  %v15609_v24 = vld [vmem:[%s14908_s29 + $0x1c] sm:$0xf] }
 0x1ee   : > { %12827 = vmatmul.mubr.bf16.gmra.mrb[32].mxu0 %v3613_v61  ;;  %v4040_v61 = vsel %vm19079_vm1, %v4037_v30, %v4039_v59  ;;  %v15594_v30 = vld [vmem:[%s19074_s1 + $0x200] sm:$0xff]  }
 0x1ef   : > { %12830 = vmatprep.mubr.bf16.mxu0 %v3621_v3  ;;  %v14678_v3 = vld [vmem:[%s19074_s1 + $0x1a8] sm:$0xff]   ;;  %v14698_v59 = vld [vmem:[%s14908_s29 + $0x80] sm:$0xff]  }
 0x1f6   : > { %12831 = vmatmul.mubr.bf16.gmra.mrb[36].mxu0 %v3629_v38  ;;  %v4051_v38 = vrot.slane %v15401_v33, 1  ;;  %v4059_v33 = vrot.slane %v15431_v20, 1  ;;  %v4067_v20 = vrot.slane %v15455_v17, 1  ;;  %v4075_v17 = vrot.slane %v15479_v26, 1  ;;  %v14685_v26 = vld [vmem:[%s14908_s29 + $0x30] sm:$0xff]  }
 0x1f7   : > { %12834 = vmatprep.mubr.bf16.mxu0 %v3637_v11  ;;  %v4055_v11 = vrot.slane %v15419_v9, 1  ;;  %v4063_v9 = vrot.slane %v15443_v40, 1  ;;  %v4071_v40 = vrot.slane %v15467_v8, 1  ;;  %v14686_v8 = vld [vmem:[%s19074_s1 + $0x1c8] sm:$0xff]  }
 0x1f8   : > { %v4052_v15 = vsel %vm19079_vm1, %v4049_v31, %v4051_v38  ;;  %v4054_v49 = vsel %vm19079_vm1, %v4051_v38, %v4053_v43  ;;  %v4060_v22 = vsel %vm19079_vm1, %v4057_v16, %v4059_v33  ;;  %v4062_v29 = vsel %vm19079_vm1, %v4059_v33, %v4061_v58  ;;  %v14709_v31 = vld [vmem:[%s14908_s29 + $0xc0] sm:$0xff]  }
 0x1f9   : > { %v4056_v19 = vsel %vm19079_vm1, %v4053_v43, %v4055_v11  ;;  %v4058_v21 = vsel %vm19079_vm1, %v4055_v11, %v4057_v16  ;;  %v4064_v32 = vsel %vm19079_vm1, %v4061_v58, %v4063_v9  ;;  %v4066_v34 = vsel %vm19079_vm1, %v4063_v9, %v4065_v13  ;;  %v15621_v43 = vld [vmem:[%s14908_s29 + $0x28] sm:$0xff]   ;;  %v15624_v11 = vld [vmem:[%s14908_s29 + $0x30] sm:$0xff]   ;;  %v15633_v9 = vld [vmem:[%s14908_s29 + $0x38] sm:$0xff]  }
 0x1fa   : > { %v4070_v36 = vsel %vm19079_vm1, %v4067_v20, %v4069_v28  ;;  %v4072_v37 = vsel %vm19079_vm1, %v4069_v28, %v4071_v40  ;;  %v4076_v56 = vsel %vm19079_vm1, %v4073_v46, %v4075_v17  ;;  %v14712_v16 = vld [vmem:[%s14908_s29 + $0xd0] sm:$0xff]   ;;  %v5161_v58 = vshrl.u32 %v15621_v43, 16 }
 0x1fb   : > { %v5173_v28 = vshll.u32 %v15633_v9, 16 }
 0x1fd   : > { %v5175_v17 = vrot.slane %v5173_v28, 1 }
 0x1fe   : > { %12835 = vmatmul.mubr.bf16.gmra.mrb[40].mxu0 %v3645_v35  ;;  %v4068_v35 = vsel %vm19079_vm1, %v4065_v13, %v4067_v20  ;;  %v15636_v20 = vld [vmem:[%s14908_s29 + $0x40] sm:$0xff]  }
 0x1ff   : > { %12838 = vmatprep.mubr.bf16.mxu0 %v3653_v39  ;;  %v4074_v39 = vsel %vm19079_vm1, %v4071_v40, %v4073_v46  ;;  %v14719_v46 = vld [vmem:[%s19074_s1 + $0x208] sm:$0xff]  }
 0x206   : > { %12839 = vmatmul.mubr.bf16.gmra.mrb[44].mxu0 %v3661_v51  ;;  %v14699_v51 = vld [vmem:[%s19074_s1 + $0x1e0] sm:$0xff]  }
 0x207   : > { %12858 = vmatprep.mubr.bf16.mxu0 %v4030_v53  ;;  %v14688_v53 = vld [vmem:[%s14908_s29 + $0x40] sm:$0xff]  }
 0x20e   : > { %12859 = vmatmul.mubr.bf16.vlgmr.msra.gmra.mrb[0].mxu0 %v4032_v7  ;;  %v14707_v7 = vld [vmem:[%s19074_s1 + $0x1f0] sm:$0xff]  }
 0x20f   : > { %12907 = vmatpush3.bf16.msra.mxu0 %v15409_v60  ;;  %12862 = vmatprep.mubr.bf16.mxu0 %v4034_v44  ;;  %v14676_v60 = vld [vmem:[%s19074_s1 + $0x198] sm:$0xff]   ;;  %v14690_v44 = vld [vmem:[%s14908_s29 + $0x50] sm:$0xff]  }
 0x210   : > { %12908 = vmatprep.subr.bf16.mxu0 %v14674_v25 }
 0x213   : > { %12909 = vmatpush3.bf16.msra.mxu0 %v14674_v25  ;;  %v14692_v25 = vld [vmem:[%s14908_s29 + $0x58] sm:$0xff]  }
 0x214   : > { %12910 = vmatprep.subr.bf16.mxu0 %v14675_v6 }
 0x216   : > { %12863 = vmatmul.mubr.bf16.gmra.mrb[4].mxu0 %v4036_v18  ;;  %v14695_v18 = vld [vmem:[%s14908_s29 + $0x68] sm:$0xff]  }
 0x217   : > { %12866 = vmatprep.mubr.bf16.mxu0 %v4038_v52  ;;  %12911 = vmatpush3.bf16.msra.mxu0 %v14675_v6  ;;  %v14693_v6 = vld [vmem:[%s14908_s29 + $0x60] sm:$0xff]   ;;  %v14696_v52 = vld [vmem:[%s14908_s29 + $0x70] sm:$0xff]  }
 0x218   : > { %12912 = vmatprep.subr.bf16.mxu0 %v14676_v60 }
 0x21b   : > { %12913 = vmatpush3.bf16.msra.mxu0 %v14676_v60  ;;  %v14697_v60 = vld [vmem:[%s14908_s29 + $0x78] sm:$0xff]  }
 0x21c   : > { %12914 = vmatprep.subr.bf16.mxu0 %v14677_v57 }
 0x21e   : > { %12867 = vmatmul.mubr.bf16.gmra.mrb[8].mxu0 %v4040_v61  ;;  %v14703_v61 = vld [vmem:[%s14908_s29 + $0x98] sm:$0xff]  }
 0x21f   : > { %12870 = vmatprep.mubr.bf16.mxu0 %v4042_v62  ;;  %12915 = vmatpush3.bf16.msra.mxu0 %v14677_v57  ;;  %v14701_v57 = vld [vmem:[%s14908_s29 + $0x90] sm:$0xff]   ;;  %v14704_v62 = vld [vmem:[%s14908_s29 + $0xa0] sm:$0xff]  }
 0x220   : > { %12916 = vmatprep.subr.bf16.mxu0 %v14678_v3 }
 0x223   : > { %12917 = vmatpush3.bf16.msra.mxu0 %v14678_v3  ;;  %v14705_v3 = vld [vmem:[%s14908_s29 + $0xa8] sm:$0xff]  }
 0x224   : > { %12918 = vmatprep.subr.bf16.mxu0 %v14679_v4 }
 0x226   : > { %12871 = vmatmul.mubr.bf16.gmra.mrb[12].mxu0 %v4044_v5  ;;  %v14708_v5 = vld [vmem:[%s14908_s29 + $0xb8] sm:$0xff]  }
 0x227   : > { %12874 = vmatprep.mubr.bf16.mxu0 %v4046_v0  ;;  %12919 = vmatpush3.bf16.msra.mxu0 %v14679_v4  ;;  %v14706_v4 = vld [vmem:[%s14908_s29 + $0xb0] sm:$0xff]   ;;  %v11569_v0 = vcombine.low %v4952_v1, %v15609_v24  ;;  %v15685_v1 = vld [vmem:[%s14908_s29 + $0x68] sm:$0xff]  }
 0x228   : > { %12920 = vmatprep.subr.bf16.mxu0 %v14680_v10 }
 0x229   : > { %v5144_v23 = vshll.u32 %v11569_v0, 16 }
 0x22b   : > { %12921 = vmatpush3.bf16.msra.mxu0 %v14680_v10  ;;  %v15615_v10 = vld [vmem:[%s14908_s29 + $0x20] sm:$0xff]  }
 0x22c   : > { %12970 = vmatprep.subr.bf16.mxu0 %v14683_v12  ;;  %v5149_v38 = vshll.u32 %v15615_v10, 16 }
 0x22e   : > { %12875 = vmatmul.mubr.bf16.gmra.mrb[16].mxu0 %v4048_v2  ;;  %v5142_v2 = vshrl.u32 %v11569_v0, 16 }
 0x22f   : > { %12878 = vmatprep.mubr.bf16.mxu0 %v4050_v27  ;;  %v5146_v27 = vrot.slane %v5144_v23, 1  ;;  %v15688_v23 = vld [vmem:[%s14908_s29 + $0x70] sm:$0xff]  }
 0x236   : > { %12879 = vmatmul.mubr.bf16.gmra.mrb[20].mxu0 %v4052_v15  ;;  %v5147_v15 = vor.u32 %v5146_v27, %v5142_v2 }
 0x237   : > { %12882 = vmatprep.mubr.bf16.mxu0 %v4054_v49  ;;  %v5151_v49 = vrot.slane %v5149_v38, 1 }
 0x239   : > { %v5152_v33 = vsel %vm19080_vm0, %v5147_v15, %v5151_v49  ;;  %v5225_v15 = vshrl.u32 %v15685_v1, 16 }
 0x23e   : > { %12883 = vmatmul.mubr.bf16.gmra.mrb[24].mxu0 %v4056_v19  ;;  %v5157_v19 = vshll.u32 %v15621_v43, 16 }
 0x23f   : > { %12886 = vmatprep.mubr.bf16.mxu0 %v4058_v21  ;;  %v5153_v21 = vshrl.u32 %v15615_v10, 16 }
 0x241   : > { %v5155_v13 = vor.u32 %v5153_v21, %v5151_v49  ;;  %v5229_v49 = vshll.u32 %v15688_v23, 16  ;;  %v15703_v21 = vld [vmem:[%s14908_s29 + $0x78] sm:$0xff]  }
 0x246   : > { %12887 = vmatmul.mubr.bf16.gmra.mrb[28].mxu0 %v4060_v22  ;;  %v5165_v22 = vshll.u32 %v15624_v11, 16 }
 0x247   : > { %12890 = vmatprep.mubr.bf16.mxu0 %v4062_v29  ;;  %v5159_v29 = vrot.slane %v5157_v19, 1 }
 0x24e   : > { %12891 = vmatmul.mubr.bf16.gmra.mrb[32].mxu0 %v4064_v32  ;;  %v5163_v32 = vor.u32 %v5161_v58, %v5159_v29 }
 0x24f   : > { %12894 = vmatprep.mubr.bf16.mxu0 %v4066_v34  ;;  %v5167_v34 = vrot.slane %v5165_v22, 1  ;;  %v5231_v22 = vrot.slane %v5229_v49, 1  ;;  %v14747_v49 = vld [vmem:[%s19076_s3 + $0x40] sm:$0xff]  }
 0x250   : > { %13098 = vmatprep.subr.bf16.mxu1 %v14747_v49 }
 0x251   : > { %v5168_v40 = vsel %vm19080_vm0, %v5163_v32, %v5167_v34  ;;  %13099 = vmatpush3.bf16.msra.mxu1 %v14747_v49  ;;  %v5708_v49 = vrot.slane %v15624_v11, 1 }
 0x256   : > { %12895 = vmatmul.mubr.bf16.gmra.mrb[36].mxu0 %v4068_v35  ;;  %v5160_v35 = vsel %vm19080_vm0, %v5155_v13, %v5159_v29  ;;  %v15706_v29 = vld [vmem:[%s14908_s29 + $0x80] sm:$0xff]   ;;  %v5237_v13 = vshll.u32 %v15703_v21, 16 }
 0x257   : > { %12898 = vmatprep.mubr.bf16.mxu0 %v4070_v36  ;;  %v5169_v36 = vshrl.u32 %v15624_v11, 16 }
 0x25e   : > { %12899 = vmatmul.mubr.bf16.gmra.mrb[40].mxu0 %v4072_v37  ;;  %v5177_v37 = vshrl.u32 %v15633_v9, 16 }
 0x25f   : > { %12902 = vmatprep.mubr.bf16.mxu0 %v4074_v39  ;;  %v5181_v39 = vshll.u32 %v15636_v20, 16 }
 0x266   : > { %12903 = vmatmul.mubr.bf16.gmra.mrb[44].mxu0 %v4076_v56  ;;  %v15648_v56 = vld [vmem:[%s14908_s29 + $0x48] sm:$0xff]  }
 0x267   : > { %12922 = vmatprep.mubr.bf16.mxu0 %v14681_v41  ;;  %v5171_v41 = vor.u32 %v5169_v36, %v5167_v34  ;;  %v5233_v34 = vshrl.u32 %v15688_v23, 16  ;;  %v5245_v36 = vshll.u32 %v15706_v29, 16 }
 0x26e   : > { %12923 = vmatmul.mubr.bf16.vlgmr.msra.gmra.mrb[0].mxu0 %v14682_v42  ;;  %v5179_v42 = vor.u32 %v5177_v37, %v5175_v17  ;;  %v5235_v37 = vor.u32 %v5233_v34, %v5231_v22 }
 0x26f   : > { %12971 = vmatpush3.bf16.msra.mxu0 %v14683_v12  ;;  %12926 = vmatprep.mubr.bf16.mxu0 %v14684_v45  ;;  %v14711_v12 = vld [vmem:[%s14908_s29 + $0xc8] sm:$0xff]   ;;  %v5183_v45 = vrot.slane %v5181_v39, 1 }
 0x270   : > { %12972 = vmatprep.subr.bf16.mxu0 %v14686_v8 }
 0x273   : > { %12973 = vmatpush3.bf16.msra.mxu0 %v14686_v8  ;;  %v15652_v8 = vld [vmem:[%s14908_s29 + $0x50] sm:$0xff]  }
 0x274   : > { %12974 = vmatprep.subr.bf16.mxu0 %v14691_v14  ;;  %v5716_v11 = vrot.slane %v15652_v8, 1 }
 0x276   : > { %12927 = vmatmul.mubr.bf16.gmra.mrb[4].mxu0 %v14685_v26  ;;  %v5189_v26 = vshll.u32 %v15648_v56, 16 }
 0x277   : > { %12930 = vmatprep.mubr.bf16.mxu0 %v14687_v47  ;;  %12975 = vmatpush3.bf16.msra.mxu0 %v14691_v14  ;;  %v14724_v14 = vld [vmem:[%s19074_s1 + $0x210] sm:$0xff]   ;;  %v5176_v47 = vsel %vm19080_vm0, %v5171_v41, %v5175_v17  ;;  %v5247_v17 = vrot.slane %v5245_v36, 1 }
 0x278   : > { %12976 = vmatprep.subr.bf16.mxu0 %v14694_v50  ;;  %v15718_v41 = vld [vmem:[%s14908_s29 + $0x90] sm:$0xff]  }
 0x27b   : > { %12977 = vmatpush3.bf16.msra.mxu0 %v14694_v50  ;;  %v5185_v50 = vshrl.u32 %v15636_v20, 16 }
 0x27c   : > { %12978 = vmatprep.subr.bf16.mxu0 %v14699_v51 }
 0x27e   : > { %12931 = vmatmul.mubr.bf16.gmra.mrb[8].mxu0 %v14688_v53  ;;  %v5193_v53 = vshrl.u32 %v15648_v56, 16 }
 0x27f   : > { %12934 = vmatprep.mubr.bf16.mxu0 %v14689_v54  ;;  %12979 = vmatpush3.bf16.msra.mxu0 %v14699_v51  ;;  %v5184_v51 = vsel %vm19080_vm0, %v5179_v42, %v5183_v45  ;;  %v5197_v54 = vshll.u32 %v15652_v8, 16 }
 0x280   : > { %12980 = vmatprep.subr.bf16.mxu0 %v14702_v55 }
 0x283   : > { %12981 = vmatpush3.bf16.msra.mxu0 %v14702_v55  ;;  %v14727_v55 = vld [vmem:[%s19074_s1 + $0x218] sm:$0xff]  }
 0x284   : > { %12982 = vmatprep.subr.bf16.mxu0 %v14707_v7 }
 0x286   : > { %12935 = vmatmul.mubr.bf16.gmra.mrb[12].mxu0 %v14690_v44  ;;  %v15667_v44 = vld [vmem:[%s14908_s29 + $0x58] sm:$0xff]  }
 0x287   : > { %12938 = vmatprep.mubr.bf16.mxu0 %v14692_v25  ;;  %12983 = vmatpush3.bf16.msra.mxu0 %v14707_v7  ;;  %v5191_v7 = vrot.slane %v5189_v26, 1  ;;  %v5187_v25 = vor.u32 %v5185_v50, %v5183_v45  ;;  %v5261_v50 = vshll.u32 %v15718_v41, 16 }
 0x288   : > { %12984 = vmatprep.subr.bf16.mxu0 %v14710_v48 }
 0x28b   : > { %12985 = vmatpush3.bf16.msra.mxu0 %v14710_v48  ;;  %v5195_v48 = vor.u32 %v5193_v53, %v5191_v7  ;;  %v15727_v53 = vld [vmem:[%s14908_s29 + $0x98] sm:$0xff]  }
 0x28c   : > { %13034 = vmatprep.subr.bf16.mxu0 %v15594_v30 }
 0x28e   : > { %12939 = vmatmul.mubr.bf16.gmra.mrb[16].mxu0 %v14693_v6  ;;  %v15670_v6 = vld [vmem:[%s14908_s29 + $0x60] sm:$0xff]  }
 0x28f   : > { %12942 = vmatprep.mubr.bf16.mxu0 %v14695_v18  ;;  %v14732_v18 = vld [vmem:[%s19074_s1 + $0x220] sm:$0xff]   ;;  %v5217_v27 = vshrl.u32 %v15670_v6, 16 }
 0x296   : > { %12943 = vmatmul.mubr.bf16.gmra.mrb[20].mxu0 %v14696_v52  ;;  %v5205_v52 = vshll.u32 %v15667_v44, 16 }
 0x297   : > { %12946 = vmatprep.mubr.bf16.mxu0 %v14697_v60  ;;  %v5192_v60 = vsel %vm19080_vm0, %v5187_v25, %v5191_v7  ;;  %v5263_v7 = vrot.slane %v5261_v50, 1  ;;  %v15730_v25 = vld [vmem:[%s14908_s29 + $0xa0] sm:$0xff]  }
 0x29e   : > { %12947 = vmatmul.mubr.bf16.gmra.mrb[24].mxu0 %v14698_v59  ;;  %v5201_v59 = vshrl.u32 %v15652_v8, 16  ;;  %v5724_v8 = vrot.slane %v15688_v23, 1  ;;  %v5732_v23 = vrot.slane %v15718_v41, 1 }
 0x29f   : > { %12950 = vmatprep.mubr.bf16.mxu0 %v14700_v63 }
 0x2a6   : > { %12951 = vmatmul.mubr.bf16.gmra.mrb[28].mxu0 %v14701_v57  ;;  %v5209_v57 = vshrl.u32 %v15667_v44, 16 }
 0x2a7   : > { %12954 = vmatprep.mubr.bf16.mxu0 %v14703_v61  ;;  %v5213_v61 = vshll.u32 %v15670_v6, 16 }
 0x2a9   : > { %v5215_v0 = vrot.slane %v5213_v61, 1 }
 0x2ae   : > { %12955 = vmatmul.mubr.bf16.gmra.mrb[32].mxu0 %v14704_v62  ;;  %v14735_v62 = vld [vmem:[%s19074_s1 + $0x228] sm:$0xff]  }
 0x2af   : > { %12958 = vmatprep.mubr.bf16.mxu0 %v14705_v3  ;;  %v5207_v3 = vrot.slane %v5205_v52, 1 }
 0x2b6   : > { %12959 = vmatmul.mubr.bf16.gmra.mrb[36].mxu0 %v14706_v4 }
 0x2b7   : > { %12962 = vmatprep.mubr.bf16.mxu0 %v14708_v5  ;;  %v5211_v5 = vor.u32 %v5209_v57, %v5207_v3  ;;  %v15739_v57 = vld [vmem:[%s14908_s29 + $0xa8] sm:$0xff]  }
 0x2b9   : > { %v5216_v38 = vsel %vm19080_vm0, %v5211_v5, %v5215_v0  ;;  %v5285_v5 = vshll.u32 %v15739_v57, 16 }
 0x2be   : > { %12963 = vmatmul.mubr.bf16.gmra.mrb[40].mxu0 %v14709_v31  ;;  %v14740_v31 = vld [vmem:[%s19074_s1 + $0x230] sm:$0xff]  }
 0x2bf   : > { %12966 = vmatprep.mubr.bf16.mxu0 %v14711_v12  ;;  %v5221_v12 = vshll.u32 %v15685_v1, 16 }
 0x2c1   : > { %v5223_v19 = vrot.slane %v5221_v12, 1 }
 0x2c3   : > { %v5227_v58 = vor.u32 %v5225_v15, %v5223_v19  ;;  %v15751_v15 = vld [vmem:[%s14908_s29 + $0xb8] sm:$0xff]  }
 0x2c4   : > { %v5305_v36 = vshrl.u32 %v15751_v15, 16 }
 0x2c5   : > { %v5232_v28 = vsel %vm19080_vm0, %v5227_v58, %v5231_v22  ;;  %v15760_v22 = vld [vmem:[%s14908_s29 + $0xc0] sm:$0xff]  }
 0x2c6   : > { %12967 = vmatmul.mubr.bf16.gmra.mrb[44].mxu0 %v14712_v16  ;;  %v14743_v16 = vld [vmem:[%s19074_s1 + $0x238] sm:$0xff]   ;;  %v5313_v50 = vshrl.u32 %v15760_v22, 16 }
 0x2c7   : > { %12986 = vmatprep.mubr.bf16.mxu0 %v5152_v33  ;;  %v5219_v33 = vor.u32 %v5217_v27, %v5215_v0 }
 0x2c9   : > { %v5224_v32 = vsel %vm19080_vm0, %v5219_v33, %v5223_v19 }
 0x2ce   : > { %12987 = vmatmul.mubr.bf16.vlgmr.msra.gmra.mrb[0].mxu0 %v5160_v35  ;;  %v5241_v35 = vshrl.u32 %v15703_v21, 16 }
 0x2cf   : > { %13035 = vmatpush3.bf16.msra.mxu0 %v15594_v30  ;;  %12990 = vmatprep.mubr.bf16.mxu0 %v5168_v40  ;;  %v5199_v30 = vrot.slane %v5197_v54, 1  ;;  %v5239_v40 = vrot.slane %v5237_v13, 1  ;;  %v5301_v13 = vshll.u32 %v15751_v15, 16 }
 0x2d0   : > { %13036 = vmatprep.subr.bf16.mxu0 %v14719_v46 }
 0x2d1   : > { %v5200_v63 = vsel %vm19080_vm0, %v5195_v48, %v5199_v30  ;;  %v5203_v4 = vor.u32 %v5201_v59, %v5199_v30  ;;  %v5243_v39 = vor.u32 %v5241_v35, %v5239_v40  ;;  %v5240_v45 = vsel %vm19080_vm0, %v5235_v37, %v5239_v40 }
 0x2d2   : > { %v5269_v48 = vshll.u32 %v15727_v53, 16  ;;  %v5277_v59 = vshll.u32 %v15730_v25, 16  ;;  %v5309_v40 = vshll.u32 %v15760_v22, 16  ;;  %v5303_v37 = vrot.slane %v5301_v13, 1 }
 0x2d3   : > { %13037 = vmatpush3.bf16.msra.mxu0 %v14719_v46  ;;  %v5208_v2 = vsel %vm19080_vm0, %v5203_v4, %v5207_v3  ;;  %v15715_v46 = vld [vmem:[%s14908_s29 + $0x88] sm:$0xff]   ;;  %v5248_v26 = vsel %vm19080_vm0, %v5243_v39, %v5247_v17  ;;  %v15742_v4 = vld [vmem:[%s14908_s29 + $0xb0] sm:$0xff]  }
 0x2d4   : > { %13038 = vmatprep.subr.bf16.mxu0 %v14724_v14  ;;  %v5253_v42 = vshll.u32 %v15715_v46, 16  ;;  %v5279_v3 = vrot.slane %v5277_v59, 1  ;;  %v5293_v27 = vshll.u32 %v15742_v4, 16  ;;  %v15772_v39 = vld [vmem:[%s14908_s29 + $0xc8] sm:$0xff]  }
 0x2d6   : > { %12991 = vmatmul.mubr.bf16.gmra.mrb[4].mxu0 %v5176_v47  ;;  %v5257_v47 = vshrl.u32 %v15715_v46, 16  ;;  %v5295_v58 = vrot.slane %v5293_v27, 1 }
 0x2d7   : > { %12994 = vmatprep.mubr.bf16.mxu0 %v5184_v51  ;;  %13039 = vmatpush3.bf16.msra.mxu0 %v14724_v14  ;;  %v5249_v14 = vshrl.u32 %v15706_v29, 16  ;;  %v5255_v51 = vrot.slane %v5253_v42, 1  ;;  %v5307_v42 = vor.u32 %v5305_v36, %v5303_v37 }
 0x2d8   : > { %13040 = vmatprep.subr.bf16.mxu0 %v14727_v55 }
 0x2d9   : > { %v5251_v54 = vor.u32 %v5249_v14, %v5247_v17  ;;  %v15775_v14 = vld [vmem:[%s14908_s29 + $0xd0] sm:$0xff]  }
 0x2db   : > { %13041 = vmatpush3.bf16.msra.mxu0 %v14727_v55  ;;  %v5259_v55 = vor.u32 %v5257_v47, %v5255_v51  ;;  %v5256_v30 = vsel %vm19080_vm0, %v5251_v54, %v5255_v51  ;;  %v5321_v54 = vshrl.u32 %v15772_v39, 16 }
 0x2dc   : > { %13042 = vmatprep.subr.bf16.mxu0 %v14732_v18 }
 0x2dd   : > { %v5264_v52 = vsel %vm19080_vm0, %v5259_v55, %v5263_v7  ;;  %v5325_v55 = vshll.u32 %v15775_v14, 16 }
 0x2de   : > { %12995 = vmatmul.mubr.bf16.gmra.mrb[8].mxu0 %v5192_v60  ;;  %v5273_v60 = vshrl.u32 %v15727_v53, 16 }
 0x2df   : > { %12998 = vmatprep.mubr.bf16.mxu0 %v5200_v63  ;;  %13043 = vmatpush3.bf16.msra.mxu0 %v14732_v18  ;;  %v5265_v18 = vshrl.u32 %v15718_v41, 16  ;;  %v5271_v63 = vrot.slane %v5269_v48, 1  ;;  %v5740_v41 = vrot.slane %v15742_v4, 1 }
 0x2e0   : > { %13044 = vmatprep.subr.bf16.mxu0 %v14735_v62 }
 0x2e1   : > { %v5267_v61 = vor.u32 %v5265_v18, %v5263_v7 }
 0x2e3   : > { %13045 = vmatpush3.bf16.msra.mxu0 %v14735_v62  ;;  %v5275_v62 = vor.u32 %v5273_v60, %v5271_v63  ;;  %v5272_v0 = vsel %vm19080_vm0, %v5267_v61, %v5271_v63  ;;  %v5682_v60 = vld [vmem:[%s14908_s29 + $0x18] sm:$0xe]  ;;  %v5329_v63 = vshrl.u32 %v15775_v14, 16 }
 0x2e4   : > { %13046 = vmatprep.subr.bf16.mxu0 %v14740_v31 }
 0x2e5   : > { %v5280_v12 = vsel %vm19080_vm0, %v5275_v62, %v5279_v3 }
 0x2e6   : > { %12999 = vmatmul.mubr.bf16.gmra.mrb[12].mxu0 %v5208_v2  ;;  %v5289_v2 = vshrl.u32 %v15739_v57, 16 }
 0x2e7   : > { %13002 = vmatprep.mubr.bf16.mxu0 %v5216_v38  ;;  %13047 = vmatpush3.bf16.msra.mxu0 %v14740_v31  ;;  %v5281_v31 = vshrl.u32 %v15730_v25, 16  ;;  %v5287_v38 = vrot.slane %v5285_v5, 1 }
 0x2e8   : > { %13048 = vmatprep.subr.bf16.mxu0 %v14743_v16 }
 0x2e9   : > { %v5283_v19 = vor.u32 %v5281_v31, %v5279_v3  ;;  %v5291_v33 = vor.u32 %v5289_v2, %v5287_v38  ;;  %v11618_v3 = vcombine.low %v5682_v60, %v15609_v24 }
 0x2eb   : > { %13049 = vmatpush3.bf16.msra.mxu0 %v14743_v16  ;;  %v14748_v16 = vld [vmem:[%s19076_s3 + $0x48] sm:$0xff]   ;;  %v5288_v34 = vsel %vm19080_vm0, %v5283_v19, %v5287_v38  ;;  %v5296_v35 = vsel %vm19080_vm0, %v5291_v33, %v5295_v58  ;;  %v5703_v31 = vrot.slane %v11618_v3, 1  ;;  %v5706_v38 = vrot.slane %v15621_v43, 1 }
 0x2ec   : > { %13100 = vmatprep.subr.bf16.mxu1 %v14748_v16  ;;  %v5710_v19 = vrot.slane %v15633_v9, 1  ;;  %v5714_v43 = vrot.slane %v15648_v56, 1  ;;  %v5718_v9 = vrot.slane %v15667_v44, 1  ;;  %v5722_v56 = vrot.slane %v15685_v1, 1 }
 0x2ed   : > { %13101 = vmatpush3.bf16.msra.mxu1 %v14748_v16  ;;  %v5709_v24 = vsel %vm19079_vm1, %v5706_v38, %v5708_v49  ;;  %v5726_v44 = vrot.slane %v15703_v21, 1  ;;  %v5730_v1 = vrot.slane %v15715_v46, 1  ;;  %v5734_v21 = vrot.slane %v15727_v53, 1 }
 0x2ee   : > { %13003 = vmatmul.mubr.bf16.gmra.mrb[16].mxu0 %v5224_v32  ;;  %v14749_v32 = vld [vmem:[%s19076_s3 + $0x50] sm:$0xff]   ;;  %v5711_v33 = vsel %vm19079_vm1, %v5708_v49, %v5710_v19  ;;  %v5725_v36 = vsel %vm19079_vm1, %v5722_v56, %v5724_v8  ;;  %v5738_v46 = vrot.slane %v15739_v57, 1  ;;  %v5742_v53 = vrot.slane %v15751_v15, 1 }
 0x2ef   : > { %13006 = vmatprep.mubr.bf16.mxu0 %v5232_v28  ;;  %v5297_v28 = vshrl.u32 %v15742_v4, 16  ;;  %13102 = vmatprep.subr.bf16.mxu1 %v14749_v32  ;;  %v5746_v57 = vrot.slane %v15772_v39, 1  ;;  %v5748_v4 = vrot.slane %v15775_v14, 1 }
 0x2f1   : > { %v5299_v17 = vor.u32 %v5297_v28, %v5295_v58  ;;  %13103 = vmatpush3.bf16.msra.mxu1 %v14749_v32  ;;  %v5717_v32 = vsel %vm19079_vm1, %v5714_v43, %v5716_v11  ;;  %v5749_v15 = vsel %vm19079_vm1, %v5746_v57, %v5748_v4 }
 0x2f3   : > { %v5304_v47 = vsel %vm19080_vm0, %v5299_v17, %v5303_v37 }
 0x2f6   : > { %13007 = vmatmul.mubr.bf16.gmra.mrb[20].mxu0 %v5240_v45  ;;  %v5311_v45 = vrot.slane %v5309_v40, 1  ;;  %v5727_v40 = vsel %vm19079_vm1, %v5724_v8, %v5726_v44 }
 0x2f7   : > { %13010 = vmatprep.mubr.bf16.mxu0 %v5248_v26  ;;  %v5317_v26 = vshll.u32 %v15772_v39, 16 }
 0x2f8   : > { %v5312_v51 = vsel %vm19080_vm0, %v5307_v42, %v5311_v45  ;;  %v5315_v48 = vor.u32 %v5313_v50, %v5311_v45  ;;  %v5733_v42 = vsel %vm19079_vm1, %v5730_v1, %v5732_v23  ;;  %v5735_v45 = vsel %vm19079_vm1, %v5732_v23, %v5734_v21 }
 0x2f9   : > { %v5319_v7 = vrot.slane %v5317_v26, 1  ;;  %v5741_v50 = vsel %vm19079_vm1, %v5738_v46, %v5740_v41 }
 0x2fb   : > { %v5323_v18 = vor.u32 %v5321_v54, %v5319_v7  ;;  %v5320_v59 = vsel %vm19080_vm0, %v5315_v48, %v5319_v7  ;;  %v14750_v7 = vld [vmem:[%s19076_s3 + $0x58] sm:$0xff]  }
 0x2fc   : > { %13104 = vmatprep.subr.bf16.mxu1 %v14750_v7 }
 0x2fd   : > { %13105 = vmatpush3.bf16.msra.mxu1 %v14750_v7 }
 0x2fe   : > { %13011 = vmatmul.mubr.bf16.gmra.mrb[24].mxu0 %v5256_v30  ;;  %v15784_v30 = vld [vmem:[%s14908_s29 + $0xd8] ss:$0 sps:$4 sm:$0x11]  }
 0x2ff   : > { %13014 = vmatprep.mubr.bf16.mxu0 %v5264_v52  ;;  %v5327_v52 = vrot.slane %v5325_v55, 1  ;;  %v5333_v61 = vshll.u32 %v15784_v30, 16  ;;  %v230_v55 = vlaneseq  ;;  %v5750_v39 = vrot.slane %v15784_v30, 1 }
 0x301   : > { %v5328_v62 = vsel %vm19080_vm0, %v5323_v18, %v5327_v52  ;;  %v5331_v5 = vor.u32 %v5329_v63, %v5327_v52  ;;  %v14751_v18 = vld [vmem:[%s19076_s3 + $0x60] sm:$0xff]   ;;  %v14752_v52 = vld [vmem:[%s19076_s3 + $0x68] sm:$0xff]   ;;  %v5751_v60 = vsel %vm19079_vm1, %v5748_v4, %v5750_v39  ;;  %v14753_v63 = vld [vmem:[%s19076_s3 + $0x70] sm:$0xff]  }
 0x302   : > { %13106 = vmatprep.subr.bf16.mxu1 %v14751_v18 }
 0x303   : > { %13107 = vmatpush3.bf16.msra.mxu1 %v14751_v18 }
 0x304   : > { %13108 = vmatprep.subr.bf16.mxu1 %v14752_v52 }
 0x306   : > { %13015 = vmatmul.mubr.bf16.gmra.mrb[28].mxu0 %v5272_v0  ;;  %v5335_v0 = vrot.slane %v5333_v61, 1 }
 0x307   : > { %13018 = vmatprep.mubr.bf16.mxu0 %v5280_v12  ;;  %v5704_v12 = vrot.slane %v15615_v10, 1  ;;  %v5712_v10 = vrot.slane %v15636_v20, 1  ;;  %v5720_v20 = vrot.slane %v15670_v6, 1  ;;  %v5728_v6 = vrot.slane %v15706_v29, 1  ;;  %13109 = vmatpush3.bf16.msra.mxu1 %v14752_v52 }
 0x308   : > { %v5336_v2 = vsel %vm19080_vm0, %v5331_v5, %v5335_v0  ;;  %v5736_v29 = vrot.slane %v15730_v25, 1  ;;  %v5744_v25 = vrot.slane %v15760_v22, 1  ;;  %v15842_v22 = vshrl.u32 %v230_v55, 7  ;;  %13110 = vmatprep.subr.bf16.mxu1 %v14753_v63  ;;  %v14755_v55 = vld [vmem:[%s19076_s3] sm:$0xff]  }
 0x309   : > { %v5705_v27 = vsel %vm19079_vm1, %v5703_v31, %v5704_v12  ;;  %v5707_v16 = vsel %vm19079_vm1, %v5704_v12, %v5706_v38  ;;  %v5713_v58 = vsel %vm19079_vm1, %v5710_v19, %v5712_v10  ;;  %v5715_v13 = vsel %vm19079_vm1, %v5712_v10, %v5714_v43  ;;  %v14754_v31 = vld [vmem:[%s19076_s3 + $0x78] sm:$0xff]  }
 0x30a   : > { %v5721_v28 = vsel %vm19079_vm1, %v5718_v9, %v5720_v20  ;;  %v5729_v37 = vsel %vm19079_vm1, %v5726_v44, %v5728_v6  ;;  %v5731_v17 = vsel %vm19079_vm1, %v5728_v6, %v5730_v1  ;;  %v5737_v26 = vsel %vm19079_vm1, %v5734_v21, %v5736_v29 }
 0x30b   : > { %v5745_v54 = vsel %vm19079_vm1, %v5742_v53, %v5744_v25  ;;  %v5747_v48 = vsel %vm19079_vm1, %v5744_v25, %v5746_v57  ;;  %v233_v14 = vadd.s32 16, %v15842_v22  ;;  %v234_v30 = vadd.s32 24, %v15842_v22  ;;  %13111 = vmatpush3.bf16.msra.mxu1 %v14753_v63 }
 0x30c   : > { %v279_v61 = vadd.s32 1, %v15842_v22  ;;  %v237_v0 = vadd.s32 48, %v15842_v22  ;;  %v235_v38 = vadd.s32 32, %v15842_v22  ;;  %13112 = vmatprep.subr.bf16.mxu1 %v14754_v31  ;;  %v236_v44 = vadd.s32 40, %v15842_v22 }
 0x30d   : > { %v282_v12 = vadd.s32 1, %v234_v30  ;;  %v241_v23 = vadd.s32 80, %v15842_v22  ;;  %v242_v25 = vadd.s32 88, %v15842_v22  ;;  %v245_v63 = vadd.s32 112, %v15842_v22 }
 0x30e   : > { %13019 = vmatmul.mubr.bf16.gmra.mrb[32].mxu0 %v5288_v34  ;;  %v5719_v34 = vsel %vm19079_vm1, %v5716_v11, %v5718_v9  ;;  %v285_v19 = vadd.s32 1, %v237_v0  ;;  %v15908_v21 = vadd.s32 1, %v236_v44  ;;  %v243_v0 = vadd.s32 96, %v15842_v22 }
 0x30f   : > { %13022 = vmatprep.mubr.bf16.mxu0 %v5296_v35  ;;  %v5723_v35 = vsel %vm19079_vm1, %v5720_v20, %v5722_v56  ;;  %13113 = vmatpush3.bf16.msra.mxu1 %v14754_v31 }
 0x310   : > { %v15889_v9 = vmul.u32.u64.low 2863311531, %v285_v19  ;;  %v15890_v20 = vmul.u32.u64.high 2863311531, %v285_v19, %v15889_v9  ;;  %v15924_v57 = vmul.u32.u64.low 2863311531, %v15908_v21  ;;  %v15925_v4 = vmul.u32.u64.high 2863311531, %v15908_v21, %v15924_v57  ;;  %13162 = vmatprep.subr.bf16.mxu1 %v14755_v55 }
 0x316   : > { %13023 = vmatmul.mubr.bf16.gmra.mrb[36].mxu0 %v5304_v47  ;;  %v5739_v47 = vsel %vm19079_vm1, %v5736_v29, %v5738_v46 }
 0x317   : > { %13026 = vmatprep.mubr.bf16.mxu0 %v5312_v51  ;;  %v5743_v51 = vsel %vm19079_vm1, %v5740_v41, %v5742_v53 }
 0x31e   : > { %13027 = vmatmul.mubr.bf16.gmra.mrb[40].mxu0 %v5320_v59  ;;  %v281_v59 = vadd.s32 1, %v233_v14  ;;  %v240_v14 = vadd.s32 72, %v15842_v22 }
 0x31f   : > { %13030 = vmatprep.mubr.bf16.mxu0 %v5328_v62  ;;  %v232_v62 = vadd.s32 8, %v15842_v22 }
 0x320   : > { %v15859_v3 = vmul.u32.u64.low 2863311531, %v281_v59  ;;  %v15860_v5 = vmul.u32.u64.high 2863311531, %v281_v59, %v15859_v3 }
 0x321   : > { %v15870_v49 = vadd.s32 1, %v232_v62 }
 0x323   : > { %v15883_v43 = vmul.u32.u64.low 2863311531, %v15870_v49  ;;  %v15884_v11 = vmul.u32.u64.high 2863311531, %v15870_v49, %v15883_v43 }
 0x324   : > { %v15976_v43 = vadd.s32 1, %v243_v0 }
 0x326   : > { %13031 = vmatmul.mubr.bf16.gmra.mrb[44].mxu0 %v5336_v2 }
 0x327   : > { %13050 = vmatprep.mubr.bf16.mxu0 %v5705_v27  ;;  %v15866_v2 = vmul.u32.u64.low 2863311531, %v279_v61  ;;  %v15867_v27 = vmul.u32.u64.high 2863311531, %v279_v61, %v15866_v2 }
 0x32e   : > { %13051 = vmatmul.mubr.bf16.vlgmr.msra.gmra.mrb[0].mxu0 %v5707_v16  ;;  %v238_v16 = vadd.s32 56, %v15842_v22 }
 0x32f   : > { %13054 = vmatprep.mubr.bf16.mxu0 %v5709_v24  ;;  %v19081_v24 = vmov 0  }
 0x330   : > { %226 = vst [vmem:[#allocation2] sm:$0xff] %v19081_v24  ;;  %227 = vst [vmem:[#allocation2 + $0x8] sm:$0xff] %v19081_v24 }
 0x331   : > { %228 = vst [vmem:[#allocation2 + $0xd0] sm:$0xff] %v19081_v24  ;;  %229 = vst [vmem:[#allocation2 + $0xd8] sm:$0xff] %v19081_v24 }
 0x336   : > { %13055 = vmatmul.mubr.bf16.gmra.mrb[4].mxu0 %v5711_v33  ;;  %v15877_v10 = vmul.u32.u64.low 2863311531, %v282_v12  ;;  %v15878_v33 = vmul.u32.u64.high 2863311531, %v282_v12, %v15877_v10 }
 0x337   : > { %13058 = vmatprep.mubr.bf16.mxu0 %v5713_v58  ;;  %v15880_v58 = vadd.s32 1, %v235_v38  ;;  %v6337_v8 = vld [vmem:[#allocation2] sm:$0xf0]  ;;  %v388_v10 = vshrl.u32 %v15925_v4, 4 }
 0x338   : > { %v366_v1 = vshrl.u32 %v15878_v33, 4 }
 0x33a   : > { %v367_v41 = vmul.u32 24, %v366_v1 }
 0x33e   : > { %13059 = vmatmul.mubr.bf16.gmra.mrb[8].mxu0 %v5715_v13  ;;  %v15886_v13 = vadd.s32 1, %v238_v16 }
 0x33f   : > { %13062 = vmatprep.mubr.bf16.mxu0 %v5717_v32  ;;  %v355_v32 = vshrl.u32 %v15860_v5, 4 }
 0x341   : > { %v356_v6 = vmul.u32 24, %v355_v32 }
 0x343   : > { %v15910_v29 = vsub.s32 %v281_v59, %v356_v6  ;;  %v15942_v59 = vadd.s32 1, %v242_v25 }
 0x345   : > { %vm857_vm3 = vcmp.ne.s32.totalorder %v15910_v29, 0  ;;  %vm905_vm4 = vcmp.lt.s32.totalorder %v15910_v29, 0  ;;  %v1001_v52 = vadd.s32 24, %v15910_v29 }
 0x346   : > { %13063 = vmatmul.mubr.bf16.gmra.mrb[12].mxu0 %v5719_v34  ;;  %v333_v34 = vshrl.u32 %v15867_v27, 4  ;;  %v15960_v27 = vmul.u32.u64.low 2863311531, %v15942_v59  ;;  %v15961_v38 = vmul.u32.u64.high 2863311531, %v15942_v59, %v15960_v27  ;;  %vm15972_vm10 = vmand %vm905_vm4, %vm857_vm3 }
 0x347   : > { %13066 = vmatprep.mubr.bf16.mxu0 %v5721_v28  ;;  %v15894_v28 = vmul.u32.u64.low 2863311531, %v15880_v58  ;;  %v15895_v56 = vmul.u32.u64.high 2863311531, %v15880_v58, %v15894_v28 }
 0x349   : > { %v377_v53 = vshrl.u32 %v15895_v56, 4 }
 0x34e   : > { %13067 = vmatmul.mubr.bf16.gmra.mrb[16].mxu0 %v5723_v35 }
 0x34f   : > { %13070 = vmatprep.mubr.bf16.mxu0 %v5725_v36  ;;  %v15898_v35 = vmul.u32.u64.low 2863311531, %v15886_v13  ;;  %v15899_v36 = vmul.u32.u64.high 2863311531, %v15886_v13, %v15898_v35 }
 0x350   : > { %v246_v35 = vadd.s32 120, %v15842_v22 }
 0x356   : > { %13071 = vmatmul.mubr.bf16.gmra.mrb[20].mxu0 %v5727_v40  ;;  %v6381_v40 = vrot.slane %v6337_v8, 4  ;;  %v389_v8 = vmul.u32 24, %v388_v10 }
 0x357   : > { %13074 = vmatprep.mubr.bf16.mxu0 %v5729_v37  ;;  %v15903_v37 = vrot.slane %v19081_v24, 4 }
 0x358   : > { %v16036_v25 = vsub.s32 %v15908_v21, %v389_v8 }
 0x359   : > { %19200 = vst [vmem:[#allocation3_spill] sm:$0xff] %v15903_v37  ;;  %v6383_v46 = vsel %vm19086_vm2, %v6381_v40, %v15903_v37  ;;  %v16016_v40 = vmul.u32.u64.low 2863311531, %v15976_v43  ;;  %v16017_v1 = vmul.u32.u64.high 2863311531, %v15976_v43, %v16016_v40 }
 0x35a   : > { %13114 = vmatprep.mubr.bf16.mxu1 %v6383_v46  ;;  %v244_v46 = vadd.s32 104, %v15842_v22 }
 0x35e   : > { %13075 = vmatmul.mubr.bf16.gmra.mrb[24].mxu0 %v5731_v17  ;;  %v334_v17 = vmul.u32 24, %v333_v34 }
 0x35f   : > { %13078 = vmatprep.mubr.bf16.mxu0 %v5733_v42  ;;  %v344_v42 = vshrl.u32 %v15884_v11, 4 }
 0x366   : > { %13079 = vmatmul.mubr.bf16.gmra.mrb[28].mxu0 %v5735_v45  ;;  %v399_v45 = vshrl.u32 %v15890_v20, 4 }
 0x367   : > { %13082 = vmatprep.mubr.bf16.mxu0 %v5737_v26  ;;  %v239_v26 = vadd.s32 64, %v15842_v22 }
 0x368   : > { %v400_v7 = vmul.u32 24, %v399_v45 }
 0x36a   : > { %v401_v62 = vsub.s32 %v285_v19, %v400_v7 }
 0x36c   : > { %vm861_vm12 = vcmp.ne.s32.totalorder %v401_v62, 0  ;;  %vm909_vm14 = vcmp.lt.s32.totalorder %v401_v62, 0  ;;  %v1005_v44 = vadd.s32 24, %v401_v62 }
 0x36e   : > { %13083 = vmatmul.mubr.bf16.gmra.mrb[32].mxu0 %v5739_v47  ;;  %v15916_v47 = vadd.s32 1, %v241_v23 }
 0x36f   : > { %13086 = vmatprep.mubr.bf16.mxu0 %v5741_v50  ;;  %v15918_v50 = vsub.s32 %v279_v61, %v334_v17 }
 0x370   : > { %v15937_v18 = vmul.u32.u64.low 2863311531, %v15916_v47  ;;  %v15938_v39 = vmul.u32.u64.high 2863311531, %v15916_v47, %v15937_v18 }
 0x371   : > { %vm855_vm5 = vcmp.ne.s32.totalorder %v15918_v50, 0  ;;  %vm903_vm6 = vcmp.lt.s32.totalorder %v15918_v50, 0  ;;  %v999_v31 = vadd.s32 24, %v15918_v50 }
 0x372   : > { %vm15982_vm13 = vmand %vm903_vm6, %vm855_vm5 }
 0x376   : > { %13087 = vmatmul.mubr.bf16.gmra.mrb[36].mxu0 %v5743_v51  ;;  %v345_v51 = vmul.u32 24, %v344_v42 }
 0x377   : > { %13090 = vmatprep.mubr.bf16.mxu0 %v5745_v54  ;;  %v410_v54 = vshrl.u32 %v15899_v36, 4 }
 0x378   : > { %v346_v30 = vsub.s32 %v15870_v49, %v345_v51  ;;  %v15963_v49 = vadd.s32 1, %v245_v63  ;;  %v16038_v51 = vadd.s32 1, %v246_v35  ;;  %v465_v63 = vshrl.u32 %v16017_v1, 4 }
 0x379   : > { %v411_v61 = vmul.u32 24, %v410_v54 }
 0x37a   : > { %vm856_vm9 = vcmp.ne.s32.totalorder %v346_v30, 0  ;;  %vm904_vm11 = vcmp.lt.s32.totalorder %v346_v30, 0  ;;  %v16000_v34 = vmul.u32.u64.low 2863311531, %v15963_v49  ;;  %v16001_v28 = vmul.u32.u64.high 2863311531, %v15963_v49, %v16000_v34 }
 0x37b   : > { %v412_v19 = vsub.s32 %v15886_v13, %v411_v61  ;;  %v443_v13 = vshrl.u32 %v15938_v39, 4  ;;  %vm16004_vm5 = vmand %vm904_vm11, %vm856_vm9  ;;  %v16064_v39 = vadd.s32 1, %v244_v46  ;;  %v1004_v61 = vadd.s32 24, %v16036_v25 }
 0x37c   : > { %v487_v18 = vshrl.u32 %v16001_v28, 4 }
 0x37d   : > { %vm862_vm6 = vcmp.ne.s32.totalorder %v412_v19, 0  ;;  %vm910_vm1 = vcmp.lt.s32.totalorder %v412_v19, 0  ;;  %v1006_v42 = vadd.s32 24, %v412_v19  ;;  %v444_v45 = vmul.u32 24, %v443_v13 }
 0x37e   : > { %13091 = vmatmul.mubr.bf16.gmra.mrb[40].mxu0 %v5747_v48  ;;  %v15932_v48 = vadd.s32 1, %v239_v26  ;;  %vm958_vm9 = vmand %vm910_vm1, %vm862_vm6  ;;  %v454_v26 = vshrl.u32 %v15961_v38, 4  ;;  %vm860_vm1 = vcmp.ne.s32.totalorder %v16036_v25, 0  ;;  %v488_v0 = vmul.u32 24, %v487_v18 }
 0x37f   : > { %13094 = vmatprep.mubr.bf16.mxu0 %v5749_v15  ;;  %v15934_v15 = vsub.s32 %v282_v12, %v367_v41  ;;  %v15956_v12 = vadd.s32 1, %v240_v14  ;;  %v16028_v41 = vsel %vm15972_vm10, %v1001_v52, %v15910_v29  ;;  %v16057_v4 = vsel %vm958_vm9, %v1006_v42, %v412_v19 }
 0x380   : > { %v15949_v3 = vmul.u32.u64.low 2863311531, %v15932_v48  ;;  %v15950_v5 = vmul.u32.u64.high 2863311531, %v15932_v48, %v15949_v3  ;;  %v16060_v55 = vsub.s32 %v15916_v47, %v444_v45  ;;  %vm908_vm10 = vcmp.lt.s32.totalorder %v16036_v25, 0 }
 0x381   : > { %vm858_vm7 = vcmp.ne.s32.totalorder %v15934_v15, 0  ;;  %vm906_vm8 = vcmp.lt.s32.totalorder %v15934_v15, 0  ;;  %v1002_v16 = vadd.s32 24, %v15934_v15  ;;  %v250_v3 = vadd.s32 152, %v15842_v22 }
 0x382   : > { %v15988_v32 = vmul.u32.u64.low 2863311531, %v15956_v12  ;;  %v15989_v9 = vmul.u32.u64.high 2863311531, %v15956_v12, %v15988_v32  ;;  %vm15995_vm15 = vmand %vm906_vm8, %vm858_vm7  ;;  %v421_v6 = vshrl.u32 %v15950_v5, 4  ;;  %vm865_vm11 = vcmp.ne.s32.totalorder %v16060_v55, 0 }
 0x383   : > { %vm16010_vm7 = vmand %vm909_vm14, %vm861_vm12  ;;  %v16043_v54 = vsel %vm15995_vm15, %v1002_v16, %v15934_v15  ;;  %v455_v15 = vmul.u32 24, %v454_v26  ;;  %v16068_v14 = vmul.u32.u64.low 2863311531, %v16038_v51  ;;  %v16069_v52 = vmul.u32.u64.high 2863311531, %v16038_v51, %v16068_v14 }
 0x384   : > { %v16051_v29 = vsel %vm16010_vm7, %v1005_v44, %v401_v62  ;;  %v432_v7 = vshrl.u32 %v15989_v9, 4  ;;  %vm913_vm12 = vcmp.lt.s32.totalorder %v16060_v55, 0  ;;  %v248_v38 = vadd.s32 136, %v15842_v22 }
 0x385   : > { %v16082_v5 = vsub.s32 %v15942_v59, %v455_v15  ;;  %v466_v16 = vmul.u32 24, %v465_v63  ;;  %v253_v59 = vadd.s32 176, %v15842_v22  ;;  %v489_v11 = vsub.s32 %v15963_v49, %v488_v0  ;;  %vm16137_vm6 = vmand %vm913_vm12, %vm865_vm11 }
 0x386   : > { %13095 = vmatmul.mubr.bf16.gmra.mrb[44].mxu0 %v5751_v60  ;;  %v378_v60 = vmul.u32 24, %v377_v53  ;;  %v16033_v53 = vsel %vm15982_vm13, %v999_v31, %v15918_v50  ;;  %v422_v50 = vmul.u32 24, %v421_v6  ;;  %v251_v13 = vadd.s32 160, %v15842_v22 }
 0x387   : > { %v433_v62 = vmul.u32 24, %v432_v7  ;;  %vm866_vm15 = vcmp.ne.s32.totalorder %v16082_v5, 0  ;;  %v498_v32 = vshrl.u32 %v16069_v52, 4  ;;  %v16111_v34 = vadd.s32 1, %v248_v38 }
 0x388   : > { %v379_v2 = vsub.s32 %v15880_v58, %v378_v60  ;;  %v1000_v58 = vadd.s32 24, %v346_v30  ;;  %v249_v60 = vadd.s32 144, %v15842_v22  ;;  %v16074_v47 = vsub.s32 %v15932_v48, %v422_v50 }
 0x389   : > { %v1009_v48 = vadd.s32 24, %v16060_v55  ;;  %v434_v33 = vsub.s32 %v15956_v12, %v433_v62  ;;  %v467_v12 = vsub.s32 %v15976_v43, %v466_v16  ;;  %v16118_v8 = vadd.s32 1, %v253_v59 }
 0x38a   : > { %vm859_vm3 = vcmp.ne.s32.totalorder %v379_v2, 0  ;;  %vm907_vm4 = vcmp.lt.s32.totalorder %v379_v2, 0  ;;  %v1003_v17 = vadd.s32 24, %v379_v2  ;;  %v16047_v57 = vsel %vm16004_vm5, %v1000_v58, %v346_v30 }
 0x38b   : > { %vm16019_vm8 = vmand %vm907_vm4, %vm859_vm3  ;;  %v247_v30 = vadd.s32 128, %v15842_v22  ;;  %v16090_v27 = vadd.s32 1, %v249_v60  ;;  %vm863_vm13 = vcmp.ne.s32.totalorder %v16074_v47, 0  ;;  %vm911_vm14 = vcmp.lt.s32.totalorder %v16074_v47, 0 }
 0x38c   : > { %v16055_v21 = vsel %vm16019_vm8, %v1003_v17, %v379_v2  ;;  %v16085_v31 = vmul.u32.u64.low 2863311531, %v16064_v39  ;;  %v16086_v2 = vmul.u32.u64.high 2863311531, %v16064_v39, %v16085_v31  ;;  %v1007_v10 = vadd.s32 24, %v16074_v47  ;;  %vm16124_vm4 = vmand %vm908_vm10, %vm860_vm1 }
 0x38d   : > { %v16094_v19 = vadd.s32 1, %v247_v30  ;;  %v16100_v58 = vadd.s32 1, %v250_v3  ;;  %vm914_vm3 = vcmp.lt.s32.totalorder %v16082_v5, 0  ;;  %v1010_v35 = vadd.s32 24, %v16082_v5  ;;  %vm16148_vm9 = vmand %vm911_vm14, %vm863_vm13 }
 0x38e   : > { %v16108_v9 = vmul.u32.u64.low 2863311531, %v16090_v27  ;;  %v16109_v20 = vmul.u32.u64.high 2863311531, %v16090_v27, %v16108_v9  ;;  %vm864_vm5 = vcmp.ne.s32.totalorder %v434_v33, 0  ;;  %vm912_vm7 = vcmp.lt.s32.totalorder %v434_v33, 0  ;;  %vm16160_vm10 = vmand %vm914_vm3, %vm866_vm15 }
 0x38f   : > { %v16115_v28 = vmul.u32.u64.low 2863311531, %v16094_v19  ;;  %v16116_v56 = vmul.u32.u64.high 2863311531, %v16094_v19, %v16115_v28  ;;  %v16130_v36 = vmul.u32.u64.low 2863311531, %v16100_v58  ;;  %v16131_v43 = vmul.u32.u64.high 2863311531, %v16100_v58, %v16130_v36  ;;  %vm16169_vm13 = vmand %vm912_vm7, %vm864_vm5 }
 0x390   : > { %vm869_vm8 = vcmp.ne.s32.totalorder %v489_v11, 0  ;;  %v476_v6 = vshrl.u32 %v16086_v2, 4  ;;  %v16142_v40 = vadd.s32 1, %v251_v13  ;;  %vm917_vm1 = vcmp.lt.s32.totalorder %v489_v11, 0 }
 0x391   : > { %v499_v23 = vmul.u32 24, %v498_v32  ;;  %v16153_v17 = vmul.u32.u64.low 2863311531, %v16111_v34  ;;  %v16154_v42 = vmul.u32.u64.high 2863311531, %v16111_v34, %v16153_v17  ;;  %vm867_vm11 = vcmp.ne.s32.totalorder %v467_v12, 0  ;;  %vm16175_vm14 = vmand %vm917_vm1, %vm869_vm8 }
 0x392   : > { %vm915_vm12 = vcmp.lt.s32.totalorder %v467_v12, 0  ;;  %v16165_v26 = vmul.u32.u64.low 2863311531, %v16118_v8  ;;  %v16166_v46 = vmul.u32.u64.high 2863311531, %v16118_v8, %v16165_v26  ;;  %v1008_v7 = vadd.s32 24, %v434_v33 }
 0x393   : > { %v1013_v15 = vadd.s32 24, %v489_v11  ;;  %v254_v18 = vadd.s32 184, %v15842_v22  ;;  %v1011_v52 = vadd.s32 24, %v467_v12  ;;  %v477_v60 = vmul.u32 24, %v476_v6  ;;  %vm963_vm15 = vmand %vm915_vm12, %vm867_vm11 }
 0x394   : > { %v16180_v63 = vmul.u32.u64.low 2863311531, %v16142_v40  ;;  %v16181_v30 = vmul.u32.u64.high 2863311531, %v16142_v40, %v16180_v63  ;;  %v16186_v62 = vsel %vm16124_vm4, %v1004_v61, %v16036_v25  ;;  %v16191_v3 = vsel %vm16137_vm6, %v1009_v48, %v16060_v55 }
 0x395   : > { %v16195_v0 = vsub.s32 %v16038_v51, %v499_v23  ;;  %v531_v31 = vshrl.u32 %v16109_v20, 4  ;;  %v16201_v2 = vsel %vm16148_vm9, %v1007_v10, %v16074_v47  ;;  %v16206_v25 = vsel %vm16160_vm10, %v1010_v35, %v16082_v5 }
 0x396   : > { %v509_v55 = vshrl.u32 %v16116_v56, 4  ;;  %v252_v61 = vadd.s32 168, %v15842_v22  ;;  %v16212_v51 = vsel %vm16169_vm13, %v1008_v7, %v434_v33  ;;  %v542_v48 = vshrl.u32 %v16131_v43, 4 }
 0x397   : > { %v16215_v38 = vadd.s32 1, %v254_v18  ;;  %v257_v47 = vadd.s32 208, %v15842_v22  ;;  %v16220_v16 = vsel %vm16175_vm14, %v1013_v15, %v489_v11  ;;  %v16222_v5 = vsel %vm963_vm15, %v1011_v52, %v467_v12 }
 0x398   : > { %v16225_v59 = vsub.s32 %v16064_v39, %v477_v60  ;;  %v255_v10 = vadd.s32 192, %v15842_v22  ;;  %vm870_vm3 = vcmp.ne.s32.totalorder %v16195_v0, 0  ;;  %vm918_vm4 = vcmp.lt.s32.totalorder %v16195_v0, 0 }
 0x399   : > { %v532_v33 = vmul.u32 24, %v531_v31  ;;  %v520_v13 = vshrl.u32 %v16154_v42, 4  ;;  %v16232_v32 = vadd.s32 24, %v16195_v0  ;;  %v510_v9 = vmul.u32 24, %v509_v55  ;;  %vm16286_vm11 = vmand %vm918_vm4, %vm870_vm3 }
 0x39a   : > { %v575_v11 = vshrl.u32 %v16166_v46, 4  ;;  %v16235_v20 = vadd.s32 1, %v252_v61  ;;  %v543_v12 = vmul.u32 24, %v542_v48  ;;  %v16241_v56 = vadd.s32 1, %v257_v47 }
 0x39b   : > { %v16238_v39 = vmul.u32.u64.low 2863311531, %v16215_v38  ;;  %v16239_v28 = vmul.u32.u64.high 2863311531, %v16215_v38, %v16238_v39  ;;  %vm868_vm5 = vcmp.ne.s32.totalorder %v16225_v59, 0  ;;  %v553_v49 = vshrl.u32 %v16181_v30, 4 }
 0x39c   : > { %v16245_v35 = vadd.s32 1, %v255_v10  ;;  %v258_v36 = vadd.s32 216, %v15842_v22  ;;  %vm916_vm6 = vcmp.lt.s32.totalorder %v16225_v59, 0  ;;  %v1012_v43 = vadd.s32 24, %v16225_v59 }
 0x39d   : > { %v533_v44 = vsub.s32 %v16090_v27, %v532_v33  ;;  %v521_v6 = vmul.u32 24, %v520_v13  ;;  %v16252_v1 = vsub.s32 %v16094_v19, %v510_v9  ;;  %v576_v23 = vmul.u32 24, %v575_v11  ;;  %vm16300_vm13 = vmand %vm916_vm6, %vm868_vm5 }
 0x39e   : > { %v16255_v17 = vmul.u32.u64.low 2863311531, %v16235_v20  ;;  %v16256_v42 = vmul.u32.u64.high 2863311531, %v16235_v20, %v16255_v17  ;;  %v16259_v45 = vsub.s32 %v16100_v58, %v543_v12  ;;  %v256_v50 = vadd.s32 200, %v15842_v22 }
 0x39f   : > { %v16262_v26 = vmul.u32.u64.low 2863311531, %v16241_v56  ;;  %v16263_v46 = vmul.u32.u64.high 2863311531, %v16241_v56, %v16262_v26  ;;  %v554_v7 = vmul.u32 24, %v553_v49  ;;  %v16270_v19 = vadd.s32 1, %v258_v36 }
 0x3a0   : > { %v16267_v27 = vmul.u32.u64.low 2863311531, %v16245_v35  ;;  %v16268_v15 = vmul.u32.u64.high 2863311531, %v16245_v35, %v16267_v27  ;;  %vm873_vm7 = vcmp.ne.s32.totalorder %v533_v44, 0  ;;  %vm921_vm8 = vcmp.lt.s32.totalorder %v533_v44, 0 }
 0x3a1   : > { %v522_v18 = vsub.s32 %v16111_v34, %v521_v6  ;;  %v261_v58 = vadd.s32 240, %v15842_v22  ;;  %v1017_v14 = vadd.s32 24, %v533_v44  ;;  %vm871_vm9 = vcmp.ne.s32.totalorder %v16252_v1, 0  ;;  %vm16309_vm3 = vmand %vm921_vm8, %vm873_vm7 }
 0x3a2   : > { %vm919_vm1 = vcmp.lt.s32.totalorder %v16252_v1, 0  ;;  %v577_v52 = vsub.s32 %v16118_v8, %v576_v23  ;;  %v1015_v60 = vadd.s32 24, %v16252_v1  ;;  %vm874_vm10 = vcmp.ne.s32.totalorder %v16259_v45, 0 }
 0x3a3   : > { %v586_v63 = vshrl.u32 %v16239_v28, 4  ;;  %v16280_v30 = vadd.s32 1, %v256_v50  ;;  %vm922_vm12 = vcmp.lt.s32.totalorder %v16259_v45, 0  ;;  %v555_v8 = vsub.s32 %v16142_v40, %v554_v7  ;;  %vm16319_vm5 = vmand %vm919_vm1, %vm871_vm9 }
 0x3a4   : > { %v16293_v31 = vmul.u32.u64.low 2863311531, %v16270_v19  ;;  %v16294_v55 = vmul.u32.u64.high 2863311531, %v16270_v19, %v16293_v31  ;;  %v1018_v48 = vadd.s32 24, %v16259_v45  ;;  %vm872_vm14 = vcmp.ne.s32.totalorder %v522_v18, 0  ;;  %vm16332_vm6 = vmand %vm922_vm12, %vm874_vm10 }
 0x3a5   : > { %vm920_vm15 = vcmp.lt.s32.totalorder %v522_v18, 0  ;;  %v16305_v47 = vadd.s32 1, %v261_v58  ;;  %vm877_vm4 = vcmp.ne.s32.totalorder %v577_v52, 0  ;;  %vm925_vm0 = vcmp.lt.s32.totalorder %v577_v52, 0 }
 0x3a6   : > { %v564_v10 = vshrl.u32 %v16256_v42, 4  ;;  %v259_v33 = vadd.s32 224, %v15842_v22  ;;  %v587_v9 = vmul.u32 24, %v586_v63  ;;  %v619_v11 = vshrl.u32 %v16263_v46, 4  ;;  %vm16339_vm9 = vmand %vm920_vm15, %vm872_vm14 }
 0x3a7   : > { %v16325_v12 = vmul.u32.u64.low 2863311531, %v16280_v30  ;;  %v16326_v39 = vmul.u32.u64.high 2863311531, %v16280_v30, %v16325_v12  ;;  %v1016_v49 = vadd.s32 24, %v522_v18  ;;  %vm875_vm7 = vcmp.ne.s32.totalorder %v555_v8, 0  ;;  %vm973_vm1 = vmand %vm925_vm0, %vm877_vm4 }
 0x3a8   : > { %vm923_vm8 = vcmp.lt.s32.totalorder %v555_v8, 0  ;;  %v597_v36 = vshrl.u32 %v16268_v15, 4  ;;  %v1021_v23 = vadd.s32 24, %v577_v52  ;;  %v262_v26 = vadd.s32 248, %v15842_v22 }
 0x3a9   : > { %v16344_v17 = vmul.u32.u64.low 2863311531, %v16305_v47  ;;  %v16345_v42 = vmul.u32.u64.high 2863311531, %v16305_v47, %v16344_v17  ;;  %v16352_v46 = vsel %vm16286_vm11, %v16232_v32, %v16195_v0  ;;  %v1019_v50 = vadd.s32 24, %v555_v8  ;;  %vm971_vm10 = vmand %vm923_vm8, %vm875_vm7 }
 0x3aa   : > { %v565_v7 = vmul.u32 24, %v564_v10  ;;  %v16356_v27 = vadd.s32 1, %v259_v33  ;;  %v16361_v15 = vsel %vm16300_vm13, %v1012_v43, %v16225_v59  ;;  %v16365_v58 = vsel %vm16309_vm3, %v1017_v14, %v533_v44 }
 0x3ab   : > { %v16369_v0 = vsub.s32 %v16215_v38, %v587_v9  ;;  %v620_v32 = vmul.u32 24, %v619_v11  ;;  %v16374_v63 = vsel %vm16319_vm5, %v1015_v60, %v16252_v1  ;;  %v16379_v59 = vsel %vm16332_vm6, %v1018_v48, %v16259_v45 }
 0x3ac   : > { %v598_v43 = vmul.u32 24, %v597_v36  ;;  %v630_v44 = vshrl.u32 %v16294_v55, 4  ;;  %v16384_v14 = vsel %vm16339_vm9, %v1016_v49, %v522_v18  ;;  %v16386_v38 = vsel %vm973_vm1, %v1021_v23, %v577_v52 }
 0x3ad   : > { %19237 = vst [vmem:[#allocation4_spill] sm:$0xff] %v16384_v14  ;;  %19238 = vst [vmem:[#allocation5_spill] sm:$0xff] %v16386_v38  ;;  %v16388_v34 = vadd.s32 1, %v262_v26  ;;  %v260_v31 = vadd.s32 232, %v15842_v22  ;;  %v16391_v1 = vsel %vm971_vm10, %v1019_v50, %v555_v8  ;;  %v16394_v60 = vsub.s32 %v16235_v20, %v565_v7 }
 0x3ae   : > { %19239 = vst [vmem:[#allocation6_spill] sm:$0xff] %v16391_v1  ;;  %v16397_v45 = vmul.u32.u64.low 2863311531, %v16356_v27  ;;  %v16398_v61 = vmul.u32.u64.high 2863311531, %v16356_v27, %v16397_v45  ;;  %vm878_vm0 = vcmp.ne.s32.totalorder %v16369_v0, 0  ;;  %v16402_v18 = vsub.s32 %v16241_v56, %v620_v32 }
 0x3af   : > { %v608_v52 = vshrl.u32 %v16326_v39, 4  ;;  %v265_v55 = vadd.s32 272, %v15842_v22  ;;  %vm926_vm11 = vcmp.lt.s32.totalorder %v16369_v0, 0  ;;  %v16408_v8 = vadd.s32 24, %v16369_v0 }
 0x3b0   : > { %v16411_v20 = vsub.s32 %v16245_v35, %v598_v43  ;;  %v631_v48 = vmul.u32 24, %v630_v44  ;;  %v663_v40 = vshrl.u32 %v16345_v42, 4  ;;  %v16418_v56 = vadd.s32 1, %v260_v31  ;;  %vm16456_vm7 = vmand %vm926_vm11, %vm878_vm0 }
 0x3b1   : > { %v16415_v10 = vmul.u32.u64.low 2863311531, %v16388_v34  ;;  %v16416_v33 = vmul.u32.u64.high 2863311531, %v16388_v34, %v16415_v10  ;;  %vm876_vm12 = vcmp.ne.s32.totalorder %v16394_v60, 0  ;;  %vm924_vm13 = vcmp.lt.s32.totalorder %v16394_v60, 0 }
 0x3b2   : > { %v1020_v13 = vadd.s32 24, %v16394_v60  ;;  %v263_v9 = vadd.s32 256, %v15842_v22  ;;  %vm881_vm14 = vcmp.ne.s32.totalorder %v16402_v18, 0  ;;  %v609_v35 = vmul.u32 24, %v608_v52  ;;  %vm16467_vm8 = vmand %vm924_vm13, %vm876_vm12 }
 0x3b3   : > { %v16425_v11 = vadd.s32 1, %v265_v55  ;;  %v266_v12 = vadd.s32 280, %v15842_v22  ;;  %vm929_vm15 = vcmp.lt.s32.totalorder %v16402_v18, 0  ;;  %v1025_v39 = vadd.s32 24, %v16402_v18 }
 0x3b4   : > { %v632_v28 = vsub.s32 %v16270_v19, %v631_v48  ;;  %v264_v49 = vadd.s32 264, %v15842_v22  ;;  %vm879_vm3 = vcmp.ne.s32.totalorder %v16411_v20, 0  ;;  %v664_v36 = vmul.u32 24, %v663_v40  ;;  %vm16481_vm9 = vmand %vm929_vm15, %vm881_vm14 }
 0x3b5   : > { %v16434_v6 = vmul.u32.u64.low 2863311531, %v16418_v56  ;;  %v16435_v23 = vmul.u32.u64.high 2863311531, %v16418_v56, %v16434_v6  ;;  %vm927_vm4 = vcmp.lt.s32.totalorder %v16411_v20, 0  ;;  %v641_v17 = vshrl.u32 %v16398_v61, 4 }
 0x3b6   : > { %v16439_v42 = vadd.s32 1, %v263_v9  ;;  %v269_v26 = vadd.s32 304, %v15842_v22  ;;  %v610_v50 = vsub.s32 %v16280_v30, %v609_v35  ;;  %v16447_v32 = vadd.s32 1, %v266_v12  ;;  %vm16493_vm0 = vmand %vm927_vm4, %vm879_vm3 }
 0x3b7   : > { %v16444_v19 = vmul.u32.u64.low 2863311531, %v16425_v11  ;;  %v16445_v7 = vmul.u32.u64.high 2863311531, %v16425_v11, %v16444_v19  ;;  %v1023_v43 = vadd.s32 24, %v16411_v20  ;;  %vm882_vm5 = vcmp.ne.s32.totalorder %v632_v28, 0 }
 0x3b8   : > { %vm930_vm6 = vcmp.lt.s32.totalorder %v632_v28, 0  ;;  %v16450_v44 = vadd.s32 1, %v264_v49  ;;  %v1026_v30 = vadd.s32 24, %v632_v28  ;;  %v665_v45 = vsub.s32 %v16305_v47, %v664_v36 }
 0x3b9   : > { %v674_v61 = vshrl.u32 %v16416_v33, 4  ;;  %v267_v52 = vadd.s32 288, %v15842_v22  ;;  %v642_v48 = vmul.u32 24, %v641_v17  ;;  %v16475_v9 = vadd.s32 1, %v269_v26  ;;  %vm16505_vm11 = vmand %vm930_vm6, %vm882_vm5 }
 0x3ba   : > { %v16472_v40 = vmul.u32.u64.low 2863311531, %v16439_v42  ;;  %v16473_v10 = vmul.u32.u64.high 2863311531, %v16439_v42, %v16472_v40  ;;  %vm880_vm1 = vcmp.ne.s32.totalorder %v610_v50, 0  ;;  %vm928_vm10 = vcmp.lt.s32.totalorder %v610_v50, 0 }
 0x3bb   : > { %v16486_v33 = vmul.u32.u64.low 2863311531, %v16447_v32  ;;  %v16487_v35 = vmul.u32.u64.high 2863311531, %v16447_v32, %v16486_v33  ;;  %v1024_v49 = vadd.s32 24, %v610_v50  ;;  %v16501_v17 = vadd.s32 1, %v267_v52  ;;  %vm16510_vm14 = vmand %vm928_vm10, %vm880_vm1 }
 0x3bc   : > { %v16498_v36 = vmul.u32.u64.low 2863311531, %v16450_v44  ;;  %v16499_v6 = vmul.u32.u64.high 2863311531, %v16450_v44, %v16498_v36  ;;  %vm885_vm12 = vcmp.ne.s32.totalorder %v665_v45, 0  ;;  %vm933_vm13 = vcmp.lt.s32.totalorder %v665_v45, 0 }
 0x3bd   : > { %v675_v19 = vmul.u32 24, %v674_v61  ;;  %v652_v40 = vshrl.u32 %v16435_v23, 4  ;;  %v643_v24 = vsub.s32 %v16356_v27, %v642_v48  ;;  %v270_v1 = vadd.s32 312, %v15842_v22  ;;  %vm981_vm15 = vmand %vm933_vm13, %vm885_vm12 }
 0x3be   : > { %v16516_v52 = vmul.u32.u64.low 2863311531, %v16475_v9  ;;  %v16517_v36 = vmul.u32.u64.high 2863311531, %v16475_v9, %v16516_v52  ;;  %v16524_v38 = vsel %vm16456_vm7, %v16408_v8, %v16369_v0  ;;  %v16529_v23 = vsel %vm16467_vm8, %v1020_v13, %v16394_v60 }
 0x3bf   : > { %v16534_v27 = vsel %vm16481_vm9, %v1025_v39, %v16402_v18  ;;  %v707_v61 = vshrl.u32 %v16445_v7, 4  ;;  %v1029_v48 = vadd.s32 24, %v665_v45  ;;  %v268_v0 = vadd.s32 296, %v15842_v22 }
 0x3c0   : > { %v16538_v52 = vmul.u32.u64.low 2863311531, %v16501_v17  ;;  %v16539_v14 = vmul.u32.u64.high 2863311531, %v16501_v17, %v16538_v52  ;;  %v16545_v8 = vsel %vm16493_vm0, %v1023_v43, %v16411_v20  ;;  %v16549_v60 = vsel %vm16505_vm11, %v1026_v30, %v632_v28 }
 0x3c1   : > { %v16553_v18 = vsel %vm16510_vm14, %v1024_v49, %v610_v50  ;;  %v653_v13 = vmul.u32 24, %v652_v40  ;;  %vm883_vm3 = vcmp.ne.s32.totalorder %v643_v24, 0  ;;  %v16558_v39 = vsub.s32 %v16388_v34, %v675_v19 }
 0x3c2   : > { %v685_v7 = vshrl.u32 %v16473_v10, 4  ;;  %v16561_v20 = vadd.s32 1, %v270_v1  ;;  %vm931_vm4 = vcmp.lt.s32.totalorder %v643_v24, 0  ;;  %v708_v43 = vmul.u32 24, %v707_v61 }
 0x3c3   : > { %v718_v28 = vshrl.u32 %v16487_v35, 4  ;;  %v273_v31 = vadd.s32 336, %v15842_v22  ;;  %v16565_v50 = vsel %vm981_vm15, %v1029_v48, %v665_v45  ;;  %v1027_v30 = vadd.s32 24, %v643_v24  ;;  %vm979_vm5 = vmand %vm931_vm4, %vm883_vm3 }
 0x3c4   : > { %v696_v55 = vshrl.u32 %v16499_v6, 4  ;;  %v16568_v47 = vadd.s32 1, %v268_v0  ;;  %v16571_v34 = vsub.s32 %v16418_v56, %v653_v13  ;;  %v271_v12 = vadd.s32 320, %v15842_v22 }
 0x3c5   : > { %v16574_v10 = vmul.u32.u64.low 2863311531, %v16561_v20  ;;  %v16575_v1 = vmul.u32.u64.high 2863311531, %v16561_v20, %v16574_v10  ;;  %vm886_vm6 = vcmp.ne.s32.totalorder %v16558_v39, 0  ;;  %vm934_vm7 = vcmp.lt.s32.totalorder %v16558_v39, 0 }
 0x3c6   : > { %v686_v45 = vmul.u32 24, %v685_v7  ;;  %v751_v35 = vshrl.u32 %v16517_v36, 4  ;;  %v1030_v49 = vadd.s32 24, %v16558_v39  ;;  %v709_v56 = vsub.s32 %v16425_v11, %v708_v43  ;;  %vm16616_vm13 = vmand %vm934_vm7, %vm886_vm6 }
 0x3c7   : > { %v719_v6 = vmul.u32 24, %v718_v28  ;;  %v16584_v26 = vadd.s32 1, %v273_v31  ;;  %v697_v19 = vmul.u32 24, %v696_v55  ;;  %v729_v40 = vshrl.u32 %v16539_v14, 4 }
 0x3c8   : > { %v16588_v33 = vmul.u32.u64.low 2863311531, %v16568_v47  ;;  %v16589_v61 = vmul.u32.u64.high 2863311531, %v16568_v47, %v16588_v33  ;;  %vm1097_vm8 = vcmp.ge.s32.totalorder %v16028_v41, 1  ;;  %vm1145_vm9 = vcmp.le.s32.totalorder %v16028_v41, 16 }
 0x3c9   : > { %v16593_v48 = vsel %vm979_vm5, %v1027_v30, %v643_v24  ;;  %vm884_vm1 = vcmp.ne.s32.totalorder %v16571_v34, 0  ;;  %v762_v11 = vshrl.u32 %v16575_v1, 4  ;;  %v16597_v36 = vadd.s32 1, %v271_v12 }
 0x3ca   : > { %vm932_vm10 = vcmp.lt.s32.totalorder %v16571_v34, 0  ;;  %v687_v14 = vsub.s32 %v16439_v42, %v686_v45  ;;  %v752_v52 = vmul.u32 24, %v751_v35  ;;  %v274_v0 = vadd.s32 344, %v15842_v22 }
 0x3cb   : > { %v1028_v24 = vadd.s32 24, %v16571_v34  ;;  %v720_v13 = vsub.s32 %v16447_v32, %v719_v6  ;;  %v16607_v7 = vmul.u32.u64.low 2863311531, %v16584_v26  ;;  %v16608_v43 = vmul.u32.u64.high 2863311531, %v16584_v26, %v16607_v7  ;;  %vm16635_vm6 = vmand %vm932_vm10, %vm884_vm1 }
 0x3cc   : > { %vm889_vm12 = vcmp.ne.s32.totalorder %v709_v56, 0  ;;  %v698_v28 = vsub.s32 %v16450_v44, %v697_v19  ;;  %v730_v31 = vmul.u32 24, %v729_v40  ;;  %v740_v42 = vshrl.u32 %v16589_v61, 4 }
 0x3cd   : > { %vm937_vm14 = vcmp.lt.s32.totalorder %v709_v56, 0  ;;  %v763_v32 = vmul.u32 24, %v762_v11  ;;  %v16621_v55 = vmul.u32.u64.low 2863311531, %v16597_v36  ;;  %v16622_v10 = vmul.u32.u64.high 2863311531, %v16597_v36, %v16621_v55 }
 0x3ce   : > { %vm887_vm4 = vcmp.ne.s32.totalorder %v687_v14, 0  ;;  %vm935_vm5 = vcmp.lt.s32.totalorder %v687_v14, 0  ;;  %v16627_v44 = vsub.s32 %v16475_v9, %v752_v52  ;;  %v16629_v1 = vadd.s32 1, %v274_v0  ;;  %vm985_vm0 = vmand %vm937_vm14, %vm889_vm12 }
 0x3cf   : > { %v1033_v45 = vadd.s32 24, %v709_v56  ;;  %vm890_vm7 = vcmp.ne.s32.totalorder %v720_v13, 0  ;;  %vm938_vm2 = vcmp.lt.s32.totalorder %v720_v13, 0  ;;  %v741_v35 = vmul.u32 24, %v740_v42  ;;  %vm16653_vm11 = vmand %vm935_vm5, %vm887_vm4 }
 0x3d0   : > { %vm1096_vm15 = vcmp.ge.s32.totalorder %v16047_v57, 1  ;;  %vm1144_vm3 = vcmp.le.s32.totalorder %v16047_v57, 16  ;;  %v16644_v9 = vsel %vm16616_vm13, %v1030_v49, %v16558_v39  ;;  %vm888_vm1 = vcmp.ne.s32.totalorder %v698_v28, 0  ;;  %vm16662_vm12 = vmand %vm938_vm2, %vm890_vm7 }
 0x3d1   : > { %vm936_vm10 = vcmp.lt.s32.totalorder %v698_v28, 0  ;;  %v16649_v6 = vsub.s32 %v16501_v17, %v730_v31  ;;  %v1031_v40 = vadd.s32 24, %v687_v14  ;;  %v1034_v33 = vadd.s32 24, %v720_v13  ;;  %vm16692_vm4 = vmand %vm1097_vm8, %vm1145_vm9 }
 0x3d2   : > { %v1032_v61 = vadd.s32 24, %v698_v28  ;;  %v16658_v39 = vsub.s32 %v16561_v20, %v763_v32  ;;  %vm893_vm13 = vcmp.ne.s32.totalorder %v16627_v44, 0  ;;  %vm941_vm14 = vcmp.lt.s32.totalorder %v16627_v44, 0  ;;  %vm16680_vm2 = vmand %vm936_vm10, %vm888_vm1 }
 0x3d3   : > { %v16669_v17 = vmul.u32.u64.low 2863311531, %v16629_v1  ;;  %v16670_v11 = vmul.u32.u64.high 2863311531, %v16629_v1, %v16669_v17  ;;  %v16675_v52 = vsel %vm16635_vm6, %v1028_v24, %v16571_v34  ;;  %v16677_v20 = vsel %vm985_vm0, %v1033_v45, %v709_v56  ;;  %v16699_v34 = vld [vmem:[%s19075_s2] ss:$0 sm:$0xff]  ;;  %vm16715_vm9 = vmand %vm941_vm14, %vm893_vm13 }
 0x3d4   : > { %v16685_v7 = vsub.s32 %v16568_v47, %v741_v35  ;;  %v795_v31 = vshrl.u32 %v16608_v43, 4  ;;  %v1037_v56 = vadd.s32 24, %v16627_v44  ;;  %vm891_vm0 = vcmp.ne.s32.totalorder %v16649_v6, 0 }
 0x3d5   : > { %vm939_vm5 = vcmp.lt.s32.totalorder %v16649_v6, 0  ;;  %v272_v47 = vadd.s32 328, %v15842_v22  ;;  %vm1149_vm8 = vcmp.le.s32.totalorder %v16051_v29, 16  ;;  %v16709_v41 = vsel %vm16653_vm11, %v1031_v40, %v687_v14 }
 0x3d6   : > { %vm894_vm7 = vcmp.ne.s32.totalorder %v16658_v39, 0  ;;  %vm942_vm1 = vcmp.lt.s32.totalorder %v16658_v39, 0  ;;  %v773_v43 = vshrl.u32 %v16622_v10, 4  ;;  %vm19266_vm10 = vcmp.le.s32.totalorder %v16033_v53, 16 }
 0x3d7   : > { %vm19267_vm11 = vcmp.ge.s32.totalorder %v16033_v53, 1  ;;  %vm1147_vm14 = vcmp.le.s32.totalorder %v16055_v21, 16  ;;  %v16734_v32 = vsel %vm16662_vm12, %v1034_v33, %v720_v13  ;;  %v16738_v55 = vsel %vm16680_vm2, %v1032_v61, %v698_v28  ;;  %vm16749_vm12 = vmand %vm939_vm5, %vm891_vm0 }
 0x3d8   : > { %vm16726_vm6 = vmand %vm19267_vm11, %vm19266_vm10  ;;  %v1035_v10 = vadd.s32 24, %v16649_v6  ;;  %v1038_v53 = vadd.s32 24, %v16658_v39  ;;  %vm892_vm2 = vcmp.ne.s32.totalorder %v16685_v7, 0  ;;  %vm940_vm13 = vcmp.lt.s32.totalorder %v16685_v7, 0 }
 0x3d9   : > { %v796_v28 = vmul.u32 24, %v795_v31  ;;  %v16761_v40 = vsel %vm16715_vm9, %v1037_v56, %v16627_v44  ;;  %vm16767_vm0 = vmand %vm942_vm1, %vm894_vm7  ;;  %v16771_v61 = vadd.s32 1, %v272_v47  ;;  %v277_v49 = vadd.s32 368, %v15842_v22 }
 0x3da   : > { %vm19274_vm5 = vcmp.le.s32.totalorder %v16043_v54, 16  ;;  %vm19275_vm10 = vcmp.ge.s32.totalorder %v16043_v54, 1  ;;  %v1036_v56 = vadd.s32 24, %v16685_v7  ;;  %v774_v24 = vmul.u32 24, %v773_v43  ;;  %vm16794_vm9 = vmand %vm940_vm13, %vm892_vm2 }
 0x3db   : > { %vm16778_vm11 = vmand %vm19275_vm10, %vm19274_vm5  ;;  %vm1105_vm1 = vcmp.ge.s32.totalorder %v16191_v3, 1  ;;  %vm1153_vm10 = vcmp.le.s32.totalorder %v16191_v3, 16  ;;  %vm19293_vm5 = vcmp.ge.s32.totalorder %v16186_v62, 1 }
 0x3dc   : > { %vm16803_vm7 = vmand %vm1096_vm15, %vm1144_vm3  ;;  %vm1103_vm15 = vcmp.ge.s32.totalorder %v16201_v2, 1  ;;  %vm1151_vm3 = vcmp.le.s32.totalorder %v16201_v2, 16 }
 0x401   : > { %v13052_v30 = vpop.f32.mrb[0].mxu0 }
 0x402   : > { %v6106_v12 = vadd.f32 %v13052_v30, %v16699_v34  ;;  %v5858_v45 = vpop.f32.mrb[1].mxu0 }
 0x403   : > { %v6104_v35 = vadd.f32 %v16699_v34, %v5858_v45  ;;  %v13053_v19 = vpop.f32.mrb[2].mxu0  ;;  %v806_v45 = vshrl.u32 %v16670_v11, 4  ;;  %v16815_v11 = vsub.s32 %v16584_v26, %v796_v28  ;;  %v16833_v26 = vsel %vm16794_vm9, %v1036_v56, %v16685_v7 }
 0x404   : > { %v6154_v17 = vmax.f32 %v6106_v12, 0.0  ;;  %v6107_v0 = vadd.f32 %v13053_v19, %v16699_v34  ;;  %v5861_v31 = vpop.f32.mrb[3].mxu0  ;;  %v16788_v12 = vsel %vm16749_vm12, %v1035_v10, %v16649_v6  ;;  %v16812_v6 = vsel %vm16767_vm0, %v1038_v53, %v16658_v39 }
 0x405   : > { %v6152_v30 = vmax.f32 %v6104_v35, 0.0  ;;  %v6105_v47 = vadd.f32 %v16699_v34, %v5861_v31  ;;  %v275_v10 = vadd.s32 352, %v15842_v22  ;;  %v16836_v39 = vsub.s32 %v16597_v36, %v774_v24 }
 0x406   : > { %v6155_v19 = vmax.f32 %v6107_v0, 0.0  ;;  %v16819_v57 = vmul.u32.u64.low 2863311531, %v16771_v61  ;;  %v16820_v35 = vmul.u32.u64.high 2863311531, %v16771_v61, %v16819_v57  ;;  %v16822_v0 = vadd.s32 1, %v277_v49 }
 0x407   : > { %v6153_v13 = vmax.f32 %v6105_v47, 0.0  ;;  %v6202_v31 = vsel %vm16692_vm4, %v6154_v17, 0.0  ;;  %v6200_v53 = vsel %vm16726_vm6, %v6152_v30, 0.0  ;;  %v807_v17 = vmul.u32 24, %v806_v45  ;;  %v14757_v45 = vld [vmem:[%s19076_s3 + $0x10] sm:$0xff]  }
 0x408   : > { %v6203_v33 = vsel %vm16778_vm11, %v6155_v19, 0.0  ;;  %vm897_vm11 = vcmp.ne.s32.totalorder %v16815_v11, 0  ;;  %vm945_vm6 = vcmp.lt.s32.totalorder %v16815_v11, 0  ;;  %vm19282_vm12 = vcmp.ge.s32.totalorder %v16051_v29, 1 }
 0x409   : > { %v16840_v42 = vpack.c.bf16 %v6203_v33, %v6202_v31  ;;  %v6201_v28 = vsel %vm16803_vm7, %v6153_v13, 0.0  ;;  %v13056_v49 = vpop.f32.mrb[4].mxu0  ;;  %vm16856_vm2 = vmand %vm19282_vm12, %vm1149_vm8  ;;  %v16865_v24 = vmul.u32.u64.low 2863311531, %v16822_v0  ;;  %v16866_v30 = vmul.u32.u64.high 2863311531, %v16822_v0, %v16865_v24 }
 0x40a   : > { %v16844_v44 = vpack.c.bf16 %v6201_v28, %v6200_v53  ;;  %v6110_v47 = vadd.f32 %v13056_v49, %v16699_v34  ;;  %v5874_v54 = vpop.f32.mrb[5].mxu0  ;;  %vm19285_vm8 = vcmp.ge.s32.totalorder %v16055_v21, 1  ;;  %v16879_v57 = vadd.s32 1, %v275_v10  ;;  %v14756_v53 = vld [vmem:[%s19076_s3 + $0x8] sm:$0xff]  }
 0x40b   : > { %6273 = vst [vmem:[#allocation2 + $0x18] sm:$0xff] %v16840_v42  ;;  %v6108_v7 = vadd.f32 %v16699_v34, %v5874_v54  ;;  %v13057_v14 = vpop.f32.mrb[6].mxu0  ;;  %v6386_v56 = vrot.slane %v16840_v42, 4  ;;  %vm16873_vm9 = vmand %vm19285_vm8, %vm1147_vm14  ;;  %vm19288_vm7 = vcmp.le.s32.totalorder %v16057_v4, 16  ;;  %vm19289_vm12 = vcmp.ge.s32.totalorder %v16057_v4, 1 }
 0x40c   : > { %6272 = vst [vmem:[#allocation2 + $0x10] sm:$0xff] %v16844_v44  ;;  %v6158_v29 = vmax.f32 %v6110_v47, 0.0  ;;  %v6111_v19 = vadd.f32 %v13057_v14, %v16699_v34  ;;  %v5877_v43 = vpop.f32.mrb[7].mxu0  ;;  %v6384_v13 = vrot.slane %v16844_v44, 4  ;;  %vm16885_vm0 = vmand %vm19289_vm12, %vm19288_vm7  ;;  %v16894_v28 = vadd.s32 24, %v16815_v11 }
 0x40d   : > { %v6156_v31 = vmax.f32 %v6108_v7, 0.0  ;;  %v6109_v21 = vadd.f32 %v16699_v34, %v5877_v43  ;;  %vm895_vm14 = vcmp.ne.s32.totalorder %v16836_v39, 0  ;;  %vm19292_vm8 = vcmp.le.s32.totalorder %v16186_v62, 16 }
 0x40e   : > { %v6159_v10 = vmax.f32 %v6111_v19, 0.0  ;;  %vm16901_vm7 = vmand %vm19293_vm5, %vm19292_vm8  ;;  %vm19296_vm12 = vcmask 1043456   ;;  %v16911_v54 = vsub.s32 %v16629_v1, %v807_v17  ;;  %vm943_vm13 = vcmp.lt.s32.totalorder %v16836_v39, 0  ;;  %v14841_v1 = vld [vmem:[%s19076_s3] sm:$0xff]  }
 0x40f   : > { %v6385_v49 = vsel %vm19296_vm12, %v15903_v37, %v6384_v13  ;;  %vm19297_vm4 = vmmov %vm19296_vm12  ;;  %v6157_v7 = vmax.f32 %v6109_v21, 0.0  ;;  %v16915_v62 = vadd.s32 24, %v16836_v39  ;;  %v784_v14 = vshrl.u32 %v16820_v35, 4 }
 0x410   : > { %v6387_v47 = vsel %vm19297_vm4, %v6384_v13, %v6386_v56  ;;  %13115 = vmatmul.mubr.bf16.vlgmr.msra.gmra.mrb[0].mxu1 %v6385_v49  ;;  %v6206_v24 = vsel %vm16856_vm2, %v6158_v29, 0.0  ;;  %v6207_v19 = vsel %vm16885_vm0, %v6159_v10, 0.0  ;;  %vm1109_vm4 = vcmp.ge.s32.totalorder %v16220_v16, 1  ;;  %vm16941_vm2 = vmand %vm1105_vm1, %vm1153_vm10  ;;  %v14759_v13 = vld [vmem:[%s19076_s3 + $0x20] sm:$0xff]  }
 0x411   : > { %13118 = vmatprep.mubr.bf16.mxu1 %v6387_v47  ;;  %13163 = vmatpush3.bf16.msra.mxu1 %v14841_v1  ;;  %vm1157_vm5 = vcmp.le.s32.totalorder %v16220_v16, 16  ;;  %v16928_v17 = vmul.u32.u64.low 2863311531, %v16879_v57  ;;  %v16929_v43 = vmul.u32.u64.high 2863311531, %v16879_v57, %v16928_v17  ;;  %v6204_v35 = vsel %vm16873_vm9, %v6156_v31, 0.0  ;;  %v13060_v33 = vpop.f32.mrb[8].mxu0  ;;  %vm16962_vm9 = vmand %vm945_vm6, %vm897_vm11 }
 0x412   : > { %v16933_v36 = vpack.c.bf16 %v6207_v19, %v6206_v24  ;;  %v6205_v29 = vsel %vm16901_vm7, %v6157_v7, 0.0  ;;  %vm1155_vm8 = vcmp.le.s32.totalorder %v16222_v5, 16  ;;  %13164 = vmatprep.subr.bf16.mxu1 %v14756_v53  ;;  %v16951_v31 = vadd.s32 376, %v15842_v22  ;;  %v5890_v10 = vpop.f32.mrb[9].mxu0  ;;  %vm16973_vm1 = vmand %vm1103_vm15, %vm1151_vm3 }
 0x413   : > { %v16953_v21 = vpack.c.bf16 %v6205_v29, %v6204_v35  ;;  %v6114_v3 = vadd.f32 %v13060_v33, %v16699_v34  ;;  %vm898_vm7 = vcmp.ne.s32.totalorder %v16911_v54, 0  ;;  %vm946_vm12 = vcmp.lt.s32.totalorder %v16911_v54, 0  ;;  %v13061_v7 = vpop.f32.mrb[10].mxu0  ;;  %vm16989_vm15 = vmand %vm943_vm13, %vm895_vm14 }
 0x414   : > { %19300 = vst [vmem:[#allocation7_spill] sm:$0xff] %v16951_v31  ;;  %6275 = vst [vmem:[#allocation2 + $0x28] sm:$0xff] %v16933_v36  ;;  %v6112_v47 = vadd.f32 %v16699_v34, %v5890_v10  ;;  %v19087_v24 = vrot.slane %v16933_v36, 4  ;;  %v785_v19 = vmul.u32 24, %v784_v14  ;;  %v839_v1 = vshrl.u32 %v16866_v30, 4  ;;  %v5893_v35 = vpop.f32.mrb[11].mxu0 }
 0x415   : > { %6274 = vst [vmem:[#allocation2 + $0x20] sm:$0xff] %v16953_v21  ;;  %v6162_v17 = vmax.f32 %v6114_v3, 0.0  ;;  %v6115_v2 = vadd.f32 %v13061_v7, %v16699_v34  ;;  %v6388_v29 = vrot.slane %v16953_v21, 4  ;;  %13165 = vmatpush3.bf16.msra.mxu1 %v14756_v53  ;;  %v817_v14 = vshrl.u32 %v16929_v43, 4  ;;  %v14758_v43 = vld [vmem:[%s19076_s3 + $0x18] sm:$0xff]  }
 0x416   : > { %v6160_v30 = vmax.f32 %v6112_v47, 0.0  ;;  %vm19307_vm3 = vcmp.le.s32.totalorder %v16206_v25, 16  ;;  %vm19308_vm11 = vcmp.ge.s32.totalorder %v16206_v25, 1  ;;  %v6113_v53 = vadd.f32 %v16699_v34, %v5893_v35  ;;  %13166 = vmatprep.subr.bf16.mxu1 %v14757_v45 }
 0x417   : > { %vm16998_vm6 = vmand %vm19308_vm11, %vm19307_vm3  ;;  %v17012_v25 = vsel %vm16962_vm9, %v16894_v28, %v16815_v11  ;;  %v17015_v10 = vadd.s32 1, %v16951_v31  ;;  %v6163_v47 = vmax.f32 %v6115_v2, 0.0  ;;  %vm19311_vm14 = vcmp.le.s32.totalorder %v16212_v51, 16 }
 0x418   : > { %vm19312_vm11 = vcmp.ge.s32.totalorder %v16212_v51, 1  ;;  %vm19315_vm10 = vcmask 1043456   ;;  %vm1111_vm13 = vcmp.ge.s32.totalorder %v16374_v63, 1  ;;  %vm1159_vm0 = vcmp.le.s32.totalorder %v16374_v63, 16 }
 0x419   : > { %vm17021_vm3 = vmand %vm19312_vm11, %vm19311_vm14  ;;  %v6389_v35 = vsel %vm19315_vm10, %v6386_v56, %v6388_v29  ;;  %v1042_v28 = vadd.s32 24, %v16911_v54  ;;  %v6161_v4 = vmax.f32 %v6113_v53, 0.0  ;;  %vm1114_vm14 = vcmp.ge.s32.totalorder %v16379_v59, 1  ;;  %13167 = vmatpush3.bf16.msra.mxu1 %v14757_v45 }
 0x41a   : > { %vm19316_vm9 = vmmov %vm19315_vm10  ;;  %13119 = vmatmul.mubr.bf16.gmra.mrb[4].mxu1 %v6389_v35  ;;  %vm1162_vm11 = vcmp.le.s32.totalorder %v16379_v59, 16  ;;  %v17040_v51 = vsel %vm16989_vm15, %v16915_v62, %v16836_v39  ;;  %v17051_v2 = vsub.s32 %v16771_v61, %v785_v19  ;;  %v6210_v53 = vsel %vm16941_vm2, %v6162_v17, 0.0  ;;  %v13064_v61 = vpop.f32.mrb[12].mxu0  ;;  %13168 = vmatprep.subr.bf16.mxu1 %v14758_v43 }
 0x41b   : > { %v6391_v11 = vsel %vm19316_vm9, %v6388_v29, %v19087_v24  ;;  %19317 = vst [vmem:[#allocation8_spill] sm:$0xff] %v17040_v51  ;;  %vm17046_vm10 = vmand %vm946_vm12, %vm898_vm7  ;;  %v840_v29 = vmul.u32 24, %v839_v1  ;;  %v6208_v33 = vsel %vm16973_vm1, %v6160_v30, 0.0  ;;  %v6211_v39 = vsel %vm16998_vm6, %v6163_v47, 0.0  ;;  %v5906_v17 = vpop.f32.mrb[13].mxu0 }
 0x41c   : > { %13122 = vmatprep.mubr.bf16.mxu1 %v6391_v11  ;;  %v818_v62 = vmul.u32 24, %v817_v14  ;;  %v17059_v35 = vpack.c.bf16 %v6211_v39, %v6210_v53  ;;  %v6209_v24 = vsel %vm17021_vm3, %v6161_v4, 0.0  ;;  %v6118_v45 = vadd.f32 %v13064_v61, %v16699_v34  ;;  %vm17085_vm2 = vmand %vm1109_vm4, %vm1157_vm5  ;;  %v13065_v7 = vpop.f32.mrb[14].mxu0  ;;  %v19323_v11 = vld [vmem:[#allocation4_spill] sm:$0xff] }
 0x41d   : > { %v17067_v49 = vmul.u32.u64.low 2863311531, %v17015_v10  ;;  %v17068_v19 = vmul.u32.u64.high 2863311531, %v17015_v10, %v17067_v49  ;;  %v17070_v1 = vpack.c.bf16 %v6209_v24, %v6208_v33  ;;  %v17076_v14 = vsel %vm17046_vm10, %v1042_v28, %v16911_v54  ;;  %v5909_v56 = vpop.f32.mrb[15].mxu0  ;;  %13169 = vmatpush3.bf16.msra.mxu1 %v14758_v43  ;;  %v14760_v39 = vld [vmem:[%s19076_s3 + $0x28] sm:$0xff]  }
 0x41e   : > { %19320 = vst [vmem:[#allocation9_spill] sm:$0xff] %v17076_v14  ;;  %v276_v30 = vadd.s32 360, %v15842_v22  ;;  %6277 = vst [vmem:[#allocation2 + $0x38] sm:$0xff] %v17059_v35  ;;  %v6116_v47 = vadd.f32 %v16699_v34, %v5906_v17  ;;  %v19088_v22 = vrot.slane %v17059_v35, 4  ;;  %v17094_v54 = vsub.s32 %v16822_v0, %v840_v29  ;;  %13170 = vmatprep.subr.bf16.mxu1 %v14759_v13 }
 0x41f   : > { %6276 = vst [vmem:[#allocation2 + $0x30] sm:$0xff] %v17070_v1  ;;  %v6166_v28 = vmax.f32 %v6118_v45, 0.0  ;;  %vm19324_vm4 = vcmp.ge.s32.totalorder %v16222_v5, 1  ;;  %v6119_v4 = vadd.f32 %v13065_v7, %v16699_v34  ;;  %v6392_v53 = vrot.slane %v17070_v1, 4  ;;  %v19342_v7 = vld [vmem:[#allocation5_spill] sm:$0xff] }
 0x420   : > { %vm17101_vm5 = vmand %vm19324_vm4, %vm1155_vm8  ;;  %v17108_v0 = vsub.s32 %v16879_v57, %v818_v62  ;;  %v6164_v29 = vmax.f32 %v6116_v47, 0.0  ;;  %vm19327_vm12 = vcmp.le.s32.totalorder %v16352_v46, 16  ;;  %vm19328_vm6 = vcmp.ge.s32.totalorder %v16352_v46, 1  ;;  %v6296_v46 = vld [vmem:[#allocation2] sm:$0xf8] }
 0x421   : > { %vm17114_vm15 = vmand %vm19328_vm6, %vm19327_vm12  ;;  %v6117_v33 = vadd.f32 %v16699_v34, %v5909_v56  ;;  %vm896_vm8 = vcmp.ne.s32.totalorder %v17051_v2, 0  ;;  %vm944_vm3 = vcmp.lt.s32.totalorder %v17051_v2, 0  ;;  %v6167_v57 = vmax.f32 %v6119_v4, 0.0  ;;  %13171 = vmatpush3.bf16.msra.mxu1 %v14759_v13  ;;  %v13068_v56 = vpop.f32.mrb[16].mxu0  ;;  %v19345_v13 = vld [vmem:[#allocation6_spill] sm:$0xff] }
 0x422   : > { %vm19331_vm9 = vcmp.le.s32.totalorder %v16361_v15, 16  ;;  %vm19332_vm10 = vcmp.ge.s32.totalorder %v16361_v15, 1  ;;  %v19335_v43 = vrot.slane %v16933_v36, 4  ;;  %vm19336_vm12 = vcmask 1043456   ;;  %13172 = vmatprep.subr.bf16.mxu1 %v14760_v39  ;;  %v5922_v63 = vpop.f32.mrb[17].mxu0 }
 0x423   : > { %vm17128_vm4 = vmand %vm19332_vm10, %vm19331_vm9  ;;  %v17138_v49 = vadd.s32 1, %v276_v30  ;;  %v6165_v45 = vmax.f32 %v6117_v33, 0.0  ;;  %v17141_v17 = vadd.s32 24, %v17051_v2  ;;  %v6214_v15 = vsel %vm17085_vm2, %v6166_v28, 0.0 }
 0x424   : > { %v6393_v62 = vsel %vm19336_vm12, %v19335_v43, %v6392_v53  ;;  %vm19337_vm6 = vmmov %vm19336_vm12  ;;  %v6215_v47 = vsel %vm17114_vm15, %v6167_v57, 0.0  ;;  %vm19338_vm12 = vcmp.le.s32.totalorder %v16365_v58, 16  ;;  %vm1117_vm7 = vcmp.ge.s32.totalorder %v19342_v7, 1 }
 0x425   : > { %v6395_v61 = vsel %vm19337_vm6, %v6392_v53, %v19088_v22  ;;  %13123 = vmatmul.mubr.bf16.gmra.mrb[8].mxu1 %v6393_v62  ;;  %vm19339_vm6 = vcmp.ge.s32.totalorder %v16365_v58, 1  ;;  %vm1165_vm9 = vcmp.le.s32.totalorder %v19342_v7, 16  ;;  %vm899_vm10 = vcmp.ne.s32.totalorder %v17108_v0, 0  ;;  %vm17171_vm2 = vmand %vm1111_vm13, %vm1159_vm0  ;;  %v13069_v62 = vpop.f32.mrb[18].mxu0 }
 0x426   : > { %vm17153_vm1 = vmand %vm19339_vm6, %vm19338_vm12  ;;  %13126 = vmatprep.mubr.bf16.mxu1 %v6395_v61  ;;  %v850_v24 = vshrl.u32 %v17068_v19, 4  ;;  %v6212_v28 = vsel %vm17101_vm5, %v6164_v29, 0.0  ;;  %v17163_v4 = vpack.c.bf16 %v6215_v47, %v6214_v15  ;;  %v6213_v58 = vsel %vm17128_vm4, %v6165_v45, 0.0  ;;  %v14761_v19 = vld [vmem:[%s19076_s3 + $0x30] sm:$0xff]   ;;  %13173 = vmatpush3.bf16.msra.mxu1 %v14760_v39 }
 0x427   : > { %vm1163_vm12 = vcmp.le.s32.totalorder %v19345_v13, 16  ;;  %vm947_vm5 = vcmp.lt.s32.totalorder %v17108_v0, 0  ;;  %v17181_v16 = vpack.c.bf16 %v6213_v58, %v6212_v28  ;;  %v6122_v29 = vadd.f32 %v13068_v56, %v16699_v34  ;;  %vm17188_vm0 = vmand %vm1114_vm14, %vm1162_vm11  ;;  %v5925_v58 = vpop.f32.mrb[19].mxu0  ;;  %13174 = vmatprep.subr.bf16.mxu1 %v14761_v19 }
 0x428   : > { %v17195_v33 = vmul.u32.u64.low 2863311531, %v17138_v49  ;;  %v17196_v57 = vmul.u32.u64.high 2863311531, %v17138_v49, %v17195_v33  ;;  %6279 = vst [vmem:[#allocation2 + $0x48] sm:$0xff] %v17163_v4  ;;  %v6120_v43 = vadd.f32 %v16699_v34, %v5922_v63  ;;  %vm17207_vm11 = vmand %vm944_vm3, %vm896_vm8  ;;  %v1045_v45 = vadd.s32 24, %v17094_v54 }
 0x429   : > { %v1043_v15 = vadd.s32 24, %v17108_v0  ;;  %6278 = vst [vmem:[#allocation2 + $0x40] sm:$0xff] %v17181_v16  ;;  %v6170_v47 = vmax.f32 %v6122_v29, 0.0  ;;  %v6123_v28 = vadd.f32 %v13069_v62, %v16699_v34  ;;  %v6396_v56 = vrot.slane %v17181_v16, 4  ;;  %vm17230_vm14 = vmand %vm947_vm5, %vm899_vm10  ;;  %v14762_v62 = vld [vmem:[%s19076_s3 + $0x38] sm:$0xff]   ;;  %v13072_v5 = vpop.f32.mrb[20].mxu0 }
 0x42a   : > { %vm19350_vm6 = vcmp.ne.s32.totalorder %v17094_v54, 0  ;;  %vm19351_vm8 = vcmp.lt.s32.totalorder %v17094_v54, 0  ;;  %v851_v33 = vmul.u32 24, %v850_v24  ;;  %v6168_v59 = vmax.f32 %v6120_v43, 0.0  ;;  %13175 = vmatpush3.bf16.msra.mxu1 %v14761_v19  ;;  %v5938_v19 = vpop.f32.mrb[21].mxu0 }
 0x42b   : > { %vm17220_vm3 = vmand %vm19351_vm8, %vm19350_vm6  ;;  %v6121_v29 = vadd.f32 %v16699_v34, %v5925_v58  ;;  %v6729_v22 = vshrl.u32 %v6296_v46, 16  ;;  %v6171_v24 = vmax.f32 %v6123_v28, 0.0  ;;  %vm19356_vm6 = vcmp.le.s32.totalorder %v19323_v11, 16  ;;  %13176 = vmatprep.subr.bf16.mxu1 %v14762_v62 }
 0x42c   : > { %vm19357_vm8 = vcmp.ge.s32.totalorder %v19323_v11, 1  ;;  %v19360_v58 = vrot.slane %v17059_v35, 4  ;;  %vm19361_vm10 = vcmask 1043456   ;;  %v19362_v37 = vrot.slane %v17163_v4, 4 }
 0x42d   : > { %vm17241_vm13 = vmand %vm19357_vm8, %vm19356_vm6  ;;  %v6732_v14 = vshll.u32 %v6296_v46, 16  ;;  %v6169_v51 = vmax.f32 %v6121_v29, 0.0  ;;  %vm1121_vm4 = vcmp.ge.s32.totalorder %v16534_v27, 1  ;;  %vm1169_vm15 = vcmp.le.s32.totalorder %v16534_v27, 16 }
 0x42e   : > { %v6397_v3 = vsel %vm19361_vm10, %v19360_v58, %v6396_v56  ;;  %vm19363_vm5 = vmmov %vm19361_vm10  ;;  %v17257_v11 = vsel %vm17207_vm11, %v17141_v17, %v17051_v2  ;;  %v17262_v28 = vsel %vm17220_vm3, %v1045_v45, %v17094_v54  ;;  %v6219_v46 = vsel %vm17188_vm0, %v6171_v24, 0.0  ;;  %13177 = vmatpush3.bf16.msra.mxu1 %v14762_v62 }
 0x42f   : > { %v6399_v31 = vsel %vm19363_vm5, %v6396_v56, %v19362_v37  ;;  %13127 = vmatmul.mubr.bf16.gmra.mrb[12].mxu1 %v6397_v3  ;;  %v828_v37 = vshrl.u32 %v17196_v57, 4  ;;  %v6218_v3 = vsel %vm17153_vm1, %v6170_v47, 0.0  ;;  %v17272_v61 = vsel %vm17230_vm14, %v1043_v15, %v17108_v0  ;;  %vm17304_vm14 = vmand %vm1117_vm7, %vm1165_vm9  ;;  %v13073_v15 = vpop.f32.mrb[22].mxu0 }
 0x430   : > { %13130 = vmatprep.mubr.bf16.mxu1 %v6399_v31  ;;  %v17275_v2 = vsub.s32 %v17015_v10, %v851_v33  ;;  %v6216_v54 = vsel %vm17171_vm2, %v6168_v59, 0.0  ;;  %v17279_v17 = vpack.c.bf16 %v6219_v46, %v6218_v3  ;;  %v6217_v30 = vsel %vm17241_vm13, %v6169_v51, 0.0  ;;  %v17288_v10 = vld [vmem:[%s19076_s3 + $0x80] sm:$0xff]   ;;  %v5941_v29 = vpop.f32.mrb[23].mxu0 }
 0x431   : > { %vm1119_vm1 = vcmp.ge.s32.totalorder %v16545_v8, 1  ;;  %vm1167_vm0 = vcmp.le.s32.totalorder %v16545_v8, 16  ;;  %v829_v31 = vmul.u32 24, %v828_v37  ;;  %v17290_v0 = vpack.c.bf16 %v6217_v30, %v6216_v54  ;;  %13226 = vmatprep.subr.bf16.mxu1 %v17288_v10 }
 0x432   : > { %v6126_v53 = vadd.f32 %v13072_v5, %v16699_v34  ;;  %vm1170_vm13 = vcmp.le.s32.totalorder %v16549_v60, 16  ;;  %v17295_v51 = vrot.slane %v6729_v22, 3  ;;  %v17297_v57 = vrot.slane %v6732_v14, 4  ;;  %6281 = vst [vmem:[#allocation2 + $0x58] sm:$0xff] %v17279_v17 }
 0x433   : > { %v6124_v45 = vadd.f32 %v16699_v34, %v5938_v19  ;;  %v6402_v14 = vrot.slane %v17279_v17, 4  ;;  %v17313_v22 = vsub.s32 %v17138_v49, %v829_v31  ;;  %v19366_v47 = vmov 0   ;;  %6280 = vst [vmem:[#allocation2 + $0x50] sm:$0xff] %v17290_v0 }
 0x434   : > { %v17316_v56 = vrot.slane %v19366_v47, 3  ;;  %v6174_v7 = vmax.f32 %v6126_v53, 0.0  ;;  %vm19367_vm7 = vcmp.ge.s32.totalorder %v19345_v13, 1  ;;  %v6127_v33 = vadd.f32 %v13073_v15, %v16699_v34 }
 0x435   : > { %vm17323_vm9 = vmand %vm19367_vm7, %vm1163_vm12  ;;  %v6400_v49 = vrot.slane %v17290_v0, 4  ;;  %vm902_vm6 = vcmp.ne.s32.totalorder %v17275_v2, 0  ;;  %v6172_v39 = vmax.f32 %v6124_v45, 0.0  ;;  %vm19370_vm8 = vcmp.le.s32.totalorder %v16524_v38, 16  ;;  %v13076_v45 = vpop.f32.mrb[24].mxu0 }
 0x436   : > { %vm19371_vm10 = vcmp.ge.s32.totalorder %v16524_v38, 1  ;;  %v6125_v13 = vadd.f32 %v16699_v34, %v5941_v29  ;;  %vm950_vm12 = vcmp.lt.s32.totalorder %v17275_v2, 0  ;;  %v1046_v24 = vadd.s32 24, %v17275_v2  ;;  %v5954_v29 = vpop.f32.mrb[25].mxu0 }
 0x437   : > { %vm1214_vm5 = vmand %vm19371_vm10, %vm19370_vm8  ;;  %v6175_v43 = vmax.f32 %v6127_v33, 0.0  ;;  %vm19372_vm7 = vcmp.le.s32.totalorder %v16529_v23, 16  ;;  %vm19373_vm11 = vcmp.ge.s32.totalorder %v16529_v23, 1  ;;  %v19376_v38 = vrot.slane %v17163_v4, 4 }
 0x438   : > { %vm17342_vm3 = vmand %vm19373_vm11, %vm19372_vm7  ;;  %vm19377_vm8 = vcmask 1043456   ;;  %v6173_v46 = vmax.f32 %v6125_v13, 0.0  ;;  %vm900_vm2 = vcmp.ne.s32.totalorder %v17313_v22, 0  ;;  %vm948_vm11 = vcmp.lt.s32.totalorder %v17313_v22, 0 }
 0x439   : > { %v6401_v58 = vsel %vm19377_vm8, %v19376_v38, %v6400_v49  ;;  %vm19378_vm10 = vmmov %vm19377_vm8  ;;  %v6222_v23 = vsel %vm17304_vm14, %v6174_v7, 0.0  ;;  %v6223_v54 = vsel %vm1214_vm5, %v6175_v43, 0.0  ;;  %vm1125_vm7 = vcmp.ge.s32.totalorder %v16565_v50, 1  ;;  %v13077_v43 = vpop.f32.mrb[26].mxu0 }
 0x43a   : > { %v6403_v37 = vsel %vm19378_vm10, %v6400_v49, %v6402_v14  ;;  %13131 = vmatmul.mubr.bf16.gmra.mrb[16].mxu1 %v6401_v58  ;;  %vm1173_vm8 = vcmp.le.s32.totalorder %v16565_v50, 16  ;;  %vm17364_vm10 = vmand %vm950_vm12, %vm902_vm6  ;;  %v19111_v5 = vshrl.u32 %v16840_v42, 16  ;;  %v19108_v31 = vshll.u32 %v16840_v42, 16 }
 0x43b   : > { %13134 = vmatprep.mubr.bf16.mxu1 %v6403_v37  ;;  %v6220_v53 = vsel %vm17323_vm9, %v6172_v39, 0.0  ;;  %v17372_v19 = vpack.c.bf16 %v6223_v54, %v6222_v23  ;;  %v6221_v59 = vsel %vm17342_vm3, %v6173_v46, 0.0  ;;  %vm1123_vm14 = vcmp.ge.s32.totalorder %v16593_v48, 1  ;;  %vm17385_vm5 = vmand %vm1121_vm4, %vm1169_vm15  ;;  %v5957_v23 = vpop.f32.mrb[27].mxu0 }
 0x43c   : > { %vm1171_vm6 = vcmp.le.s32.totalorder %v16593_v48, 16  ;;  %v19107_v15 = vshrl.u32 %v16953_v21, 16  ;;  %v17379_v7 = vpack.c.bf16 %v6221_v59, %v6220_v53  ;;  %v6130_v33 = vadd.f32 %v13076_v45, %v16699_v34  ;;  %vm17411_vm3 = vmand %vm948_vm11, %vm900_vm2 }
 0x43d   : > { %vm1174_vm9 = vcmp.le.s32.totalorder %v16644_v9, 16  ;;  %v1044_v49 = vadd.s32 24, %v17313_v22  ;;  %vm6727_vm12 = vsmask.f32 4352  ;;  %v19383_v39 = vshrl.u32 %v16844_v44, 16  ;;  %6283 = vst [vmem:[#allocation2 + $0x68] sm:$0xff] %v17372_v19 }
 0x43e   : > { %v6128_v27 = vadd.f32 %v16699_v34, %v5954_v29  ;;  %v6406_v62 = vrot.slane %v17372_v19, 4  ;;  %v17405_v38 = vsel %vm17364_vm10, %v1046_v24, %v17275_v2  ;;  %v6757_v37 = vrot.slane %v19111_v5, 3  ;;  %6282 = vst [vmem:[#allocation2 + $0x60] sm:$0xff] %v17379_v7  ;;  %vm17422_vm10 = vmand %vm1119_vm1, %vm1167_vm0  ;;  %v13080_v2 = vpop.f32.mrb[28].mxu0 }
 0x43f   : > { %v17395_v13 = vrot.slane %v19383_v39, 3  ;;  %v6178_v46 = vmax.f32 %v6130_v33, 0.0  ;;  %v6131_v24 = vadd.f32 %v13077_v43, %v16699_v34  ;;  %v6404_v54 = vrot.slane %v17379_v7, 4 }
 0x440   : > { %v6760_v30 = vrot.slane %v19108_v31, 4  ;;  %v6176_v53 = vmax.f32 %v6128_v27, 0.0  ;;  %vm19388_vm2 = vcmp.ge.s32.totalorder %v16549_v60, 1  ;;  %v6129_v8 = vadd.f32 %v16699_v34, %v5957_v23 }
 0x441   : > { %vm1218_vm11 = vmand %vm19388_vm2, %vm1170_vm13  ;;  %v6766_v59 = vrot.slane %v19107_v15, 3  ;;  %v19106_v45 = vshll.u32 %v16953_v21, 16  ;;  %v6179_v33 = vmax.f32 %v6131_v24, 0.0  ;;  %vm19389_vm1 = vcmp.le.s32.totalorder %v16553_v18, 16 }
 0x442   : > { %vm19390_vm0 = vcmp.ge.s32.totalorder %v16553_v18, 1  ;;  %vm19393_vm4 = vcmask 1043456   ;;  %v17455_v27 = vsel %vm17411_vm3, %v1044_v49, %v17313_v22  ;;  %v6226_v18 = vsel %vm17385_vm5, %v6178_v46, 0.0 }
 0x443   : > { %vm17442_vm15 = vmand %vm19390_vm0, %vm19389_vm1  ;;  %v6405_v60 = vsel %vm19393_vm4, %v6402_v14, %v6404_v54  ;;  %v6224_v43 = vsel %vm17422_vm10, %v6176_v53, 0.0  ;;  %v6177_v24 = vmax.f32 %v6129_v8, 0.0  ;;  %v6769_v14 = vrot.slane %v19106_v45, 4 }
 0x444   : > { %vm19394_vm13 = vmmov %vm19393_vm4  ;;  %13135 = vmatmul.mubr.bf16.gmra.mrb[20].mxu1 %v6405_v60  ;;  %v6227_v23 = vsel %vm1218_vm11, %v6179_v33, 0.0  ;;  %vm1129_vm4 = vcmp.ge.s32.totalorder %v16677_v20, 1  ;;  %vm1177_vm2 = vcmp.le.s32.totalorder %v16677_v20, 16  ;;  %v19101_v22 = vshrl.u32 %v16933_v36, 16  ;;  %v5970_v60 = vpop.f32.mrb[29].mxu0 }
 0x445   : > { %v6407_v39 = vsel %vm19394_vm13, %v6404_v54, %v6406_v62  ;;  %v19096_v49 = vshll.u32 %v16933_v36, 16  ;;  %v19095_v63 = vshrl.u32 %v17070_v1, 16  ;;  %v17468_v58 = vpack.c.bf16 %v6227_v23, %v6226_v18 }
 0x446   : > { %13138 = vmatprep.mubr.bf16.mxu1 %v6407_v39  ;;  %v6225_v46 = vsel %vm17442_vm15, %v6177_v24, 0.0  ;;  %vm1127_vm5 = vcmp.ge.s32.totalorder %v16709_v41, 1  ;;  %vm1175_vm3 = vcmp.le.s32.totalorder %v16709_v41, 16  ;;  %v17474_v54 = vor.u32 %v6760_v30, %v6757_v37  ;;  %vm17490_vm15 = vmand %vm1125_vm7, %vm1173_vm8 }
 0x447   : > { %v6770_v53 = vor.u32 %v6769_v14, %v6766_v59  ;;  %v17476_v8 = vpack.c.bf16 %v6225_v46, %v6224_v43  ;;  %v6134_v33 = vadd.f32 %v13080_v2, %v16699_v34  ;;  %vm1130_vm10 = vcmp.ge.s32.totalorder %v16734_v32, 1  ;;  %6285 = vst [vmem:[#allocation2 + $0x78] sm:$0xff] %v17468_v58  ;;  %v13081_v59 = vpop.f32.mrb[30].mxu0  ;;  %vm1219_vm7 = vmand %vm1123_vm14, %vm1171_vm6 }
 0x448   : > { %vm1178_vm11 = vcmp.le.s32.totalorder %v16734_v32, 16  ;;  %v6775_v29 = vrot.slane %v19101_v22, 3  ;;  %v6778_v39 = vrot.slane %v19096_v49, 4  ;;  %v6132_v30 = vadd.f32 %v16699_v34, %v5970_v60  ;;  %v5973_v23 = vpop.f32.mrb[31].mxu0 }
 0x449   : > { %vm1176_vm0 = vcmp.le.s32.totalorder %v16738_v55, 16  ;;  %v6410_v18 = vrot.slane %v17468_v58, 4  ;;  %v17500_v43 = vsel %vm6727_vm12, %v17474_v54, %v6770_v53  ;;  %v6784_v50 = vrot.slane %v19095_v63, 3  ;;  %6284 = vst [vmem:[#allocation2 + $0x70] sm:$0xff] %v17476_v8 }
 0x44a   : > { %v6182_v24 = vmax.f32 %v6134_v33, 0.0  ;;  %v6135_v14 = vadd.f32 %v13081_v59, %v16699_v34  ;;  %v6408_v46 = vrot.slane %v17476_v8, 4  ;;  %v6779_v2 = vor.u32 %v6778_v39, %v6775_v29 }
 0x44b   : > { %v6180_v60 = vmax.f32 %v6132_v30, 0.0  ;;  %vm19397_vm8 = vcmp.ge.s32.totalorder %v16644_v9, 1  ;;  %v6133_v63 = vadd.f32 %v16699_v34, %v5973_v23  ;;  %v19098_v33 = vshll.u32 %v17070_v1, 16 }
 0x44c   : > { %vm1222_vm13 = vmand %vm19397_vm8, %vm1174_vm9  ;;  %v19097_v49 = vshrl.u32 %v17059_v35, 16  ;;  %v6230_v48 = vsel %vm17490_vm15, %v6182_v24, 0.0  ;;  %v6183_v59 = vmax.f32 %v6135_v14, 0.0  ;;  %vm19398_vm14 = vcmp.le.s32.totalorder %v16675_v52, 16 }
 0x44d   : > { %vm19399_vm6 = vcmp.ge.s32.totalorder %v16675_v52, 1  ;;  %vm19402_vm9 = vcmask 1043456   ;;  %v6228_v30 = vsel %vm1219_vm7, %v6180_v60, 0.0  ;;  %v6181_v37 = vmax.f32 %v6133_v63, 0.0  ;;  %v13084_v60 = vpop.f32.mrb[32].mxu0 }
 0x44e   : > { %vm17524_vm1 = vmand %vm19399_vm6, %vm19398_vm14  ;;  %v6409_v9 = vsel %vm19402_vm9, %v6406_v62, %v6408_v46  ;;  %v17535_v24 = vsel %vm6727_vm12, %v6770_v53, %v6779_v2  ;;  %v6787_v52 = vrot.slane %v19098_v33, 4  ;;  %v6231_v14 = vsel %vm1222_vm13, %v6183_v59, 0.0  ;;  %v5986_v33 = vpop.f32.mrb[33].mxu0 }
 0x44f   : > { %vm19403_vm8 = vmmov %vm19402_vm9  ;;  %13139 = vmatmul.mubr.bf16.gmra.mrb[24].mxu1 %v6409_v9  ;;  %vm1133_vm15 = vcmp.ge.s32.totalorder %v16761_v40, 1  ;;  %vm1181_vm14 = vcmp.le.s32.totalorder %v16761_v40, 16  ;;  %v6793_v62 = vrot.slane %v19097_v49, 3  ;;  %v19100_v23 = vshll.u32 %v17059_v35, 16 }
 0x450   : > { %v6411_v39 = vsel %vm19403_vm8, %v6408_v46, %v6410_v18  ;;  %v19099_v63 = vshrl.u32 %v17181_v16, 16  ;;  %v17545_v46 = vpack.c.bf16 %v6231_v14, %v6230_v48  ;;  %v6229_v53 = vsel %vm17524_vm1, %v6181_v37, 0.0  ;;  %vm17566_vm1 = vmand %vm1129_vm4, %vm1177_vm2  ;;  %v13085_v37 = vpop.f32.mrb[34].mxu0 }
 0x451   : > { %13142 = vmatprep.mubr.bf16.mxu1 %v6411_v39  ;;  %vm1131_vm7 = vcmp.ge.s32.totalorder %v16788_v12, 1  ;;  %vm1179_vm13 = vcmp.le.s32.totalorder %v16788_v12, 16  ;;  %v6788_v59 = vor.u32 %v6787_v52, %v6784_v50  ;;  %v19102_v9 = vshll.u32 %v17181_v16, 16  ;;  %vm1223_vm4 = vmand %vm1127_vm5, %vm1175_vm3 }
 0x452   : > { %v17552_v39 = vpack.c.bf16 %v6229_v53, %v6228_v30  ;;  %v6138_v49 = vadd.f32 %v13084_v60, %v16699_v34  ;;  %vm1182_vm9 = vcmp.le.s32.totalorder %v16812_v6, 16  ;;  %v6796_v48 = vrot.slane %v19100_v23, 4  ;;  %6287 = vst [vmem:[#allocation2 + $0x88] sm:$0xff] %v17545_v46  ;;  %v5989_v60 = vpop.f32.mrb[35].mxu0  ;;  %vm1226_vm2 = vmand %vm1130_vm10, %vm1178_vm11 }
 0x453   : > { %v6802_v29 = vrot.slane %v19099_v63, 3  ;;  %v6136_v30 = vadd.f32 %v16699_v34, %v5986_v33  ;;  %vm1132_vm8 = vcmp.ge.s32.totalorder %v16833_v26, 1  ;;  %vm1180_vm6 = vcmp.le.s32.totalorder %v16833_v26, 16 }
 0x454   : > { %v6414_v52 = vrot.slane %v17545_v46, 4  ;;  %v17575_v14 = vsel %vm6727_vm12, %v6779_v2, %v6788_v59  ;;  %v6805_v53 = vrot.slane %v19102_v9, 4  ;;  %6286 = vst [vmem:[#allocation2 + $0x80] sm:$0xff] %v17552_v39  ;;  %v6186_v20 = vmax.f32 %v6138_v49, 0.0 }
 0x455   : > { %v6139_v33 = vadd.f32 %v13085_v37, %v16699_v34  ;;  %v6412_v63 = vrot.slane %v17552_v39, 4  ;;  %v6797_v23 = vor.u32 %v6796_v48, %v6793_v62  ;;  %v6184_v22 = vmax.f32 %v6136_v30, 0.0 }
 0x456   : > { %v6137_v2 = vadd.f32 %v16699_v34, %v5989_v60  ;;  %v17591_v49 = vor.u32 %v6805_v53, %v6802_v29  ;;  %v19105_v9 = vshrl.u32 %v17163_v4, 16  ;;  %v6234_v41 = vsel %vm17566_vm1, %v6186_v20, 0.0  ;;  %v19411_v20 = vld [vmem:[#allocation8_spill] sm:$0xff] }
 0x457   : > { %v6187_v37 = vmax.f32 %v6139_v33, 0.0  ;;  %vm19406_vm5 = vcmp.ge.s32.totalorder %v16738_v55, 1  ;;  %vm19409_vm10 = vcmask 1043456   ;;  %v6232_v48 = vsel %vm1223_vm4, %v6184_v22, 0.0 }
 0x458   : > { %vm17600_vm3 = vmand %vm19406_vm5, %vm1176_vm0  ;;  %v6413_v34 = vsel %vm19409_vm10, %v6410_v18, %v6412_v63  ;;  %v6185_v29 = vmax.f32 %v6137_v2, 0.0  ;;  %v17611_v50 = vsel %vm6727_vm12, %v6788_v59, %v6797_v23  ;;  %v17615_v55 = vsel %vm6727_vm12, %v6797_v23, %v17591_v49  ;;  %v13088_v23 = vpop.f32.mrb[36].mxu0 }
 0x459   : > { %vm19410_vm11 = vmmov %vm19409_vm10  ;;  %13143 = vmatmul.mubr.bf16.gmra.mrb[28].mxu1 %v6413_v34  ;;  %v6235_v30 = vsel %vm1226_vm2, %v6187_v37, 0.0  ;;  %vm1137_vm0 = vcmp.ge.s32.totalorder %v17012_v25, 1  ;;  %vm1185_vm1 = vcmp.le.s32.totalorder %v17012_v25, 16  ;;  %v6811_v18 = vrot.slane %v19105_v9, 3  ;;  %v17636_v37 = vld [vmem:[%s19075_s2] ss:$0 sm:$0xff] }
 0x45a   : > { %v6415_v32 = vsel %vm19410_vm11, %v6412_v63, %v6414_v52  ;;  %v19104_v22 = vshll.u32 %v17163_v4, 16  ;;  %v19103_v63 = vshrl.u32 %v17290_v0, 16  ;;  %v17623_v53 = vpack.c.bf16 %v6235_v30, %v6234_v41  ;;  %v6002_v62 = vpop.f32.mrb[37].mxu0  ;;  %v19412_v34 = vld [vmem:[#allocation9_spill] sm:$0xff]  ;;  %vm17650_vm10 = vmand %vm1133_vm15, %vm1181_vm14 }
 0x45b   : > { %13146 = vmatprep.mubr.bf16.mxu1 %v6415_v32  ;;  %v6233_v59 = vsel %vm17600_vm3, %v6185_v29, 0.0  ;;  %vm1135_vm4 = vcmp.ge.s32.totalorder %v19411_v20, 1  ;;  %vm1183_vm2 = vcmp.le.s32.totalorder %v19411_v20, 16  ;;  %v19110_v33 = vshll.u32 %v17290_v0, 16  ;;  %vm1227_vm15 = vmand %vm1131_vm7, %vm1179_vm13 }
 0x45c   : > { %v19109_v60 = vshrl.u32 %v17279_v17, 16  ;;  %v17631_v2 = vpack.c.bf16 %v6233_v59, %v6232_v48  ;;  %v6142_v41 = vadd.f32 %v17636_v37, %v13088_v23  ;;  %vm1186_vm3 = vcmp.le.s32.totalorder %v19412_v34, 16  ;;  %6289 = vst [vmem:[#allocation2 + $0x98] sm:$0xff] %v17623_v53  ;;  %v13089_v59 = vpop.f32.mrb[38].mxu0  ;;  %vm17685_vm7 = vmand %vm1132_vm8, %vm1180_vm6 }
 0x45d   : > { %v6814_v32 = vrot.slane %v19104_v22, 4  ;;  %v6820_v29 = vrot.slane %v19103_v63, 3  ;;  %v6140_v30 = vadd.f32 %v17636_v37, %v6002_v62  ;;  %vm1184_vm5 = vcmp.le.s32.totalorder %v17257_v11, 16  ;;  %v6005_v9 = vpop.f32.mrb[39].mxu0 }
 0x45e   : > { %v6418_v23 = vrot.slane %v17623_v53, 4  ;;  %v6823_v63 = vrot.slane %v19110_v33, 4  ;;  %v6829_v22 = vrot.slane %v19109_v60, 3  ;;  %6288 = vst [vmem:[#allocation2 + $0x90] sm:$0xff] %v17631_v2  ;;  %v6190_v40 = vmax.f32 %v6142_v41, 0.0 }
 0x45f   : > { %v6143_v62 = vadd.f32 %v17636_v37, %v13089_v59  ;;  %v6416_v45 = vrot.slane %v17631_v2, 4  ;;  %v6815_v15 = vor.u32 %v6814_v32, %v6811_v18  ;;  %v6188_v31 = vmax.f32 %v6140_v30, 0.0  ;;  %v13092_v30 = vpop.f32.mrb[40].mxu0 }
 0x460   : > { %vm19415_vm14 = vcmp.ge.s32.totalorder %v16812_v6, 1  ;;  %v6141_v41 = vadd.f32 %v17636_v37, %v6005_v9  ;;  %v6824_v33 = vor.u32 %v6823_v63, %v6820_v29  ;;  %v19115_v12 = vshll.u32 %v17279_v17, 16 }
 0x461   : > { %vm17673_vm11 = vmand %vm19415_vm14, %vm1182_vm9  ;;  %v6238_v59 = vsel %vm17650_vm10, %v6190_v40, 0.0  ;;  %v6191_v5 = vmax.f32 %v6143_v62, 0.0  ;;  %vm19420_vm13 = vcmask 1043456   ;;  %v6236_v63 = vsel %vm1227_vm15, %v6188_v31, 0.0 }
 0x462   : > { %v6417_v6 = vsel %vm19420_vm13, %v6414_v52, %v6416_v45  ;;  %vm19421_vm9 = vmmov %vm19420_vm13  ;;  %v6189_v32 = vmax.f32 %v6141_v41, 0.0  ;;  %vm1142_vm10 = vcmp.ge.s32.totalorder %v17405_v38, 1  ;;  %vm1190_vm14 = vcmp.le.s32.totalorder %v17405_v38, 16  ;;  %v6018_v41 = vpop.f32.mrb[41].mxu0 }
 0x463   : > { %v6419_v9 = vsel %vm19421_vm9, %v6416_v45, %v6418_v23  ;;  %13147 = vmatmul.mubr.bf16.gmra.mrb[32].mxu1 %v6417_v6  ;;  %v17699_v26 = vsel %vm6727_vm12, %v17591_v49, %v6815_v15  ;;  %v17702_v29 = vsel %vm6727_vm12, %v6815_v15, %v6824_v33  ;;  %v6239_v52 = vsel %vm17673_vm11, %v6191_v5, 0.0  ;;  %v19422_v6 = vld [vmem:[#allocation7_spill] sm:$0xff] }
 0x464   : > { %13150 = vmatprep.mubr.bf16.mxu1 %v6419_v9  ;;  %vm1141_vm6 = vcmp.ge.s32.totalorder %v17262_v28, 1  ;;  %vm1189_vm8 = vcmp.le.s32.totalorder %v17262_v28, 16  ;;  %v6832_v31 = vrot.slane %v19115_v12, 4  ;;  %v19112_v45 = vshrl.u32 %v17379_v7, 16 }
 0x465   : > { %v19113_v48 = vshll.u32 %v17379_v7, 16  ;;  %v17712_v49 = vpack.c.bf16 %v6239_v52, %v6238_v59  ;;  %v6237_v15 = vsel %vm17685_vm7, %v6189_v32, 0.0  ;;  %vm1139_vm11 = vcmp.ge.s32.totalorder %v17272_v61, 1  ;;  %vm17731_vm7 = vmand %vm1137_vm0, %vm1185_vm1  ;;  %v13093_v32 = vpop.f32.mrb[42].mxu0 }
 0x466   : > { %vm1187_vm15 = vcmp.le.s32.totalorder %v17272_v61, 16  ;;  %v19114_v5 = vshrl.u32 %v17372_v19, 16  ;;  %v19116_v60 = vshll.u32 %v17372_v19, 16  ;;  %v17720_v40 = vpack.c.bf16 %v6237_v15, %v6236_v63  ;;  %vm1231_vm0 = vmand %vm1135_vm4, %vm1183_vm2 }
 0x467   : > { %v6146_v62 = vadd.f32 %v17636_v37, %v13092_v30  ;;  %v6833_v59 = vor.u32 %v6832_v31, %v6829_v22  ;;  %v6838_v18 = vrot.slane %v19112_v45, 3  ;;  %6291 = vst [vmem:[#allocation2 + $0xa8] sm:$0xff] %v17712_v49  ;;  %v6144_v63 = vadd.f32 %v17636_v37, %v6018_v41  ;;  %v6021_v30 = vpop.f32.mrb[43].mxu0 }
 0x468   : > { %v6422_v22 = vrot.slane %v17712_v49, 4  ;;  %v6841_v52 = vrot.slane %v19113_v48, 4  ;;  %v6847_v31 = vrot.slane %v19114_v5, 3  ;;  %6290 = vst [vmem:[#allocation2 + $0xa0] sm:$0xff] %v17720_v40  ;;  %v6147_v15 = vadd.f32 %v17636_v37, %v13093_v32  ;;  %v13096_v3 = vpop.f32.mrb[44].mxu0 }
 0x469   : > { %v6194_v25 = vmax.f32 %v6146_v62, 0.0  ;;  %v6420_v41 = vrot.slane %v17720_v40, 4  ;;  %v17751_v45 = vsel %vm6727_vm12, %v6824_v33, %v6833_v59  ;;  %v6192_v48 = vmax.f32 %v6144_v63, 0.0 }
 0x46a   : > { %vm19425_vm1 = vcmp.ge.s32.totalorder %v19412_v34, 1  ;;  %v6145_v62 = vadd.f32 %v17636_v37, %v6021_v30  ;;  %v6842_v5 = vor.u32 %v6841_v52, %v6838_v18  ;;  %v6850_v20 = vrot.slane %v19116_v60, 4 }
 0x46b   : > { %vm1234_vm9 = vmand %vm19425_vm1, %vm1186_vm3  ;;  %v6242_v32 = vsel %vm17731_vm7, %v6194_v25, 0.0  ;;  %v6195_v12 = vmax.f32 %v6147_v15, 0.0  ;;  %vm19426_vm4 = vcmp.ge.s32.totalorder %v17257_v11, 1  ;;  %v6421_v33 = vsel %vm19420_vm13, %v6418_v23, %v6420_v41 }
 0x46c   : > { %vm1232_vm2 = vmand %vm19426_vm4, %vm1184_vm5  ;;  %v6240_v18 = vsel %vm1231_vm0, %v6192_v48, 0.0  ;;  %v6193_v63 = vmax.f32 %v6145_v62, 0.0  ;;  %13151 = vmatmul.mubr.bf16.gmra.mrb[36].mxu1 %v6421_v33  ;;  %v17773_v9 = vsel %vm6727_vm12, %v6833_v59, %v6842_v5  ;;  %v6851_v52 = vor.u32 %v6850_v20, %v6847_v31  ;;  %v6034_v31 = vpop.f32.mrb[45].mxu0 }
 0x46d   : > { %vm19427_vm3 = vmmov %vm19420_vm13  ;;  %v6243_v25 = vsel %vm1234_vm9, %v6195_v12, 0.0  ;;  %v19120_v11 = vshrl.u32 %v17476_v8, 16  ;;  %v19117_v15 = vshll.u32 %v17476_v8, 16  ;;  %v19119_v30 = vshrl.u32 %v17468_v58, 16 }
 0x46e   : > { %v6423_v34 = vsel %vm19427_vm3, %v6420_v41, %v6422_v22  ;;  %v17778_v23 = vpack.c.bf16 %v6243_v25, %v6242_v32  ;;  %v6241_v60 = vsel %vm1232_vm2, %v6193_v63, 0.0  ;;  %v17781_v48 = vsel %vm6727_vm12, %v6842_v5, %v6851_v52  ;;  %vm17791_vm5 = vmand %vm1142_vm10, %vm1190_vm14 }
 0x46f   : > { %13154 = vmatprep.mubr.bf16.mxu1 %v6423_v34  ;;  %v19118_v41 = vshll.u32 %v17468_v58, 16  ;;  %v17784_v59 = vpack.c.bf16 %v6241_v60, %v6240_v18  ;;  %v6150_v12 = vadd.f32 %v17636_v37, %v13096_v3  ;;  %v6856_v20 = vrot.slane %v19120_v11, 3  ;;  %vm17804_vm13 = vmand %vm1141_vm6, %vm1189_vm8  ;;  %v13097_v60 = vpop.f32.mrb[46].mxu0 }
 0x470   : > { %v6859_v5 = vrot.slane %v19117_v15, 4  ;;  %6293 = vst [vmem:[#allocation2 + $0xb8] sm:$0xff] %v17778_v23  ;;  %v6148_v38 = vadd.f32 %v17636_v37, %v6034_v31  ;;  %v19133_v32 = vrot.slane %v17778_v23, 4  ;;  %v6865_v33 = vrot.slane %v19119_v30, 3  ;;  %vm1235_vm10 = vmand %vm1139_vm11, %vm1187_vm15  ;;  %v6037_v63 = vpop.f32.mrb[47].mxu0 }
 0x471   : > { %v6868_v34 = vrot.slane %v19118_v41, 4  ;;  %6292 = vst [vmem:[#allocation2 + $0xb0] sm:$0xff] %v17784_v59  ;;  %v6198_v18 = vmax.f32 %v6150_v12, 0.0  ;;  %v6151_v28 = vadd.f32 %v17636_v37, %v13097_v60  ;;  %v6424_v25 = vrot.slane %v17784_v59, 4  ;;  %vm19435_vm7 = vmmov %vm19427_vm3 }
 0x472   : > { %v6860_v31 = vor.u32 %v6859_v5, %v6856_v20  ;;  %v6196_v15 = vmax.f32 %v6148_v38, 0.0  ;;  %vm19432_vm14 = vcmp.lt.s32.totalorder %v19422_v6, 382  ;;  %v6149_v41 = vadd.f32 %v17636_v37, %v6037_v63  ;;  %vm19436_vm9 = vmmov %vm19427_vm3 }
 0x473   : > { %vm1334_vm6 = vmand %vm17791_vm5, %vm19432_vm14  ;;  %v6869_v12 = vor.u32 %v6868_v34, %v6865_v33  ;;  %v19132_v30 = vshrl.u32 %v17552_v39, 16  ;;  %v6246_v61 = vsel %vm17804_vm13, %v6198_v18, 0.0  ;;  %v6199_v11 = vmax.f32 %v6151_v28, 0.0 }
 0x474   : > { %vm19433_vm8 = vcmp.le.s32.totalorder %v17455_v27, 16  ;;  %vm19434_vm11 = vcmp.ge.s32.totalorder %v17455_v27, 1  ;;  %v6425_v6 = vsel %vm19435_vm7, %v6422_v22, %v6424_v25  ;;  %v6427_v37 = vsel %vm19436_vm9, %v6424_v25, %v19133_v32  ;;  %vm19442_vm0 = vmmov %vm19427_vm3 }
 0x475   : > { %vm1236_vm15 = vmand %vm19434_vm11, %vm19433_vm8  ;;  %v6244_v62 = vsel %vm1235_vm10, %v6196_v15, 0.0  ;;  %v6197_v20 = vmax.f32 %v6149_v41, 0.0  ;;  %13155 = vmatmul.mubr.bf16.gmra.mrb[40].mxu1 %v6425_v6  ;;  %v17840_v5 = vsel %vm6727_vm12, %v6851_v52, %v6860_v31  ;;  %v17843_v3 = vsel %vm6727_vm12, %v6860_v31, %v6869_v12 }
 0x476   : > { %v6247_v38 = vsel %vm1334_vm6, %v6199_v11, 0.0  ;;  %13158 = vmatprep.mubr.bf16.mxu1 %v6427_v37  ;;  %v6874_v27 = vrot.slane %v19132_v30, 3  ;;  %v19131_v22 = vshll.u32 %v17552_v39, 16  ;;  %v19129_v60 = vshrl.u32 %v17545_v46, 16 }
 0x477   : > { %v6271_v33 = vpack.c.bf16 %v6247_v38, %v6246_v61  ;;  %v6245_v34 = vsel %vm1236_vm15, %v6197_v20, 0.0  ;;  %v19122_v15 = vshll.u32 %v17545_v46, 16  ;;  %v19121_v41 = vshrl.u32 %v17631_v2, 16 }
 0x478   : > { %v6270_v52 = vpack.c.bf16 %v6245_v34, %v6244_v62  ;;  %v6877_v18 = vrot.slane %v19131_v22, 4  ;;  %v6883_v11 = vrot.slane %v19129_v60, 3  ;;  %v19125_v28 = vshll.u32 %v17631_v2, 16 }
 0x479   : > { %6295 = vst [vmem:[#allocation2 + $0xc8] sm:$0xff] %v6271_v33  ;;  %v6886_v63 = vrot.slane %v19122_v15, 4  ;;  %v6892_v25 = vrot.slane %v19121_v41, 3  ;;  %v19123_v31 = vshrl.u32 %v17623_v53, 16  ;;  %v19124_v61 = vshll.u32 %v17623_v53, 16 }
 0x47a   : > { %6294 = vst [vmem:[#allocation2 + $0xc0] sm:$0xff] %v6270_v52  ;;  %v6878_v6 = vor.u32 %v6877_v18, %v6874_v27  ;;  %v6895_v37 = vrot.slane %v19125_v28, 4  ;;  %v19126_v62 = vshrl.u32 %v17720_v40, 16  ;;  %v19128_v20 = vshll.u32 %v17720_v40, 16 }
 0x47b   : > { %v6887_v38 = vor.u32 %v6886_v63, %v6883_v11  ;;  %v6901_v33 = vrot.slane %v19123_v31, 3  ;;  %v6904_v34 = vrot.slane %v19124_v61, 4  ;;  %v19127_v41 = vshrl.u32 %v17712_v49, 16 }
 0x47c   : > { %v17872_v15 = vsel %vm6727_vm12, %v6869_v12, %v6878_v6  ;;  %v6896_v27 = vor.u32 %v6895_v37, %v6892_v25  ;;  %v6910_v52 = vrot.slane %v19126_v62, 3  ;;  %v6913_v18 = vrot.slane %v19128_v20, 4 }
 0x47d   : > { %v17879_v11 = vsel %vm6727_vm12, %v6878_v6, %v6887_v38  ;;  %v6905_v63 = vor.u32 %v6904_v34, %v6901_v33  ;;  %v6919_v31 = vrot.slane %v19127_v41, 3  ;;  %v19130_v61 = vshll.u32 %v17712_v49, 16  ;;  %v19437_v41 = vld [vmem:[#allocation3_spill] sm:$0xff] }
 0x47e   : > { %v17885_v28 = vsel %vm6727_vm12, %v6887_v38, %v6896_v27  ;;  %v6914_v12 = vor.u32 %v6913_v18, %v6910_v52  ;;  %v19134_v25 = vshrl.u32 %v17784_v59, 16  ;;  %v19135_v37 = vshll.u32 %v17784_v59, 16 }
 0x47f   : > { %v17890_v62 = vsel %vm6727_vm12, %v6896_v27, %v6905_v63  ;;  %v6922_v6 = vrot.slane %v19130_v61, 4  ;;  %v19136_v33 = vshrl.u32 %v17778_v23, 16  ;;  %v19137_v34 = vshll.u32 %v17778_v23, 16 }
 0x480   : > { %v6743_v20 = vor.u32 %v17316_v56, %v19437_v41  ;;  %v17899_v38 = vsel %vm6727_vm12, %v6905_v63, %v6914_v12  ;;  %v6928_v52 = vrot.slane %v19134_v25, 3  ;;  %v6931_v27 = vrot.slane %v19135_v37, 4 }
 0x481   : > { %19438 = vst [vmem:[#allocation4_spill] sm:$0xff] %v17899_v38  ;;  %v6320_v18 = vld [vmem:[#allocation2 + $0xc0] sm:$0xf]  ;;  %v19439_v60 = vshll.u32 %v16844_v44, 16  ;;  %v6923_v22 = vor.u32 %v6922_v6, %v6919_v31  ;;  %v6937_v30 = vrot.slane %v19136_v33, 3  ;;  %v6940_v56 = vrot.slane %v19137_v34, 4 }
 0x482   : > { %v6428_v32 = vrot.slane %v6320_v18, 4  ;;  %v6932_v63 = vor.u32 %v6931_v27, %v6928_v52  ;;  %v6944_v41 = vshrl.u32 %v6320_v18, 16  ;;  %v6947_v47 = vshll.u32 %v6320_v18, 16 }
 0x483   : > { %v6751_v61 = vrot.slane %v19439_v60, 4  ;;  %v19440_v25 = vor.u32 %v17297_v57, %v17295_v51  ;;  %v17916_v38 = vsel %vm6727_vm12, %v6914_v12, %v6923_v22  ;;  %v6941_v60 = vor.u32 %v6940_v56, %v6937_v30 }
 0x484   : > { %v19441_v31 = vrot.slane %v17778_v23, 4  ;;  %v17922_v33 = vsel %vm6727_vm12, %v6923_v22, %v6932_v63  ;;  %v6946_v34 = vrot.slane %v6944_v41, 3  ;;  %v6949_v52 = vrot.slane %v6947_v47, 4 }
 0x485   : > { %v6744_v37 = vsel %vm6727_vm12, %v19440_v25, %v6743_v20  ;;  %v6752_v27 = vor.u32 %v6751_v61, %v17395_v13  ;;  %v17926_v51 = vsel %vm6727_vm12, %v6932_v63, %v6941_v60  ;;  %v19443_v12 = vshrl.u32 %v16840_v42, 16 }
 0x486   : > { %v6429_v6 = vsel %vm19442_vm0, %v19441_v31, %v6428_v32  ;;  %v6950_v57 = vor.u32 %v6949_v52, %v6946_v34  ;;  %v19444_v25 = vshll.u32 %v16840_v42, 16  ;;  %v19445_v32 = vshrl.u32 %v16953_v21, 16 }
 0x487   : > { %13159 = vmatmul.mubr.bf16.gmra.mrb[44].mxu1 %v6429_v6  ;;  %v7284_v30 = vrot.slane %v19443_v12, 4  ;;  %v19446_v47 = vshll.u32 %v16953_v21, 16  ;;  %v19447_v61 = vshrl.u32 %v16933_v36, 16  ;;  %v19448_v63 = vshll.u32 %v16933_v36, 16 }
 0x488   : > { %13178 = vmatprep.mubr.bf16.mxu1 %v6744_v37  ;;  %v7285_v18 = vrot.slane %v19444_v25, 5  ;;  %v7288_v22 = vrot.slane %v19445_v32, 4  ;;  %v17935_v41 = vsel %vm6727_vm12, %v6941_v60, %v6950_v57  ;;  %v6753_v37 = vsel %vm6727_vm12, %v6743_v20, %v6752_v27  ;;  %v14764_v20 = vld [vmem:[%s19076_s3 + $0x88] sm:$0xff]  }
 0x489   : > { %v7289_v13 = vrot.slane %v19446_v47, 5  ;;  %v7292_v56 = vrot.slane %v19447_v61, 4  ;;  %v7293_v42 = vrot.slane %v19448_v63, 5  ;;  %v19449_v31 = vshrl.u32 %v17070_v1, 16 }
 0x48a   : > { %v17942_v34 = vor.u32 %v7285_v18, %v7284_v30  ;;  %v6762_v60 = vsel %vm6727_vm12, %v6752_v27, %v17474_v54  ;;  %v19450_v21 = vshll.u32 %v17070_v1, 16  ;;  %v19451_v12 = vshrl.u32 %v17059_v35, 16 }
 0x48b   : > { %v7296_v6 = vrot.slane %v19449_v31, 4  ;;  %v7290_v52 = vor.u32 %v7289_v13, %v7288_v22  ;;  %vm7267_vm1 = vsmask.f32 3328  ;;  %v7294_v36 = vor.u32 %v7293_v42, %v7292_v56 }
 0x48c   : > { %v7297_v57 = vrot.slane %v19450_v21, 5  ;;  %v7300_v25 = vrot.slane %v19451_v12, 4  ;;  %v19452_v30 = vshll.u32 %v17059_v35, 16  ;;  %v19453_v32 = vshrl.u32 %v17181_v16, 16 }
 0x48d   : > { %v17963_v54 = vsel %vm7267_vm1, %v17942_v34, %v7290_v52  ;;  %v19454_v27 = vshll.u32 %v17181_v16, 16  ;;  %v19455_v13 = vshrl.u32 %v17163_v4, 16  ;;  %v17970_v56 = vsel %vm7267_vm1, %v7290_v52, %v7294_v36 }
 0x48e   : > { %v7301_v18 = vrot.slane %v19452_v30, 5  ;;  %v7304_v47 = vrot.slane %v19453_v32, 4  ;;  %v7298_v1 = vor.u32 %v7297_v57, %v7296_v6  ;;  %v19456_v63 = vshll.u32 %v17163_v4, 16  ;;  %v14765_v4 = vld [vmem:[%s19076_s3 + $0x90] sm:$0xff]  }
 0x48f   : > { %v7305_v22 = vrot.slane %v19454_v27, 5  ;;  %v7308_v61 = vrot.slane %v19455_v13, 4  ;;  %13179 = vmatmul.mubr.bf16.vlgmr.msra.gmra.mrb[0].mxu1 %v6753_v37  ;;  %v19457_v31 = vshrl.u32 %v17290_v0, 16  ;;  %v19458_v57 = vshll.u32 %v17290_v0, 16 }
 0x490   : > { %v7302_v35 = vor.u32 %v7301_v18, %v7300_v25  ;;  %v7309_v42 = vrot.slane %v19456_v63, 5  ;;  %13182 = vmatprep.mubr.bf16.mxu1 %v6762_v60  ;;  %13227 = vmatpush3.bf16.msra.mxu1 %v17288_v10  ;;  %v17978_v16 = vsel %vm7267_vm1, %v7294_v36, %v7298_v1  ;;  %v19459_v52 = vshrl.u32 %v17279_v17, 16 }
 0x491   : > { %v7312_v21 = vrot.slane %v19457_v31, 4  ;;  %v7306_v6 = vor.u32 %v7305_v22, %v7304_v47  ;;  %v7313_v37 = vrot.slane %v19458_v57, 5  ;;  %13228 = vmatprep.subr.bf16.mxu1 %v14764_v20  ;;  %v19460_v10 = vshll.u32 %v17279_v17, 16 }
 0x492   : > { %v7316_v12 = vrot.slane %v19459_v52, 4  ;;  %v17988_v25 = vsel %vm7267_vm1, %v7298_v1, %v7302_v35  ;;  %v7310_v60 = vor.u32 %v7309_v42, %v7308_v61  ;;  %v19461_v30 = vshrl.u32 %v17379_v7, 16 }
 0x493   : > { %v7317_v36 = vrot.slane %v19460_v10, 5  ;;  %v17995_v0 = vsel %vm7267_vm1, %v7302_v35, %v7306_v6  ;;  %v7314_v32 = vor.u32 %v7313_v37, %v7312_v21  ;;  %v19462_v47 = vshll.u32 %v17379_v7, 16 }
 0x494   : > { %v7320_v18 = vrot.slane %v19461_v30, 4  ;;  %v19463_v22 = vshrl.u32 %v17372_v19, 16  ;;  %v18002_v1 = vsel %vm7267_vm1, %v7306_v6, %v7310_v60  ;;  %v19464_v17 = vshll.u32 %v17372_v19, 16  ;;  %13229 = vmatpush3.bf16.msra.mxu1 %v14764_v20  ;;  %v14766_v19 = vld [vmem:[%s19076_s3 + $0x98] sm:$0xff]  }
 0x495   : > { %v7321_v27 = vrot.slane %v19462_v47, 5  ;;  %v7318_v61 = vor.u32 %v7317_v36, %v7316_v12  ;;  %v19465_v42 = vshrl.u32 %v17476_v8, 16  ;;  %v18009_v35 = vsel %vm7267_vm1, %v7310_v60, %v7314_v32  ;;  %13230 = vmatprep.subr.bf16.mxu1 %v14765_v4 }
 0x496   : > { %v7324_v13 = vrot.slane %v19463_v22, 4  ;;  %v7325_v63 = vrot.slane %v19464_v17, 5  ;;  %v19466_v7 = vshll.u32 %v17476_v8, 16  ;;  %v19467_v37 = vshrl.u32 %v17468_v58, 16 }
 0x497   : > { %v7328_v31 = vrot.slane %v19465_v42, 4  ;;  %v7322_v21 = vor.u32 %v7321_v27, %v7320_v18  ;;  %v18019_v6 = vsel %vm7267_vm1, %v7314_v32, %v7318_v61  ;;  %v19468_v20 = vshll.u32 %v17468_v58, 16  ;;  %13183 = vmatmul.mubr.bf16.gmra.mrb[4].mxu1 %v17500_v43 }
 0x498   : > { %v7329_v57 = vrot.slane %v19466_v7, 5  ;;  %v7332_v52 = vrot.slane %v19467_v37, 4  ;;  %v7326_v12 = vor.u32 %v7325_v63, %v7324_v13  ;;  %v19469_v10 = vshrl.u32 %v17552_v39, 16  ;;  %13186 = vmatprep.mubr.bf16.mxu1 %v17535_v24  ;;  %13231 = vmatpush3.bf16.msra.mxu1 %v14765_v4 }
 0x499   : > { %v7333_v60 = vrot.slane %v19468_v20, 5  ;;  %v18026_v8 = vsel %vm7267_vm1, %v7318_v61, %v7322_v21  ;;  %v19470_v18 = vshll.u32 %v17552_v39, 16  ;;  %v19471_v27 = vshrl.u32 %v17545_v46, 16  ;;  %13232 = vmatprep.subr.bf16.mxu1 %v14766_v19 }
 0x49a   : > { %v7336_v36 = vrot.slane %v19469_v10, 4  ;;  %v7330_v30 = vor.u32 %v7329_v57, %v7328_v31  ;;  %v18034_v32 = vsel %vm7267_vm1, %v7322_v21, %v7326_v12  ;;  %v19472_v13 = vshll.u32 %v17545_v46, 16  ;;  %v14767_v46 = vld [vmem:[%s19076_s3 + $0xa0] sm:$0xff]  }
 0x49b   : > { %v7337_v47 = vrot.slane %v19470_v18, 5  ;;  %v7340_v22 = vrot.slane %v19471_v27, 4  ;;  %v7334_v58 = vor.u32 %v7333_v60, %v7332_v52  ;;  %v19473_v63 = vshrl.u32 %v17631_v2, 16 }
 0x49c   : > { %v7341_v17 = vrot.slane %v19472_v13, 5  ;;  %v18042_v39 = vsel %vm7267_vm1, %v7326_v12, %v7330_v30  ;;  %v19474_v31 = vshll.u32 %v17631_v2, 16  ;;  %v19475_v21 = vshrl.u32 %v17623_v53, 16  ;;  %13233 = vmatpush3.bf16.msra.mxu1 %v14766_v19 }
 0x49d   : > { %v7344_v61 = vrot.slane %v19473_v63, 4  ;;  %v7338_v42 = vor.u32 %v7337_v47, %v7336_v36  ;;  %v18052_v57 = vsel %vm7267_vm1, %v7330_v30, %v7334_v58  ;;  %v19476_v4 = vshll.u32 %v17623_v53, 16  ;;  %13234 = vmatprep.subr.bf16.mxu1 %v14767_v46 }
 0x49e   : > { %v7345_v43 = vrot.slane %v19474_v31, 5  ;;  %v7348_v7 = vrot.slane %v19475_v21, 4  ;;  %v7342_v24 = vor.u32 %v7341_v17, %v7340_v22  ;;  %v19477_v52 = vshrl.u32 %v17720_v40, 16 }
 0x49f   : > { %v7349_v37 = vrot.slane %v19476_v4, 5  ;;  %v18059_v2 = vsel %vm7267_vm1, %v7334_v58, %v7338_v42  ;;  %v19478_v60 = vshll.u32 %v17720_v40, 16  ;;  %v19479_v36 = vshrl.u32 %v17712_v49, 16  ;;  %13187 = vmatmul.mubr.bf16.gmra.mrb[8].mxu1 %v17575_v14  ;;  %v14770_v14 = vld [vmem:[%s19076_s3 + $0xb8] sm:$0xff]  }
 0x4a0   : > { %v7352_v12 = vrot.slane %v19477_v52, 4  ;;  %v7346_v20 = vor.u32 %v7345_v43, %v7344_v61  ;;  %v18066_v30 = vsel %vm7267_vm1, %v7338_v42, %v7342_v24  ;;  %v19480_v53 = vshll.u32 %v17712_v49, 16  ;;  %v14768_v49 = vld [vmem:[%s19076_s3 + $0xa8] sm:$0xff]   ;;  %13190 = vmatprep.mubr.bf16.mxu1 %v17611_v50  ;;  %13235 = vmatpush3.bf16.msra.mxu1 %v14767_v46  ;;  %v14771_v50 = vld [vmem:[%s19076_s3 + $0xc0] sm:$0xff]   ;;  %v18117_v46 = vld [vmem:[#allocation2 + $0x10] sm:$0xff] }
 0x4a1   : > { %v7353_v10 = vrot.slane %v19478_v60, 5  ;;  %v7356_v18 = vrot.slane %v19479_v36, 4  ;;  %v7350_v47 = vor.u32 %v7349_v37, %v7348_v7  ;;  %v19481_v22 = vshrl.u32 %v17784_v59, 16  ;;  %13236 = vmatprep.subr.bf16.mxu1 %v14768_v49 }
 0x4a2   : > { %v7357_v27 = vrot.slane %v19480_v53, 5  ;;  %v18073_v58 = vsel %vm7267_vm1, %v7342_v24, %v7346_v20  ;;  %v19482_v40 = vshll.u32 %v17784_v59, 16  ;;  %v19483_v61 = vshrl.u32 %v17778_v23, 16 }
 0x4a3   : > { %v7360_v13 = vrot.slane %v19481_v22, 4  ;;  %v7354_v17 = vor.u32 %v7353_v10, %v7352_v12  ;;  %v18083_v42 = vsel %vm7267_vm1, %v7346_v20, %v7350_v47  ;;  %v19484_v19 = vshll.u32 %v17778_v23, 16  ;;  %v14769_v23 = vld [vmem:[%s19076_s3 + $0xb0] sm:$0xff]   ;;  %v18120_v12 = vld [vmem:[#allocation2 + $0x18] sm:$0xff] }
 0x4a4   : > { %v7361_v63 = vrot.slane %v19482_v40, 5  ;;  %v7364_v31 = vrot.slane %v19483_v61, 4  ;;  %v7358_v43 = vor.u32 %v7357_v27, %v7356_v18  ;;  %13237 = vmatpush3.bf16.msra.mxu1 %v14768_v49  ;;  %v7770_v20 = vshrl.u32 %v18117_v46, 16 }
 0x4a5   : > { %v7365_v21 = vrot.slane %v19484_v19, 5  ;;  %v18088_v7 = vsel %vm7267_vm1, %v7350_v47, %v7354_v17  ;;  %13238 = vmatprep.subr.bf16.mxu1 %v14769_v23  ;;  %vm19485_vm4 = vsmask.f32 7424  ;;  %v19487_v27 = vmov 0  }
 0x4a6   : > { %v7362_v59 = vor.u32 %v7361_v63, %v7360_v13  ;;  %v18092_v24 = vsel %vm7267_vm1, %v7354_v17, %v7358_v43  ;;  %v7277_v22 = vrot.slane %v19487_v27, 5  ;;  %v19489_v13 = vshrl.u32 %v16844_v44, 16  ;;  %v14781_v27 = vld [vmem:[%s19076_s3 + $0x110] sm:$0xff]   ;;  %vm19533_vm3 = vmmov %vm19485_vm4 }
 0x4a7   : > { %v18094_v4 = vor.u32 %v7365_v21, %v7364_v31  ;;  %13191 = vmatmul.mubr.bf16.gmra.mrb[12].mxu1 %v17615_v55  ;;  %v7773_v55 = vshll.u32 %v18117_v46, 16  ;;  %v14776_v31 = vld [vmem:[%s19076_s3 + $0xe8] sm:$0xff]   ;;  %vm7764_vm2 = vsmask.f32 256  ;;  %vm19534_vm5 = vmmov %vm19533_vm3 }
 0x4a8   : > { %v18098_v37 = vsel %vm7267_vm1, %v7358_v43, %v7362_v59  ;;  %13194 = vmatprep.mubr.bf16.mxu1 %v17699_v26  ;;  %13239 = vmatpush3.bf16.msra.mxu1 %v14769_v23  ;;  %v7781_v26 = vshll.u32 %v18120_v12, 16  ;;  %v7280_v17 = vrot.slane %v19489_v13, 4  ;;  %v14779_v43 = vld [vmem:[%s19076_s3 + $0x100] sm:$0xff]   ;;  %vm19535_vm13 = vmmov %vm19533_vm3 }
 0x4a9   : > { %v18105_v52 = vsel %vm7267_vm1, %v7362_v59, %v18094_v4  ;;  %13240 = vmatprep.subr.bf16.mxu1 %v14770_v14  ;;  %v8691_v60 = vrot.slane %v7773_v55, 1  ;;  %vm19536_vm10 = vmmov %vm19533_vm3 }
 0x4aa   : > { %vm19537_vm14 = vmmov %vm19533_vm3 }
 0x4ab   : > { %vm19538_vm6 = vmmov %vm19533_vm3 }
 0x4ac   : > { %13241 = vmatpush3.bf16.msra.mxu1 %v14770_v14  ;;  %v18230_v14 = vld [vmem:[#allocation2 + $0x28] sm:$0xff]  ;;  %vm19539_vm8 = vmmov %vm19533_vm3 }
 0x4ad   : > { %13290 = vmatprep.subr.bf16.mxu1 %v14771_v50  ;;  %19494 = vst [vmem:[#allocation9_spill] sm:$0xff] %v18230_v14  ;;  %vm19540_vm11 = vmmov %vm19533_vm3 }
 0x4ae   : > { %vm19541_vm15 = vmmov %vm19533_vm3 }
 0x4af   : > { %13195 = vmatmul.mubr.bf16.gmra.mrb[16].mxu1 %v17702_v29  ;;  %v7778_v29 = vshrl.u32 %v18120_v12, 16  ;;  %vm19542_vm7 = vmmov %vm19533_vm3 }
 0x4b0   : > { %13198 = vmatprep.mubr.bf16.mxu1 %v17751_v45  ;;  %v8696_v45 = vrot.slane %v7781_v26, 1  ;;  %vm19543_vm9 = vmmov %vm19533_vm3 }
 0x4b1   : > { %vm19544_vm0 = vmmov %vm19533_vm3 }
 0x4b7   : > { %13199 = vmatmul.mubr.bf16.gmra.mrb[20].mxu1 %v17773_v9  ;;  %v8692_v9 = vor.u32 %v8691_v60, %v7770_v20 }
 0x4b8   : > { %13202 = vmatprep.mubr.bf16.mxu1 %v17781_v48  ;;  %v18137_v48 = vor.u32 %v8696_v45, %v7778_v29 }
 0x4b9   : > { %v18140_v10 = vsel %vm19485_vm4, %v8692_v9, %v8696_v45  ;;  %v14780_v45 = vld [vmem:[%s19076_s3 + $0x108] sm:$0xff]   ;;  %vm19549_vm4 = vmmov %vm19544_vm0 }
 0x4bf   : > { %13203 = vmatmul.mubr.bf16.gmra.mrb[24].mxu1 %v17840_v5  ;;  %v19486_v5 = vld [vmem:[#allocation4_spill] sm:$0xff] }
 0x4c0   : > { %13206 = vmatprep.mubr.bf16.mxu1 %v17843_v3  ;;  %v14843_v3 = vld [vmem:[#allocation2] sm:$0xf0] }
 0x4c1   : > { %v7269_v36 = vshrl.u32 %v14843_v3, 16  ;;  %v7272_v18 = vshll.u32 %v14843_v3, 16 }
 0x4c3   : > { %v7271_v47 = vrot.slane %v7269_v36, 4  ;;  %v7274_v53 = vrot.slane %v7272_v18, 5  ;;  %v18253_v36 = vld [vmem:[#allocation2 + $0x38] sm:$0xff]  ;;  %v18256_v18 = vshll.u32 %v18230_v14, 16 }
 0x4c4   : > { %19496 = vst [vmem:[#allocation4_spill] sm:$0xff] %v18253_v36 }
 0x4c7   : > { %13207 = vmatmul.mubr.bf16.gmra.mrb[28].mxu1 %v17872_v15  ;;  %v7275_v15 = vor.u32 %v7274_v53, %v7271_v47  ;;  %v18258_v47 = vld [vmem:[#allocation2 + $0x40] sm:$0xff] }
 0x4c8   : > { %13210 = vmatprep.mubr.bf16.mxu1 %v17879_v11  ;;  %v19488_v11 = vld [vmem:[#allocation3_spill] sm:$0xff] }
 0x4c9   : > { %19497 = vst [vmem:[#allocation3_spill] sm:$0xff] %v18258_v47 }
 0x4cf   : > { %13211 = vmatmul.mubr.bf16.gmra.mrb[32].mxu1 %v17885_v28  ;;  %v7278_v28 = vor.u32 %v7277_v22, %v19488_v11 }
 0x4d0   : > { %13214 = vmatprep.mubr.bf16.mxu1 %v17890_v62 }
 0x4d1   : > { %v7279_v62 = vsel %vm7267_vm1, %v7275_v15, %v7278_v28  ;;  %v18268_v15 = vshrl.u32 %v18253_v36, 16 }
 0x4d7   : > { %13215 = vmatmul.mubr.bf16.gmra.mrb[36].mxu1 %v19486_v5 }
 0x4d8   : > { %13218 = vmatprep.mubr.bf16.mxu1 %v17916_v38  ;;  %v19490_v38 = vshll.u32 %v16844_v44, 16  ;;  %v14773_v44 = vld [vmem:[%s19076_s3 + $0xd0] sm:$0xff]  }
 0x4da   : > { %v7281_v40 = vrot.slane %v19490_v38, 5 }
 0x4dc   : > { %v7282_v63 = vor.u32 %v7281_v40, %v7280_v17  ;;  %v7812_v17 = vrot.slane %v18268_v15, 7 }
 0x4de   : > { %v7287_v61 = vsel %vm7267_vm1, %v7282_v63, %v17942_v34  ;;  %v14775_v34 = vld [vmem:[%s19076_s3 + $0xe0] sm:$0xff]  }
 0x4df   : > { %13219 = vmatmul.mubr.bf16.gmra.mrb[40].mxu1 %v17922_v33  ;;  %v14772_v33 = vld [vmem:[%s19076_s3 + $0xc8] sm:$0xff]  }
 0x4e0   : > { %13222 = vmatprep.mubr.bf16.mxu1 %v17926_v51  ;;  %v7283_v51 = vsel %vm7267_vm1, %v7278_v28, %v7282_v63  ;;  %v18272_v28 = vshrl.u32 %v18258_v47, 16  ;;  %v18281_v63 = vld [vmem:[#allocation2 + $0x48] sm:$0xff] }
 0x4e1   : > { %19498 = vst [vmem:[#allocation10_spill] sm:$0xff] %v18281_v63 }
 0x4e2   : > { %v7820_v40 = vrot.slane %v18272_v28, 7 }
 0x4e7   : > { %13223 = vmatmul.mubr.bf16.gmra.mrb[44].mxu1 %v17935_v41  ;;  %v14774_v41 = vld [vmem:[%s19076_s3 + $0xd8] sm:$0xff]  }
 0x4e8   : > { %13242 = vmatprep.mubr.bf16.mxu1 %v7279_v62  ;;  %v14782_v62 = vld [vmem:[%s19076_s3 + $0x118] sm:$0xff]  }
 0x4ef   : > { %13243 = vmatmul.mubr.bf16.vlgmr.msra.gmra.mrb[0].mxu1 %v7283_v51  ;;  %v18286_v51 = vld [vmem:[#allocation2 + $0x50] sm:$0xff] }
 0x4f0   : > { %13246 = vmatprep.mubr.bf16.mxu1 %v7287_v61  ;;  %13291 = vmatpush3.bf16.msra.mxu1 %v14771_v50  ;;  %v18232_v50 = vld [vmem:[#allocation2 + $0x30] sm:$0xff]  ;;  %19499 = vst [vmem:[#allocation11_spill] sm:$0xff] %v18286_v51  ;;  %v18289_v61 = vshll.u32 %v18258_v47, 16 }
 0x4f1   : > { %13292 = vmatprep.subr.bf16.mxu1 %v14772_v33  ;;  %19495 = vst [vmem:[#allocation7_spill] sm:$0xff] %v18232_v50  ;;  %v18261_v53 = vshll.u32 %v18232_v50, 16 }
 0x4f4   : > { %13293 = vmatpush3.bf16.msra.mxu1 %v14772_v33  ;;  %v18284_v33 = vshll.u32 %v18253_v36, 16 }
 0x4f5   : > { %13294 = vmatprep.subr.bf16.mxu1 %v14773_v44 }
 0x4f7   : > { %13247 = vmatmul.mubr.bf16.gmra.mrb[4].mxu1 %v17963_v54  ;;  %v14777_v54 = vld [vmem:[%s19076_s3 + $0xf0] sm:$0xff]  }
 0x4f8   : > { %13250 = vmatprep.mubr.bf16.mxu1 %v17970_v56  ;;  %13295 = vmatpush3.bf16.msra.mxu1 %v14773_v44  ;;  %v14778_v56 = vld [vmem:[%s19076_s3 + $0xf8] sm:$0xff]   ;;  %v14783_v44 = vld [vmem:[%s19076_s3 + $0x120] sm:$0xff]  }
 0x4f9   : > { %13296 = vmatprep.subr.bf16.mxu1 %v14774_v41 }
 0x4fc   : > { %13297 = vmatpush3.bf16.msra.mxu1 %v14774_v41  ;;  %v7815_v41 = vor.u32 %v18284_v33, %v7812_v17 }
 0x4fd   : > { %13298 = vmatprep.subr.bf16.mxu1 %v14775_v34 }
 0x4ff   : > { %13251 = vmatmul.mubr.bf16.gmra.mrb[8].mxu1 %v17978_v16  ;;  %v18188_v16 = vld [vmem:[#allocation2] sm:$0xff] }
 0x500   : > { %13254 = vmatprep.mubr.bf16.mxu1 %v17988_v25  ;;  %13299 = vmatpush3.bf16.msra.mxu1 %v14775_v34  ;;  %19491 = vst [vmem:[#allocation5_spill] sm:$0xff] %v18188_v16  ;;  %v19139_v25 = vshrl.u32 %v18188_v16, 16  ;;  %v19138_v49 = vshll.u32 %v18188_v16, 16  ;;  %v18296_v34 = vshrl.u32 %v18281_v63, 16  ;;  %v18431_v16 = vld [vmem:[#allocation2 + $0xa8] sm:$0xff] }
 0x501   : > { %13300 = vmatprep.subr.bf16.mxu1 %v14776_v31  ;;  %19519 = vst [vmem:[#allocation31_spill] sm:$0xff] %v18431_v16 }
 0x502   : > { %v10389_v19 = vrot.slane %v19139_v25, 4 }
 0x504   : > { %13301 = vmatpush3.bf16.msra.mxu1 %v14776_v31  ;;  %v7823_v31 = vor.u32 %v18289_v61, %v7820_v40 }
 0x505   : > { %13302 = vmatprep.subr.bf16.mxu1 %v14777_v54 }
 0x507   : > { %13255 = vmatmul.mubr.bf16.gmra.mrb[12].mxu1 %v17995_v0  ;;  %v10390_v0 = vrot.slane %v19138_v49, 5 }
 0x508   : > { %13258 = vmatprep.mubr.bf16.mxu1 %v18002_v1  ;;  %13303 = vmatpush3.bf16.msra.mxu1 %v14777_v54  ;;  %v18300_v54 = vshrl.u32 %v18286_v51, 16 }
 0x509   : > { %13304 = vmatprep.subr.bf16.mxu1 %v14778_v56  ;;  %v18199_v1 = vor.u32 %v10390_v0, %v10389_v19  ;;  %v7828_v19 = vrot.slane %v18296_v34, 7  ;;  %v7824_v0 = vsel %vm7764_vm2, %v7812_v17, %v7823_v31 }
 0x50b   : > { %19492 = vst [vmem:[#allocation6_spill] sm:$0xff] %v18199_v1 }
 0x50c   : > { %13305 = vmatpush3.bf16.msra.mxu1 %v14778_v56  ;;  %v14784_v56 = vld [vmem:[%s19076_s3 + $0x128] sm:$0xff]  }
 0x50d   : > { %13354 = vmatprep.subr.bf16.mxu1 %v14779_v43 }
 0x50f   : > { %13259 = vmatmul.mubr.bf16.gmra.mrb[16].mxu1 %v18009_v35  ;;  %v7249_v35 = vld [vmem:[#allocation2 + $0xc0] sm:$0x1f] }
 0x510   : > { %13262 = vmatprep.mubr.bf16.mxu1 %v18019_v6  ;;  %v7369_v6 = vshrl.u32 %v7249_v35, 16 }
 0x512   : > { %v7371_v21 = vrot.slane %v7369_v6, 4  ;;  %v18309_v6 = vld [vmem:[#allocation2 + $0x58] sm:$0xff] }
 0x513   : > { %19500 = vst [vmem:[#allocation12_spill] sm:$0xff] %v18309_v6 }
 0x517   : > { %13263 = vmatmul.mubr.bf16.gmra.mrb[20].mxu1 %v18026_v8  ;;  %v7372_v8 = vshll.u32 %v7249_v35, 16  ;;  %v7836_v35 = vrot.slane %v18300_v54, 7 }
 0x518   : > { %13266 = vmatprep.mubr.bf16.mxu1 %v18034_v32  ;;  %v7722_v32 = vld [vmem:[#allocation2 + $0x8] sm:$0x80] }
 0x51f   : > { %13267 = vmatmul.mubr.bf16.gmra.mrb[24].mxu1 %v18042_v39  ;;  %v7374_v39 = vrot.slane %v7372_v8, 5  ;;  %v18312_v8 = vshll.u32 %v18281_v63, 16 }
 0x520   : > { %13270 = vmatprep.mubr.bf16.mxu1 %v18052_v57  ;;  %v7766_v57 = vshrl.u32 %v7722_v32, 16  ;;  %v18314_v32 = vld [vmem:[#allocation2 + $0x60] sm:$0xff] }
 0x521   : > { %19501 = vst [vmem:[#allocation13_spill] sm:$0xff] %v18314_v32 }
 0x527   : > { %13271 = vmatmul.mubr.bf16.gmra.mrb[28].mxu1 %v18059_v2  ;;  %v7772_v2 = vrot.slane %v7770_v20, 7 }
 0x528   : > { %13274 = vmatprep.mubr.bf16.mxu1 %v18066_v30  ;;  %v18217_v30 = vld [vmem:[#allocation2 + $0x20] sm:$0xff] }
 0x529   : > { %19493 = vst [vmem:[#allocation8_spill] sm:$0xff] %v18217_v30  ;;  %v18222_v59 = vshrl.u32 %v18217_v30, 16 }
 0x52f   : > { %13275 = vmatmul.mubr.bf16.gmra.mrb[32].mxu1 %v18073_v58  ;;  %v7375_v58 = vor.u32 %v7374_v39, %v7371_v21  ;;  %v18317_v21 = vshll.u32 %v18286_v51, 16  ;;  %v14785_v39 = vld [vmem:[%s19076_s3 + $0x130] sm:$0xff]  }
 0x530   : > { %13278 = vmatprep.mubr.bf16.mxu1 %v18083_v42  ;;  %v7768_v42 = vrot.slane %v7766_v57, 7  ;;  %v7831_v57 = vor.u32 %v18312_v8, %v7828_v19 }
 0x537   : > { %13279 = vmatmul.mubr.bf16.gmra.mrb[36].mxu1 %v18088_v7  ;;  %v7775_v7 = vor.u32 %v7773_v55, %v7772_v2  ;;  %v18235_v55 = vshll.u32 %v18217_v30, 16 }
 0x538   : > { %13282 = vmatprep.mubr.bf16.mxu1 %v18092_v24  ;;  %v7376_v24 = vsel %vm7267_vm1, %v18094_v4, %v7375_v58  ;;  %v18240_v4 = vshrl.u32 %v18230_v14, 16  ;;  %v7839_v58 = vor.u32 %v18317_v21, %v7836_v35 }
 0x539   : > { %v7776_v23 = vsel %vm7764_vm2, %v7768_v42, %v7775_v7  ;;  %v18328_v42 = vshrl.u32 %v18314_v32, 16  ;;  %v14786_v7 = vld [vmem:[%s19076_s3 + $0x138] sm:$0xff]  }
 0x53a   : > { %v7796_v5 = vrot.slane %v18240_v4, 7 }
 0x53c   : > { %v7799_v22 = vor.u32 %v18256_v18, %v7796_v5 }
 0x53f   : > { %13283 = vmatmul.mubr.bf16.gmra.mrb[40].mxu1 %v18098_v37  ;;  %v7780_v37 = vrot.slane %v7778_v29, 7  ;;  %v18244_v29 = vshrl.u32 %v18232_v50, 16 }
 0x540   : > { %13286 = vmatprep.mubr.bf16.mxu1 %v18105_v52  ;;  %v7788_v52 = vrot.slane %v18222_v59, 7 }
 0x541   : > { %v7783_v20 = vor.u32 %v7781_v26, %v7780_v37  ;;  %v7804_v26 = vrot.slane %v18244_v29, 7 }
 0x542   : > { %v7791_v60 = vor.u32 %v18235_v55, %v7788_v52  ;;  %v7800_v13 = vsel %vm7764_vm2, %v7788_v52, %v7799_v22  ;;  %v7852_v52 = vrot.slane %v18328_v42, 7 }
 0x543   : > { %v7784_v9 = vsel %vm7764_vm2, %v7772_v2, %v7783_v20  ;;  %v7807_v11 = vor.u32 %v18261_v53, %v7804_v26  ;;  %v18324_v2 = vshrl.u32 %v18309_v6, 16  ;;  %v18337_v20 = vld [vmem:[#allocation2 + $0x68] sm:$0xff] }
 0x544   : > { %v7792_v3 = vsel %vm7764_vm2, %v7780_v37, %v7791_v60  ;;  %19502 = vst [vmem:[#allocation14_spill] sm:$0xff] %v18337_v20  ;;  %v18340_v60 = vshll.u32 %v18309_v6, 16 }
 0x545   : > { %v7808_v38 = vsel %vm7764_vm2, %v7796_v5, %v7807_v11  ;;  %v7844_v37 = vrot.slane %v18324_v2, 7  ;;  %v18350_v5 = vld [vmem:[%s19076_s3 + $0x140] sm:$0xff]  }
 0x547   : > { %13287 = vmatmul.mubr.bf16.gmra.mrb[44].mxu1 %v7376_v24  ;;  %v7832_v24 = vsel %vm7764_vm2, %v7820_v40, %v7831_v57  ;;  %v18368_v40 = vshll.u32 %v18337_v20, 16 }
 0x548   : > { %13306 = vmatprep.mubr.bf16.mxu1 %v7776_v23  ;;  %v7840_v23 = vsel %vm7764_vm2, %v7828_v19, %v7839_v58  ;;  %v18387_v58 = vld [vmem:[#allocation2 + $0x88] sm:$0xff] }
 0x549   : > { %19508 = vst [vmem:[#allocation20_spill] sm:$0xff] %v18387_v58 }
 0x54f   : > { %13307 = vmatmul.mubr.bf16.vlgmr.msra.gmra.mrb[0].mxu1 %v7784_v9  ;;  %v18345_v9 = vshll.u32 %v18314_v32, 16 }
 0x550   : > { %13310 = vmatprep.mubr.bf16.mxu1 %v7792_v3  ;;  %13355 = vmatpush3.bf16.msra.mxu1 %v14779_v43  ;;  %v7816_v43 = vsel %vm7764_vm2, %v7804_v26, %v7815_v41  ;;  %v7847_v3 = vor.u32 %v18340_v60, %v7844_v37  ;;  %v18354_v26 = vshrl.u32 %v18337_v20, 16 }
 0x551   : > { %13356 = vmatprep.subr.bf16.mxu1 %v14780_v45 }
 0x552   : > { %v7848_v11 = vsel %vm7764_vm2, %v7836_v35, %v7847_v3 }
 0x554   : > { %13357 = vmatpush3.bf16.msra.mxu1 %v14780_v45  ;;  %v18342_v45 = vld [vmem:[#allocation2 + $0x70] sm:$0xff] }
 0x555   : > { %13358 = vmatprep.subr.bf16.mxu1 %v14781_v27  ;;  %19503 = vst [vmem:[#allocation15_spill] sm:$0xff] %v18342_v45  ;;  %v18358_v22 = vshrl.u32 %v18342_v45, 16  ;;  %v18373_v41 = vshll.u32 %v18342_v45, 16 }
 0x557   : > { %13311 = vmatmul.mubr.bf16.gmra.mrb[4].mxu1 %v7800_v13  ;;  %v7868_v17 = vrot.slane %v18358_v22, 7 }
 0x558   : > { %13314 = vmatprep.mubr.bf16.mxu1 %v7808_v38  ;;  %13359 = vmatpush3.bf16.msra.mxu1 %v14781_v27  ;;  %v7855_v27 = vor.u32 %v18345_v9, %v7852_v52  ;;  %v18365_v38 = vld [vmem:[#allocation2 + $0x78] sm:$0xff] }
 0x559   : > { %13360 = vmatprep.subr.bf16.mxu1 %v14782_v62  ;;  %19504 = vst [vmem:[#allocation16_spill] sm:$0xff] %v18365_v38 }
 0x55a   : > { %v7856_v13 = vsel %vm7764_vm2, %v7844_v37, %v7855_v27 }
 0x55c   : > { %13361 = vmatpush3.bf16.msra.mxu1 %v14782_v62  ;;  %v7860_v62 = vrot.slane %v18354_v26, 7 }
 0x55d   : > { %13362 = vmatprep.subr.bf16.mxu1 %v14783_v44 }
 0x55e   : > { %v7863_v31 = vor.u32 %v18368_v40, %v7860_v62 }
 0x55f   : > { %13315 = vmatmul.mubr.bf16.gmra.mrb[8].mxu1 %v7816_v43  ;;  %v7871_v43 = vor.u32 %v18373_v41, %v7868_v17 }
 0x560   : > { %13318 = vmatprep.mubr.bf16.mxu1 %v7824_v0  ;;  %13363 = vmatpush3.bf16.msra.mxu1 %v14783_v44  ;;  %v18370_v44 = vld [vmem:[#allocation2 + $0x80] sm:$0xff]  ;;  %v7864_v0 = vsel %vm7764_vm2, %v7852_v52, %v7863_v31  ;;  %v18399_v52 = vshrl.u32 %v18387_v58, 16 }
 0x561   : > { %13364 = vmatprep.subr.bf16.mxu1 %v14784_v56  ;;  %19505 = vst [vmem:[#allocation17_spill] sm:$0xff] %v18370_v44  ;;  %v18381_v19 = vshrl.u32 %v18370_v44, 16  ;;  %v18395_v37 = vshll.u32 %v18370_v44, 16 }
 0x562   : > { %19511 = vst [vmem:[#allocation23_spill] sm:$0xff] %v18399_v52 }
 0x563   : > { %19507 = vst [vmem:[#allocation19_spill] sm:$0xff] %v18381_v19  ;;  %v7884_v57 = vrot.slane %v18381_v19, 7  ;;  %19510 = vst [vmem:[#allocation22_spill] sm:$0xff] %v18395_v37  ;;  %v18475_v19 = vld [vmem:[#allocation2 + $0xc8] sm:$0xff] }
 0x564   : > { %13365 = vmatpush3.bf16.msra.mxu1 %v14784_v56  ;;  %v18377_v56 = vshrl.u32 %v18365_v38, 16  ;;  %19531 = vst [vmem:[#allocation43_spill] sm:$0xff] %v18475_v19 }
 0x565   : > { %13366 = vmatprep.subr.bf16.mxu1 %v14785_v39  ;;  %v7887_v3 = vor.u32 %v18395_v37, %v7884_v57 }
 0x566   : > { %19506 = vst [vmem:[#allocation18_spill] sm:$0xff] %v18377_v56  ;;  %v7876_v35 = vrot.slane %v18377_v56, 7  ;;  %v18458_v56 = vld [vmem:[#allocation2 + $0xc0] sm:$0xff] }
 0x567   : > { %13319 = vmatmul.mubr.bf16.gmra.mrb[12].mxu1 %v7832_v24  ;;  %v18392_v24 = vld [vmem:[#allocation2 + $0x90] sm:$0xff]  ;;  %19527 = vst [vmem:[#allocation39_spill] sm:$0xff] %v18458_v56 }
 0x568   : > { %13322 = vmatprep.mubr.bf16.mxu1 %v7840_v23  ;;  %13367 = vmatpush3.bf16.msra.mxu1 %v14785_v39  ;;  %v7872_v39 = vsel %vm7764_vm2, %v7860_v62, %v7871_v43  ;;  %19509 = vst [vmem:[#allocation21_spill] sm:$0xff] %v18392_v24  ;;  %v18403_v27 = vshrl.u32 %v18392_v24, 16  ;;  %v7892_v62 = vrot.slane %v18399_v52, 7  ;;  %v18409_v43 = vld [vmem:[#allocation2 + $0x98] sm:$0xff]  ;;  %v18417_v49 = vshll.u32 %v18392_v24, 16 }
 0x569   : > { %13368 = vmatprep.subr.bf16.mxu1 %v14786_v7  ;;  %19513 = vst [vmem:[#allocation25_spill] sm:$0xff] %v18409_v43  ;;  %v18434_v52 = vshll.u32 %v18409_v43, 16 }
 0x56a   : > { %19512 = vst [vmem:[#allocation24_spill] sm:$0xff] %v18403_v27  ;;  %v7900_v31 = vrot.slane %v18403_v27, 7  ;;  %19516 = vst [vmem:[#allocation28_spill] sm:$0xff] %v18417_v49  ;;  %v18436_v27 = vld [vmem:[#allocation2 + $0xb0] sm:$0xff] }
 0x56b   : > { %19520 = vst [vmem:[#allocation32_spill] sm:$0xff] %v18434_v52  ;;  %19521 = vst [vmem:[#allocation33_spill] sm:$0xff] %v18436_v27 }
 0x56c   : > { %13369 = vmatpush3.bf16.msra.mxu1 %v14786_v7  ;;  %v18390_v7 = vshll.u32 %v18365_v38, 16 }
 0x56d   : > { %13418 = vmatprep.subr.bf16.mxu1 %v18350_v5 }
 0x56e   : > { %v7879_v23 = vor.u32 %v18390_v7, %v7876_v35 }
 0x56f   : > { %13323 = vmatmul.mubr.bf16.gmra.mrb[16].mxu1 %v7848_v11 }
 0x570   : > { %13326 = vmatprep.mubr.bf16.mxu1 %v7856_v13  ;;  %v7880_v11 = vsel %vm7764_vm2, %v7868_v17, %v7879_v23  ;;  %v7888_v13 = vsel %vm7764_vm2, %v7876_v35, %v7887_v3  ;;  %v18421_v23 = vshrl.u32 %v18409_v43, 16  ;;  %v7903_v35 = vor.u32 %v18417_v49, %v7900_v31 }
 0x572   : > { %19517 = vst [vmem:[#allocation29_spill] sm:$0xff] %v18421_v23  ;;  %v7904_v25 = vsel %vm7764_vm2, %v7892_v62, %v7903_v35  ;;  %v18447_v35 = vshrl.u32 %v18436_v27, 16 }
 0x574   : > { %19524 = vst [vmem:[#allocation36_spill] sm:$0xff] %v18447_v35 }
 0x577   : > { %13327 = vmatmul.mubr.bf16.gmra.mrb[20].mxu1 %v7864_v0  ;;  %v18412_v0 = vshll.u32 %v18387_v58, 16 }
 0x578   : > { %13330 = vmatprep.mubr.bf16.mxu1 %v7872_v39  ;;  %v18414_v39 = vld [vmem:[#allocation2 + $0xa0] sm:$0xff] }
 0x579   : > { %19514 = vst [vmem:[#allocation26_spill] sm:$0xff] %v18412_v0  ;;  %19515 = vst [vmem:[#allocation27_spill] sm:$0xff] %v18414_v39  ;;  %v7895_v17 = vor.u32 %v18412_v0, %v7892_v62  ;;  %v18425_v3 = vshrl.u32 %v18414_v39, 16  ;;  %v18439_v49 = vshll.u32 %v18414_v39, 16  ;;  %v18453_v0 = vld [vmem:[#allocation2 + $0xb8] sm:$0xff] }
 0x57a   : > { %19525 = vst [vmem:[#allocation37_spill] sm:$0xff] %v18453_v0 }
 0x57b   : > { %19518 = vst [vmem:[#allocation30_spill] sm:$0xff] %v18425_v3  ;;  %v7916_v1 = vrot.slane %v18425_v3, 7  ;;  %19522 = vst [vmem:[#allocation34_spill] sm:$0xff] %v18439_v49  ;;  %v7932_v3 = vrot.slane %v18447_v35, 7 }
 0x57d   : > { %v7919_v62 = vor.u32 %v18439_v49, %v7916_v1  ;;  %v18461_v49 = vshll.u32 %v18436_v27, 16 }
 0x57f   : > { %13331 = vmatmul.mubr.bf16.gmra.mrb[24].mxu1 %v7880_v11  ;;  %v7896_v11 = vsel %vm7764_vm2, %v7884_v57, %v7895_v17  ;;  %v18443_v17 = vshrl.u32 %v18431_v16, 16  ;;  %19528 = vst [vmem:[#allocation40_spill] sm:$0xff] %v18461_v49 }
 0x580   : > { %13334 = vmatprep.mubr.bf16.mxu1 %v7888_v13  ;;  %v7908_v13 = vrot.slane %v18421_v23, 7 }
 0x581   : > { %19523 = vst [vmem:[#allocation35_spill] sm:$0xff] %v18443_v17 }
 0x582   : > { %v7911_v57 = vor.u32 %v18434_v52, %v7908_v13  ;;  %v7920_v23 = vsel %vm7764_vm2, %v7908_v13, %v7919_v62  ;;  %v18456_v52 = vshll.u32 %v18431_v16, 16  ;;  %v7935_v13 = vor.u32 %v18461_v49, %v7932_v3 }
 0x583   : > { %v18469_v62 = vshrl.u32 %v18458_v56, 16  ;;  %v18481_v49 = vshll.u32 %v18458_v56, 16 }
 0x584   : > { %19526 = vst [vmem:[#allocation38_spill] sm:$0xff] %v18456_v52 }
 0x585   : > { %19530 = vst [vmem:[#allocation42_spill] sm:$0xff] %v18469_v62  ;;  %v7948_v35 = vrot.slane %v18469_v62, 7 }
 0x587   : > { %13335 = vmatmul.mubr.bf16.gmra.mrb[28].mxu1 %v7896_v11  ;;  %v7924_v11 = vrot.slane %v18443_v17, 7 }
 0x588   : > { %13338 = vmatprep.mubr.bf16.mxu1 %v7904_v25  ;;  %v7912_v25 = vsel %vm7764_vm2, %v7900_v31, %v7911_v57  ;;  %v18465_v57 = vshrl.u32 %v18453_v0, 16 }
 0x589   : > { %v7927_v31 = vor.u32 %v18456_v52, %v7924_v11  ;;  %v7936_v17 = vsel %vm7764_vm2, %v7924_v11, %v7935_v13  ;;  %v18478_v52 = vshll.u32 %v18453_v0, 16 }
 0x58a   : > { %19529 = vst [vmem:[#allocation41_spill] sm:$0xff] %v18465_v57 }
 0x58f   : > { %13339 = vmatmul.mubr.bf16.gmra.mrb[32].mxu1 %v7912_v25  ;;  %v7940_v25 = vrot.slane %v18465_v57, 7 }
 0x590   : > { %13342 = vmatprep.mubr.bf16.mxu1 %v7920_v23  ;;  %v7928_v23 = vsel %vm7764_vm2, %v7916_v1, %v7927_v31  ;;  %v18485_v1 = vshrl.u32 %v18475_v19, 16  ;;  %v7951_v31 = vor.u32 %v18481_v49, %v7948_v35 }
 0x591   : > { %v7943_v37 = vor.u32 %v18478_v52, %v7940_v25 }
 0x592   : > { %v7956_v13 = vrot.slane %v18485_v1, 7 }
 0x593   : > { %v7944_v11 = vsel %vm7764_vm2, %v7932_v3, %v7943_v37  ;;  %v14788_v37 = vld [vmem:[%s19076_s3 + $0x148] sm:$0xff]   ;;  %v14789_v3 = vld [vmem:[%s19076_s3 + $0x150] sm:$0xff]  }
 0x597   : > { %13343 = vmatmul.mubr.bf16.gmra.mrb[36].mxu1 %v7928_v23  ;;  %v18492_v23 = vshll.u32 %v18475_v19, 16 }
 0x598   : > { %13346 = vmatprep.mubr.bf16.mxu1 %v7936_v17  ;;  %v7952_v17 = vsel %vm7764_vm2, %v7940_v25, %v7951_v31  ;;  %v8704_v25 = vrot.slane %v18235_v55, 1 }
 0x599   : > { %19532 = vst [vmem:[#allocation44_spill] sm:$0xff] %v18492_v23  ;;  %v7959_v57 = vor.u32 %v18492_v23, %v7956_v13  ;;  %v14796_v13 = vld [vmem:[%s19076_s3 + $0x188] sm:$0xff]  }
 0x59a   : > { %v8708_v31 = vor.u32 %v8704_v25, %v18222_v59 }
 0x59b   : > { %v7960_v62 = vsel %vm7764_vm2, %v7948_v35, %v7959_v57  ;;  %v14793_v35 = vld [vmem:[%s19076_s3 + $0x170] sm:$0xff]   ;;  %v14794_v57 = vld [vmem:[%s19076_s3 + $0x178] sm:$0xff]   ;;  %vm19550_vm2 = vmmov %vm19544_vm0 }
 0x59f   : > { %13347 = vmatmul.mubr.bf16.gmra.mrb[40].mxu1 %v7944_v11  ;;  %v8712_v11 = vrot.slane %v18256_v18, 1 }
 0x5a0   : > { %13350 = vmatprep.mubr.bf16.mxu1 %v7952_v17  ;;  %v8705_v17 = vsel %vm19533_vm3, %v18137_v48, %v8704_v25  ;;  %v14798_v48 = vld [vmem:[%s19076_s3 + $0x198] sm:$0xff]   ;;  %v14799_v25 = vld [vmem:[%s19076_s3 + $0x1a0] sm:$0xff]   ;;  %vm19555_vm3 = vmmov %vm19544_vm0 }
 0x5a7   : > { %13351 = vmatmul.mubr.bf16.gmra.mrb[44].mxu1 %v7960_v62  ;;  %v14795_v62 = vld [vmem:[%s19076_s3 + $0x180] sm:$0xff]  }
 0x5a8   : > { %13370 = vmatprep.mubr.bf16.mxu1 %v18117_v46  ;;  %v14790_v46 = vld [vmem:[%s19076_s3 + $0x158] sm:$0xff]  }
 0x5af   : > { %13371 = vmatmul.mubr.bf16.vlgmr.msra.gmra.mrb[0].mxu1 %v18120_v12  ;;  %v14791_v12 = vld [vmem:[%s19076_s3 + $0x160] sm:$0xff]  }
 0x5b0   : > { %13374 = vmatprep.mubr.bf16.mxu1 %v18217_v30  ;;  %13419 = vmatpush3.bf16.msra.mxu1 %v18350_v5  ;;  %v14792_v5 = vld [vmem:[%s19076_s3 + $0x168] sm:$0xff]  }
 0x5b1   : > { %13420 = vmatprep.subr.bf16.mxu1 %v14788_v37 }
 0x5b4   : > { %13421 = vmatpush3.bf16.msra.mxu1 %v14788_v37  ;;  %v8713_v37 = vsel %vm19534_vm5, %v8708_v31, %v8712_v11  ;;  %vm19556_vm5 = vmmov %vm19544_vm0 }
 0x5b5   : > { %13422 = vmatprep.subr.bf16.mxu1 %v14789_v3 }
 0x5b7   : > { %13375 = vmatmul.mubr.bf16.gmra.mrb[4].mxu1 %v18230_v14 }
 0x5b8   : > { %13378 = vmatprep.mubr.bf16.mxu1 %v18232_v50  ;;  %13423 = vmatpush3.bf16.msra.mxu1 %v14789_v3  ;;  %v8720_v3 = vrot.slane %v18261_v53, 1 }
 0x5b9   : > { %13424 = vmatprep.subr.bf16.mxu1 %v14790_v46 }
 0x5bc   : > { %13425 = vmatpush3.bf16.msra.mxu1 %v14790_v46  ;;  %v8724_v46 = vor.u32 %v8720_v3, %v18244_v29 }
 0x5bd   : > { %13426 = vmatprep.subr.bf16.mxu1 %v14791_v12 }
 0x5bf   : > { %13379 = vmatmul.mubr.bf16.gmra.mrb[8].mxu1 %v18253_v36 }
 0x5c0   : > { %13382 = vmatprep.mubr.bf16.mxu1 %v18258_v47  ;;  %13427 = vmatpush3.bf16.msra.mxu1 %v14791_v12  ;;  %v8716_v12 = vor.u32 %v8712_v11, %v18240_v4 }
 0x5c1   : > { %13428 = vmatprep.subr.bf16.mxu1 %v14792_v5 }
 0x5c4   : > { %13429 = vmatpush3.bf16.msra.mxu1 %v14792_v5  ;;  %v8728_v5 = vrot.slane %v18284_v33, 1 }
 0x5c5   : > { %13430 = vmatprep.subr.bf16.mxu1 %v14793_v35 }
 0x5c6   : > { %v8732_v11 = vor.u32 %v8728_v5, %v18268_v15 }
 0x5c7   : > { %13383 = vmatmul.mubr.bf16.gmra.mrb[12].mxu1 %v18281_v63 }
 0x5c8   : > { %13386 = vmatprep.mubr.bf16.mxu1 %v18286_v51  ;;  %13431 = vmatpush3.bf16.msra.mxu1 %v14793_v35  ;;  %v8721_v35 = vsel %vm19535_vm13, %v8716_v12, %v8720_v3  ;;  %vm19561_vm13 = vmmov %vm19544_vm0  ;;  %v8872_v51 = vrot.slane %v18492_v23, 1 }
 0x5c9   : > { %13432 = vmatprep.subr.bf16.mxu1 %v14794_v57 }
 0x5ca   : > { %v8876_v50 = vor.u32 %v8872_v51, %v18485_v1 }
 0x5cc   : > { %13433 = vmatpush3.bf16.msra.mxu1 %v14794_v57  ;;  %v8729_v57 = vsel %vm19536_vm10, %v8724_v46, %v8728_v5  ;;  %v14801_v46 = vld [vmem:[%s19076_s3 + $0x1b0] sm:$0xff]   ;;  %vm19562_vm10 = vmmov %vm19544_vm0 }
 0x5cd   : > { %13482 = vmatprep.subr.bf16.mxu1 %v14795_v62 }
 0x5cf   : > { %13387 = vmatmul.mubr.bf16.gmra.mrb[16].mxu1 %v18309_v6  ;;  %v19569_v6 = vld [vmem:[#allocation41_spill] sm:$0xff] }
 0x5d0   : > { %13390 = vmatprep.mubr.bf16.mxu1 %v18314_v32  ;;  %v8864_v32 = vrot.slane %v18481_v49, 1 }
 0x5d7   : > { %13391 = vmatmul.mubr.bf16.gmra.mrb[20].mxu1 %v18337_v20 }
 0x5d8   : > { %13394 = vmatprep.mubr.bf16.mxu1 %v18342_v45 }
 0x5df   : > { %13395 = vmatmul.mubr.bf16.gmra.mrb[24].mxu1 %v18365_v38  ;;  %v19563_v38 = vld [vmem:[#allocation40_spill] sm:$0xff] }
 0x5e0   : > { %13398 = vmatprep.mubr.bf16.mxu1 %v18370_v44  ;;  %v8848_v45 = vrot.slane %v19563_v38, 1 }
 0x5e7   : > { %13399 = vmatmul.mubr.bf16.gmra.mrb[28].mxu1 %v18387_v58  ;;  %v19560_v58 = vld [vmem:[#allocation38_spill] sm:$0xff] }
 0x5e8   : > { %13402 = vmatprep.mubr.bf16.mxu1 %v18392_v24 }
 0x5ef   : > { %13403 = vmatmul.mubr.bf16.gmra.mrb[32].mxu1 %v18409_v43  ;;  %v19557_v43 = vld [vmem:[#allocation34_spill] sm:$0xff] }
 0x5f0   : > { %13406 = vmatprep.mubr.bf16.mxu1 %v18414_v39  ;;  %v8832_v24 = vrot.slane %v19557_v43, 1 }
 0x5f7   : > { %13407 = vmatmul.mubr.bf16.gmra.mrb[36].mxu1 %v18431_v16  ;;  %v19554_v16 = vld [vmem:[#allocation32_spill] sm:$0xff] }
 0x5f8   : > { %13410 = vmatprep.mubr.bf16.mxu1 %v18436_v27 }
 0x5ff   : > { %13411 = vmatmul.mubr.bf16.gmra.mrb[40].mxu1 %v18453_v0  ;;  %v19551_v0 = vld [vmem:[#allocation28_spill] sm:$0xff] }
 0x600   : > { %13414 = vmatprep.mubr.bf16.mxu1 %v18458_v56  ;;  %v8816_v27 = vrot.slane %v19551_v0, 1 }
 0x607   : > { %13415 = vmatmul.mubr.bf16.gmra.mrb[44].mxu1 %v18475_v19  ;;  %v19548_v19 = vld [vmem:[#allocation26_spill] sm:$0xff] }
 0x608   : > { %13434 = vmatprep.mubr.bf16.mxu1 %v18140_v10  ;;  %v14797_v10 = vld [vmem:[%s19076_s3 + $0x190] sm:$0xff]  }
 0x60f   : > { %13435 = vmatmul.mubr.bf16.vlgmr.msra.gmra.mrb[0].mxu1 %v8705_v17  ;;  %v14800_v17 = vld [vmem:[%s19076_s3 + $0x1a8] sm:$0xff]  }
 0x610   : > { %13438 = vmatprep.mubr.bf16.mxu1 %v8713_v37  ;;  %13483 = vmatpush3.bf16.msra.mxu1 %v14795_v62  ;;  %v8736_v62 = vrot.slane %v18289_v61, 1 }
 0x611   : > { %13484 = vmatprep.subr.bf16.mxu1 %v14796_v13 }
 0x612   : > { %v8740_v31 = vor.u32 %v8736_v62, %v18272_v28  ;;  %v8737_v37 = vsel %vm19537_vm14, %v8732_v11, %v8736_v62  ;;  %vm19566_vm14 = vmmov %vm19544_vm0 }
 0x614   : > { %13485 = vmatpush3.bf16.msra.mxu1 %v14796_v13  ;;  %v8744_v13 = vrot.slane %v18312_v8, 1 }
 0x615   : > { %13486 = vmatprep.subr.bf16.mxu1 %v14797_v10 }
 0x616   : > { %v8745_v3 = vsel %vm19538_vm6, %v8740_v31, %v8744_v13  ;;  %v8748_v5 = vor.u32 %v8744_v13, %v18296_v34  ;;  %v18595_v31 = vld [vmem:[%s19076_s3 + $0x1c0] sm:$0xff]   ;;  %vm19567_vm6 = vmmov %vm19544_vm0 }
 0x617   : > { %13439 = vmatmul.mubr.bf16.gmra.mrb[4].mxu1 %v8721_v35  ;;  %v14802_v35 = vld [vmem:[%s19076_s3 + $0x1b8] sm:$0xff]  }
 0x618   : > { %13442 = vmatprep.mubr.bf16.mxu1 %v8729_v57  ;;  %13487 = vmatpush3.bf16.msra.mxu1 %v14797_v10  ;;  %v8752_v10 = vrot.slane %v18317_v21, 1 }
 0x619   : > { %13488 = vmatprep.subr.bf16.mxu1 %v14798_v48 }
 0x61a   : > { %v8756_v12 = vor.u32 %v8752_v10, %v18300_v54  ;;  %v8753_v57 = vsel %vm19539_vm8, %v8748_v5, %v8752_v10  ;;  %v8784_v10 = vrot.slane %v18373_v41, 1  ;;  %v8792_v5 = vrot.slane %v18390_v7, 1  ;;  %vm19570_vm8 = vmmov %vm19544_vm0 }
 0x61c   : > { %13489 = vmatpush3.bf16.msra.mxu1 %v14798_v48  ;;  %v8760_v48 = vrot.slane %v18340_v60, 1 }
 0x61d   : > { %13490 = vmatprep.subr.bf16.mxu1 %v14799_v25 }
 0x61e   : > { %v8761_v62 = vsel %vm19540_vm11, %v8756_v12, %v8760_v48  ;;  %v8764_v13 = vor.u32 %v8760_v48, %v18324_v2  ;;  %vm19571_vm11 = vmmov %vm19544_vm0 }
 0x61f   : > { %13443 = vmatmul.mubr.bf16.gmra.mrb[8].mxu1 %v8737_v37 }
 0x620   : > { %13446 = vmatprep.mubr.bf16.mxu1 %v8745_v3  ;;  %13491 = vmatpush3.bf16.msra.mxu1 %v14799_v25  ;;  %v8768_v25 = vrot.slane %v18345_v9, 1 }
 0x621   : > { %13492 = vmatprep.subr.bf16.mxu1 %v14800_v17 }
 0x622   : > { %v8772_v11 = vor.u32 %v8768_v25, %v18328_v42  ;;  %v8769_v37 = vsel %vm19541_vm15, %v8764_v13, %v8768_v25  ;;  %v19546_v25 = vld [vmem:[#allocation19_spill] sm:$0xff]  ;;  %vm19572_vm15 = vmmov %vm19544_vm0 }
 0x624   : > { %13493 = vmatpush3.bf16.msra.mxu1 %v14800_v17  ;;  %v8776_v17 = vrot.slane %v18368_v40, 1 }
 0x625   : > { %13494 = vmatprep.subr.bf16.mxu1 %v14801_v46 }
 0x626   : > { %v8777_v3 = vsel %vm19542_vm7, %v8772_v11, %v8776_v17  ;;  %v8780_v12 = vor.u32 %v8776_v17, %v18354_v26  ;;  %v19547_v11 = vld [vmem:[#allocation18_spill] sm:$0xff]  ;;  %vm19577_vm7 = vcmask 1043456  }
 0x627   : > { %13447 = vmatmul.mubr.bf16.gmra.mrb[12].mxu1 %v8753_v57  ;;  %v19545_v57 = vld [vmem:[#allocation22_spill] sm:$0xff] }
 0x628   : > { %13450 = vmatprep.mubr.bf16.mxu1 %v8761_v62  ;;  %13495 = vmatpush3.bf16.msra.mxu1 %v14801_v46  ;;  %v8788_v46 = vor.u32 %v8784_v10, %v18358_v22  ;;  %v8785_v48 = vsel %vm19543_vm9, %v8780_v12, %v8784_v10  ;;  %v8800_v62 = vrot.slane %v19545_v57, 1  ;;  %v19552_v10 = vld [vmem:[#allocation24_spill] sm:$0xff]  ;;  %vm19580_vm9 = vmmov %vm19577_vm7 }
 0x629   : > { %13496 = vmatprep.subr.bf16.mxu1 %v14802_v35  ;;  %v8820_v12 = vor.u32 %v8816_v27, %v19552_v10 }
 0x62a   : > { %v8804_v13 = vor.u32 %v8800_v62, %v19546_v25 }
 0x62c   : > { %13497 = vmatpush3.bf16.msra.mxu1 %v14802_v35  ;;  %v8793_v35 = vsel %vm19544_vm0, %v8788_v46, %v8792_v5  ;;  %v19553_v46 = vld [vmem:[#allocation23_spill] sm:$0xff]  ;;  %vm19581_vm0 = vmmov %vm19577_vm7 }
 0x62d   : > { %13546 = vmatprep.subr.bf16.mxu1 %v18595_v31 }
 0x62f   : > { %13451 = vmatmul.mubr.bf16.gmra.mrb[16].mxu1 %v8769_v37  ;;  %v8796_v37 = vor.u32 %v8792_v5, %v19547_v11 }
 0x630   : > { %13454 = vmatprep.mubr.bf16.mxu1 %v8777_v3  ;;  %v8808_v3 = vrot.slane %v19548_v19, 1 }
 0x631   : > { %v8801_v56 = vsel %vm19549_vm4, %v8796_v37, %v8800_v62  ;;  %vm19585_vm4 = vmmov %vm19581_vm0 }
 0x632   : > { %v8809_v17 = vsel %vm19550_vm2, %v8804_v13, %v8808_v3  ;;  %v19559_v13 = vld [vmem:[#allocation29_spill] sm:$0xff]  ;;  %vm19588_vm2 = vmmov %vm19581_vm0 }
 0x637   : > { %13455 = vmatmul.mubr.bf16.gmra.mrb[20].mxu1 %v8785_v48  ;;  %v8812_v48 = vor.u32 %v8808_v3, %v19553_v46 }
 0x638   : > { %13458 = vmatprep.mubr.bf16.mxu1 %v8793_v35  ;;  %v8824_v35 = vrot.slane %v19554_v16, 1 }
 0x639   : > { %v8817_v39 = vsel %vm19555_vm3, %v8812_v48, %v8816_v27  ;;  %v19564_v27 = vld [vmem:[#allocation36_spill] sm:$0xff]  ;;  %vm19589_vm3 = vmmov %vm19581_vm0 }
 0x63a   : > { %v8825_v5 = vsel %vm19556_vm5, %v8820_v12, %v8824_v35  ;;  %v8828_v37 = vor.u32 %v8824_v35, %v19559_v13  ;;  %v19565_v12 = vld [vmem:[#allocation35_spill] sm:$0xff]  ;;  %vm19592_vm5 = vmmov %vm19581_vm0 }
 0x63c   : > { %v8833_v44 = vsel %vm19561_vm13, %v8828_v37, %v8832_v24  ;;  %v8668_v37 = vld [vmem:[#allocation2 + $0xd0] sm:$0x1]  ;;  %vm19593_vm13 = vmmov %vm19581_vm0 }
 0x63d   : > { %v8878_v36 = vshll.u32 %v8668_v37, 16  ;;  %v9298_v37 = vrot.slane %v18244_v29, 3 }
 0x63f   : > { %13459 = vmatmul.mubr.bf16.gmra.mrb[24].mxu1 %v8801_v56  ;;  %v19558_v56 = vld [vmem:[#allocation30_spill] sm:$0xff] }
 0x640   : > { %13462 = vmatprep.mubr.bf16.mxu1 %v8809_v17  ;;  %v8836_v62 = vor.u32 %v8832_v24, %v19558_v56  ;;  %v8840_v17 = vrot.slane %v19560_v58, 1  ;;  %v19568_v24 = vld [vmem:[#allocation42_spill] sm:$0xff] }
 0x642   : > { %v8841_v3 = vsel %vm19562_vm10, %v8836_v62, %v8840_v17  ;;  %v8844_v48 = vor.u32 %v8840_v17, %v19565_v12  ;;  %v8868_v62 = vor.u32 %v8864_v32, %v19568_v24  ;;  %vm19596_vm10 = vmmov %vm19581_vm0 }
 0x644   : > { %v8849_v20 = vsel %vm19566_vm14, %v8844_v48, %v8848_v45  ;;  %vm19597_vm14 = vmmov %vm19581_vm0 }
 0x647   : > { %13463 = vmatmul.mubr.bf16.gmra.mrb[28].mxu1 %v8817_v39  ;;  %v8852_v39 = vor.u32 %v8848_v45, %v19564_v27  ;;  %v9280_v45 = vrot.slane %v18222_v59, 3 }
 0x648   : > { %13466 = vmatprep.mubr.bf16.mxu1 %v8825_v5  ;;  %v8856_v5 = vrot.slane %v18478_v52, 1 }
 0x64a   : > { %v8857_v35 = vsel %vm19567_vm6, %v8852_v39, %v8856_v5  ;;  %v9283_v39 = vrot.slane %v18235_v55, 4  ;;  %vm19600_vm6 = vmmov %vm19581_vm0 }
 0x64c   : > { %v9284_v14 = vor.u32 %v9283_v39, %v9280_v45  ;;  %v9316_v45 = vrot.slane %v18272_v28, 3  ;;  %v9319_v39 = vrot.slane %v18289_v61, 4 }
 0x64f   : > { %13467 = vmatmul.mubr.bf16.gmra.mrb[32].mxu1 %v8833_v44  ;;  %v9227_v44 = vld [vmem:[#allocation2 + $0x18] sm:$0xf8] }
 0x650   : > { %13470 = vmatprep.mubr.bf16.mxu1 %v8841_v3  ;;  %v8860_v3 = vor.u32 %v8856_v5, %v19569_v6  ;;  %v9270_v63 = vshrl.u32 %v9227_v44, 16  ;;  %v9273_v17 = vshll.u32 %v9227_v44, 16  ;;  %v8880_v5 = vrot.slane %v8878_v36, 1  ;;  %v14804_v36 = vld [vmem:[%s19076_s3 + $0x1c8] sm:$0xff]  }
 0x652   : > { %v8865_v47 = vsel %vm19570_vm8, %v8860_v3, %v8864_v32  ;;  %v9272_v48 = vrot.slane %v9270_v63, 3  ;;  %v8881_v44 = vsel %vm19572_vm15, %v8876_v50, %v8880_v5  ;;  %v9289_v32 = vrot.slane %v18240_v4, 3  ;;  %v14806_v5 = vld [vmem:[%s19076_s3 + $0x1d8] sm:$0xff]   ;;  %vm19601_vm8 = vmmov %vm19581_vm0 }
 0x653   : > { %v9301_v3 = vrot.slane %v18261_v53, 4  ;;  %vm19605_vm15 = vmmov %vm19581_vm0 }
 0x657   : > { %13471 = vmatmul.mubr.bf16.gmra.mrb[36].mxu1 %v8849_v20  ;;  %v8873_v20 = vsel %vm19571_vm11, %v8868_v62, %v8872_v51  ;;  %v9307_v51 = vrot.slane %v18268_v15, 3  ;;  %vm19604_vm11 = vmmov %vm19581_vm0 }
 0x658   : > { %13474 = vmatprep.mubr.bf16.mxu1 %v8857_v35  ;;  %v9275_v35 = vrot.slane %v9273_v17, 4  ;;  %v9302_v17 = vor.u32 %v9301_v3, %v9298_v37  ;;  %v9337_v37 = vrot.slane %v18317_v21, 4  ;;  %v14807_v3 = vld [vmem:[%s19076_s3 + $0x1e0] sm:$0xff]  }
 0x65a   : > { %v9276_v30 = vor.u32 %v9275_v35, %v9272_v48  ;;  %v14805_v48 = vld [vmem:[%s19076_s3 + $0x1d0] sm:$0xff]   ;;  %v9320_v35 = vor.u32 %v9319_v39, %v9316_v45  ;;  %v9352_v45 = vrot.slane %v18328_v42, 3  ;;  %v9355_v39 = vrot.slane %v18345_v9, 4 }
 0x65c   : > { %v9285_v62 = vsel %vm6727_vm12, %v9276_v30, %v9284_v14 }
 0x65f   : > { %13475 = vmatmul.mubr.bf16.gmra.mrb[40].mxu1 %v8865_v47  ;;  %v9292_v47 = vrot.slane %v18256_v18, 4 }
 0x660   : > { %13478 = vmatprep.mubr.bf16.mxu1 %v8873_v20  ;;  %v9310_v20 = vrot.slane %v18284_v33, 4 }
 0x661   : > { %v9293_v63 = vor.u32 %v9292_v47, %v9289_v32  ;;  %v9325_v32 = vrot.slane %v18296_v34, 3  ;;  %v9328_v47 = vrot.slane %v18312_v8, 4 }
 0x663   : > { %v9294_v50 = vsel %vm6727_vm12, %v9284_v14, %v9293_v63  ;;  %v9303_v30 = vsel %vm6727_vm12, %v9293_v63, %v9302_v17  ;;  %v9311_v14 = vor.u32 %v9310_v20, %v9307_v51  ;;  %v9329_v63 = vor.u32 %v9328_v47, %v9325_v32 }
 0x664   : > { %v9343_v51 = vrot.slane %v18324_v2, 3  ;;  %v9346_v20 = vrot.slane %v18340_v60, 4  ;;  %v9361_v32 = vrot.slane %v18354_v26, 3  ;;  %v9364_v47 = vrot.slane %v18368_v40, 4 }
 0x667   : > { %13479 = vmatmul.mubr.bf16.gmra.mrb[44].mxu1 %v8881_v44  ;;  %v9312_v44 = vsel %vm6727_vm12, %v9302_v17, %v9311_v14 }
 0x668   : > { %13498 = vmatprep.mubr.bf16.mxu1 %v9285_v62  ;;  %v9334_v62 = vrot.slane %v18300_v54, 3 }
 0x66a   : > { %v9338_v17 = vor.u32 %v9337_v37, %v9334_v62  ;;  %v9370_v62 = vrot.slane %v18358_v22, 3  ;;  %v9373_v37 = vrot.slane %v18373_v41, 4 }
 0x66f   : > { %13499 = vmatmul.mubr.bf16.vlgmr.msra.gmra.mrb[0].mxu1 %v9294_v50  ;;  %v9330_v50 = vsel %vm6727_vm12, %v9320_v35, %v9329_v63 }
 0x670   : > { %13502 = vmatprep.mubr.bf16.mxu1 %v9303_v30  ;;  %13547 = vmatpush3.bf16.msra.mxu1 %v18595_v31  ;;  %v9321_v31 = vsel %vm6727_vm12, %v9311_v14, %v9320_v35  ;;  %v9339_v30 = vsel %vm6727_vm12, %v9329_v63, %v9338_v17  ;;  %v9347_v14 = vor.u32 %v9346_v20, %v9343_v51  ;;  %v9382_v51 = vrot.slane %v18390_v7, 4 }
 0x671   : > { %13548 = vmatprep.subr.bf16.mxu1 %v14804_v36  ;;  %v9356_v35 = vor.u32 %v9355_v39, %v9352_v45  ;;  %v9365_v63 = vor.u32 %v9364_v47, %v9361_v32  ;;  %v9391_v45 = vrot.slane %v19545_v57, 4  ;;  %v9406_v32 = vrot.slane %v19552_v10, 3 }
 0x672   : > { %v9409_v47 = vrot.slane %v19551_v0, 4 }
 0x674   : > { %13549 = vmatpush3.bf16.msra.mxu1 %v14804_v36  ;;  %v14808_v36 = vld [vmem:[%s19076_s3 + $0x1e8] sm:$0xff]  }
 0x675   : > { %13550 = vmatprep.subr.bf16.mxu1 %v14805_v48 }
 0x677   : > { %13503 = vmatmul.mubr.bf16.gmra.mrb[4].mxu1 %v9312_v44  ;;  %v9348_v44 = vsel %vm6727_vm12, %v9338_v17, %v9347_v14  ;;  %v9374_v17 = vor.u32 %v9373_v37, %v9370_v62  ;;  %v9410_v62 = vor.u32 %v9409_v47, %v9406_v32 }
 0x678   : > { %13506 = vmatprep.mubr.bf16.mxu1 %v9321_v31  ;;  %13551 = vmatpush3.bf16.msra.mxu1 %v14805_v48  ;;  %v14809_v48 = vld [vmem:[%s19076_s3 + $0x1f0] sm:$0xff]   ;;  %v9357_v31 = vsel %vm6727_vm12, %v9347_v14, %v9356_v35 }
 0x679   : > { %13552 = vmatprep.subr.bf16.mxu1 %v14806_v5  ;;  %v9375_v20 = vsel %vm6727_vm12, %v9365_v63, %v9374_v17 }
 0x67c   : > { %13553 = vmatpush3.bf16.msra.mxu1 %v14806_v5  ;;  %v14810_v5 = vld [vmem:[%s19076_s3 + $0x1f8] sm:$0xff]  }
 0x67d   : > { %13554 = vmatprep.subr.bf16.mxu1 %v14807_v3 }
 0x67f   : > { %13507 = vmatmul.mubr.bf16.gmra.mrb[8].mxu1 %v9330_v50  ;;  %v9379_v50 = vrot.slane %v19547_v11, 3 }
 0x680   : > { %13510 = vmatprep.mubr.bf16.mxu1 %v9339_v30  ;;  %13555 = vmatpush3.bf16.msra.mxu1 %v14807_v3  ;;  %v18697_v3 = vld [vmem:[%s19076_s3 + $0x200] sm:$0xff]   ;;  %v9388_v30 = vrot.slane %v19546_v25, 3 }
 0x681   : > { %13556 = vmatprep.subr.bf16.mxu1 %v14808_v36  ;;  %v9383_v39 = vor.u32 %v9382_v51, %v9379_v50  ;;  %v9424_v50 = vrot.slane %v19558_v56, 3  ;;  %v9427_v51 = vrot.slane %v19557_v43, 4 }
 0x683   : > { %v9384_v14 = vsel %vm6727_vm12, %v9374_v17, %v9383_v39  ;;  %v9418_v17 = vrot.slane %v19554_v16, 4 }
 0x684   : > { %13557 = vmatpush3.bf16.msra.mxu1 %v14808_v36  ;;  %v9366_v36 = vsel %vm6727_vm12, %v9356_v35, %v9365_v63  ;;  %v9400_v35 = vrot.slane %v19548_v19, 4  ;;  %v9415_v63 = vrot.slane %v19559_v13, 3 }
 0x685   : > { %13558 = vmatprep.subr.bf16.mxu1 %v14809_v48 }
 0x687   : > { %13511 = vmatmul.mubr.bf16.gmra.mrb[12].mxu1 %v9348_v44 }
 0x688   : > { %13514 = vmatprep.mubr.bf16.mxu1 %v9357_v31  ;;  %13559 = vmatpush3.bf16.msra.mxu1 %v14809_v48  ;;  %v9392_v48 = vor.u32 %v9391_v45, %v9388_v30  ;;  %v9428_v30 = vor.u32 %v9427_v51, %v9424_v50  ;;  %v18730_v51 = vld [vmem:[#allocation2 + $0xd8] sm:$0xf] }
 0x689   : > { %13560 = vmatprep.subr.bf16.mxu1 %v14810_v5 }
 0x68a   : > { %v9393_v44 = vsel %vm6727_vm12, %v9383_v39, %v9392_v48  ;;  %v9433_v39 = vrot.slane %v19565_v12, 3 }
 0x68c   : > { %13561 = vmatpush3.bf16.msra.mxu1 %v14810_v5  ;;  %v9397_v5 = vrot.slane %v19553_v46, 3 }
 0x68d   : > { %13610 = vmatprep.subr.bf16.mxu1 %v18697_v3 }
 0x68e   : > { %v9401_v31 = vor.u32 %v9400_v35, %v9397_v5  ;;  %v9442_v5 = vrot.slane %v19564_v27, 3  ;;  %v9445_v35 = vrot.slane %v19563_v38, 4 }
 0x68f   : > { %13515 = vmatmul.mubr.bf16.gmra.mrb[16].mxu1 %v9366_v36 }
 0x690   : > { %13518 = vmatprep.mubr.bf16.mxu1 %v9375_v20  ;;  %v9402_v37 = vsel %vm6727_vm12, %v9392_v48, %v9401_v31  ;;  %v9411_v36 = vsel %vm6727_vm12, %v9401_v31, %v9410_v62  ;;  %v9419_v20 = vor.u32 %v9418_v17, %v9415_v63  ;;  %v9436_v48 = vrot.slane %v19560_v58, 4 }
 0x691   : > { %v9446_v32 = vor.u32 %v9445_v35, %v9442_v5  ;;  %v9451_v31 = vrot.slane %v19569_v6, 3  ;;  %v9460_v63 = vrot.slane %v19568_v24, 3  ;;  %v9463_v17 = vrot.slane %v18481_v49, 4 }
 0x692   : > { %v9420_v45 = vsel %vm6727_vm12, %v9410_v62, %v9419_v20  ;;  %v9454_v62 = vrot.slane %v18478_v52, 4 }
 0x693   : > { %v9464_v50 = vor.u32 %v9463_v17, %v9460_v63 }
 0x697   : > { %13519 = vmatmul.mubr.bf16.gmra.mrb[20].mxu1 %v9384_v14  ;;  %v9429_v14 = vsel %vm6727_vm12, %v9419_v20, %v9428_v30 }
 0x698   : > { %13522 = vmatprep.mubr.bf16.mxu1 %v9393_v44  ;;  %v9437_v44 = vor.u32 %v9436_v48, %v9433_v39  ;;  %v19573_v48 = vld [vmem:[#allocation5_spill] sm:$0xff] }
 0x699   : > { %v19575_v35 = vshll.u32 %v19573_v48, 16 }
 0x69a   : > { %v9438_v47 = vsel %vm6727_vm12, %v9428_v30, %v9437_v44  ;;  %v9469_v30 = vrot.slane %v18485_v1, 3 }
 0x69f   : > { %13523 = vmatmul.mubr.bf16.gmra.mrb[24].mxu1 %v9402_v37  ;;  %v9447_v37 = vsel %vm6727_vm12, %v9437_v44, %v9446_v32  ;;  %v9481_v44 = vrot.slane %v19575_v35, 4 }
 0x6a0   : > { %13526 = vmatprep.mubr.bf16.mxu1 %v9411_v36  ;;  %v9455_v36 = vor.u32 %v9454_v62, %v9451_v31  ;;  %v9488_v31 = vshll.u32 %v18730_v51, 16 }
 0x6a2   : > { %v9456_v20 = vsel %vm6727_vm12, %v9446_v32, %v9455_v36  ;;  %v9465_v39 = vsel %vm6727_vm12, %v9455_v36, %v9464_v50  ;;  %v9490_v63 = vrot.slane %v9488_v31, 4 }
 0x6a7   : > { %13527 = vmatmul.mubr.bf16.gmra.mrb[28].mxu1 %v9420_v45  ;;  %v9472_v45 = vrot.slane %v18492_v23, 4 }
 0x6a8   : > { %13530 = vmatprep.mubr.bf16.mxu1 %v9429_v14  ;;  %v19574_v14 = vshrl.u32 %v19573_v48, 16  ;;  %v19576_v48 = vld [vmem:[#allocation8_spill] sm:$0xff] }
 0x6a9   : > { %v9473_v62 = vor.u32 %v9472_v45, %v9469_v30  ;;  %v9882_v35 = vrot.slane %v19576_v48, 4  ;;  %v19578_v45 = vld [vmem:[#allocation9_spill] sm:$0xff]  ;;  %v14815_v48 = vld [vmem:[%s19076_s3 + $0x220] sm:$0xff]  }
 0x6aa   : > { %v9478_v5 = vrot.slane %v19574_v14, 3  ;;  %v18744_v14 = vld [vmem:[#allocation2 + $0x18] sm:$0xf0] }
 0x6ab   : > { %v9474_v17 = vsel %vm6727_vm12, %v9464_v50, %v9473_v62  ;;  %v9881_v23 = vrot.slane %v18744_v14, 4  ;;  %v19579_v50 = vld [vmem:[#allocation7_spill] sm:$0xff] }
 0x6ac   : > { %v9482_v32 = vor.u32 %v9481_v44, %v9478_v5  ;;  %v9884_v5 = vrot.slane %v19578_v45, 4  ;;  %v9886_v44 = vrot.slane %v19579_v50, 4 }
 0x6ad   : > { %v9883_v30 = vsel %vm19577_vm7, %v9881_v23, %v9882_v35  ;;  %v14813_v23 = vld [vmem:[%s19076_s3 + $0x210] sm:$0xff]   ;;  %vm19608_vm7 = vmmov %vm19581_vm0 }
 0x6ae   : > { %v9483_v36 = vsel %vm6727_vm12, %v9473_v62, %v9482_v32  ;;  %v9885_v31 = vsel %vm19580_vm9, %v9882_v35, %v9884_v5  ;;  %v9887_v62 = vsel %vm19581_vm0, %v9884_v5, %v9886_v44  ;;  %v19586_v35 = vld [vmem:[#allocation10_spill] sm:$0xff]  ;;  %v14816_v5 = vld [vmem:[%s19076_s3 + $0x228] sm:$0xff]   ;;  %vm19609_vm9 = vmmov %vm19581_vm0 }
 0x6af   : > { %13531 = vmatmul.mubr.bf16.gmra.mrb[32].mxu1 %v9438_v47  ;;  %v9485_v47 = vshrl.u32 %v18730_v51, 16 }
 0x6b0   : > { %13534 = vmatprep.mubr.bf16.mxu1 %v9447_v37 }
 0x6b1   : > { %v9487_v37 = vrot.slane %v9485_v47, 3  ;;  %v14812_v47 = vld [vmem:[%s19076_s3 + $0x208] sm:$0xff]  }
 0x6b7   : > { %13535 = vmatmul.mubr.bf16.gmra.mrb[36].mxu1 %v9456_v20  ;;  %v9491_v20 = vor.u32 %v9490_v63, %v9487_v37  ;;  %v19583_v63 = vld [vmem:[#allocation3_spill] sm:$0xff] }
 0x6b8   : > { %13538 = vmatprep.mubr.bf16.mxu1 %v9465_v39 }
 0x6b9   : > { %v9492_v39 = vsel %vm6727_vm12, %v9482_v32, %v9491_v20  ;;  %v19582_v32 = vld [vmem:[#allocation4_spill] sm:$0xff]  ;;  %vm19584_vm12 = vmmov %vm19581_vm0 }
 0x6ba   : > { %v9888_v37 = vrot.slane %v19582_v32, 4 }
 0x6bc   : > { %v9889_v20 = vsel %vm19584_vm12, %v9886_v44, %v9888_v37  ;;  %vm19612_vm12 = vmmov %vm19581_vm0 }
 0x6bf   : > { %13539 = vmatmul.mubr.bf16.gmra.mrb[40].mxu1 %v9474_v17  ;;  %v9890_v17 = vrot.slane %v19583_v63, 4 }
 0x6c0   : > { %13542 = vmatprep.mubr.bf16.mxu1 %v9483_v36  ;;  %v14814_v36 = vld [vmem:[%s19076_s3 + $0x218] sm:$0xff]  }
 0x6c7   : > { %13543 = vmatmul.mubr.bf16.gmra.mrb[44].mxu1 %v9492_v39  ;;  %v9892_v39 = vrot.slane %v19586_v35, 4 }
 0x6c8   : > { %13562 = vmatprep.mubr.bf16.mxu1 %v9883_v30  ;;  %v19587_v30 = vld [vmem:[#allocation11_spill] sm:$0xff] }
 0x6c9   : > { %v9894_v45 = vrot.slane %v19587_v30, 4  ;;  %v9893_v50 = vsel %vm19588_vm2, %v9890_v17, %v9892_v39  ;;  %v19598_v30 = vld [vmem:[#allocation16_spill] sm:$0xff]  ;;  %vm19616_vm2 = vmmov %vm19581_vm0 }
 0x6cb   : > { %v9895_v44 = vsel %vm19589_vm3, %v9892_v39, %v9894_v45  ;;  %vm19618_vm3 = vmmov %vm19581_vm0 }
 0x6cf   : > { %13563 = vmatmul.mubr.bf16.vlgmr.msra.gmra.mrb[0].mxu1 %v9885_v31  ;;  %v19590_v31 = vld [vmem:[#allocation12_spill] sm:$0xff] }
 0x6d0   : > { %13566 = vmatprep.mubr.bf16.mxu1 %v9887_v62  ;;  %13611 = vmatpush3.bf16.msra.mxu1 %v18697_v3  ;;  %v9891_v3 = vsel %vm19585_vm4, %v9888_v37, %v9890_v17  ;;  %v9896_v62 = vrot.slane %v19590_v31, 4  ;;  %v14818_v37 = vld [vmem:[%s19076_s3 + $0x238] sm:$0xff]   ;;  %v19602_v31 = vld [vmem:[#allocation20_spill] sm:$0xff]  ;;  %vm19615_vm4 = vmmov %vm19581_vm0 }
 0x6d1   : > { %13612 = vmatprep.subr.bf16.mxu1 %v14812_v47 }
 0x6d2   : > { %v9897_v63 = vsel %vm19592_vm5, %v9894_v45, %v9896_v62  ;;  %v19599_v45 = vld [vmem:[#allocation17_spill] sm:$0xff]  ;;  %vm19619_vm5 = vmmov %vm19581_vm0 }
 0x6d4   : > { %13613 = vmatpush3.bf16.msra.mxu1 %v14812_v47  ;;  %v14817_v47 = vld [vmem:[%s19076_s3 + $0x230] sm:$0xff]  }
 0x6d5   : > { %13614 = vmatprep.subr.bf16.mxu1 %v14813_v23 }
 0x6d7   : > { %13567 = vmatmul.mubr.bf16.gmra.mrb[4].mxu1 %v9889_v20 }
 0x6d8   : > { %13570 = vmatprep.mubr.bf16.mxu1 %v9891_v3  ;;  %13615 = vmatpush3.bf16.msra.mxu1 %v14813_v23  ;;  %v19591_v23 = vld [vmem:[#allocation13_spill] sm:$0xff]  ;;  %v19595_v3 = vld [vmem:[#allocation15_spill] sm:$0xff] }
 0x6d9   : > { %13616 = vmatprep.subr.bf16.mxu1 %v14814_v36  ;;  %v9898_v32 = vrot.slane %v19591_v23, 4  ;;  %v19603_v23 = vld [vmem:[#allocation21_spill] sm:$0xff] }
 0x6db   : > { %v9899_v17 = vsel %vm19593_vm13, %v9896_v62, %v9898_v32  ;;  %v9908_v62 = vrot.slane %v19602_v31, 4  ;;  %vm19620_vm13 = vmmov %vm19581_vm0 }
 0x6dc   : > { %13617 = vmatpush3.bf16.msra.mxu1 %v14814_v36  ;;  %v19594_v36 = vld [vmem:[#allocation14_spill] sm:$0xff] }
 0x6dd   : > { %13618 = vmatprep.subr.bf16.mxu1 %v14815_v48  ;;  %v9900_v20 = vrot.slane %v19594_v36, 4 }
 0x6df   : > { %13571 = vmatmul.mubr.bf16.gmra.mrb[8].mxu1 %v9893_v50  ;;  %v9901_v35 = vsel %vm19596_vm10, %v9898_v32, %v9900_v20  ;;  %v9906_v50 = vrot.slane %v19599_v45, 4 }
 0x6e0   : > { %13574 = vmatprep.mubr.bf16.mxu1 %v9895_v44  ;;  %13619 = vmatpush3.bf16.msra.mxu1 %v14815_v48  ;;  %v9902_v48 = vrot.slane %v19595_v3, 4 }
 0x6e1   : > { %13620 = vmatprep.subr.bf16.mxu1 %v14816_v5  ;;  %v9909_v32 = vsel %vm19604_vm11, %v9906_v50, %v9908_v62 }
 0x6e2   : > { %v9903_v39 = vsel %vm19597_vm14, %v9900_v20, %v9902_v48  ;;  %v19607_v20 = vld [vmem:[#allocation27_spill] sm:$0xff] }
 0x6e3   : > { %v9914_v3 = vrot.slane %v19607_v20, 4 }
 0x6e4   : > { %13621 = vmatpush3.bf16.msra.mxu1 %v14816_v5  ;;  %v9904_v5 = vrot.slane %v19598_v30, 4 }
 0x6e5   : > { %13622 = vmatprep.subr.bf16.mxu1 %v14817_v47 }
 0x6e6   : > { %v9905_v44 = vsel %vm19600_vm6, %v9902_v48, %v9904_v5 }
 0x6e7   : > { %13575 = vmatmul.mubr.bf16.gmra.mrb[12].mxu1 %v9897_v63 }
 0x6e8   : > { %13578 = vmatprep.mubr.bf16.mxu1 %v9899_v17  ;;  %13623 = vmatpush3.bf16.msra.mxu1 %v14817_v47  ;;  %v9907_v47 = vsel %vm19601_vm8, %v9904_v5, %v9906_v50  ;;  %v19606_v17 = vld [vmem:[#allocation25_spill] sm:$0xff] }
 0x6e9   : > { %13624 = vmatprep.subr.bf16.mxu1 %v14818_v37  ;;  %v9912_v36 = vrot.slane %v19606_v17, 4  ;;  %v19611_v5 = vld [vmem:[#allocation33_spill] sm:$0xff] }
 0x6ea   : > { %v9918_v45 = vrot.slane %v19611_v5, 4  ;;  %v10302_v5 = vrot.slane %v18235_v55, 5  ;;  %v10310_v55 = vrot.slane %v18261_v53, 5 }
 0x6ec   : > { %13625 = vmatpush3.bf16.msra.mxu1 %v14818_v37  ;;  %v9910_v37 = vrot.slane %v19603_v23, 4 }
 0x6ee   : > { %v9911_v63 = vsel %vm19605_vm15, %v9908_v62, %v9910_v37  ;;  %v9913_v48 = vsel %vm19608_vm7, %v9910_v37, %v9912_v36  ;;  %v19614_v62 = vld [vmem:[#allocation39_spill] sm:$0xff] }
 0x6ef   : > { %13579 = vmatmul.mubr.bf16.gmra.mrb[16].mxu1 %v9901_v35  ;;  %v9915_v35 = vsel %vm19609_vm9, %v9912_v36, %v9914_v3  ;;  %v9922_v23 = vrot.slane %v19614_v62, 4  ;;  %v14845_v36 = vld [vmem:[#allocation2] sm:$0xff] }
 0x6f0   : > { %13582 = vmatprep.mubr.bf16.mxu1 %v9903_v39  ;;  %v19610_v39 = vld [vmem:[#allocation31_spill] sm:$0xff]  ;;  %v9926_v20 = vrot.slane %v14845_v36, 4  ;;  %v10314_v36 = vrot.slane %v18284_v33, 5  ;;  %v10325_v33 = vrot.slane %v18300_v54, 4 }
 0x6f1   : > { %v9916_v30 = vrot.slane %v19610_v39, 4 }
 0x6f3   : > { %v9917_v50 = vsel %vm19581_vm0, %v9914_v3, %v9916_v30  ;;  %v10294_v3 = vshrl.u32 %v18744_v14, 16 }
 0x6f7   : > { %13583 = vmatmul.mubr.bf16.gmra.mrb[20].mxu1 %v9905_v44  ;;  %v9919_v44 = vsel %vm19612_vm12, %v9916_v30, %v9918_v45  ;;  %v10301_v30 = vrot.slane %v18222_v59, 4  ;;  %v10309_v59 = vrot.slane %v18244_v29, 4 }
 0x6f8   : > { %13586 = vmatprep.mubr.bf16.mxu1 %v9907_v47  ;;  %v19613_v47 = vld [vmem:[#allocation37_spill] sm:$0xff] }
 0x6f9   : > { %v9920_v31 = vrot.slane %v19613_v47, 4  ;;  %v10303_v47 = vor.u32 %v10302_v5, %v10301_v30  ;;  %v10329_v5 = vrot.slane %v18324_v2, 4 }
 0x6fb   : > { %v9921_v37 = vsel %vm19615_vm4, %v9918_v45, %v9920_v31  ;;  %v9928_v45 = vrot.slane %v18730_v51, 4  ;;  %v10311_v51 = vor.u32 %v10310_v55, %v10309_v59  ;;  %v10350_v59 = vrot.slane %v19545_v57, 5 }
 0x6ff   : > { %13587 = vmatmul.mubr.bf16.gmra.mrb[24].mxu1 %v9909_v32  ;;  %v9923_v32 = vsel %vm19616_vm2, %v9920_v31, %v9922_v23  ;;  %v9929_v31 = vsel %vm19620_vm13, %v9926_v20, %v9928_v45  ;;  %v10330_v45 = vrot.slane %v18340_v60, 5  ;;  %v10341_v60 = vrot.slane %v18358_v22, 4 }
 0x700   : > { %13590 = vmatprep.mubr.bf16.mxu1 %v9911_v63  ;;  %v19617_v63 = vld [vmem:[#allocation43_spill] sm:$0xff] }
 0x701   : > { %v9924_v17 = vrot.slane %v19617_v63, 4  ;;  %v10331_v54 = vor.u32 %v10330_v45, %v10329_v5 }
 0x703   : > { %v9927_v39 = vsel %vm19619_vm5, %v9924_v17, %v9926_v20  ;;  %v10318_v20 = vrot.slane %v18289_v61, 5 }
 0x707   : > { %13591 = vmatmul.mubr.bf16.gmra.mrb[28].mxu1 %v9913_v48  ;;  %v10297_v48 = vshll.u32 %v18744_v14, 16  ;;  %v10305_v14 = vrot.slane %v18240_v4, 4 }
 0x708   : > { %13594 = vmatprep.mubr.bf16.mxu1 %v9915_v35  ;;  %v9925_v35 = vsel %vm19618_vm3, %v9922_v23, %v9924_v17  ;;  %v10306_v23 = vrot.slane %v18256_v18, 5  ;;  %v10313_v17 = vrot.slane %v18268_v15, 4  ;;  %v10317_v18 = vrot.slane %v18272_v28, 4 }
 0x70a   : > { %v10315_v29 = vor.u32 %v10314_v36, %v10313_v17  ;;  %v10361_v36 = vrot.slane %v19559_v13, 4 }
 0x70c   : > { %v10316_v53 = vsel %vm7267_vm1, %v10311_v51, %v10315_v29 }
 0x70f   : > { %13595 = vmatmul.mubr.bf16.gmra.mrb[32].mxu1 %v9917_v50  ;;  %v10296_v50 = vrot.slane %v10294_v3, 4  ;;  %v10319_v3 = vor.u32 %v10318_v20, %v10317_v18  ;;  %v10366_v18 = vrot.slane %v19557_v43, 5 }
 0x710   : > { %13598 = vmatprep.mubr.bf16.mxu1 %v9919_v44  ;;  %v10299_v44 = vrot.slane %v10297_v48, 5  ;;  %v10321_v48 = vrot.slane %v18296_v34, 4 }
 0x711   : > { %v10320_v15 = vsel %vm7267_vm1, %v10315_v29, %v10319_v3  ;;  %v10369_v29 = vrot.slane %v19565_v12, 4 }
 0x712   : > { %v10300_v62 = vor.u32 %v10299_v44, %v10296_v50  ;;  %v10334_v50 = vrot.slane %v18345_v9, 5 }
 0x717   : > { %13599 = vmatmul.mubr.bf16.gmra.mrb[36].mxu1 %v9921_v37  ;;  %v10304_v37 = vsel %vm7267_vm1, %v10300_v62, %v10303_v47  ;;  %v10342_v62 = vrot.slane %v18373_v41, 5 }
 0x718   : > { %13602 = vmatprep.mubr.bf16.mxu1 %v9923_v32  ;;  %v10307_v32 = vor.u32 %v10306_v23, %v10305_v14  ;;  %v10345_v23 = vrot.slane %v19547_v11, 4 }
 0x719   : > { %v10343_v14 = vor.u32 %v10342_v62, %v10341_v60 }
 0x71a   : > { %v10308_v63 = vsel %vm7267_vm1, %v10303_v47, %v10307_v32  ;;  %v10312_v4 = vsel %vm7267_vm1, %v10307_v32, %v10311_v51  ;;  %v10337_v47 = vrot.slane %v18354_v26, 4  ;;  %v10353_v32 = vrot.slane %v19553_v46, 4 }
 0x71b   : > { %v10354_v51 = vrot.slane %v19548_v19, 5  ;;  %v10365_v19 = vrot.slane %v19558_v56, 4 }
 0x71d   : > { %v10367_v20 = vor.u32 %v10366_v18, %v10365_v19 }
 0x71f   : > { %13603 = vmatmul.mubr.bf16.gmra.mrb[40].mxu1 %v9925_v35  ;;  %v10322_v35 = vrot.slane %v18312_v8, 5  ;;  %v10333_v8 = vrot.slane %v18328_v42, 4 }
 0x720   : > { %13606 = vmatprep.mubr.bf16.mxu1 %v9927_v39  ;;  %v10326_v39 = vrot.slane %v18317_v21, 5 }
 0x721   : > { %v10323_v28 = vor.u32 %v10322_v35, %v10321_v48  ;;  %v10335_v44 = vor.u32 %v10334_v50, %v10333_v8  ;;  %v10377_v35 = vrot.slane %v19569_v6, 4  ;;  %v19622_v50 = vld [vmem:[#allocation6_spill] sm:$0xff] }
 0x722   : > { %v10327_v30 = vor.u32 %v10326_v39, %v10325_v33  ;;  %v10382_v33 = vrot.slane %v18481_v49, 5 }
 0x723   : > { %v10324_v61 = vsel %vm7267_vm1, %v10319_v3, %v10323_v28  ;;  %v10336_v2 = vsel %vm7267_vm1, %v10331_v54, %v10335_v44  ;;  %v10370_v3 = vrot.slane %v19560_v58, 5  ;;  %v10381_v58 = vrot.slane %v19568_v24, 4 }
 0x724   : > { %v10328_v34 = vsel %vm7267_vm1, %v10323_v28, %v10327_v30  ;;  %v10332_v21 = vsel %vm7267_vm1, %v10327_v30, %v10331_v54  ;;  %v10385_v30 = vrot.slane %v18485_v1, 4 }
 0x725   : > { %v10371_v56 = vor.u32 %v10370_v3, %v10369_v29  ;;  %v10383_v39 = vor.u32 %v10382_v33, %v10381_v58 }
 0x727   : > { %13607 = vmatmul.mubr.bf16.gmra.mrb[44].mxu1 %v9929_v31  ;;  %v10338_v31 = vrot.slane %v18368_v40, 5  ;;  %v10349_v40 = vrot.slane %v19546_v25, 4  ;;  %v10355_v25 = vor.u32 %v10354_v51, %v10353_v32  ;;  %v10372_v43 = vsel %vm7267_vm1, %v10367_v20, %v10371_v56 }
 0x728   : > { %13626 = vmatprep.mubr.bf16.mxu1 %v10304_v37  ;;  %v10346_v37 = vrot.slane %v18390_v7, 5  ;;  %v10357_v7 = vrot.slane %v19552_v10, 4 }
 0x729   : > { %v10339_v42 = vor.u32 %v10338_v31, %v10337_v47  ;;  %v10351_v55 = vor.u32 %v10350_v59, %v10349_v40  ;;  %v11924_v47 = vld [vmem:[%s14908_s29 + $0x18] sm:$0xff]   ;;  %v10747_v31 = vld [vmem:[%s14908_s29 + $0xc] sm:$0xf]  ;;  %v11925_v40 = vld [vmem:[%s14908_s29 + $0x20] sm:$0xff]  }
 0x72a   : > { %v10347_v22 = vor.u32 %v10346_v37, %v10345_v23  ;;  %v11837_v60 = vunpack.c.l.bf16 %v11924_v47  ;;  %v11926_v59 = vld [vmem:[%s14908_s29 + $0x28] sm:$0xff]   ;;  %v11842_v51 = vunpack.c.h.bf16 %v11925_v40 }
 0x72b   : > { %v10340_v9 = vsel %vm7267_vm1, %v10335_v44, %v10339_v42  ;;  %v10344_v26 = vsel %vm7267_vm1, %v10339_v42, %v10343_v14  ;;  %v10356_v57 = vsel %vm7267_vm1, %v10351_v55, %v10355_v25  ;;  %v10796_v42 = vunpack.c.l.bf16 %v10747_v31 }
 0x72c   : > { %v10348_v41 = vsel %vm7267_vm1, %v10343_v14, %v10347_v22  ;;  %v10352_v11 = vsel %vm7267_vm1, %v10347_v22, %v10351_v55  ;;  %v11838_v14 = vunpack.c.h.bf16 %v11924_v47  ;;  %v10955_v23 = vrot.slane %v11837_v60, 1  ;;  %v18897_v22 = vld [vmem:[%s19077_s4] ss:$0 sm:$0xff] }
 0x72d   : > { %v10950_v37 = vrot.slane %v10796_v42, 1  ;;  %v10961_v3 = vrot.slane %v11842_v51, 1  ;;  %v11930_v42 = vld [vmem:[%s14908_s29 + $0x48] sm:$0xff]  }
 0x72e   : > { %v10957_v55 = vrot.slane %v11838_v14, 1 }
 0x72f   : > { %13627 = vmatmul.mubr.bf16.vlgmr.msra.gmra.mrb[0].mxu1 %v10308_v63  ;;  %v10358_v63 = vrot.slane %v19551_v0, 5 }
 0x730   : > { %13630 = vmatprep.mubr.bf16.mxu1 %v10312_v4  ;;  %v10362_v4 = vrot.slane %v19554_v16, 5  ;;  %v10373_v16 = vrot.slane %v19564_v27, 4 }
 0x731   : > { %v10359_v17 = vor.u32 %v10358_v63, %v10357_v7 }
 0x732   : > { %v10363_v10 = vor.u32 %v10362_v4, %v10361_v36 }
 0x733   : > { %v10360_v46 = vsel %vm7267_vm1, %v10355_v25, %v10359_v17 }
 0x734   : > { %v10364_v0 = vsel %vm7267_vm1, %v10359_v17, %v10363_v10  ;;  %v10368_v13 = vsel %vm7267_vm1, %v10363_v10, %v10367_v20  ;;  %v11841_v17 = vunpack.c.l.bf16 %v11925_v40 }
 0x737   : > { %13631 = vmatmul.mubr.bf16.gmra.mrb[4].mxu1 %v10316_v53  ;;  %v10374_v53 = vrot.slane %v19563_v38, 5  ;;  %v10275_v38 = vld [vmem:[#allocation2 + $0xd8] sm:$0x1f] }
 0x738   : > { %13634 = vmatprep.mubr.bf16.mxu1 %v10320_v15  ;;  %v10378_v15 = vrot.slane %v18478_v52, 5  ;;  %v10394_v52 = vshrl.u32 %v10275_v38, 16  ;;  %v10397_v24 = vshll.u32 %v10275_v38, 16 }
 0x739   : > { %v10375_v48 = vor.u32 %v10374_v53, %v10373_v16 }
 0x73a   : > { %v10379_v27 = vor.u32 %v10378_v15, %v10377_v35  ;;  %v10396_v45 = vrot.slane %v10394_v52, 4 }
 0x73b   : > { %v10376_v12 = vsel %vm7267_vm1, %v10371_v56, %v10375_v48  ;;  %v10959_v56 = vrot.slane %v11841_v17, 1 }
 0x73c   : > { %v10380_v28 = vsel %vm7267_vm1, %v10375_v48, %v10379_v27  ;;  %v10384_v6 = vsel %vm7267_vm1, %v10379_v27, %v10383_v39  ;;  %v11927_v48 = vld [vmem:[%s14908_s29 + $0x30] sm:$0xff]  }
 0x73d   : > { %v11850_v38 = vunpack.c.h.bf16 %v11927_v48 }
 0x73f   : > { %13635 = vmatmul.mubr.bf16.gmra.mrb[8].mxu1 %v10324_v61  ;;  %v19621_v61 = vld [vmem:[#allocation44_spill] sm:$0xff] }
 0x740   : > { %13638 = vmatprep.mubr.bf16.mxu1 %v10328_v34  ;;  %v10386_v5 = vrot.slane %v19621_v61, 5  ;;  %v10399_v34 = vrot.slane %v10397_v24, 5 }
 0x742   : > { %v10387_v49 = vor.u32 %v10386_v5, %v10385_v30  ;;  %v10400_v54 = vor.u32 %v10399_v34, %v10396_v45 }
 0x744   : > { %v10388_v8 = vsel %vm7267_vm1, %v10383_v39, %v10387_v49  ;;  %v10392_v1 = vsel %vm7267_vm1, %v10387_v49, %v19622_v50  ;;  %v10401_v44 = vsel %vm7267_vm1, %v19622_v50, %v10400_v54  ;;  %vm19623_vm1 = vcmask 1046528  }
 0x745   : > { %vm19624_vm10 = vmmov %vm19623_vm1 }
 0x746   : > { %vm19625_vm14 = vmmov %vm19623_vm1 }
 0x747   : > { %13639 = vmatmul.mubr.bf16.gmra.mrb[12].mxu1 %v10332_v21  ;;  %v11923_v21 = vld [vmem:[%s14908_s29 + $0x10] sm:$0xff]   ;;  %v10958_v4 = vsel %vm19625_vm14, %v10955_v23, %v10957_v55  ;;  %vm19626_vm6 = vmmov %vm19623_vm1 }
 0x748   : > { %13642 = vmatprep.mubr.bf16.mxu1 %v10336_v2  ;;  %v11834_v2 = vunpack.c.h.bf16 %v11923_v21  ;;  %v11833_v62 = vunpack.c.l.bf16 %v11923_v21  ;;  %vm19627_vm8 = vmmov %vm19623_vm1  ;;  %v10969_v21 = vrot.slane %v11850_v38, 1 }
 0x749   : > { %vm19628_vm11 = vmmov %vm19623_vm1 }
 0x74a   : > { %v10960_v5 = vsel %vm19628_vm11, %v10957_v55, %v10959_v56  ;;  %vm19629_vm15 = vmmov %vm19623_vm1 }
 0x74b   : > { %vm19630_vm7 = vmmov %vm19623_vm1 }
 0x74c   : > { %vm19631_vm9 = vmmov %vm19623_vm1 }
 0x74d   : > { %vm19632_vm0 = vmmov %vm19623_vm1 }
 0x74e   : > { %vm19633_vm12 = vmmov %vm19632_vm0 }
 0x74f   : > { %13643 = vmatmul.mubr.bf16.gmra.mrb[16].mxu1 %v10340_v9  ;;  %v10953_v9 = vrot.slane %v11834_v2, 1  ;;  %vm19634_vm4 = vmmov %vm19632_vm0 }
 0x750   : > { %13646 = vmatprep.mubr.bf16.mxu1 %v10344_v26  ;;  %v10951_v26 = vrot.slane %v11833_v62, 1  ;;  %v11929_v62 = vld [vmem:[%s14908_s29 + $0x40] sm:$0xff]   ;;  %vm19635_vm2 = vmmov %vm19632_vm0 }
 0x751   : > { %v10956_v32 = vsel %vm19623_vm1, %v10953_v9, %v10955_v23  ;;  %v11858_v55 = vunpack.c.h.bf16 %v11929_v62  ;;  %vm19636_vm3 = vmmov %vm19632_vm0 }
 0x752   : > { %v10952_v25 = vsel %vm19624_vm10, %v10950_v37, %v10951_v26  ;;  %v10954_v20 = vsel %vm19626_vm6, %v10951_v26, %v10953_v9  ;;  %vm19637_vm5 = vmmov %vm19632_vm0 }
 0x753   : > { %vm19638_vm13 = vmmov %vm19632_vm0 }
 0x754   : > { %vm19639_vm1 = vmmov %vm19632_vm0 }
 0x755   : > { %vm19640_vm10 = vmmov %vm19632_vm0 }
 0x756   : > { %vm19641_vm14 = vmmov %vm19632_vm0 }
 0x757   : > { %13647 = vmatmul.mubr.bf16.gmra.mrb[20].mxu1 %v10348_v41  ;;  %vm19642_vm6 = vmmov %vm19632_vm0 }
 0x758   : > { %13650 = vmatprep.mubr.bf16.mxu1 %v10352_v11  ;;  %v11845_v11 = vunpack.c.l.bf16 %v11926_v59  ;;  %vm19644_vm11 = vmmov %vm19632_vm0 }
 0x75f   : > { %13651 = vmatmul.mubr.bf16.gmra.mrb[24].mxu1 %v10356_v57 }
 0x760   : > { %13654 = vmatprep.mubr.bf16.mxu1 %v10360_v46  ;;  %v11846_v46 = vunpack.c.h.bf16 %v11926_v59 }
 0x767   : > { %13655 = vmatmul.mubr.bf16.gmra.mrb[28].mxu1 %v10364_v0 }
 0x768   : > { %13658 = vmatprep.mubr.bf16.mxu1 %v10368_v13  ;;  %v10963_v13 = vrot.slane %v11845_v11, 1 }
 0x76a   : > { %v10964_v39 = vsel %vm19627_vm8, %v10961_v3, %v10963_v13  ;;  %vm19643_vm8 = vmmov %vm19632_vm0 }
 0x76f   : > { %13659 = vmatmul.mubr.bf16.gmra.mrb[32].mxu1 %v10372_v43  ;;  %v11928_v43 = vld [vmem:[%s14908_s29 + $0x38] sm:$0xff]  }
 0x770   : > { %13662 = vmatprep.mubr.bf16.mxu1 %v10376_v12  ;;  %v10965_v12 = vrot.slane %v11846_v46, 1  ;;  %v11854_v45 = vunpack.c.h.bf16 %v11928_v43 }
 0x772   : > { %v10966_v49 = vsel %vm19629_vm15, %v10963_v13, %v10965_v12  ;;  %v10973_v23 = vrot.slane %v11854_v45, 1  ;;  %vm19645_vm15 = vmmov %vm19632_vm0 }
 0x777   : > { %13663 = vmatmul.mubr.bf16.gmra.mrb[36].mxu1 %v10380_v28  ;;  %v11853_v28 = vunpack.c.l.bf16 %v11928_v43 }
 0x778   : > { %13666 = vmatprep.mubr.bf16.mxu1 %v10384_v6  ;;  %v11849_v6 = vunpack.c.l.bf16 %v11927_v48 }
 0x779   : > { %v10971_v47 = vrot.slane %v11853_v28, 1 }
 0x77a   : > { %v10967_v60 = vrot.slane %v11849_v6, 1 }
 0x77b   : > { %v10972_v59 = vsel %vm19631_vm9, %v10969_v21, %v10971_v47  ;;  %v10974_v17 = vsel %vm19633_vm12, %v10971_v47, %v10973_v23  ;;  %vm19647_vm9 = vmmov %vm19632_vm0 }
 0x77c   : > { %v10968_v11 = vsel %vm19632_vm0, %v10965_v12, %v10967_v60  ;;  %vm19648_vm12 = vmmov %vm19632_vm0 }
 0x77f   : > { %13667 = vmatmul.mubr.bf16.gmra.mrb[40].mxu1 %v10388_v8 }
 0x780   : > { %13670 = vmatprep.mubr.bf16.mxu1 %v10392_v1  ;;  %v10962_v1 = vsel %vm19630_vm7, %v10959_v56, %v10961_v3  ;;  %vm19646_vm7 = vmmov %vm19632_vm0 }
 0x787   : > { %13671 = vmatmul.mubr.bf16.gmra.mrb[44].mxu1 %v10401_v44 }
 0x802   : > { %v13628_v41 = vpop.f32.mrb[0].mxu1 }
 0x803   : > { %v10854_v7 = vadd.f32 %v13628_v41, %v18897_v22  ;;  %v10508_v63 = vpop.f32.mrb[1].mxu1  ;;  %v11861_v41 = vunpack.c.l.bf16 %v11930_v42 }
 0x804   : > { %v10852_v57 = vadd.f32 %v18897_v22, %v10508_v63  ;;  %v13629_v36 = vpop.f32.mrb[2].mxu1 }
 0x805   : > { %v11097_v19 = vadd.f32 %v10956_v32, %v10854_v7  ;;  %v10855_v18 = vadd.f32 %v13629_v36, %v18897_v22  ;;  %v10511_v10 = vpop.f32.mrb[3].mxu1  ;;  %v11857_v7 = vunpack.c.l.bf16 %v11929_v62 }
 0x806   : > { %v11095_v0 = vadd.f32 %v10952_v25, %v10852_v57  ;;  %v10853_v29 = vadd.f32 %v18897_v22, %v10511_v10  ;;  %v11862_v57 = vunpack.c.h.bf16 %v11930_v42 }
 0x807   : > { %v11145_v16 = vmax.f32 %v11097_v19, 0.0  ;;  %v11098_v53 = vadd.f32 %v10958_v4, %v10855_v18  ;;  %v10970_v19 = vsel %vm19634_vm4, %v10967_v60, %v10969_v21  ;;  %v10975_v13 = vrot.slane %v11857_v7, 1  ;;  %vm19649_vm4 = vmmov %vm19632_vm0 }
 0x808   : > { %v11143_v35 = vmax.f32 %v11095_v0, 0.0  ;;  %v11096_v15 = vadd.f32 %v10954_v20, %v10853_v29  ;;  %v10977_v20 = vrot.slane %v11858_v55, 1  ;;  %v10979_v0 = vrot.slane %v11861_v41, 1 }
 0x809   : > { %11193 = vst [vmem:[%s18910_s11 + $0x10] sm:$0xff] %v11145_v16  ;;  %v11146_v58 = vmax.f32 %v11098_v53, 0.0  ;;  %v11931_v16 = vld [vmem:[%s14908_s29 + $0x50] sm:$0xff]   ;;  %v11932_v53 = vld [vmem:[%s14908_s29 + $0x58] sm:$0xff]   ;;  %v10981_v43 = vrot.slane %v11862_v57, 1  ;;  %v10976_v28 = vsel %vm19636_vm3, %v10973_v23, %v10975_v13  ;;  %vm19651_vm3 = vmmov %vm19632_vm0 }
 0x80a   : > { %11191 = vst [vmem:[%s18910_s11] sm:$0xff] %v11143_v35  ;;  %v11144_v33 = vmax.f32 %v11096_v15, 0.0  ;;  %v13632_v27 = vpop.f32.mrb[4].mxu1 }
 0x80b   : > { %11194 = vst [vmem:[%s18910_s11 + $0x18] sm:$0xff] %v11146_v58  ;;  %v10858_v30 = vadd.f32 %v13632_v27, %v18897_v22  ;;  %v10524_v61 = vpop.f32.mrb[5].mxu1  ;;  %v10980_v58 = vsel %vm19635_vm2, %v10977_v20, %v10979_v0  ;;  %v11869_v27 = vunpack.c.l.bf16 %v11932_v53  ;;  %v10982_v6 = vsel %vm19637_vm5, %v10979_v0, %v10981_v43  ;;  %vm19650_vm2 = vmmov %vm19632_vm0 }
 0x80c   : > { %11192 = vst [vmem:[%s18910_s11 + $0x8] sm:$0xff] %v11144_v33  ;;  %v10856_v52 = vadd.f32 %v18897_v22, %v10524_v61  ;;  %v13633_v24 = vpop.f32.mrb[6].mxu1  ;;  %v11866_v33 = vunpack.c.h.bf16 %v11931_v16  ;;  %vm19652_vm5 = vmmov %vm19632_vm0 }
 0x80d   : > { %v11101_v34 = vadd.f32 %v10964_v39, %v10858_v30  ;;  %v10859_v8 = vadd.f32 %v13633_v24, %v18897_v22  ;;  %v10527_v50 = vpop.f32.mrb[7].mxu1  ;;  %v11865_v30 = vunpack.c.l.bf16 %v11931_v16 }
 0x80e   : > { %v11099_v54 = vadd.f32 %v10960_v5, %v10856_v52  ;;  %v10857_v44 = vadd.f32 %v18897_v22, %v10527_v50  ;;  %v11870_v52 = vunpack.c.h.bf16 %v11932_v53 }
 0x80f   : > { %v11149_v31 = vmax.f32 %v11101_v34, 0.0  ;;  %v11102_v2 = vadd.f32 %v10966_v49, %v10859_v8  ;;  %v10978_v34 = vsel %vm19638_vm13, %v10975_v13, %v10977_v20  ;;  %v10983_v47 = vrot.slane %v11865_v30, 1  ;;  %vm19653_vm13 = vmmov %vm19632_vm0 }
 0x810   : > { %v11147_v14 = vmax.f32 %v11099_v54, 0.0  ;;  %v11100_v9 = vadd.f32 %v10962_v1, %v10857_v44  ;;  %v10985_v1 = vrot.slane %v11866_v33, 1  ;;  %v10987_v54 = vrot.slane %v11869_v27, 1 }
 0x811   : > { %11197 = vst [vmem:[%s18910_s11 + $0x30] sm:$0xff] %v11149_v31  ;;  %v11150_v37 = vmax.f32 %v11102_v2, 0.0  ;;  %v11933_v31 = vld [vmem:[%s14908_s29 + $0x60] sm:$0xff]   ;;  %v11934_v2 = vld [vmem:[%s14908_s29 + $0x68] sm:$0xff]   ;;  %v10989_v42 = vrot.slane %v11870_v52, 1  ;;  %v10984_v41 = vsel %vm19640_vm10, %v10981_v43, %v10983_v47  ;;  %vm19655_vm10 = vmmov %vm19632_vm0 }
 0x812   : > { %11195 = vst [vmem:[%s18910_s11 + $0x20] sm:$0xff] %v11147_v14  ;;  %v11148_v26 = vmax.f32 %v11100_v9, 0.0  ;;  %v13636_v40 = vpop.f32.mrb[8].mxu1 }
 0x813   : > { %11198 = vst [vmem:[%s18910_s11 + $0x38] sm:$0xff] %v11150_v37  ;;  %v10862_v32 = vadd.f32 %v13636_v40, %v18897_v22  ;;  %v10540_v51 = vpop.f32.mrb[9].mxu1  ;;  %v10988_v37 = vsel %vm19639_vm1, %v10985_v1, %v10987_v54  ;;  %v11877_v40 = vunpack.c.l.bf16 %v11934_v2  ;;  %v10990_v7 = vsel %vm19641_vm14, %v10987_v54, %v10989_v42  ;;  %vm19654_vm1 = vmmov %vm19632_vm0 }
 0x814   : > { %11196 = vst [vmem:[%s18910_s11 + $0x28] sm:$0xff] %v11148_v26  ;;  %v10860_v63 = vadd.f32 %v18897_v22, %v10540_v51  ;;  %v13637_v25 = vpop.f32.mrb[10].mxu1  ;;  %v11874_v26 = vunpack.c.h.bf16 %v11933_v31  ;;  %vm19656_vm14 = vmmov %vm19632_vm0 }
 0x815   : > { %v11105_v36 = vadd.f32 %v10972_v59, %v10862_v32  ;;  %v10863_v4 = vadd.f32 %v13637_v25, %v18897_v22  ;;  %v10543_v46 = vpop.f32.mrb[11].mxu1  ;;  %v11873_v32 = vunpack.c.l.bf16 %v11933_v31 }
 0x816   : > { %v11103_v18 = vadd.f32 %v10968_v11, %v10860_v63  ;;  %v10861_v10 = vadd.f32 %v18897_v22, %v10543_v46  ;;  %v11878_v63 = vunpack.c.h.bf16 %v11934_v2 }
 0x817   : > { %v11153_v29 = vmax.f32 %v11105_v36, 0.0  ;;  %v11106_v3 = vadd.f32 %v10974_v17, %v10863_v4  ;;  %v10986_v36 = vsel %vm19642_vm6, %v10983_v47, %v10985_v1  ;;  %v10991_v0 = vrot.slane %v11873_v32, 1  ;;  %vm19657_vm6 = vmmov %vm19632_vm0 }
 0x818   : > { %v11151_v56 = vmax.f32 %v11103_v18, 0.0  ;;  %v11104_v48 = vadd.f32 %v10970_v19, %v10861_v10  ;;  %v10993_v19 = vrot.slane %v11874_v26, 1  ;;  %v10995_v18 = vrot.slane %v11877_v40, 1 }
 0x819   : > { %11201 = vst [vmem:[%s18910_s11 + $0x50] sm:$0xff] %v11153_v29  ;;  %v11154_v35 = vmax.f32 %v11106_v3, 0.0  ;;  %v11935_v29 = vld [vmem:[%s14908_s29 + $0x70] sm:$0xff]   ;;  %v11936_v3 = vld [vmem:[%s14908_s29 + $0x78] sm:$0xff]   ;;  %v10997_v53 = vrot.slane %v11878_v63, 1  ;;  %v10992_v27 = vsel %vm19644_vm11, %v10989_v42, %v10991_v0  ;;  %vm19659_vm11 = vmmov %vm19632_vm0 }
 0x81a   : > { %11199 = vst [vmem:[%s18910_s11 + $0x40] sm:$0xff] %v11151_v56  ;;  %v11152_v15 = vmax.f32 %v11104_v48, 0.0  ;;  %v13640_v12 = vpop.f32.mrb[12].mxu1 }
 0x81b   : > { %11202 = vst [vmem:[%s18910_s11 + $0x58] sm:$0xff] %v11154_v35  ;;  %v10866_v39 = vadd.f32 %v13640_v12, %v18897_v22  ;;  %v10556_v38 = vpop.f32.mrb[13].mxu1  ;;  %v10996_v35 = vsel %vm19643_vm8, %v10993_v19, %v10995_v18  ;;  %v11885_v12 = vunpack.c.l.bf16 %v11936_v3  ;;  %v10998_v30 = vsel %vm19645_vm15, %v10995_v18, %v10997_v53  ;;  %vm19658_vm8 = vmmov %vm19632_vm0 }
 0x81c   : > { %11200 = vst [vmem:[%s18910_s11 + $0x48] sm:$0xff] %v11152_v15  ;;  %v10864_v61 = vadd.f32 %v18897_v22, %v10556_v38  ;;  %v13641_v5 = vpop.f32.mrb[14].mxu1  ;;  %v11882_v15 = vunpack.c.h.bf16 %v11935_v29  ;;  %vm19660_vm15 = vmmov %vm19632_vm0 }
 0x81d   : > { %v11109_v24 = vadd.f32 %v10980_v58, %v10866_v39  ;;  %v10867_v49 = vadd.f32 %v13641_v5, %v18897_v22  ;;  %v10559_v45 = vpop.f32.mrb[15].mxu1  ;;  %v11881_v39 = vunpack.c.l.bf16 %v11935_v29 }
 0x81e   : > { %v11107_v8 = vadd.f32 %v10976_v28, %v10864_v61  ;;  %v10865_v50 = vadd.f32 %v18897_v22, %v10559_v45  ;;  %v11886_v61 = vunpack.c.h.bf16 %v11936_v3 }
 0x81f   : > { %v11157_v44 = vmax.f32 %v11109_v24, 0.0  ;;  %v11110_v21 = vadd.f32 %v10982_v6, %v10867_v49  ;;  %v10994_v24 = vsel %vm19646_vm7, %v10991_v0, %v10993_v19  ;;  %v10999_v54 = vrot.slane %v11881_v39, 1  ;;  %vm19661_vm7 = vmmov %vm19632_vm0 }
 0x820   : > { %v11155_v60 = vmax.f32 %v11107_v8, 0.0  ;;  %v11108_v62 = vadd.f32 %v10978_v34, %v10865_v50  ;;  %v11001_v34 = vrot.slane %v11882_v15, 1  ;;  %v11003_v8 = vrot.slane %v11885_v12, 1 }
 0x821   : > { %11205 = vst [vmem:[%s18910_s11 + $0x70] sm:$0xff] %v11157_v44  ;;  %v11158_v14 = vmax.f32 %v11110_v21, 0.0  ;;  %v11937_v44 = vld [vmem:[%s14908_s29 + $0x80] sm:$0xff]   ;;  %v11938_v21 = vld [vmem:[%s14908_s29 + $0x88] sm:$0xff]   ;;  %v11005_v2 = vrot.slane %v11886_v61, 1  ;;  %v11000_v40 = vsel %vm19632_vm0, %v10997_v53, %v10999_v54 }
 0x822   : > { %11203 = vst [vmem:[%s18910_s11 + $0x60] sm:$0xff] %v11155_v60  ;;  %v11156_v9 = vmax.f32 %v11108_v62, 0.0  ;;  %v13644_v23 = vpop.f32.mrb[16].mxu1 }
 0x823   : > { %11206 = vst [vmem:[%s18910_s11 + $0x78] sm:$0xff] %v11158_v14  ;;  %v10870_v59 = vadd.f32 %v13644_v23, %v18897_v22  ;;  %v10572_v55 = vpop.f32.mrb[17].mxu1  ;;  %v11004_v14 = vsel %vm19647_vm9, %v11001_v34, %v11003_v8  ;;  %v11893_v23 = vunpack.c.l.bf16 %v11938_v21  ;;  %v11006_v32 = vsel %vm19648_vm12, %v11003_v8, %v11005_v2  ;;  %vm19662_vm9 = vmmov %vm19632_vm0 }
 0x824   : > { %11204 = vst [vmem:[%s18910_s11 + $0x68] sm:$0xff] %v11156_v9  ;;  %v10868_v51 = vadd.f32 %v18897_v22, %v10572_v55  ;;  %v13645_v11 = vpop.f32.mrb[18].mxu1  ;;  %v11890_v9 = vunpack.c.h.bf16 %v11937_v44  ;;  %vm19663_vm12 = vmmov %vm19632_vm0 }
 0x825   : > { %v11113_v25 = vadd.f32 %v10988_v37, %v10870_v59  ;;  %v10871_v17 = vadd.f32 %v13645_v11, %v18897_v22  ;;  %v10575_v57 = vpop.f32.mrb[19].mxu1  ;;  %v11889_v59 = vunpack.c.l.bf16 %v11937_v44 }
 0x826   : > { %v11111_v4 = vadd.f32 %v10984_v41, %v10868_v51  ;;  %v10869_v46 = vadd.f32 %v18897_v22, %v10575_v57  ;;  %v11894_v51 = vunpack.c.h.bf16 %v11938_v21 }
 0x827   : > { %v11161_v10 = vmax.f32 %v11113_v25, 0.0  ;;  %v11114_v20 = vadd.f32 %v10990_v7, %v10871_v17  ;;  %v11002_v25 = vsel %vm19649_vm4, %v10999_v54, %v11001_v34  ;;  %v11007_v18 = vrot.slane %v11889_v59, 1  ;;  %vm19664_vm4 = vmmov %vm19632_vm0 }
 0x828   : > { %v11159_v13 = vmax.f32 %v11111_v4, 0.0  ;;  %v11112_v16 = vadd.f32 %v10986_v36, %v10869_v46  ;;  %v11009_v36 = vrot.slane %v11890_v9, 1  ;;  %v11011_v4 = vrot.slane %v11893_v23, 1 }
 0x829   : > { %11209 = vst [vmem:[%s18910_s11 + $0x90] sm:$0xff] %v11161_v10  ;;  %v11162_v56 = vmax.f32 %v11114_v20, 0.0  ;;  %v11939_v10 = vld [vmem:[%s14908_s29 + $0x90] sm:$0xff]   ;;  %v11940_v20 = vld [vmem:[%s14908_s29 + $0x98] sm:$0xff]   ;;  %v11013_v3 = vrot.slane %v11894_v51, 1  ;;  %v11008_v12 = vsel %vm19651_vm3, %v11005_v2, %v11007_v18  ;;  %vm19666_vm3 = vmmov %vm19632_vm0 }
 0x82a   : > { %11207 = vst [vmem:[%s18910_s11 + $0x80] sm:$0xff] %v11159_v13  ;;  %v11160_v48 = vmax.f32 %v11112_v16, 0.0  ;;  %v13648_v43 = vpop.f32.mrb[20].mxu1 }
 0x82b   : > { %11210 = vst [vmem:[%s18910_s11 + $0x98] sm:$0xff] %v11162_v56  ;;  %v10874_v58 = vadd.f32 %v13648_v43, %v18897_v22  ;;  %v10588_v33 = vpop.f32.mrb[21].mxu1  ;;  %v11012_v56 = vsel %vm19650_vm2, %v11009_v36, %v11011_v4  ;;  %v11901_v43 = vunpack.c.l.bf16 %v11940_v20  ;;  %v11014_v39 = vsel %vm19652_vm5, %v11011_v4, %v11013_v3  ;;  %vm19665_vm2 = vmmov %vm19632_vm0 }
 0x82c   : > { %11208 = vst [vmem:[%s18910_s11 + $0x88] sm:$0xff] %v11160_v48  ;;  %v10872_v38 = vadd.f32 %v18897_v22, %v10588_v33  ;;  %v13649_v28 = vpop.f32.mrb[22].mxu1  ;;  %v11898_v48 = vunpack.c.h.bf16 %v11939_v10  ;;  %vm19667_vm5 = vmmov %vm19632_vm0 }
 0x82d   : > { %v11117_v5 = vadd.f32 %v10996_v35, %v10874_v58  ;;  %v10875_v6 = vadd.f32 %v13649_v28, %v18897_v22  ;;  %v10591_v52 = vpop.f32.mrb[23].mxu1  ;;  %v11897_v58 = vunpack.c.l.bf16 %v11939_v10 }
 0x82e   : > { %v11115_v49 = vadd.f32 %v10992_v27, %v10872_v38  ;;  %v10873_v45 = vadd.f32 %v18897_v22, %v10591_v52  ;;  %v11902_v38 = vunpack.c.h.bf16 %v11940_v20 }
 0x82f   : > { %v11165_v50 = vmax.f32 %v11117_v5, 0.0  ;;  %v11118_v1 = vadd.f32 %v10998_v30, %v10875_v6  ;;  %v11010_v5 = vsel %vm19653_vm13, %v11007_v18, %v11009_v36  ;;  %v11015_v8 = vrot.slane %v11897_v58, 1  ;;  %vm19668_vm13 = vmmov %vm19632_vm0 }
 0x830   : > { %v11163_v47 = vmax.f32 %v11115_v49, 0.0  ;;  %v11116_v31 = vadd.f32 %v10994_v24, %v10873_v45  ;;  %v11017_v24 = vrot.slane %v11898_v48, 1  ;;  %v11019_v49 = vrot.slane %v11901_v43, 1 }
 0x831   : > { %11213 = vst [vmem:[%s18910_s11 + $0xb0] sm:$0xff] %v11165_v50  ;;  %v11166_v60 = vmax.f32 %v11118_v1, 0.0  ;;  %v11941_v50 = vld [vmem:[%s14908_s29 + $0xa0] sm:$0xff]   ;;  %v11942_v1 = vld [vmem:[%s14908_s29 + $0xa8] sm:$0xff]   ;;  %v11021_v21 = vrot.slane %v11902_v38, 1  ;;  %v11016_v23 = vsel %vm19655_vm10, %v11013_v3, %v11015_v8 }
 0x832   : > { %11211 = vst [vmem:[%s18910_s11 + $0xa0] sm:$0xff] %v11163_v47  ;;  %v11164_v62 = vmax.f32 %v11116_v31, 0.0  ;;  %v13652_v42 = vpop.f32.mrb[24].mxu1 }
 0x833   : > { %11214 = vst [vmem:[%s18910_s11 + $0xb8] sm:$0xff] %v11166_v60  ;;  %v10878_v37 = vadd.f32 %v13652_v42, %v18897_v22  ;;  %v10604_v26 = vpop.f32.mrb[25].mxu1  ;;  %v11020_v60 = vsel %vm19654_vm1, %v11017_v24, %v11019_v49  ;;  %v11909_v42 = vunpack.c.l.bf16 %v11942_v1  ;;  %v11022_v59 = vsel %vm19656_vm14, %v11019_v49, %v11021_v21 }
 0x834   : > { %11212 = vst [vmem:[%s18910_s11 + $0xa8] sm:$0xff] %v11164_v62  ;;  %v10876_v55 = vadd.f32 %v18897_v22, %v10604_v26  ;;  %v13653_v41 = vpop.f32.mrb[26].mxu1  ;;  %v11906_v62 = vunpack.c.h.bf16 %v11941_v50 }
 0x835   : > { %v11121_v11 = vadd.f32 %v11004_v14, %v10878_v37  ;;  %v10879_v7 = vadd.f32 %v13653_v41, %v18897_v22  ;;  %v10607_v63 = vpop.f32.mrb[27].mxu1  ;;  %v11905_v37 = vunpack.c.l.bf16 %v11941_v50 }
 0x836   : > { %v11119_v17 = vadd.f32 %v11000_v40, %v10876_v55  ;;  %v10877_v57 = vadd.f32 %v18897_v22, %v10607_v63  ;;  %v11910_v55 = vunpack.c.h.bf16 %v11942_v1 }
 0x837   : > { %v11169_v46 = vmax.f32 %v11121_v11, 0.0  ;;  %v11122_v19 = vadd.f32 %v11006_v32, %v10879_v7  ;;  %v11018_v11 = vsel %vm19657_vm6, %v11015_v8, %v11017_v24  ;;  %v11023_v4 = vrot.slane %v11905_v37, 1 }
 0x838   : > { %v11167_v0 = vmax.f32 %v11119_v17, 0.0  ;;  %v11120_v29 = vadd.f32 %v11002_v25, %v10877_v57  ;;  %v11025_v25 = vrot.slane %v11906_v62, 1  ;;  %v11027_v17 = vrot.slane %v11909_v42, 1 }
 0x839   : > { %11217 = vst [vmem:[%s18910_s11 + $0xd0] sm:$0xff] %v11169_v46  ;;  %v11170_v13 = vmax.f32 %v11122_v19, 0.0  ;;  %v11943_v46 = vld [vmem:[%s14908_s29 + $0xb0] sm:$0xff]   ;;  %v11944_v19 = vld [vmem:[%s14908_s29 + $0xb8] sm:$0xff]   ;;  %v11029_v20 = vrot.slane %v11910_v55, 1  ;;  %v11024_v43 = vsel %vm19659_vm11, %v11021_v21, %v11023_v4 }
 0x83a   : > { %11215 = vst [vmem:[%s18910_s11 + $0xc0] sm:$0xff] %v11167_v0  ;;  %v11168_v16 = vmax.f32 %v11120_v29, 0.0  ;;  %v13656_v53 = vpop.f32.mrb[28].mxu1 }
 0x83b   : > { %11218 = vst [vmem:[%s18910_s11 + $0xd8] sm:$0xff] %v11170_v13  ;;  %v10882_v35 = vadd.f32 %v13656_v53, %v18897_v22  ;;  %v10620_v15 = vpop.f32.mrb[29].mxu1  ;;  %v11028_v13 = vsel %vm19658_vm8, %v11025_v25, %v11027_v17  ;;  %v11917_v53 = vunpack.c.l.bf16 %v11944_v19  ;;  %v11030_v58 = vsel %vm19660_vm15, %v11027_v17, %v11029_v20 }
 0x83c   : > { %11216 = vst [vmem:[%s18910_s11 + $0xc8] sm:$0xff] %v11168_v16  ;;  %v10880_v33 = vadd.f32 %v18897_v22, %v10620_v15  ;;  %v13657_v27 = vpop.f32.mrb[30].mxu1  ;;  %v11914_v16 = vunpack.c.h.bf16 %v11943_v46 }
 0x83d   : > { %v11125_v28 = vadd.f32 %v11012_v56, %v10882_v35  ;;  %v10883_v30 = vadd.f32 %v13657_v27, %v18897_v22  ;;  %v10623_v61 = vpop.f32.mrb[31].mxu1  ;;  %v11913_v35 = vunpack.c.l.bf16 %v11943_v46 }
 0x83e   : > { %v11123_v6 = vadd.f32 %v11008_v12, %v10880_v33  ;;  %v10881_v52 = vadd.f32 %v18897_v22, %v10623_v61  ;;  %v11918_v33 = vunpack.c.h.bf16 %v11944_v19 }
 0x83f   : > { %v11173_v45 = vmax.f32 %v11125_v28, 0.0  ;;  %v11126_v34 = vadd.f32 %v11014_v39, %v10883_v30  ;;  %v11026_v28 = vsel %vm19661_vm7, %v11023_v4, %v11025_v25  ;;  %v11031_v49 = vrot.slane %v11913_v35, 1 }
 0x840   : > { %v11171_v54 = vmax.f32 %v11123_v6, 0.0  ;;  %v11124_v44 = vadd.f32 %v11010_v5, %v10881_v52  ;;  %v11033_v5 = vrot.slane %v11914_v16, 1  ;;  %v11035_v6 = vrot.slane %v11917_v53, 1 }
 0x841   : > { %11221 = vst [vmem:[%s18910_s11 + $0xf0] sm:$0xff] %v11173_v45  ;;  %v11174_v47 = vmax.f32 %v11126_v34, 0.0  ;;  %v11945_v45 = vld [vmem:[%s14908_s29 + $0xc0] sm:$0xff]   ;;  %v10794_v34 = vld [vmem:[%s14908_s29 + $0xc8] sm:$0xf]  ;;  %v11037_v1 = vrot.slane %v11918_v33, 1 }
 0x842   : > { %11219 = vst [vmem:[%s18910_s11 + $0xe0] sm:$0xff] %v11171_v54  ;;  %v11172_v31 = vmax.f32 %v11124_v44, 0.0  ;;  %v13660_v2 = vpop.f32.mrb[32].mxu1  ;;  %v10795_v44 = vld [vmem:[%s14908_s29 + $0xcc] sm:$0x1] }
 0x843   : > { %11222 = vst [vmem:[%s18910_s11 + $0xf8] sm:$0xff] %v11174_v47  ;;  %v10886_v14 = vadd.f32 %v13660_v2, %v18897_v22  ;;  %v10636_v9 = vpop.f32.mrb[33].mxu1  ;;  %v11922_v2 = vunpack.c.h.bf16 %v11945_v45 }
 0x844   : > { %11220 = vst [vmem:[%s18910_s11 + $0xe8] sm:$0xff] %v11172_v31  ;;  %v10884_v26 = vadd.f32 %v18897_v22, %v10636_v9  ;;  %v13661_v40 = vpop.f32.mrb[34].mxu1  ;;  %v11036_v31 = vsel %vm19662_vm9, %v11033_v5, %v11035_v6  ;;  %v11921_v9 = vunpack.c.l.bf16 %v11945_v45 }
 0x845   : > { %v11129_v41 = vadd.f32 %v11020_v60, %v10886_v14  ;;  %v10887_v32 = vadd.f32 %v13661_v40, %v18897_v22  ;;  %v10639_v51 = vpop.f32.mrb[35].mxu1  ;;  %v10843_v60 = vunpack.c.l.bf16 %v10794_v34  ;;  %v11032_v14 = vsel %vm19632_vm0, %v11029_v20, %v11031_v49 }
 0x846   : > { %v11127_v7 = vadd.f32 %v11016_v23, %v10884_v26  ;;  %v10885_v63 = vadd.f32 %v18897_v22, %v10639_v51  ;;  %v11038_v26 = vsel %vm19663_vm12, %v11035_v6, %v11037_v1  ;;  %v10844_v40 = vunpack.c.l.bf16 %v10795_v44 }
 0x847   : > { %v11177_v57 = vmax.f32 %v11129_v41, 0.0  ;;  %v11130_v36 = vadd.f32 %v11022_v59, %v10887_v32  ;;  %v11034_v32 = vsel %vm19664_vm4, %v11031_v49, %v11033_v5 }
 0x848   : > { %v11175_v18 = vmax.f32 %v11127_v7, 0.0  ;;  %v11128_v10 = vadd.f32 %v11018_v11, %v10885_v63  ;;  %v11041_v7 = vrot.slane %v11922_v2, 1  ;;  %v11043_v63 = vrot.slane %v10843_v60, 1 }
 0x849   : > { %11225 = vst [vmem:[%s18910_s11 + $0x110] sm:$0xff] %v11177_v57  ;;  %v11178_v0 = vmax.f32 %v11130_v36, 0.0  ;;  %v11039_v57 = vrot.slane %v11921_v9, 1  ;;  %v11045_v46 = vrot.slane %v10844_v40, 1 }
 0x84a   : > { %11223 = vst [vmem:[%s18910_s11 + $0x100] sm:$0xff] %v11175_v18  ;;  %v11176_v29 = vmax.f32 %v11128_v10, 0.0  ;;  %v13664_v3 = vpop.f32.mrb[36].mxu1  ;;  %v11044_v20 = vsel %vm19665_vm2, %v11041_v7, %v11043_v63 }
 0x84b   : > { %11226 = vst [vmem:[%s18910_s11 + $0x118] sm:$0xff] %v11178_v0  ;;  %v10890_v56 = vadd.f32 %v13664_v3, %v18897_v22  ;;  %v10652_v48 = vpop.f32.mrb[37].mxu1  ;;  %v11040_v3 = vsel %vm19666_vm3, %v11037_v1, %v11039_v57  ;;  %v11046_v53 = vsel %vm19667_vm5, %v11043_v63, %v11045_v46  ;;  %v11042_v35 = vsel %vm19668_vm13, %v11039_v57, %v11041_v7 }
 0x84c   : > { %11224 = vst [vmem:[%s18910_s11 + $0x108] sm:$0xff] %v11176_v29  ;;  %v10888_v15 = vadd.f32 %v18897_v22, %v10652_v48  ;;  %v13665_v12 = vpop.f32.mrb[38].mxu1 }
 0x84d   : > { %v11133_v27 = vadd.f32 %v11028_v13, %v10890_v56  ;;  %v10891_v39 = vadd.f32 %v13665_v12, %v18897_v22  ;;  %v10655_v38 = vpop.f32.mrb[39].mxu1 }
 0x84e   : > { %v11131_v30 = vadd.f32 %v11024_v43, %v10888_v15  ;;  %v10889_v61 = vadd.f32 %v18897_v22, %v10655_v38 }
 0x84f   : > { %v11181_v52 = vmax.f32 %v11133_v27, 0.0  ;;  %v11134_v24 = vadd.f32 %v11030_v58, %v10891_v39 }
 0x850   : > { %v11179_v8 = vmax.f32 %v11131_v30, 0.0  ;;  %v11132_v50 = vadd.f32 %v11026_v28, %v10889_v61 }
 0x851   : > { %11229 = vst [vmem:[%s18910_s11 + $0x130] sm:$0xff] %v11181_v52  ;;  %v11182_v54 = vmax.f32 %v11134_v24, 0.0 }
 0x852   : > { %11227 = vst [vmem:[%s18910_s11 + $0x120] sm:$0xff] %v11179_v8  ;;  %v11180_v21 = vmax.f32 %v11132_v50, 0.0  ;;  %v13668_v47 = vpop.f32.mrb[40].mxu1 }
 0x853   : > { %11230 = vst [vmem:[%s18910_s11 + $0x138] sm:$0xff] %v11182_v54  ;;  %v10894_v62 = vadd.f32 %v13668_v47, %v18897_v22  ;;  %v10668_v42 = vpop.f32.mrb[41].mxu1 }
 0x854   : > { %11228 = vst [vmem:[%s18910_s11 + $0x128] sm:$0xff] %v11180_v21  ;;  %v10892_v23 = vadd.f32 %v18897_v22, %v10668_v42  ;;  %v13669_v37 = vpop.f32.mrb[42].mxu1 }
 0x855   : > { %v11137_v59 = vadd.f32 %v11036_v31, %v10894_v62  ;;  %v10895_v55 = vadd.f32 %v13669_v37, %v18897_v22  ;;  %v10671_v41 = vpop.f32.mrb[43].mxu1 }
 0x856   : > { %v11135_v51 = vadd.f32 %v11032_v14, %v10892_v23  ;;  %v10893_v11 = vadd.f32 %v18897_v22, %v10671_v41 }
 0x857   : > { %v11185_v25 = vmax.f32 %v11137_v59, 0.0  ;;  %v11138_v17 = vadd.f32 %v11038_v26, %v10895_v55 }
 0x858   : > { %v11183_v36 = vmax.f32 %v11135_v51, 0.0  ;;  %v11136_v4 = vadd.f32 %v11034_v32, %v10893_v11 }
 0x859   : > { %11233 = vst [vmem:[%s18910_s11 + $0x150] sm:$0xff] %v11185_v25  ;;  %v11186_v19 = vmax.f32 %v11138_v17, 0.0 }
 0x85a   : > { %11231 = vst [vmem:[%s18910_s11 + $0x140] sm:$0xff] %v11183_v36  ;;  %v11184_v18 = vmax.f32 %v11136_v4, 0.0  ;;  %v13672_v10 = vpop.f32.mrb[44].mxu1 }
 0x85b   : > { %11234 = vst [vmem:[%s18910_s11 + $0x158] sm:$0xff] %v11186_v19  ;;  %v10898_v0 = vadd.f32 %v13672_v10, %v18897_v22  ;;  %v10684_v29 = vpop.f32.mrb[45].mxu1 }
 0x85c   : > { %11232 = vst [vmem:[%s18910_s11 + $0x148] sm:$0xff] %v11184_v18  ;;  %v10896_v13 = vadd.f32 %v18897_v22, %v10684_v29  ;;  %v13673_v16 = vpop.f32.mrb[46].mxu1 }
 0x85d   : > { %v11141_v56 = vadd.f32 %v11044_v20, %v10898_v0  ;;  %v10899_v48 = vadd.f32 %v13673_v16, %v18897_v22  ;;  %v10687_v43 = vpop.f32.mrb[47].mxu1 }
 0x85e   : > { %v11139_v15 = vadd.f32 %v11040_v3, %v10896_v13  ;;  %v10897_v12 = vadd.f32 %v18897_v22, %v10687_v43 }
 0x85f   : > { %v11189_v58 = vmax.f32 %v11141_v56, 0.0  ;;  %v11142_v33 = vadd.f32 %v11046_v53, %v10899_v48 }
 0x860   : > { %v11187_v27 = vmax.f32 %v11139_v15, 0.0  ;;  %v11140_v39 = vadd.f32 %v11042_v35, %v10897_v12 }
 0x861   : > { %11237 = vst [vmem:[%s18910_s11 + $0x170] sm:$0xff] %v11189_v58  ;;  %v11190_v38 = vmax.f32 %v11142_v33, 0.0 }
 0x862   : > { %11235 = vst [vmem:[%s18910_s11 + $0x160] sm:$0xff] %v11187_v27  ;;  %v11188_v28 = vmax.f32 %v11140_v39, 0.0 }
 0x863   : > { %11238 = vst [vmem:[%s18910_s11 + $0x178] sm:$0xff] %v11190_v38 }
 0x864   : > { %11236 = vst [vmem:[%s18910_s11 + $0x168] sm:$0xff] %v11188_v28 }
 0x865 PF: > { %s15_s18 = sadd.s32 1, %s14852_s18  }
 0x866   : > { %p12_p4 = scmp.ge.s32.totalorder %s15_s18, 4  }
 0x868   :  { %14 = sbr.rel (!%p12_p4) target bundleno = 1 (0x1), region = 86 }

</bundles_post_ra>
